<compile_context>
chip_gen: v7x
topology: tpu7x:2x2x1
jax: 0.10.0
libtpu: 0.0.40
codegen_flags: <defaults>
</compile_context>

<pallas_src>
import jax
import jax.numpy as jnp
from jax import lax
from jax.experimental import pallas as pl
from jax.experimental.pallas import tpu as pltpu

BN_EPS = 1e-3


def _se_conv_bn_kernel(xse_ref, w1_ref, b1_ref, xmain_ref, w2t_ref,
                       gamma_ref, beta_ref, out_ref, acc_ref):
    k = pl.program_id(0)

    @pl.when(k == 0)
    def _():
        acc_ref[...] = jnp.zeros_like(acc_ref)

    # --- SE 1x1 conv slice (56 -> tk rows of 1344) + bias, channel-major ---
    # [tk,56] * [1,56] (broadcast) reduced over the 56 lanes -> [tk,1]
    se = jnp.sum(w1_ref[...] * xse_ref[...], axis=1, keepdims=True) + b1_ref[...]
    gate = jax.nn.sigmoid(se)                              # [tk, 1]  (EUP)

    # --- gate the main feature map slice (VPU) ---
    z = xmain_ref[...] * gate                              # [tk, 196]

    # --- partial 1x1 conv 1344->224 on MXU: contract dim 0 of both operands ---
    # w2t block: [tk, 224], z: [tk, 196]  ->  [224, 196]
    acc_ref[...] += lax.dot_general(
        w2t_ref[...], z,
        dimension_numbers=(((0,), (0,)), ((), ())),
        preferred_element_type=jnp.float32,
        precision=lax.Precision.HIGHEST)

    @pl.when(k == pl.num_programs(0) - 1)
    def _():
        # --- BatchNorm2d(224), training-mode: batch stats over N*H*W (lanes) ---
        y = acc_ref[...]                                   # [224, 196]
        mean = jnp.mean(y, axis=1, keepdims=True)
        var = jnp.mean((y - mean) * (y - mean), axis=1, keepdims=True)  # biased
        inv = lax.rsqrt(var + BN_EPS)
        out_ref[...] = ((y - mean) * inv * gamma_ref[...]
                        + beta_ref[...]).astype(out_ref.dtype)


def _pick_tk():
    """Generation-dependent K tile; must divide 1344 and be a multiple of 8."""
    try:
        kind = jax.devices()[0].device_kind.lower()
    except Exception:
        return 448
    if "v5" in kind:
        return 336   # 4 steps: deeper overlap on the slowest-HBM generation
    if "v6" in kind:
        return 448   # 3 steps
    if "v7" in kind or "7x" in kind:
        return 672   # 2 steps: per-step overhead rivals the ~0.9us DMA on v7x
    return 448


def se_conv_bn(x_se_nchw, x_main_nchw, w1, b1, w2t, gamma, beta, *, tk=None):
    """Forward of the SE + 1x1-conv + BN block.

    x_se_nchw:   [1, 56, 1, 1]      (NCHW, like torch)
    x_main_nchw: [1, 1344, 14, 14]
    w1:          [1344, 56, 1, 1]   conv2d91 weight (bias b1: [1344])
    w2t:         [1344, 224]        conv2d92 weight pre-staged as [C_mid, C_out]
                                    (transpose done once at parameter prep, not
                                     per forward call)
    gamma/beta:  [224]              BN affine params
    """
    N, C_in = x_se_nchw.shape[0], x_se_nchw.shape[1]
    _, C_mid, H, W = x_main_nchw.shape
    C_out = w2t.shape[1]
    HW = H * W
    assert N == 1, "kernel specialized for the module's batch=1 forward"

    if tk is None:
        tk = _pick_tk()
    assert C_mid % tk == 0 and tk % 8 == 0, "tk must divide C_mid and be 8-aligned"
    n_k = C_mid // tk

    # NCHW / param -> channel-major views (all free, contiguous reshapes)
    x_se_row = x_se_nchw.reshape(1, C_in)          # [1, 56]
    x_main_cm = x_main_nchw.reshape(C_mid, HW)     # [1344, 196]
    w1_cm = w1.reshape(C_mid, C_in)                # [1344, 56]   (as stored)
    b1_cm = b1.reshape(C_mid, 1)                   # [1344, 1]
    gamma_cm = gamma.reshape(C_out, 1)             # [224, 1]
    beta_cm = beta.reshape(C_out, 1)               # [224, 1]

    flops = (2 * C_out * C_mid * HW        # main matmul
             + 2 * C_mid * C_in            # SE mat-vec
             + C_mid * HW                  # gate multiply
             + 6 * C_out * HW)             # BN normalize
    bytes_accessed = 4 * (C_mid * HW + C_out * C_mid + C_mid * C_in
                          + C_out * HW + 2 * C_mid + 3 * C_out + C_in)

    grid_spec = pltpu.PrefetchScalarGridSpec(
        num_scalar_prefetch=0,
        grid=(n_k,),
        in_specs=[
            pl.BlockSpec((1, C_in), lambda k: (0, 0)),       # x_se   (resident)
            pl.BlockSpec((tk, C_in), lambda k: (k, 0)),      # w1     (streamed)
            pl.BlockSpec((tk, 1), lambda k: (k, 0)),         # b1     (streamed)
            pl.BlockSpec((tk, HW), lambda k: (k, 0)),        # x_main (streamed)
            pl.BlockSpec((tk, C_out), lambda k: (k, 0)),     # w2t    (streamed)
            pl.BlockSpec((C_out, 1), lambda k: (0, 0)),      # gamma  (resident)
            pl.BlockSpec((C_out, 1), lambda k: (0, 0)),      # beta   (resident)
        ],
        out_specs=pl.BlockSpec((C_out, HW), lambda k: (0, 0)),
        scratch_shapes=[pltpu.VMEM((C_out, HW), jnp.float32)],
    )

    out = pl.pallas_call(
        _se_conv_bn_kernel,
        out_shape=jax.ShapeDtypeStruct((C_out, HW), jnp.float32),
        grid_spec=grid_spec,
        cost_estimate=pl.CostEstimate(flops=flops,
                                      transcendentals=C_mid + C_out,
                                      bytes_accessed=bytes_accessed),
        compiler_params=pltpu.CompilerParams(
            dimension_semantics=("arbitrary",)),
    )(x_se_row, w1_cm, b1_cm, x_main_cm, w2t, gamma_cm, beta_cm)

    # [C_out, H*W] -> NCHW [1, C_out, H, W]: free contiguous reshape, no transpose.
    return out.reshape(N, C_out, H, W)


def _reference(x_se_nchw, x_main_nchw, w1, b1, w2, gamma, beta):
    """Pure-JAX f32 reference mirroring the PyTorch forward (training-mode BN)."""
    N, C_in, _, _ = x_se_nchw.shape
    _, C_mid, H, W = x_main_nchw.shape
    C_out = w2.shape[0]
    se = x_se_nchw.reshape(N, C_in) @ w1.reshape(C_mid, C_in).T + b1        # [1, 1344]
    gate = jax.nn.sigmoid(se).reshape(N, C_mid, 1, 1)
    z = gate * x_main_nchw                                                  # [1,1344,14,14]
    z_flat = jnp.transpose(z, (0, 2, 3, 1)).reshape(-1, C_mid)
    y = z_flat @ w2.reshape(C_out, C_mid).T                                 # [196, 224]
    mean = jnp.mean(y, axis=0)
    var = jnp.mean((y - mean) ** 2, axis=0)
    yn = (y - mean) / jnp.sqrt(var + BN_EPS) * gamma + beta
    return jnp.transpose(yn.reshape(N, H, W, C_out), (0, 3, 1, 2))


if __name__ == "__main__":
    key = jax.random.PRNGKey(0)
    k1, k2, k3, k4, k5, k6, k7 = jax.random.split(key, 7)

    # shapes implied by the module's forward
    x298 = jax.random.normal(k1, (1, 56, 1, 1), dtype=jnp.float32)      # SE squeezed input
    x295 = jax.random.normal(k2, (1, 1344, 14, 14), dtype=jnp.float32)  # main feature map

    # deterministic parameter init (conv2d91: 56->1344 w/ bias, conv2d92: 1344->224 no bias,
    # batchnorm affine params for 224 channels)
    w1 = 0.05 * jax.random.normal(k3, (1344, 56, 1, 1), dtype=jnp.float32)
    b1 = 0.05 * jax.random.normal(k4, (1344,), dtype=jnp.float32)
    w2 = 0.05 * jax.random.normal(k5, (224, 1344, 1, 1), dtype=jnp.float32)
    gamma = 1.0 + 0.1 * jax.random.normal(k6, (224,), dtype=jnp.float32)
    beta = 0.1 * jax.random.normal(k7, (224,), dtype=jnp.float32)

    # One-time parameter prep (hoisted out of the per-forward hot path):
    # conv2d92 weight staged as [C_mid=1344, C_out=224] so K blocks are (tk, 224).
    w2t = jnp.transpose(w2.reshape(224, 1344), (1, 0))
    w2t = jax.block_until_ready(w2t)

    out = se_conv_bn(x298, x295, w1, b1, w2t, gamma, beta)
    out = jax.block_until_ready(out)

    ref = _reference(x298, x295, w1, b1, w2, gamma, beta)
    assert out.shape == (1, 224, 14, 14)
    assert jnp.allclose(out, ref, atol=1e-3, rtol=1e-3), "mismatch vs JAX reference"

    # TODO(synk): BatchNorm running_mean/running_var momentum updates (training-time
    # buffer side effects) are not emitted; only the forward output is produced.
    print("KERNEL_OK")
</pallas_src>

<mosaic_0001>
module attributes {stable_mosaic.version = 11 : i64} {
  func.func @_se_conv_bn_kernel(%arg0: i32, %arg1: memref<1x56xf32, #tpu.memory_space<vmem>>, %arg2: memref<448x56xf32, #tpu.memory_space<vmem>>, %arg3: memref<448x1xf32, #tpu.memory_space<vmem>>, %arg4: memref<448x196xf32, #tpu.memory_space<vmem>>, %arg5: memref<448x224xf32, #tpu.memory_space<vmem>>, %arg6: memref<224x1xf32, #tpu.memory_space<vmem>>, %arg7: memref<224x1xf32, #tpu.memory_space<vmem>>, %arg8: memref<224x196xf32, #tpu.memory_space<vmem>>, %arg9: memref<224x196xf32, #tpu.memory_space<vmem>>) attributes {dimension_semantics = [#tpu.dimension_semantics<arbitrary>], iteration_bounds = array<i64: 3>, scalar_prefetch = 0 : i64, scratch_operands = 1 : i64, tpu.core_type = #tpu.core_type<tc>, window_params = [{pipeline_mode = #tpu.pipeline_mode<synchronous>, transform_indices = @transform_0, window_bounds = array<i64: 1, 56>}, {transform_indices = @transform_1, window_bounds = array<i64: 448, 56>}, {transform_indices = @transform_2, window_bounds = array<i64: 448, 1>}, {transform_indices = @transform_3, window_bounds = array<i64: 448, 196>}, {transform_indices = @transform_4, window_bounds = array<i64: 448, 224>}, {pipeline_mode = #tpu.pipeline_mode<synchronous>, transform_indices = @transform_5, window_bounds = array<i64: 224, 1>}, {pipeline_mode = #tpu.pipeline_mode<synchronous>, transform_indices = @transform_6, window_bounds = array<i64: 224, 1>}, {pipeline_mode = #tpu.pipeline_mode<synchronous>, transform_indices = @transform_7, window_bounds = array<i64: 224, 196>}]} {
    %c0_i32 = arith.constant 0 : i32
    %0 = arith.cmpi eq, %arg0, %c0_i32 : i32
    %1 = arith.extui %0 : i1 to i32
    %c0_i32_0 = arith.constant 0 : i32
    %2 = arith.cmpi ne, %1, %c0_i32_0 : i32
    scf.if %2 {
      %cst_17 = arith.constant 0.000000e+00 : f32
      %27 = vector.broadcast %cst_17 : f32 to vector<224x196xf32>
      %c0_18 = arith.constant 0 : index
      %c0_19 = arith.constant 0 : index
      %28 = vector.load %arg9[%c0_18, %c0_19] : memref<224x196xf32, #tpu.memory_space<vmem>>, vector<224x196xf32>
      tpu.vector_store %arg9[%c0_18, %c0_19], %27 {strides = array<i32>} : memref<224x196xf32, #tpu.memory_space<vmem>>, vector<224x196xf32>,
    } else {
    }
    %c0 = arith.constant 0 : index
    %c0_1 = arith.constant 0 : index
    %3 = vector.load %arg2[%c0, %c0_1] : memref<448x56xf32, #tpu.memory_space<vmem>>, vector<448x56xf32>
    %c0_2 = arith.constant 0 : index
    %c0_3 = arith.constant 0 : index
    %4 = vector.load %arg1[%c0_2, %c0_3] : memref<1x56xf32, #tpu.memory_space<vmem>>, vector<1x56xf32>
    %5 = vector.broadcast %4 : vector<1x56xf32> to vector<448x56xf32>
    %6 = arith.mulf %3, %5 : vector<448x56xf32>
    %cst = arith.constant dense<0.000000e+00> : vector<448xf32>
    %7 = vector.multi_reduction <add>, %6, %cst [1] : vector<448x56xf32> to vector<448xf32>
    %8 = vector.shape_cast %7 : vector<448xf32> to vector<448x1xf32>
    %c0_4 = arith.constant 0 : index
    %c0_5 = arith.constant 0 : index
    %9 = vector.load %arg3[%c0_4, %c0_5] : memref<448x1xf32, #tpu.memory_space<vmem>>, vector<448x1xf32>
    %10 = arith.addf %8, %9 : vector<448x1xf32>
    %11 = arith.negf %10 : vector<448x1xf32>
    %12 = math.exp %11 : vector<448x1xf32>
    %cst_6 = arith.constant 1.000000e+00 : f32
    %13 = vector.broadcast %cst_6 : f32 to vector<448x1xf32>
    %14 = arith.addf %13, %12 : vector<448x1xf32>
    %15 = arith.divf %13, %14 : vector<448x1xf32>
    %c0_7 = arith.constant 0 : index
    %c0_8 = arith.constant 0 : index
    %16 = vector.load %arg4[%c0_7, %c0_8] : memref<448x196xf32, #tpu.memory_space<vmem>>, vector<448x196xf32>
    %17 = vector.broadcast %15 : vector<448x1xf32> to vector<448x196xf32>
    %18 = arith.mulf %16, %17 : vector<448x196xf32>
    %c0_9 = arith.constant 0 : index
    %c0_10 = arith.constant 0 : index
    %19 = vector.load %arg9[%c0_9, %c0_10] : memref<224x196xf32, #tpu.memory_space<vmem>>, vector<224x196xf32>
    %c0_11 = arith.constant 0 : index
    %c0_12 = arith.constant 0 : index
    %20 = vector.load %arg5[%c0_11, %c0_12] : memref<448x224xf32, #tpu.memory_space<vmem>>, vector<448x224xf32>
    %cst_13 = arith.constant dense<0.000000e+00> : vector<224x196xf32>
    %21 = tpu.matmul %20, %18, %cst_13 {dimension_numbers = #tpu.dot_dimension_numbers<[0], [0], [1], [1], [0, 1, 1, 1], [], []>, precision = #tpu.contract_precision<fp32>} : vector<448x224xf32>, vector<448x196xf32>, vector<224x196xf32> -> vector<224x196xf32>
    %22 = arith.addf %19, %21 : vector<224x196xf32>
    %c0_14 = arith.constant 0 : index
    %c0_15 = arith.constant 0 : index
    %23 = vector.load %arg9[%c0_14, %c0_15] : memref<224x196xf32, #tpu.memory_space<vmem>>, vector<224x196xf32>
    tpu.vector_store %arg9[%c0_14, %c0_15], %22 {strides = array<i32>} : memref<224x196xf32, #tpu.memory_space<vmem>>, vector<224x196xf32>,
    %c2_i32 = arith.constant 2 : i32
    %24 = arith.cmpi eq, %arg0, %c2_i32 : i32
    %25 = arith.extui %24 : i1 to i32
    %c0_i32_16 = arith.constant 0 : i32
    %26 = arith.cmpi ne, %25, %c0_i32_16 : i32
    scf.if %26 {
      %c0_17 = arith.constant 0 : index
      %c0_18 = arith.constant 0 : index
      %27 = vector.load %arg9[%c0_17, %c0_18] : memref<224x196xf32, #tpu.memory_space<vmem>>, vector<224x196xf32>
      %cst_19 = arith.constant dense<0.000000e+00> : vector<224xf32>
      %28 = vector.multi_reduction <add>, %27, %cst_19 [1] : vector<224x196xf32> to vector<224xf32>
      %29 = vector.shape_cast %28 : vector<224xf32> to vector<224x1xf32>
      %cst_20 = arith.constant 1.960000e+02 : f32
      %30 = vector.broadcast %cst_20 : f32 to vector<224x1xf32>
      %31 = arith.divf %29, %30 : vector<224x1xf32>
      %32 = vector.broadcast %31 : vector<224x1xf32> to vector<224x196xf32>
      %33 = arith.subf %27, %32 : vector<224x196xf32>
      %34 = vector.broadcast %31 : vector<224x1xf32> to vector<224x196xf32>
      %35 = arith.subf %27, %34 : vector<224x196xf32>
      %36 = arith.mulf %33, %35 : vector<224x196xf32>
      %cst_21 = arith.constant dense<0.000000e+00> : vector<224xf32>
      %37 = vector.multi_reduction <add>, %36, %cst_21 [1] : vector<224x196xf32> to vector<224xf32>
      %38 = vector.shape_cast %37 : vector<224xf32> to vector<224x1xf32>
      %cst_22 = arith.constant 1.960000e+02 : f32
      %39 = vector.broadcast %cst_22 : f32 to vector<224x1xf32>
      %40 = arith.divf %38, %39 : vector<224x1xf32>
      %cst_23 = arith.constant 1.000000e-03 : f32
      %41 = vector.broadcast %cst_23 : f32 to vector<224x1xf32>
      %42 = arith.addf %40, %41 : vector<224x1xf32>
      %43 = math.rsqrt %42 : vector<224x1xf32>
      %44 = vector.broadcast %31 : vector<224x1xf32> to vector<224x196xf32>
      %45 = arith.subf %27, %44 : vector<224x196xf32>
      %46 = vector.broadcast %43 : vector<224x1xf32> to vector<224x196xf32>
      %47 = arith.mulf %45, %46 : vector<224x196xf32>
      %c0_24 = arith.constant 0 : index
      %c0_25 = arith.constant 0 : index
      %48 = vector.load %arg6[%c0_24, %c0_25] : memref<224x1xf32, #tpu.memory_space<vmem>>, vector<224x1xf32>
      %49 = vector.broadcast %48 : vector<224x1xf32> to vector<224x196xf32>
      %50 = arith.mulf %47, %49 : vector<224x196xf32>
      %c0_26 = arith.constant 0 : index
      %c0_27 = arith.constant 0 : index
      %51 = vector.load %arg7[%c0_26, %c0_27] : memref<224x1xf32, #tpu.memory_space<vmem>>, vector<224x1xf32>
      %52 = vector.broadcast %51 : vector<224x1xf32> to vector<224x196xf32>
      %53 = arith.addf %50, %52 : vector<224x196xf32>
      %c0_28 = arith.constant 0 : index
      %c0_29 = arith.constant 0 : index
      %54 = vector.load %arg8[%c0_28, %c0_29] : memref<224x196xf32, #tpu.memory_space<vmem>>, vector<224x196xf32>
      tpu.vector_store %arg8[%c0_28, %c0_29], %53 {strides = array<i32>} : memref<224x196xf32, #tpu.memory_space<vmem>>, vector<224x196xf32>,
    } else {
    }
    return
  }
  func.func @transform_0(%arg0: i32) -> (i32, i32) {
    %c0_i32 = arith.constant 0 : i32
    %c0_i32_0 = arith.constant 0 : i32
    %c0_i32_1 = arith.constant 0 : i32
    return %c0_i32, %c0_i32_0 : i32, i32
  }
  func.func @transform_1(%arg0: i32) -> (i32, i32) {
    %c0_i32 = arith.constant 0 : i32
    %c0_i32_0 = arith.constant 0 : i32
    return %arg0, %c0_i32 : i32, i32
  }
  func.func @transform_2(%arg0: i32) -> (i32, i32) {
    %c0_i32 = arith.constant 0 : i32
    %c0_i32_0 = arith.constant 0 : i32
    return %arg0, %c0_i32 : i32, i32
  }
  func.func @transform_3(%arg0: i32) -> (i32, i32) {
    %c0_i32 = arith.constant 0 : i32
    %c0_i32_0 = arith.constant 0 : i32
    return %arg0, %c0_i32 : i32, i32
  }
  func.func @transform_4(%arg0: i32) -> (i32, i32) {
    %c0_i32 = arith.constant 0 : i32
    %c0_i32_0 = arith.constant 0 : i32
    return %arg0, %c0_i32 : i32, i32
  }
  func.func @transform_5(%arg0: i32) -> (i32, i32) {
    %c0_i32 = arith.constant 0 : i32
    %c0_i32_0 = arith.constant 0 : i32
    %c0_i32_1 = arith.constant 0 : i32
    return %c0_i32, %c0_i32_0 : i32, i32
  }
  func.func @transform_6(%arg0: i32) -> (i32, i32) {
    %c0_i32 = arith.constant 0 : i32
    %c0_i32_0 = arith.constant 0 : i32
    %c0_i32_1 = arith.constant 0 : i32
    return %c0_i32, %c0_i32_0 : i32, i32
  }
  func.func @transform_7(%arg0: i32) -> (i32, i32) {
    %c0_i32 = arith.constant 0 : i32
    %c0_i32_0 = arith.constant 0 : i32
    %c0_i32_1 = arith.constant 0 : i32
    return %c0_i32, %c0_i32_0 : i32, i32
  }
}

</mosaic_0001>

<bundles_post_ra>
// kernel: tpu_custom_call.1
= control target key start
LH: loop header
LB: loop body
LE: loop exit
PB: predicated region body
PF: predicated region fallthrough
CT: control target
= control target key end

     0   :  { %s10810_s24 = smov 0   ;;  %s16905_s0 = inlined_call_operand.vmem [shape: f32[1,56], index: 0, kind: input, shape index: {}]   ;;  %s16906_s1 = inlined_call_operand.vmem [shape: f32[1344,56], index: 1, kind: input, shape index: {}]   ;;  %s16907_s2 = inlined_call_operand.vmem [shape: f32[1344,1], index: 2, kind: input, shape index: {}]   ;;  %s16908_s3 = inlined_call_operand.vmem [shape: f32[1344,196], index: 3, kind: input, shape index: {}]   ;;  %s16909_s4 = inlined_call_operand.vmem [shape: f32[1344,224], index: 4, kind: input, shape index: {}]   ;;  %s16910_s5 = inlined_call_operand.vmem [shape: f32[224,1], index: 5, kind: input, shape index: {}]   ;;  %s16911_s6 = inlined_call_operand.vmem [shape: f32[224,1], index: 6, kind: input, shape index: {}]   ;;  %s16912_s7 = inlined_call_operand.vmem [shape: f32[224,196], index: 7, kind: output, shape index: {}]  }
   0x1 LB: > { %s10816_s25 = sadd.s32 4294967295, %s10765_s24   ;;  %p9105_p0 = scmp.ge.s32.totalorder %s10765_s24, 1  ;;  %s10765_s24 = sphi %s10810_s24, %s17_s24  }
   0x2   : > { %p268_p1 = scmp.lt.s32.totalorder %s10765_s24, 4 }
   0x4   : > { %p269_p2 = pnand %p9105_p0, %p268_p1 }
   0x6   : > { %272 = sbr.rel (%p269_p2) target bundleno = 2016 (0x7e0), region = 48 }
   0xd   : > { %s312_s26 = smul.u32 56, %s10816_s25  ;;  %p9112_p4 = scmp.ne.s32.totalorder %s10816_s25, 0 }
   0xe   : > { %vm343_vm0 = vcmask (!%p9112_p4), 556032   ;;  %v10767_v0 = vmov (!%p9112_p4), 0.0  }
   0xf   : > { %p313_p3 = scmp.lt.s32.totalorder %s312_s26, 167  ;;  %341 = sbr.rel (%p9112_p4) target bundleno = 43 (0x2b), region = 52  ;;  %342 = vst [vmem:[#allocation2] sm:$0xff] (!%p9112_p4), %v10767_v0  ;;  %345 = vst [vmem:[#allocation2 + $0x10] sm:$0xff] (!%p9112_p4), %v10767_v0 }
  0x10   : > { %347 = vst [vmem:[#allocation2 + $0x20] sm:$0xff] (!%p9112_p4), %v10767_v0  ;;  %349 = vst [vmem:[#allocation2 + $0x30] sm:$0xff] (!%p9112_p4), %v10767_v0 }
  0x11   : > { %s19828_s26 = smov (!%p313_p3, %s312_s26), 167  ;;  %351 = vst [vmem:[#allocation2 + $0x40] sm:$0xff] (!%p9112_p4), %v10767_v0  ;;  %353 = vst [vmem:[#allocation2 + $0x50] sm:$0xff] (!%p9112_p4), %v10767_v0 }
  0x12   : > { %s9106_s27 = sshll.u32 %s19828_s26, 3  ;;  %s9173_s28 = sshll.u32 %s19828_s26, 4  ;;  %355 = vst [vmem:[#allocation2 + $0x60] sm:$0xff] (!%p9112_p4), %v10767_v0  ;;  %357 = vst [vmem:[#allocation2 + $0x70] sm:$0xff] (!%p9112_p4), %v10767_v0 }
  0x13   : > { %s10824_s8 = scalar_lea.vmem %s16906_s1, %s9106_s27  ;;  %s10829_s11 = scalar_lea.vmem %s16907_s2, %s9106_s27  ;;  %359 = vst [vmem:[#allocation2 + $0x80] sm:$0xff] (!%p9112_p4), %v10767_v0  ;;  %361 = vst [vmem:[#allocation2 + $0x90] sm:$0xff] (!%p9112_p4), %v10767_v0 }
  0x14   : > { %s10834_s14 = scalar_lea.vmem %s16908_s3, %s9173_s28  ;;  %s10839_s17 = scalar_lea.vmem %s16909_s4, %s9173_s28  ;;  %363 = vst [vmem:[#allocation2 + $0xa0] sm:$0xff] (!%p9112_p4), %v10767_v0  ;;  %365 = vst [vmem:[#allocation2 + $0xb0] sm:$0xff] (!%p9112_p4), %v10767_v0 }
  0x15   : > { %367 = vst [vmem:[#allocation2 + $0xc0] sm:$0xff] (!%p9112_p4), %v10767_v0  ;;  %369 = vst [vmem:[#allocation2 + $0xd0] sm:$0xff] (!%p9112_p4), %v10767_v0 }
  0x16   : > { %371 = vst [vmem:[#allocation2 + $0xe0] sm:$0xff] %v10767_v0  ;;  %373 = vst [vmem:[#allocation2 + $0xf0] sm:$0xff] %v10767_v0 }
  0x17   : > { %375 = vst [vmem:[#allocation2 + $0x100] sm:$0xff] %v10767_v0  ;;  %377 = vst [vmem:[#allocation2 + $0x110] sm:$0xff] %v10767_v0 }
  0x18   : > { %379 = vst [vmem:[#allocation2 + $0x120] sm:$0xff] %v10767_v0  ;;  %381 = vst [vmem:[#allocation2 + $0x130] sm:$0xff] %v10767_v0 }
  0x19   : > { %383 = vst [vmem:[#allocation2 + $0x140] sm:$0xff] %v10767_v0  ;;  %385 = vst [vmem:[#allocation2 + $0x150] sm:$0xff] %v10767_v0 }
  0x1a   : > { %387 = vst [vmem:[#allocation2 + $0x160] sm:$0xff] %v10767_v0  ;;  %389 = vst [vmem:[#allocation2 + $0x170] sm:$0xff] %v10767_v0 }
  0x1b   : > { %391 = vst [vmem:[#allocation2 + $0x180] sm:$0xff] %v10767_v0  ;;  %393 = vst [vmem:[#allocation2 + $0x190] sm:$0xff] %v10767_v0 }
  0x1c   : > { %395 = vst [vmem:[#allocation2 + $0x1a0] sm:$0xff] %v10767_v0  ;;  %397 = vst [vmem:[#allocation2 + $0x1b0] sm:$0xff] %v10767_v0 }
  0x1d   : > { %344 = vst.msk [vmem:[#allocation2 + $0x8] sm:$0xff] %vm343_vm0, %v10767_v0  ;;  %346 = vst.msk [vmem:[#allocation2 + $0x18] sm:$0xff] %vm343_vm0, %v10767_v0 }
  0x1e   : > { %348 = vst.msk [vmem:[#allocation2 + $0x28] sm:$0xff] %vm343_vm0, %v10767_v0  ;;  %350 = vst.msk [vmem:[#allocation2 + $0x38] sm:$0xff] %vm343_vm0, %v10767_v0 }
  0x1f   : > { %352 = vst.msk [vmem:[#allocation2 + $0x48] sm:$0xff] %vm343_vm0, %v10767_v0  ;;  %354 = vst.msk [vmem:[#allocation2 + $0x58] sm:$0xff] %vm343_vm0, %v10767_v0 }
  0x20   : > { %356 = vst.msk [vmem:[#allocation2 + $0x68] sm:$0xff] %vm343_vm0, %v10767_v0  ;;  %358 = vst.msk [vmem:[#allocation2 + $0x78] sm:$0xff] %vm343_vm0, %v10767_v0 }
  0x21   : > { %360 = vst.msk [vmem:[#allocation2 + $0x88] sm:$0xff] %vm343_vm0, %v10767_v0  ;;  %362 = vst.msk [vmem:[#allocation2 + $0x98] sm:$0xff] %vm343_vm0, %v10767_v0 }
  0x22   : > { %364 = vst.msk [vmem:[#allocation2 + $0xa8] sm:$0xff] %vm343_vm0, %v10767_v0  ;;  %366 = vst.msk [vmem:[#allocation2 + $0xb8] sm:$0xff] %vm343_vm0, %v10767_v0 }
  0x23   : > { %368 = vst.msk [vmem:[#allocation2 + $0xc8] sm:$0xff] %vm343_vm0, %v10767_v0  ;;  %370 = vst.msk [vmem:[#allocation2 + $0xd8] sm:$0xff] %vm343_vm0, %v10767_v0 }
  0x24   : > { %372 = vst.msk [vmem:[#allocation2 + $0xe8] sm:$0xff] %vm343_vm0, %v10767_v0  ;;  %374 = vst.msk [vmem:[#allocation2 + $0xf8] sm:$0xff] %vm343_vm0, %v10767_v0 }
  0x25   : > { %376 = vst.msk [vmem:[#allocation2 + $0x108] sm:$0xff] %vm343_vm0, %v10767_v0  ;;  %378 = vst.msk [vmem:[#allocation2 + $0x118] sm:$0xff] %vm343_vm0, %v10767_v0 }
  0x26   : > { %380 = vst.msk [vmem:[#allocation2 + $0x128] sm:$0xff] %vm343_vm0, %v10767_v0  ;;  %382 = vst.msk [vmem:[#allocation2 + $0x138] sm:$0xff] %vm343_vm0, %v10767_v0 }
  0x27   : > { %384 = vst.msk [vmem:[#allocation2 + $0x148] sm:$0xff] %vm343_vm0, %v10767_v0  ;;  %386 = vst.msk [vmem:[#allocation2 + $0x158] sm:$0xff] %vm343_vm0, %v10767_v0 }
  0x28   : > { %388 = vst.msk [vmem:[#allocation2 + $0x168] sm:$0xff] %vm343_vm0, %v10767_v0  ;;  %390 = vst.msk [vmem:[#allocation2 + $0x178] sm:$0xff] %vm343_vm0, %v10767_v0 }
  0x29   : > { %392 = vst.msk [vmem:[#allocation2 + $0x188] sm:$0xff] %vm343_vm0, %v10767_v0  ;;  %394 = vst.msk [vmem:[#allocation2 + $0x198] sm:$0xff] %vm343_vm0, %v10767_v0 }
  0x2a   : > { %396 = vst.msk [vmem:[#allocation2 + $0x1a8] sm:$0xff] %vm343_vm0, %v10767_v0  ;;  %398 = vst.msk [vmem:[#allocation2 + $0x1b8] sm:$0xff] %vm343_vm0, %v10767_v0 }
  0x2b PF: > { %v401_v1 = vld [vmem:[%s10824_s8 + $0x10] sm:$0xff]  ;;  %v10874_v2 = vld [vmem:[%s16905_s0] ss:$0 sm:$0xff]  ;;  %vm518_vm1 = vcmask 457728   ;;  %v402_v6 = vld [vmem:[%s10824_s8 + $0x18] sm:$0xff]  ;;  %vm2063_vm2 = vcmask 523264  }
  0x2c   : > { %v399_v3 = vld [vmem:[%s10824_s8] sm:$0xff]  ;;  %v464_v4 = vmul.f32 %v10874_v2, %v401_v1  ;;  %v400_v7 = vld [vmem:[%s10824_s8 + $0x8] sm:$0xff]  ;;  %v465_v8 = vmul.f32 %v10874_v2, %v402_v6  ;;  %v406_v18 = vld [vmem:[%s10824_s8 + $0x38] sm:$0xff]  ;;  %vm7913_vm3 = vcmask 556032   ;;  %p9170_p5 = scmp.ne.s32.totalorder %s10816_s25, 2 }
  0x2d   : > { %v462_v5 = vmul.f32 %v10874_v2, %v399_v3  ;;  %v463_v9 = vmul.f32 %v10874_v2, %v400_v7  ;;  %v404_v10 = vld [vmem:[%s10824_s8 + $0x28] sm:$0xff]  ;;  %v403_v11 = vld [vmem:[%s10824_s8 + $0x20] sm:$0xff]  ;;  %v405_v19 = vld [vmem:[%s10824_s8 + $0x30] sm:$0xff]  ;;  %v469_v22 = vmul.f32 %v10874_v2, %v406_v18 }
  0x2e   : > { %v525_v12 = vsel %vm518_vm1, %v464_v4, 0.0  ;;  %v528_v14 = vsel %vm518_vm1, %v465_v8, 0.0  ;;  %v467_v16 = vmul.f32 %v10874_v2, %v404_v10  ;;  %v466_v17 = vmul.f32 %v10874_v2, %v403_v11  ;;  %v408_v20 = vld [vmem:[%s10824_s8 + $0x48] sm:$0xff]  ;;  %v410_v26 = vld [vmem:[%s10824_s8 + $0x58] sm:$0xff]  ;;  %v407_v27 = vld [vmem:[%s10824_s8 + $0x40] sm:$0xff] }
  0x2f   : > { %v519_v13 = vsel %vm518_vm1, %v462_v5, 0.0  ;;  %526 = vadd.xlane.f32.xlu1 %v525_v12  ;;  %v522_v15 = vsel %vm518_vm1, %v463_v9, 0.0  ;;  %v432_v24 = vld [vmem:[%s10824_s8 + $0x108] sm:$0xff]  ;;  %v468_v25 = vmul.f32 %v10874_v2, %v405_v19  ;;  %v471_v28 = vmul.f32 %v10874_v2, %v408_v20  ;;  %v434_v29 = vld [vmem:[%s10824_s8 + $0x118] sm:$0xff]  ;;  %v431_v30 = vld [vmem:[%s10824_s8 + $0x100] sm:$0xff] }
  0x30   : > { %520 = vadd.xlane.f32.xlu0 %v519_v13  ;;  %v534_v21 = vsel %vm518_vm1, %v467_v16, 0.0  ;;  %v531_v23 = vsel %vm518_vm1, %v466_v17, 0.0  ;;  %v420_v31 = vld [vmem:[%s10824_s8 + $0xa8] sm:$0xff]  ;;  %v495_v32 = vmul.f32 %v10874_v2, %v432_v24  ;;  %v540_v34 = vsel %vm518_vm1, %v469_v22, 0.0  ;;  %v409_v39 = vld [vmem:[%s10824_s8 + $0x50] sm:$0xff]  ;;  %v422_v43 = vld [vmem:[%s10824_s8 + $0xb8] sm:$0xff] }
  0x31   : > { %v444_v33 = vld [vmem:[%s10824_s8 + $0x168] sm:$0xff]  ;;  %v473_v35 = vmul.f32 %v10874_v2, %v410_v26  ;;  %v537_v36 = vsel %vm518_vm1, %v468_v25, 0.0  ;;  %v470_v38 = vmul.f32 %v10874_v2, %v407_v27  ;;  %v497_v40 = vmul.f32 %v10874_v2, %v434_v29  ;;  %v446_v46 = vld [vmem:[%s10824_s8 + $0x178] sm:$0xff]  ;;  %v433_v51 = vld [vmem:[%s10824_s8 + $0x110] sm:$0xff] }
  0x32   : > { %v412_v37 = vld [vmem:[%s10824_s8 + $0x68] sm:$0xff]  ;;  %v494_v41 = vmul.f32 %v10874_v2, %v431_v30  ;;  %v483_v42 = vmul.f32 %v10874_v2, %v420_v31  ;;  %v546_v44 = vsel %vm518_vm1, %v471_v28, 0.0  ;;  %v507_v45 = vmul.f32 %v10874_v2, %v444_v33  ;;  %v419_v53 = vld [vmem:[%s10824_s8 + $0xa0] sm:$0xff]  ;;  %v426_v0 = vld [vmem:[%s10824_s8 + $0xd8] sm:$0xff] }
  0x33   : > { %529 = vadd.xlane.f32.xlu1 %v528_v14  ;;  %v424_v47 = vld [vmem:[%s10824_s8 + $0xc8] sm:$0xff]  ;;  %v618_v48 = vsel %vm518_vm1, %v495_v32, 0.0  ;;  %v10923_v49 = vmul.f32 %v10874_v2, %v412_v37  ;;  %v472_v50 = vmul.f32 %v10874_v2, %v409_v39  ;;  %v10933_v55 = vsel %vm518_vm1, %v473_v35, 0.0  ;;  %v443_v59 = vld [vmem:[%s10824_s8 + $0x160] sm:$0xff]  ;;  %v421_v1 = vld [vmem:[%s10824_s8 + $0xb0] sm:$0xff] }
  0x34   : > { %523 = vadd.xlane.f32.xlu0 %v522_v15  ;;  %v10928_v52 = vsel %vm518_vm1, %v483_v42, 0.0  ;;  %v448_v54 = vld [vmem:[%s10824_s8 + $0x188] sm:$0xff]  ;;  %v543_v56 = vsel %vm518_vm1, %v470_v38, 0.0  ;;  %v10937_v57 = vsel %vm518_vm1, %v507_v45, 0.0  ;;  %v485_v58 = vmul.f32 %v10874_v2, %v422_v43  ;;  %v450_v7 = vld [vmem:[%s10824_s8 + $0x198] sm:$0xff]  ;;  %v445_v8 = vld [vmem:[%s10824_s8 + $0x170] sm:$0xff] }
  0x35   : > { %v10942_v60 = vsel %vm518_vm1, %v497_v40, 0.0  ;;  %v615_v61 = vsel %vm518_vm1, %v494_v41, 0.0  ;;  %v509_v62 = vmul.f32 %v10874_v2, %v446_v46  ;;  %v487_v63 = vmul.f32 %v10874_v2, %v424_v47  ;;  %v428_v9 = vld [vmem:[%s10824_s8 + $0xe8] sm:$0xff]  ;;  %v423_v14 = vld [vmem:[%s10824_s8 + $0xc0] sm:$0xff]  ;;  %v430_v25 = vld [vmem:[%s10824_s8 + $0xf8] sm:$0xff] }
  0x36   : > { %v496_v3 = vmul.f32 %v10874_v2, %v433_v51  ;;  %v10951_v4 = vsel %vm518_vm1, %v485_v58, 0.0  ;;  %v482_v5 = vmul.f32 %v10874_v2, %v419_v53  ;;  %v511_v6 = vmul.f32 %v10874_v2, %v448_v54  ;;  %v452_v15 = vld [vmem:[%s10824_s8 + $0x1a8] sm:$0xff]  ;;  %v447_v20 = vld [vmem:[%s10824_s8 + $0x180] sm:$0xff]  ;;  %v425_v26 = vld [vmem:[%s10824_s8 + $0xd0] sm:$0xff] }
  0x37   : > { %535 = vadd.xlane.f32.xlu1 %v534_v21  ;;  %v549_v10 = vsel %vm518_vm1, %v472_v50, 0.0  ;;  %v10960_v11 = vsel %vm518_vm1, %v509_v62, 0.0  ;;  %v10963_v12 = vsel %vm518_vm1, %v487_v63, 0.0  ;;  %v506_v13 = vmul.f32 %v10874_v2, %v443_v59  ;;  %v454_v31 = vld [vmem:[%s10824_s8 + $0x1b8] sm:$0xff]  ;;  %v449_v32 = vld [vmem:[%s10824_s8 + $0x190] sm:$0xff]  ;;  %v427_v33 = vld [vmem:[%s10824_s8 + $0xe0] sm:$0xff] }
  0x38   : > { %532 = vadd.xlane.f32.xlu0 %v531_v23  ;;  %v10969_v16 = vsel %vm518_vm1, %v482_v5, 0.0  ;;  %v10972_v17 = vsel %vm518_vm1, %v511_v6, 0.0  ;;  %v489_v18 = vmul.f32 %v10874_v2, %v426_v0  ;;  %v484_v19 = vmul.f32 %v10874_v2, %v421_v1  ;;  %v451_v38 = vld [vmem:[%s10824_s8 + $0x1a0] sm:$0xff]  ;;  %v429_v39 = vld [vmem:[%s10824_s8 + $0xf0] sm:$0xff]  ;;  %v436_v5 = vld [vmem:[%s10824_s8 + $0x128] sm:$0xff] }
  0x39   : > { %v10978_v21 = vsel %vm518_vm1, %v506_v13, 0.0  ;;  %v513_v22 = vmul.f32 %v10874_v2, %v450_v7  ;;  %v508_v23 = vmul.f32 %v10874_v2, %v445_v8  ;;  %v491_v24 = vmul.f32 %v10874_v2, %v428_v9  ;;  %v411_v45 = vld [vmem:[%s10824_s8 + $0x60] sm:$0xff]  ;;  %v414_v13 = vld [vmem:[%s10824_s8 + $0x78] sm:$0xff] }
  0x3a   : > { %v10986_v27 = vsel %vm518_vm1, %v489_v18, 0.0  ;;  %v10989_v28 = vsel %vm518_vm1, %v484_v19, 0.0  ;;  %v486_v29 = vmul.f32 %v10874_v2, %v423_v14  ;;  %v515_v30 = vmul.f32 %v10874_v2, %v452_v15  ;;  %v435_v6 = vld [vmem:[%s10824_s8 + $0x120] sm:$0xff]  ;;  %v413_v14 = vld [vmem:[%s10824_s8 + $0x70] sm:$0xff]  ;;  %v438_v19 = vld [vmem:[%s10824_s8 + $0x138] sm:$0xff] }
  0x3b   : > { %541 = vadd.xlane.f32.xlu1 %v540_v34  ;;  %v10997_v34 = vsel %vm518_vm1, %v513_v22, 0.0  ;;  %v11000_v35 = vsel %vm518_vm1, %v508_v23, 0.0  ;;  %v510_v37 = vmul.f32 %v10874_v2, %v447_v20  ;;  %v493_v42 = vmul.f32 %v10874_v2, %v430_v25  ;;  %v437_v20 = vld [vmem:[%s10824_s8 + $0x130] sm:$0xff] }
  0x3c   : > { %538 = vadd.xlane.f32.xlu0 %v537_v36  ;;  %v11003_v36 = vsel %vm518_vm1, %v491_v24, 0.0  ;;  %v11009_v40 = vsel %vm518_vm1, %v486_v29, 0.0  ;;  %v11012_v41 = vsel %vm518_vm1, %v515_v30, 0.0  ;;  %v488_v43 = vmul.f32 %v10874_v2, %v425_v26  ;;  %v416_v24 = vld [vmem:[%s10824_s8 + $0x88] sm:$0xff]  ;;  %v415_v29 = vld [vmem:[%s10824_s8 + $0x80] sm:$0xff] }
  0x3d   : > { %v11019_v46 = vsel %vm518_vm1, %v510_v37, 0.0  ;;  %v517_v47 = vmul.f32 %v10874_v2, %v454_v31  ;;  %v490_v50 = vmul.f32 %v10874_v2, %v427_v33  ;;  %v11025_v51 = vsel %vm518_vm1, %v493_v42, 0.0  ;;  %v440_v37 = vld [vmem:[%s10824_s8 + $0x148] sm:$0xff] }
  0x3e   : > { %v11028_v53 = vsel %vm518_vm1, %v488_v43, 0.0  ;;  %v514_v54 = vmul.f32 %v10874_v2, %v451_v38  ;;  %v621_v63 = vsel %vm518_vm1, %v496_v3, 0.0  ;;  %v474_v0 = vmul.f32 %v10874_v2, %v411_v45  ;;  %v439_v38 = vld [vmem:[%s10824_s8 + $0x140] sm:$0xff] }
  0x3f   : > { %547 = vadd.xlane.f32.xlu1 %v546_v44  ;;  %v453_v44 = vld [vmem:[%s10824_s8 + $0x1b0] sm:$0xff]  ;;  %v11034_v58 = vsel %vm518_vm1, %v517_v47, 0.0  ;;  %v558_v3 = vsel %vm518_vm1, %v10923_v49, 0.0  ;;  %v499_v8 = vmul.f32 %v10874_v2, %v436_v5  ;;  %v476_v49 = vmul.f32 %v10874_v2, %v413_v14  ;;  %v418_v47 = vld [vmem:[%s10824_s8 + $0x98] sm:$0xff] }
  0x40   : > { %544 = vadd.xlane.f32.xlu0 %v543_v56  ;;  %v492_v56 = vmul.f32 %v10874_v2, %v429_v39  ;;  %v516_v62 = vmul.f32 %v10874_v2, %v453_v44  ;;  %v555_v9 = vsel %vm518_vm1, %v474_v0, 0.0  ;;  %v501_v23 = vmul.f32 %v10874_v2, %v438_v19  ;;  %v441_v0 = vld [vmem:[%s10824_s8 + $0x150] sm:$0xff] }
  0x41   : > { %v630_v15 = vsel %vm518_vm1, %v499_v8, 0.0  ;;  %v561_v25 = vsel %vm518_vm1, %v476_v49, 0.0  ;;  %v500_v26 = vmul.f32 %v10874_v2, %v437_v20  ;;  %v479_v30 = vmul.f32 %v10874_v2, %v416_v24 }
  0x42   : > { %v11049_v1 = vsel %vm518_vm1, %v492_v56, 0.0  ;;  %v11054_v7 = vsel %vm518_vm1, %v516_v62, 0.0  ;;  %v636_v31 = vsel %vm518_vm1, %v501_v23, 0.0  ;;  %v478_v33 = vmul.f32 %v10874_v2, %v415_v29  ;;  %v695_v23 = vld [vmem:[%s10829_s11 + $0x40] sm:$0xff] }
  0x43   : > { %619 = vadd.xlane.f32.xlu1 %v618_v48  ;;  %v512_v48 = vmul.f32 %v10874_v2, %v449_v32  ;;  %v633_v32 = vsel %vm518_vm1, %v500_v26, 0.0  ;;  %v10768_v39 = vmov 0   ;;  %v570_v42 = vsel %vm518_vm1, %v479_v30, 0.0  ;;  %v720_v30 = vld [vmem:[%s10829_s11 + $0x108] sm:$0xff] }
  0x44   : > { %616 = vadd.xlane.f32.xlu0 %v615_v61  ;;  %v11040_v61 = vsel %vm518_vm1, %v490_v50, 0.0  ;;  %10476 = vset.pattern.permute.xlu1 %v10768_v39  ;;  %v503_v43 = vmul.f32 %v10874_v2, %v440_v37  ;;  %v567_v44 = vsel %vm518_vm1, %v478_v33, 0.0  ;;  %v502_v45 = vmul.f32 %v10874_v2, %v439_v38 }
  0x45   : > { %v11037_v59 = vsel %vm518_vm1, %v512_v48, 0.0  ;;  %10475 = vset.pattern.permute.xlu0 %v10768_v39  ;;  %v417_v48 = vld [vmem:[%s10824_s8 + $0x90] sm:$0xff]  ;;  %v504_v8 = vmul.f32 %v10874_v2, %v441_v0 }
  0x46   : > { %v642_v50 = vsel %vm518_vm1, %v503_v43, 0.0  ;;  %v639_v56 = vsel %vm518_vm1, %v502_v45, 0.0  ;;  %v480_v62 = vmul.f32 %v10874_v2, %v417_v48  ;;  %v719_v48 = vld [vmem:[%s10829_s11 + $0x100] sm:$0xff] }
  0x47   : > { %553 = vadd.xlane.f32.xlu1 %v10933_v55  ;;  %v11046_v55 = vsel %vm518_vm1, %v514_v54, 0.0  ;;  %v481_v54 = vmul.f32 %v10874_v2, %v418_v47  ;;  %v698_v47 = vld [vmem:[%s10829_s11 + $0x58] sm:$0xff] }
  0x48   : > { %550 = vadd.xlane.f32.xlu0 %v549_v10  ;;  %v498_v10 = vmul.f32 %v10874_v2, %v435_v6 }
  0x49   : > { %v576_v5 = vsel %vm518_vm1, %v481_v54, 0.0 }
  0x4a   : > { %v627_v18 = vsel %vm518_vm1, %v498_v10, 0.0  ;;  %v645_v10 = vsel %vm518_vm1, %v504_v8, 0.0  ;;  %v722_v8 = vld [vmem:[%s10829_s11 + $0x118] sm:$0xff] }
  0x4b   : > { %625 = vadd.xlane.f32.xlu1 %v10942_v60  ;;  %v477_v60 = vmul.f32 %v10874_v2, %v414_v13  ;;  %v693_v13 = vld [vmem:[%s10829_s11 + $0x30] sm:$0xff] }
  0x4c   : > { %622 = vadd.xlane.f32.xlu0 %v621_v63  ;;  %v442_v63 = vld [vmem:[%s10824_s8 + $0x158] sm:$0xff] }
  0x4d   : > { %v564_v22 = vsel %vm518_vm1, %v477_v60, 0.0  ;;  %v505_v6 = vmul.f32 %v10874_v2, %v442_v63  ;;  %v689_v2 = vld [vmem:[%s10829_s11 + $0x10] sm:$0xff] }
  0x4f   : > { %559 = vadd.xlane.f32.xlu1 %v558_v3  ;;  %v573_v3 = vsel %vm518_vm1, %v480_v62, 0.0 }
  0x50   : > { %556 = vadd.xlane.f32.xlu0 %v555_v9  ;;  %v648_v9 = vsel %vm518_vm1, %v505_v6, 0.0 }
  0x53   : > { %631 = vadd.xlane.f32.xlu1 %v630_v15 }
  0x54   : > { %628 = vadd.xlane.f32.xlu0 %v627_v18  ;;  %v696_v18 = vld [vmem:[%s10829_s11 + $0x48] sm:$0xff] }
  0x57   : > { %565 = vadd.xlane.f32.xlu1 %v564_v22 }
  0x58   : > { %562 = vadd.xlane.f32.xlu0 %v561_v25 }
  0x5b   : > { %637 = vadd.xlane.f32.xlu1 %v636_v31 }
  0x5c   : > { %634 = vadd.xlane.f32.xlu0 %v633_v32 }
  0x5f   : > { %571 = vadd.xlane.f32.xlu1 %v570_v42 }
  0x60   : > { %568 = vadd.xlane.f32.xlu0 %v567_v44 }
  0x63   : > { %643 = vadd.xlane.f32.xlu1 %v642_v50 }
  0x64   : > { %640 = vadd.xlane.f32.xlu0 %v639_v56 }
  0x67   : > { %577 = vadd.xlane.f32.xlu1 %v576_v5 }
  0x68   : > { %574 = vadd.xlane.f32.xlu0 %v573_v3 }
  0x6b   : > { %649 = vadd.xlane.f32.xlu1 %v648_v9 }
  0x6c   : > { %646 = vadd.xlane.f32.xlu0 %v645_v10 }
  0x6f   : > { %583 = vadd.xlane.f32.xlu1 %v10928_v52  ;;  %v687_v52 = vld [vmem:[%s10829_s11] sm:$0xff] }
  0x70   : > { %580 = vadd.xlane.f32.xlu0 %v10969_v16  ;;  %v690_v16 = vld [vmem:[%s10829_s11 + $0x18] sm:$0xff] }
  0x73   : > { %655 = vadd.xlane.f32.xlu1 %v10937_v57 }
  0x74   : > { %652 = vadd.xlane.f32.xlu0 %v10978_v21 }
  0x77   : > { %589 = vadd.xlane.f32.xlu1 %v10951_v4 }
  0x78   : > { %586 = vadd.xlane.f32.xlu0 %v10989_v28 }
  0x7b   : > { %661 = vadd.xlane.f32.xlu1 %v10960_v11 }
  0x7c   : > { %658 = vadd.xlane.f32.xlu0 %v11000_v35 }
  0x7f   : > { %595 = vadd.xlane.f32.xlu1 %v10963_v12 }
  0x80   : > { %592 = vadd.xlane.f32.xlu0 %v11009_v40  ;;  %v692_v40 = vld [vmem:[%s10829_s11 + $0x28] sm:$0xff] }
  0x83   : > { %667 = vadd.xlane.f32.xlu1 %v10972_v17  ;;  %v688_v17 = vld [vmem:[%s10829_s11 + $0x8] sm:$0xff] }
  0x84   : > { %664 = vadd.xlane.f32.xlu0 %v11019_v46 }
  0x87   : > { %601 = vadd.xlane.f32.xlu1 %v10986_v27 }
  0x88   : > { %598 = vadd.xlane.f32.xlu0 %v11028_v53 }
  0x8b   : > { %673 = vadd.xlane.f32.xlu1 %v10997_v34 }
  0x8c   : > { %670 = vadd.xlane.f32.xlu0 %v11037_v59 }
  0x8f   : > { %607 = vadd.xlane.f32.xlu1 %v11003_v36 }
  0x90   : > { %604 = vadd.xlane.f32.xlu0 %v11040_v61 }
  0x93   : > { %679 = vadd.xlane.f32.xlu1 %v11012_v41  ;;  %v691_v41 = vld [vmem:[%s10829_s11 + $0x20] sm:$0xff] }
  0x94   : > { %676 = vadd.xlane.f32.xlu0 %v11046_v55  ;;  %v694_v55 = vld [vmem:[%s10829_s11 + $0x38] sm:$0xff] }
  0x97   : > { %613 = vadd.xlane.f32.xlu1 %v11025_v51 }
  0x98   : > { %610 = vadd.xlane.f32.xlu0 %v11049_v1 }
  0x9b   : > { %685 = vadd.xlane.f32.xlu1 %v11034_v58 }
  0x9c   : > { %682 = vadd.xlane.f32.xlu0 %v11054_v7 }
  0xbc   : > { %v527_v57 = vpop.xlane.xlu1 %526 }
  0xbd   : > { %v521_v4 = vpop.xlane.xlu0 %520  ;;  %v745_v11 = vadd.f32 %v689_v2, %v527_v57 }
  0xbe   : > { %v743_v12 = vadd.f32 %v687_v52, %v521_v4  ;;  %v697_v4 = vld [vmem:[%s10829_s11 + $0x50] sm:$0xff] }
  0xbf   : > { %v9116_v21 = vmul.f32 -1.442695, %v745_v11 }
  0xc0   : > { %v9114_v27 = vmul.f32 -1.442695, %v743_v12  ;;  %v530_v28 = vpop.xlane.xlu1 %529 }
  0xc1   : > { %v524_v34 = vpop.xlane.xlu0 %523  ;;  %v746_v35 = vadd.f32 %v690_v16, %v530_v28 }
  0xc2   : > { %v744_v36 = vadd.f32 %v688_v17, %v524_v34  ;;  %10477 = vpow2.f32 %v9114_v27 }
  0xc3   : > { %10479 = vpow2.f32 %v9116_v21  ;;  %v9117_v46 = vmul.f32 -1.442695, %v746_v35  ;;  %v700_v21 = vld [vmem:[%s10829_s11 + $0x68] sm:$0xff] }
  0xc4   : > { %v9115_v51 = vmul.f32 -1.442695, %v744_v36  ;;  %v536_v53 = vpop.xlane.xlu1 %535 }
  0xc5   : > { %v533_v58 = vpop.xlane.xlu0 %532  ;;  %v748_v59 = vadd.f32 %v692_v40, %v536_v53 }
  0xc6   : > { %v747_v61 = vadd.f32 %v691_v41, %v533_v58  ;;  %10481 = vpow2.f32 %v9115_v51 }
  0xc7   : > { %10483 = vpow2.f32 %v9117_v46  ;;  %v9119_v1 = vmul.f32 -1.442695, %v748_v59  ;;  %v721_v46 = vld [vmem:[%s10829_s11 + $0x110] sm:$0xff] }
  0xc8   : > { %v9118_v7 = vmul.f32 -1.442695, %v747_v61  ;;  %v542_v14 = vpop.xlane.xlu1 %541  ;;  %v724_v61 = vld [vmem:[%s10829_s11 + $0x128] sm:$0xff] }
  0xc9   : > { %v539_v15 = vpop.xlane.xlu0 %538  ;;  %v750_v60 = vadd.f32 %v694_v55, %v542_v14  ;;  %10485 = vpow2.f32 %v9119_v1  ;;  %v699_v14 = vld [vmem:[%s10829_s11 + $0x60] sm:$0xff] }
  0xca   : > { %v749_v49 = vadd.f32 %v693_v13, %v539_v15  ;;  %10487 = vpow2.f32 %v9118_v7 }
  0xcb   : > { %v9121_v19 = vmul.f32 -1.442695, %v750_v60 }
  0xcc   : > { %v10478_v20 = vpop.eup %10477  ;;  %v548_v22 = vpop.xlane.xlu1 %547  ;;  %v9120_v31 = vmul.f32 -1.442695, %v749_v49  ;;  %v723_v49 = vld [vmem:[%s10829_s11 + $0x120] sm:$0xff] }
  0xcd   : > { %v545_v24 = vpop.xlane.xlu0 %544  ;;  %v10480_v25 = vpop.eup %10479  ;;  %v967_v26 = vadd.f32 1.0, %v10478_v20  ;;  %v752_v29 = vadd.f32 %v696_v18, %v548_v22  ;;  %10489 = vpow2.f32 %v9121_v19 }
  0xce   : > { %v751_v33 = vadd.f32 %v695_v23, %v545_v24  ;;  %v969_v38 = vadd.f32 1.0, %v10480_v25  ;;  %v702_v24 = vld [vmem:[%s10829_s11 + $0x78] sm:$0xff] }
  0xcf   : > { %10491 = vrcp.f32 %v967_v26  ;;  %v9123_v32 = vmul.f32 -1.442695, %v752_v29 }
  0xd0   : > { %v10482_v37 = vpop.eup %10481  ;;  %v620_v39 = vpop.xlane.xlu1 %619  ;;  %v9122_v54 = vmul.f32 -1.442695, %v751_v33 }
  0xd1   : > { %v617_v42 = vpop.xlane.xlu0 %616  ;;  %v10484_v43 = vpop.eup %10483  ;;  %v968_v44 = vadd.f32 1.0, %v10482_v37  ;;  %10493 = vpow2.f32 %v9123_v32  ;;  %v776_v45 = vadd.f32 %v720_v30, %v620_v39 }
  0xd2   : > { %10495 = vpow2.f32 %v9120_v31  ;;  %v970_v62 = vadd.f32 1.0, %v10484_v43  ;;  %v775_v3 = vadd.f32 %v719_v48, %v617_v42  ;;  %v701_v43 = vld [vmem:[%s10829_s11 + $0x70] sm:$0xff] }
  0xd3   : > { %10497 = vrcp.f32 %v968_v44  ;;  %v9147_v50 = vmul.f32 -1.442695, %v776_v45  ;;  %v10486_v56 = vpop.eup %10485  ;;  %v726_v45 = vld [vmem:[%s10829_s11 + $0x138] sm:$0xff] }
  0xd4   : > { %10499 = vrcp.f32 %v969_v38  ;;  %v554_v63 = vpop.xlane.xlu1 %553  ;;  %v10488_v5 = vpop.eup %10487  ;;  %v972_v9 = vadd.f32 1.0, %v10486_v56  ;;  %v9146_v17 = vmul.f32 -1.442695, %v775_v3 }
  0xd5   : > { %v551_v0 = vpop.xlane.xlu0 %550  ;;  %10501 = vpow2.f32 %v9147_v50  ;;  %v754_v6 = vadd.f32 %v698_v47, %v554_v63  ;;  %v971_v52 = vadd.f32 1.0, %v10488_v5 }
  0xd6   : > { %10503 = vpow2.f32 %v9122_v54  ;;  %v753_v34 = vadd.f32 %v697_v4, %v551_v0  ;;  %v725_v0 = vld [vmem:[%s10829_s11 + $0x130] sm:$0xff] }
  0xd7   : > { %v9125_v10 = vmul.f32 -1.442695, %v754_v6  ;;  %v10490_v2 = vpop.eup %10489  ;;  %10505 = vrcp.f32 %v970_v62 }
  0xd8   : > { %v626_v57 = vpop.xlane.xlu1 %625  ;;  %v974_v36 = vadd.f32 1.0, %v10490_v2  ;;  %v9124_v7 = vmul.f32 -1.442695, %v753_v34 }
  0xd9   : > { %v623_v11 = vpop.xlane.xlu0 %622  ;;  %v10492_v12 = vpop.eup %10491  ;;  %10507 = vpow2.f32 %v9125_v10  ;;  %v778_v16 = vadd.f32 %v722_v8, %v626_v57  ;;  %v704_v10 = vld [vmem:[%s10829_s11 + $0x88] sm:$0xff] }
  0xda   : > { %1249 = vperm.xlu0 %10475, %v10492_v12   ;;  %10509 = vrcp.f32 %v972_v9  ;;  %v777_v13 = vadd.f32 %v721_v46, %v623_v11 }
  0xdb   : > { %v10494_v27 = vpop.eup %10493  ;;  %v9149_v28 = vmul.f32 -1.442695, %v778_v16  ;;  %10511 = vrcp.f32 %v971_v52 }
  0xdc   : > { %v10496_v35 = vpop.eup %10495  ;;  %v976_v40 = vadd.f32 1.0, %v10494_v27  ;;  %v560_v41 = vpop.xlane.xlu1 %559  ;;  %10513 = vpow2.f32 %v9146_v17  ;;  %v9148_v30 = vmul.f32 -1.442695, %v777_v13  ;;  %v727_v13 = vld [vmem:[%s10829_s11 + $0x140] sm:$0xff] }
  0xdd   : > { %v557_v51 = vpop.xlane.xlu0 %556  ;;  %v10498_v53 = vpop.eup %10497  ;;  %v756_v58 = vadd.f32 %v700_v21, %v560_v41  ;;  %v973_v60 = vadd.f32 1.0, %v10496_v35  ;;  %v703_v21 = vld [vmem:[%s10829_s11 + $0x80] sm:$0xff] }
  0xde   : > { %v10500_v59 = vpop.eup %10499  ;;  %10515 = vrcp.f32 %v976_v40  ;;  %1254 = vperm.xlu1 %10476, %v10498_v53   ;;  %v755_v25 = vadd.f32 %v699_v14, %v557_v51 }
  0xdf   : > { %v10502_v55 = vpop.eup %10501  ;;  %10517 = vpow2.f32 %v9149_v28  ;;  %v9127_v1 = vmul.f32 -1.442695, %v756_v58 }
  0xe0   : > { %10519 = vrcp.f32 %v974_v36  ;;  %v1000_v15 = vadd.f32 1.0, %v10502_v55  ;;  %v632_v18 = vpop.xlane.xlu1 %631  ;;  %v10504_v20 = vpop.eup %10503  ;;  %v9126_v47 = vmul.f32 -1.442695, %v755_v25  ;;  %v728_v36 = vld [vmem:[%s10829_s11 + $0x148] sm:$0xff] }
  0xe1   : > { %v629_v19 = vpop.xlane.xlu0 %628  ;;  %10521 = vpow2.f32 %v9127_v1  ;;  %v780_v22 = vadd.f32 %v724_v61, %v632_v18  ;;  %v10506_v23 = vpop.eup %10505  ;;  %v975_v33 = vadd.f32 1.0, %v10504_v20 }
  0xe2   : > { %10523 = vrcp.f32 %v1000_v15  ;;  %1259 = vperm.xlu1 %10476, %v10500_v59   ;;  %v779_v31 = vadd.f32 %v723_v49, %v629_v19  ;;  %v706_v15 = vld [vmem:[%s10829_s11 + $0x98] sm:$0xff] }
  0xe3   : > { %v10508_v26 = vpop.eup %10507  ;;  %v9151_v29 = vmul.f32 -1.442695, %v780_v22  ;;  %10525 = vpow2.f32 %v9124_v7 }
  0xe4   : > { %v978_v32 = vadd.f32 1.0, %v10508_v26  ;;  %10527 = vrcp.f32 %v973_v60  ;;  %v566_v37 = vpop.xlane.xlu1 %565  ;;  %v10510_v39 = vpop.eup %10509  ;;  %v9150_v54 = vmul.f32 -1.442695, %v779_v31 }
  0xe5   : > { %v563_v38 = vpop.xlane.xlu0 %562  ;;  %10529 = vpow2.f32 %v9151_v29  ;;  %v758_v42 = vadd.f32 %v702_v24, %v566_v37  ;;  %v10512_v44 = vpop.eup %10511 }
  0xe6   : > { %10531 = vrcp.f32 %v978_v32  ;;  %1264 = vperm.xlu1 %10476, %v10506_v23   ;;  %v10514_v48 = vpop.eup %10513  ;;  %v757_v63 = vadd.f32 %v701_v43, %v563_v38  ;;  %v730_v32 = vld [vmem:[%s10829_s11 + $0x158] sm:$0xff] }
  0xe7   : > { %v9129_v50 = vmul.f32 -1.442695, %v758_v42  ;;  %10533 = vpow2.f32 %v9148_v30  ;;  %v999_v52 = vadd.f32 1.0, %v10514_v48  ;;  %v705_v30 = vld [vmem:[%s10829_s11 + $0x90] sm:$0xff] }
  0xe8   : > { %v10516_v56 = vpop.eup %10515  ;;  %10535 = vrcp.f32 %v975_v33  ;;  %v638_v62 = vpop.xlane.xlu1 %637  ;;  %v9128_v17 = vmul.f32 -1.442695, %v757_v63 }
  0xe9   : > { %v635_v5 = vpop.xlane.xlu0 %634  ;;  %v10518_v6 = vpop.eup %10517  ;;  %10537 = vpow2.f32 %v9129_v50  ;;  %v782_v3 = vadd.f32 %v726_v45, %v638_v62  ;;  %1294 = vperm.xlu0 %10475, %v10516_v56   ;;  %v708_v56 = vld [vmem:[%s10829_s11 + $0xa8] sm:$0xff] }
  0xea   : > { %v10520_v8 = vpop.eup %10519  ;;  %v1002_v9 = vadd.f32 1.0, %v10518_v6  ;;  %1269 = vperm.xlu1 %10476, %v10512_v44   ;;  %10539 = vpow2.f32 %v9126_v47  ;;  %v781_v4 = vadd.f32 %v725_v0, %v635_v5 }
  0xeb   : > { %v10522_v2 = vpop.eup %10521  ;;  %v9153_v57 = vmul.f32 -1.442695, %v782_v3  ;;  %10541 = vpow2.f32 %v9150_v54 }
  0xec   : > { %v10524_v11 = vpop.eup %10523  ;;  %10543 = vrcp.f32 %v1002_v9  ;;  %v980_v12 = vadd.f32 1.0, %v10522_v2  ;;  %v572_v16 = vpop.xlane.xlu1 %571  ;;  %v9152_v46 = vmul.f32 -1.442695, %v781_v4  ;;  %v729_v9 = vld [vmem:[%s10829_s11 + $0x150] sm:$0xff]  ;;  %v732_v4 = vld [vmem:[%s10829_s11 + $0x168] sm:$0xff] }
  0xed   : > { %v569_v27 = vpop.xlane.xlu0 %568  ;;  %v10526_v28 = vpop.eup %10525  ;;  %10545 = vpow2.f32 %v9153_v57  ;;  %v760_v34 = vadd.f32 %v704_v10, %v572_v16  ;;  %1414 = vperm.xlu0 %10475, %v10524_v11  }
  0xee   : > { %v10528_v35 = vpop.eup %10527  ;;  %10547 = vrcp.f32 %v980_v12  ;;  %1274 = vperm.xlu1 %10476, %v10510_v39   ;;  %v759_v51 = vadd.f32 %v703_v21, %v569_v27  ;;  %v977_v59 = vadd.f32 1.0, %v10526_v28 }
  0xef   : > { %v10530_v40 = vpop.eup %10529  ;;  %10549 = vrcp.f32 %v999_v52  ;;  %v9131_v41 = vmul.f32 -1.442695, %v760_v34 }
  0xf0   : > { %v10532_v53 = vpop.eup %10531  ;;  %v1004_v58 = vadd.f32 1.0, %v10530_v40  ;;  %v644_v61 = vpop.xlane.xlu1 %643  ;;  %10551 = vpow2.f32 %v9128_v17  ;;  %v9130_v49 = vmul.f32 -1.442695, %v759_v51 }
  0xf1   : > { %v641_v55 = vpop.xlane.xlu0 %640  ;;  %v10534_v1 = vpop.eup %10533  ;;  %10553 = vpow2.f32 %v9131_v41  ;;  %v784_v7 = vadd.f32 %v728_v36, %v644_v61  ;;  %1304 = vperm.xlu0 %10475, %v10532_v53   ;;  %v710_v53 = vld [vmem:[%s10829_s11 + $0xb8] sm:$0xff] }
  0xf2   : > { %v10536_v14 = vpop.eup %10535  ;;  %10555 = vrcp.f32 %v1004_v58  ;;  %1279 = vperm.xlu1 %10476, %v10528_v35   ;;  %v1001_v22 = vadd.f32 1.0, %v10534_v1  ;;  %v783_v24 = vadd.f32 %v727_v13, %v641_v55  ;;  %v707_v35 = vld [vmem:[%s10829_s11 + $0xa0] sm:$0xff] }
  0xf3   : > { %v10538_v60 = vpop.eup %10537  ;;  %v9155_v18 = vmul.f32 -1.442695, %v784_v7  ;;  %10557 = vpow2.f32 %v9152_v46  ;;  %v731_v46 = vld [vmem:[%s10829_s11 + $0x160] sm:$0xff] }
  0xf4   : > { %v10540_v19 = vpop.eup %10539  ;;  %v982_v20 = vadd.f32 1.0, %v10538_v60  ;;  %10559 = vrcp.f32 %v977_v59  ;;  %v578_v23 = vpop.xlane.xlu1 %577  ;;  %v9154_v44 = vmul.f32 -1.442695, %v783_v24 }
  0xf5   : > { %v575_v25 = vpop.xlane.xlu0 %574  ;;  %v10542_v26 = vpop.eup %10541  ;;  %10561 = vpow2.f32 %v9155_v18  ;;  %v762_v29 = vadd.f32 %v706_v15, %v578_v23  ;;  %v979_v37 = vadd.f32 1.0, %v10540_v19  ;;  %v709_v19 = vld [vmem:[%s10829_s11 + $0xb0] sm:$0xff] }
  0xf6   : > { %v10544_v31 = vpop.eup %10543  ;;  %10563 = vrcp.f32 %v982_v20  ;;  %1284 = vperm.xlu1 %10476, %v10520_v8   ;;  %v761_v45 = vadd.f32 %v705_v30, %v575_v25  ;;  %v1003_v63 = vadd.f32 1.0, %v10542_v26 }
  0xf7   : > { %v10546_v33 = vpop.eup %10545  ;;  %v9133_v38 = vmul.f32 -1.442695, %v762_v29  ;;  %1424 = vperm.xlu0 %10475, %v10544_v31   ;;  %10565 = vpow2.f32 %v9130_v49 }
  0xf8   : > { %v10548_v39 = vpop.eup %10547  ;;  %v1006_v42 = vadd.f32 1.0, %v10546_v33  ;;  %10567 = vrcp.f32 %v1001_v22  ;;  %v650_v43 = vpop.xlane.xlu1 %649  ;;  %v9132_v8 = vmul.f32 -1.442695, %v761_v45  ;;  %v734_v22 = vld [vmem:[%s10829_s11 + $0x178] sm:$0xff] }
  0xf9   : > { %v647_v47 = vpop.xlane.xlu0 %646  ;;  %v10550_v48 = vpop.eup %10549  ;;  %10569 = vpow2.f32 %v9133_v38  ;;  %v786_v50 = vadd.f32 %v730_v32, %v650_v43  ;;  %v712_v43 = vld [vmem:[%s10829_s11 + $0xc8] sm:$0xff] }
  0xfa   : > { %v10552_v54 = vpop.eup %10551  ;;  %10571 = vrcp.f32 %v1006_v42  ;;  %1289 = vperm.xlu1 %10476, %v10536_v14   ;;  %v785_v17 = vadd.f32 %v729_v9, %v647_v47 }
  0xfb   : > { %v10554_v62 = vpop.eup %10553  ;;  %10573 = vrcp.f32 %v979_v37  ;;  %v9157_v0 = vmul.f32 -1.442695, %v786_v50  ;;  %1314 = vperm.xlu0 %10475, %v10548_v39   ;;  %v981_v12 = vadd.f32 1.0, %v10552_v54  ;;  %v733_v39 = vld [vmem:[%s10829_s11 + $0x170] sm:$0xff] }
  0xfc   : > { %v10556_v5 = vpop.eup %10555  ;;  %v984_v6 = vadd.f32 1.0, %v10554_v62  ;;  %v584_v3 = vpop.xlane.xlu1 %583  ;;  %10575 = vpow2.f32 %v9154_v44  ;;  %v9156_v61 = vmul.f32 -1.442695, %v785_v17 }
  0xfd   : > { %v581_v10 = vpop.xlane.xlu0 %580  ;;  %v10558_v2 = vpop.eup %10557  ;;  %10577 = vpow2.f32 %v9157_v0  ;;  %v764_v52 = vadd.f32 %v708_v56, %v584_v3  ;;  %v736_v3 = vld [vmem:[%s10829_s11 + $0x188] sm:$0xff] }
  0xfe   : > { %v10560_v57 = vpop.eup %10559  ;;  %10579 = vrcp.f32 %v984_v6  ;;  %1409 = vperm.xlu1 %10476, %v10550_v48   ;;  %v1005_v28 = vadd.f32 1.0, %v10558_v2  ;;  %v763_v55 = vadd.f32 %v707_v35, %v581_v10 }
  0xff   : > { %v10562_v11 = vpop.eup %10561  ;;  %10581 = vrcp.f32 %v1003_v63  ;;  %v9135_v16 = vmul.f32 -1.442695, %v764_v52  ;;  %1434 = vperm.xlu0 %10475, %v10556_v5  }
 0x100   : > { %v10564_v21 = vpop.eup %10563  ;;  %v1008_v27 = vadd.f32 1.0, %v10562_v11  ;;  %v656_v34 = vpop.xlane.xlu1 %655  ;;  %10583 = vpow2.f32 %v9132_v8  ;;  %v9134_v25 = vmul.f32 -1.442695, %v763_v55  ;;  %v711_v11 = vld [vmem:[%s10829_s11 + $0xc0] sm:$0xff]  ;;  %v738_v55 = vld [vmem:[%s10829_s11 + $0x198] sm:$0xff] }
 0x101   : > { %v653_v36 = vpop.xlane.xlu0 %652  ;;  %v10566_v40 = vpop.eup %10565  ;;  %10585 = vpow2.f32 %v9135_v16  ;;  %v788_v41 = vadd.f32 %v732_v4, %v656_v34 }
 0x102   : > { %v10568_v51 = vpop.eup %10567  ;;  %10587 = vrcp.f32 %v1008_v27  ;;  %1299 = vperm.xlu1 %10476, %v10560_v57   ;;  %v983_v13 = vadd.f32 1.0, %v10566_v40  ;;  %v787_v15 = vadd.f32 %v731_v46, %v653_v36  ;;  %v714_v27 = vld [vmem:[%s10829_s11 + $0xd8] sm:$0xff] }
 0x103   : > { %v10570_v58 = vpop.eup %10569  ;;  %10589 = vrcp.f32 %v981_v12  ;;  %v9159_v59 = vmul.f32 -1.442695, %v788_v41  ;;  %1324 = vperm.xlu0 %10475, %v10564_v21  }
 0x104   : > { %v10572_v1 = vpop.eup %10571  ;;  %v986_v7 = vadd.f32 1.0, %v10570_v58  ;;  %10591 = vrcp.f32 %v1005_v28  ;;  %v590_v14 = vpop.xlane.xlu1 %589  ;;  %v9158_v31 = vmul.f32 -1.442695, %v787_v15 }
 0x105   : > { %v587_v60 = vpop.xlane.xlu0 %586  ;;  %v10574_v18 = vpop.eup %10573  ;;  %10593 = vpow2.f32 %v9159_v59  ;;  %v766_v49 = vadd.f32 %v710_v53, %v590_v14  ;;  %v735_v59 = vld [vmem:[%s10829_s11 + $0x180] sm:$0xff] }
 0x106   : > { %v10576_v20 = vpop.eup %10575  ;;  %10595 = vrcp.f32 %v986_v7  ;;  %1419 = vperm.xlu1 %10476, %v10568_v51   ;;  %v765_v32 = vadd.f32 %v709_v19, %v587_v60 }
 0x107   : > { %v10578_v23 = vpop.eup %10577  ;;  %v9137_v24 = vmul.f32 -1.442695, %v766_v49  ;;  %1444 = vperm.xlu0 %10475, %v10572_v1   ;;  %10597 = vpow2.f32 %v9156_v61  ;;  %v1007_v45 = vadd.f32 1.0, %v10576_v20 }
 0x108   : > { %v10580_v26 = vpop.eup %10579  ;;  %v1010_v29 = vadd.f32 1.0, %v10578_v23  ;;  %10599 = vrcp.f32 %v983_v13  ;;  %v662_v30 = vpop.xlane.xlu1 %661  ;;  %v9136_v56 = vmul.f32 -1.442695, %v765_v32  ;;  %v713_v23 = vld [vmem:[%s10829_s11 + $0xd0] sm:$0xff] }
 0x109   : > { %v659_v33 = vpop.xlane.xlu0 %658  ;;  %v10582_v37 = vpop.eup %10581  ;;  %10601 = vpow2.f32 %v9137_v24  ;;  %v790_v38 = vadd.f32 %v734_v22, %v662_v30 }
 0x10a   : > { %v10584_v42 = vpop.eup %10583  ;;  %10603 = vrcp.f32 %v1010_v29  ;;  %1309 = vperm.xlu1 %10476, %v10574_v18   ;;  %v789_v62 = vadd.f32 %v733_v39, %v659_v33 }
 0x10b   : > { %v10586_v44 = vpop.eup %10585  ;;  %v9161_v47 = vmul.f32 -1.442695, %v790_v38  ;;  %1334 = vperm.xlu0 %10475, %v10580_v26   ;;  %10605 = vpow2.f32 %v9134_v25  ;;  %v985_v9 = vadd.f32 1.0, %v10584_v42  ;;  %v716_v25 = vld [vmem:[%s10829_s11 + $0xe8] sm:$0xff] }
 0x10c   : > { %v10588_v48 = vpop.eup %10587  ;;  %v988_v50 = vadd.f32 1.0, %v10586_v44  ;;  %v596_v54 = vpop.xlane.xlu1 %595  ;;  %10607 = vpow2.f32 %v9158_v31  ;;  %v9160_v4 = vmul.f32 -1.442695, %v789_v62  ;;  %v737_v44 = vld [vmem:[%s10829_s11 + $0x190] sm:$0xff] }
 0x10d   : > { %v593_v63 = vpop.xlane.xlu0 %592  ;;  %v10590_v0 = vpop.eup %10589  ;;  %10609 = vpow2.f32 %v9161_v47  ;;  %v768_v5 = vadd.f32 %v712_v43, %v596_v54  ;;  %v740_v47 = vld [vmem:[%s10829_s11 + $0x1a8] sm:$0xff] }
 0x10e   : > { %v10592_v6 = vpop.eup %10591  ;;  %10611 = vrcp.f32 %v988_v50  ;;  %1429 = vperm.xlu1 %10476, %v10582_v37   ;;  %v767_v35 = vadd.f32 %v711_v11, %v593_v63 }
 0x10f   : > { %v10594_v8 = vpop.eup %10593  ;;  %10613 = vrcp.f32 %v1007_v45  ;;  %v9139_v10 = vmul.f32 -1.442695, %v768_v5  ;;  %1454 = vperm.xlu0 %10475, %v10588_v48  }
 0x110   : > { %v10596_v2 = vpop.eup %10595  ;;  %v1012_v52 = vadd.f32 1.0, %v10594_v8  ;;  %v668_v57 = vpop.xlane.xlu1 %667  ;;  %10615 = vpow2.f32 %v9136_v56  ;;  %v9138_v13 = vmul.f32 -1.442695, %v767_v35  ;;  %v742_v35 = vld [vmem:[%s10829_s11 + $0x1b8] sm:$0xff] }
 0x111   : > { %v665_v12 = vpop.xlane.xlu0 %664  ;;  %v10598_v16 = vpop.eup %10597  ;;  %10617 = vpow2.f32 %v9139_v10  ;;  %v792_v17 = vadd.f32 %v736_v3, %v668_v57  ;;  %v718_v10 = vld [vmem:[%s10829_s11 + $0xf8] sm:$0xff] }
 0x112   : > { %v10600_v21 = vpop.eup %10599  ;;  %10619 = vrcp.f32 %v1012_v52  ;;  %1319 = vperm.xlu1 %10476, %v10590_v0   ;;  %v1009_v41 = vadd.f32 1.0, %v10598_v16  ;;  %v791_v49 = vadd.f32 %v735_v59, %v665_v12 }
 0x113   : > { %v10602_v28 = vpop.eup %10601  ;;  %10621 = vrcp.f32 %v985_v9  ;;  %v9163_v34 = vmul.f32 -1.442695, %v792_v17  ;;  %1344 = vperm.xlu0 %10475, %v10596_v2  }
 0x114   : > { %v10604_v36 = vpop.eup %10603  ;;  %v990_v40 = vadd.f32 1.0, %v10602_v28  ;;  %v602_v46 = vpop.xlane.xlu1 %601  ;;  %10623 = vpow2.f32 %v9160_v4  ;;  %v9162_v37 = vmul.f32 -1.442695, %v791_v49  ;;  %v739_v28 = vld [vmem:[%s10829_s11 + $0x1a0] sm:$0xff] }
 0x115   : > { %v599_v51 = vpop.xlane.xlu0 %598  ;;  %v10606_v53 = vpop.eup %10605  ;;  %10625 = vpow2.f32 %v9163_v34  ;;  %v770_v58 = vadd.f32 %v714_v27, %v602_v46 }
 0x116   : > { %v10608_v61 = vpop.eup %10607  ;;  %10627 = vrcp.f32 %v990_v40  ;;  %1439 = vperm.xlu1 %10476, %v10592_v6   ;;  %v987_v60 = vadd.f32 1.0, %v10606_v53  ;;  %v769_v38 = vadd.f32 %v713_v23, %v599_v51  ;;  %v715_v6 = vld [vmem:[%s10829_s11 + $0xe0] sm:$0xff]  ;;  %v741_v23 = vld [vmem:[%s10829_s11 + $0x1b0] sm:$0xff] }
 0x117   : > { %v10610_v1 = vpop.eup %10609  ;;  %v9141_v7 = vmul.f32 -1.442695, %v770_v58  ;;  %1464 = vperm.xlu0 %10475, %v10604_v36   ;;  %10629 = vrcp.f32 %v1009_v41  ;;  %v1011_v29 = vadd.f32 1.0, %v10608_v61 }
 0x118   : > { %v10612_v14 = vpop.eup %10611  ;;  %v1014_v15 = vadd.f32 1.0, %v10610_v1  ;;  %v674_v18 = vpop.xlane.xlu1 %673  ;;  %v9140_v0 = vmul.f32 -1.442695, %v769_v38 }
 0x119   : > { %v671_v19 = vpop.xlane.xlu0 %670  ;;  %v10614_v20 = vpop.eup %10613  ;;  %10631 = vpow2.f32 %v9141_v7  ;;  %v794_v22 = vadd.f32 %v738_v55, %v674_v18  ;;  %v717_v7 = vld [vmem:[%s10829_s11 + $0xf0] sm:$0xff] }
 0x11a   : > { %v10616_v24 = vpop.eup %10615  ;;  %10633 = vrcp.f32 %v1014_v15  ;;  %1329 = vperm.xlu1 %10476, %v10600_v21   ;;  %v793_v5 = vadd.f32 %v737_v44, %v671_v19 }
 0x11b   : > { %v10618_v26 = vpop.eup %10617  ;;  %v9165_v30 = vmul.f32 -1.442695, %v794_v22  ;;  %1354 = vperm.xlu0 %10475, %v10612_v14   ;;  %10635 = vpow2.f32 %v9138_v13  ;;  %v989_v50 = vadd.f32 1.0, %v10616_v24 }
 0x11c   : > { %v10620_v31 = vpop.eup %10619  ;;  %v992_v32 = vadd.f32 1.0, %v10618_v26  ;;  %10637 = vrcp.f32 %v987_v60  ;;  %v608_v33 = vpop.xlane.xlu1 %607  ;;  %v9164_v17 = vmul.f32 -1.442695, %v793_v5 }
 0x11d   : > { %v605_v39 = vpop.xlane.xlu0 %604  ;;  %v10622_v42 = vpop.eup %10621  ;;  %10639 = vpow2.f32 %v9165_v30  ;;  %v772_v43 = vadd.f32 %v716_v25, %v608_v33 }
 0x11e   : > { %v10624_v45 = vpop.eup %10623  ;;  %10641 = vrcp.f32 %v992_v32  ;;  %1449 = vperm.xlu1 %10476, %v10614_v20   ;;  %v771_v4 = vadd.f32 %v715_v6, %v605_v39 }
 0x11f   : > { %v10626_v48 = vpop.eup %10625  ;;  %10643 = vrcp.f32 %v1011_v29  ;;  %v9143_v54 = vmul.f32 -1.442695, %v772_v43  ;;  %1474 = vperm.xlu0 %10475, %v10620_v31   ;;  %v1013_v52 = vadd.f32 1.0, %v10624_v45 }
 0x120   : > { %v10628_v56 = vpop.eup %10627  ;;  %v1016_v62 = vadd.f32 1.0, %v10626_v48  ;;  %v680_v63 = vpop.xlane.xlu1 %679  ;;  %10645 = vpow2.f32 %v9162_v37  ;;  %v9142_v41 = vmul.f32 -1.442695, %v771_v4 }
 0x121   : > { %10647 = vpow2.f32 %v9143_v54  ;;  %v796_v3 = vadd.f32 %v740_v47, %v680_v63  ;;  %v677_v8 = vpop.xlane.xlu0 %676  ;;  %v10630_v9 = vpop.eup %10629 }
 0x122   : > { %10649 = vrcp.f32 %v1016_v62  ;;  %1339 = vperm.xlu1 %10476, %v10622_v42   ;;  %v795_v61 = vadd.f32 %v739_v28, %v677_v8 }
 0x123   : > { %v10632_v2 = vpop.eup %10631  ;;  %10651 = vrcp.f32 %v989_v50  ;;  %v9167_v57 = vmul.f32 -1.442695, %v796_v3  ;;  %1364 = vperm.xlu0 %10475, %v10628_v56  }
 0x124   : > { %v10634_v11 = vpop.eup %10633  ;;  %v994_v12 = vadd.f32 1.0, %v10632_v2  ;;  %v614_v16 = vpop.xlane.xlu1 %613  ;;  %10653 = vpow2.f32 %v9140_v0  ;;  %v9166_v49 = vmul.f32 -1.442695, %v795_v61 }
 0x125   : > { %v10636_v21 = vpop.eup %10635  ;;  %10655 = vpow2.f32 %v9167_v57  ;;  %v774_v27 = vadd.f32 %v718_v10, %v614_v16  ;;  %v611_v46 = vpop.xlane.xlu0 %610 }
 0x126   : > { %v10638_v34 = vpop.eup %10637  ;;  %10657 = vrcp.f32 %v994_v12  ;;  %1459 = vperm.xlu1 %10476, %v10630_v9   ;;  %v991_v58 = vadd.f32 1.0, %v10636_v21  ;;  %v773_v19 = vadd.f32 %v717_v7, %v611_v46  ;;  %v1135_v21 = vld [vmem:[%s10834_s14] sm:$0xff] }
 0x127   : > { %v10640_v36 = vpop.eup %10639  ;;  %10659 = vrcp.f32 %v1013_v52  ;;  %v9145_v40 = vmul.f32 -1.442695, %v774_v27  ;;  %1484 = vperm.xlu0 %10475, %v10634_v11   ;;  %v1136_v27 = vld [vmem:[%s10834_s14 + $0x8] sm:$0xff] }
 0x128   : > { %v10642_v51 = vpop.eup %10641  ;;  %v1018_v53 = vadd.f32 1.0, %v10640_v36  ;;  %v686_v59 = vpop.xlane.xlu1 %685  ;;  %10661 = vpow2.f32 %v9164_v17  ;;  %v9144_v31 = vmul.f32 -1.442695, %v773_v19  ;;  %v1137_v36 = vld [vmem:[%s10834_s14 + $0x10] sm:$0xff] }
 0x129   : > { %v10644_v55 = vpop.eup %10643  ;;  %10663 = vpow2.f32 %v9145_v40  ;;  %v798_v1 = vadd.f32 %v742_v35, %v686_v59  ;;  %v683_v24 = vpop.xlane.xlu0 %682  ;;  %v1138_v40 = vld [vmem:[%s10834_s14 + $0x18] sm:$0xff] }
 0x12a   : > { %v10646_v13 = vpop.eup %10645  ;;  %10665 = vrcp.f32 %v1018_v53  ;;  %1349 = vperm.xlu1 %10476, %v10638_v34   ;;  %v797_v32 = vadd.f32 %v741_v23, %v683_v24  ;;  %v1142_v23 = vld [vmem:[%s10834_s14 + $0x38] sm:$0xff] }
 0x12b   : > { %v10648_v14 = vpop.eup %10647  ;;  %v9169_v15 = vmul.f32 -1.442695, %v798_v1  ;;  %1374 = vperm.xlu0 %10475, %v10642_v51   ;;  %10667 = vpow2.f32 %v9142_v41  ;;  %v1015_v22 = vadd.f32 1.0, %v10646_v13  ;;  %v1140_v13 = vld [vmem:[%s10834_s14 + $0x28] sm:$0xff] }
 0x12c   : > { %v10650_v60 = vpop.eup %10649  ;;  %v996_v18 = vadd.f32 1.0, %v10648_v14  ;;  %10669 = vrcp.f32 %v991_v58  ;;  %v9168_v44 = vmul.f32 -1.442695, %v797_v32 }
 0x12d   : > { %v10652_v20 = vpop.eup %10651  ;;  %10671 = vpow2.f32 %v9169_v15 }
 0x12e   : > { %v10654_v25 = vpop.eup %10653  ;;  %10673 = vrcp.f32 %v996_v18  ;;  %1469 = vperm.xlu1 %10476, %v10644_v55   ;;  %v1139_v55 = vld [vmem:[%s10834_s14 + $0x20] sm:$0xff] }
 0x12f   : > { %v10656_v26 = vpop.eup %10655  ;;  %1494 = vperm.xlu0 %10475, %v10650_v60   ;;  %10675 = vpow2.f32 %v9166_v49  ;;  %v993_v37 = vadd.f32 1.0, %v10654_v25  ;;  %v1727_v49 = vld [vmem:[%s10839_s17 + $0x100] sm:$0xff] }
 0x130   : > { %v10658_v29 = vpop.eup %10657  ;;  %v1020_v30 = vadd.f32 1.0, %v10656_v26  ;;  %10677 = vrcp.f32 %v1015_v22  ;;  %v1141_v22 = vld [vmem:[%s10834_s14 + $0x30] sm:$0xff] }
 0x131   : > { %v10660_v33 = vpop.eup %10659 }
 0x132   : > { %v10662_v38 = vpop.eup %10661  ;;  %10679 = vrcp.f32 %v1020_v30  ;;  %1359 = vperm.xlu1 %10476, %v10652_v20  }
 0x133   : > { %v10664_v39 = vpop.eup %10663  ;;  %1384 = vperm.xlu0 %10475, %v10658_v29   ;;  %10681 = vpow2.f32 %v9144_v31  ;;  %v1017_v47 = vadd.f32 1.0, %v10662_v38  ;;  %v1154_v38 = vld [vmem:[%s10834_s14 + $0x98] sm:$0xff] }
 0x134   : > { %v10666_v42 = vpop.eup %10665  ;;  %v998_v43 = vadd.f32 1.0, %v10664_v39  ;;  %10683 = vrcp.f32 %v993_v37  ;;  %v1153_v37 = vld [vmem:[%s10834_s14 + $0x90] sm:$0xff] }
 0x135   : > { %v10668_v45 = vpop.eup %10667 }
 0x136   : > { %v10670_v48 = vpop.eup %10669  ;;  %10685 = vrcp.f32 %v998_v43  ;;  %1479 = vperm.xlu1 %10476, %v10660_v33   ;;  %v995_v62 = vadd.f32 1.0, %v10668_v45  ;;  %v1729_v33 = vld [vmem:[%s10839_s17 + $0x110] sm:$0xff]  ;;  %v1144_v45 = vld [vmem:[%s10834_s14 + $0x48] sm:$0xff] }
 0x137   : > { %v10672_v50 = vpop.eup %10671  ;;  %1504 = vperm.xlu0 %10475, %v10666_v42   ;;  %10687 = vpow2.f32 %v9168_v44  ;;  %v1143_v42 = vld [vmem:[%s10834_s14 + $0x40] sm:$0xff] }
 0x138   : > { %v10674_v54 = vpop.eup %10673  ;;  %v1022_v56 = vadd.f32 1.0, %v10672_v50  ;;  %10689 = vrcp.f32 %v1017_v47 }
 0x139   : > { %v10676_v63 = vpop.eup %10675 }
 0x13a   : > { %10691 = vrcp.f32 %v1022_v56  ;;  %1369 = vperm.xlu1 %10476, %v10670_v48   ;;  %v10678_v0 = vpop.eup %10677  ;;  %v1019_v6 = vadd.f32 1.0, %v10676_v63 }
 0x13b   : > { %1394 = vperm.xlu0 %10475, %v10674_v54   ;;  %10693 = vrcp.f32 %v995_v62 }
 0x13c   : > { %v10680_v5 = vpop.eup %10679  ;;  %10695 = vrcp.f32 %v1019_v6 }
 0x13d   : > { %v10682_v3 = vpop.eup %10681 }
 0x13e   : > { %1489 = vperm.xlu1 %10476, %v10678_v0   ;;  %v10684_v8 = vpop.eup %10683  ;;  %v997_v10 = vadd.f32 1.0, %v10682_v3  ;;  %v1731_v0 = vld [vmem:[%s10839_s17 + $0x120] sm:$0xff] }
 0x13f   : > { %1514 = vperm.xlu0 %10475, %v10680_v5  }
 0x140   : > { %v10686_v9 = vpop.eup %10685  ;;  %10697 = vrcp.f32 %v997_v10  ;;  %v1146_v10 = vld [vmem:[%s10834_s14 + $0x58] sm:$0xff] }
 0x141   : > { %v10688_v2 = vpop.eup %10687 }
 0x142   : > { %1379 = vperm.xlu1 %10476, %v10684_v8   ;;  %v10690_v52 = vpop.eup %10689  ;;  %v1021_v4 = vadd.f32 1.0, %v10688_v2 }
 0x143   : > { %1404 = vperm.xlu0 %10475, %v10686_v9   ;;  %v1145_v9 = vld [vmem:[%s10834_s14 + $0x50] sm:$0xff] }
 0x144   : > { %v10692_v57 = vpop.eup %10691  ;;  %10699 = vrcp.f32 %v1021_v4 }
 0x145   : > { %v10694_v11 = vpop.eup %10693 }
 0x146   : > { %1499 = vperm.xlu1 %10476, %v10690_v52   ;;  %v10696_v12 = vpop.eup %10695  ;;  %v1201_v52 = vld [vmem:[%s10834_s14 + $0x210] sm:$0xff] }
 0x147   : > { %1524 = vperm.xlu0 %10475, %v10692_v57  }
 0x14a   : > { %1389 = vperm.xlu1 %10476, %v10694_v11   ;;  %v10698_v16 = vpop.eup %10697 }
 0x14e   : > { %1509 = vperm.xlu1 %10476, %v10696_v12   ;;  %v10700_v17 = vpop.eup %10699 }
 0x152   : > { %1399 = vperm.xlu1 %10476, %v10698_v16  }
 0x156   : > { %1519 = vperm.xlu1 %10476, %v10700_v17  }
 0x159   : > { %v1250_v28 = vpop.permute.xlu0 %1249 }
 0x15a   : > { %v1527_v34 = vmul.f32 %v1250_v28, %v1135_v21  ;;  %v1528_v35 = vmul.f32 %v1250_v28, %v1136_v27 }
 0x15c   : > { %v2148_v41 = vand.u32 4294901760, %v1528_v35  ;;  %v2150_v46 = vand.u32 4294901760, %v1527_v34 }
 0x15d   : > { %v1255_v51 = vpop.permute.xlu1 %1254 }
 0x15e   : > { %v11184_v53 = vsub.f32 %v1528_v35, %v2148_v41  ;;  %v11186_v58 = vsub.f32 %v1527_v34, %v2150_v46  ;;  %v1529_v59 = vmul.f32 %v1255_v51, %v1137_v36  ;;  %v1530_v61 = vmul.f32 %v1255_v51, %v1138_v40  ;;  %v1202_v34 = vld [vmem:[%s10834_s14 + $0x218] sm:$0xff]  ;;  %v1733_v35 = vld [vmem:[%s10839_s17 + $0x130] sm:$0xff] }
 0x160   : > { %17880 = vst [vmem:[#allocation3_spill] sm:$0xff] %v11184_v53  ;;  %17881 = vst [vmem:[#allocation4_spill] sm:$0xff] %v11186_v58  ;;  %v2152_v1 = vand.u32 4294901760, %v1530_v61  ;;  %v2154_v7 = vand.u32 4294901760, %v1529_v59 }
 0x161   : > { %v1260_v14 = vpop.permute.xlu1 %1259 }
 0x162   : > { %v11190_v15 = vsub.f32 %v1530_v61, %v2152_v1  ;;  %v11192_v60 = vsub.f32 %v1529_v59, %v2154_v7  ;;  %v1531_v18 = vmul.f32 %v1260_v14, %v1139_v55  ;;  %v1532_v19 = vmul.f32 %v1260_v14, %v1140_v13  ;;  %v1148_v59 = vld [vmem:[%s10834_s14 + $0x68] sm:$0xff] }
 0x163   : > { %v11195_v20 = vpack.c.bf16 %v2152_v1, %v2148_v41  ;;  %v11199_v24 = vpack.c.bf16 %v2154_v7, %v2150_v46  ;;  %v1147_v41 = vld [vmem:[%s10834_s14 + $0x60] sm:$0xff] }
 0x164   : > { %17882 = vst [vmem:[#allocation5_spill] sm:$0xff] %v11190_v15  ;;  %17883 = vst [vmem:[#allocation6_spill] sm:$0xff] %v11192_v60  ;;  %v2158_v25 = vand.u32 4294901760, %v1531_v18  ;;  %v2156_v26 = vand.u32 4294901760, %v1532_v19 }
 0x165   : > { %17884 = vst [vmem:[#allocation7_spill] sm:$0xff] %v11195_v20  ;;  %17885 = vst [vmem:[#allocation8_spill] sm:$0xff] %v11199_v24  ;;  %1871 = vxpose.xlu0.b32.start [1/16] %v1727_v49, 128  ;;  %9176 = vmatprep.subr.bf16.mxu1 %v11195_v20  ;;  %v1265_v29 = vpop.permute.xlu1 %1264  ;;  %v1157_v49 = vld [vmem:[%s10834_s14 + $0xb0] sm:$0xff]  ;;  %v17920_v20 = vand.u32 4294901760, %v11186_v58 }
 0x166   : > { %v11202_v30 = vsub.f32 %v1531_v18, %v2158_v25  ;;  %v1533_v31 = vmul.f32 %v1265_v29, %v1141_v22  ;;  %v1534_v32 = vmul.f32 %v1265_v29, %v1142_v23  ;;  %9178 = vmatpush1.bf16.msra.mxu1 %v11199_v24  ;;  %v11208_v39 = vsub.f32 %v1532_v19, %v2156_v26  ;;  %v1735_v19 = vld [vmem:[%s10839_s17 + $0x140] sm:$0xff]  ;;  %v1165_v24 = vld [vmem:[%s10834_s14 + $0xf0] sm:$0xff] }
 0x168   : > { %17886 = vst [vmem:[#allocation9_spill] sm:$0xff] %v11202_v30  ;;  %17887 = vst [vmem:[#allocation10_spill] sm:$0xff] %v11208_v39  ;;  %v2160_v43 = vand.u32 4294901760, %v1534_v32  ;;  %v2162_v44 = vand.u32 4294901760, %v1533_v31  ;;  %v1295_v47 = vpop.permute.xlu0 %1294 }
 0x169   : > { %1872 = vxpose.xlu0.b32.cont [2/16] %v1729_v33, 128  ;;  %v1270_v48 = vpop.permute.xlu1 %1269  ;;  %v11212_v50 = vmul.f32 %v1295_v47, %v1153_v37  ;;  %v11214_v54 = vmul.f32 %v1295_v47, %v1154_v38  ;;  %v1149_v37 = vld [vmem:[%s10834_s14 + $0x70] sm:$0xff] }
 0x16a   : > { %v11216_v56 = vsub.f32 %v1534_v32, %v2160_v43  ;;  %v11218_v62 = vsub.f32 %v1533_v31, %v2162_v44  ;;  %v11220_v63 = vmul.f32 %v1270_v48, %v1143_v42  ;;  %v1536_v5 = vmul.f32 %v1270_v48, %v1144_v45  ;;  %v1150_v45 = vld [vmem:[%s10834_s14 + $0x78] sm:$0xff]  ;;  %v1737_v48 = vld [vmem:[%s10839_s17 + $0x150] sm:$0xff] }
 0x16b   : > { %v16920_v6 = vand.u32 4294901760, %v11214_v54  ;;  %v16919_v3 = vand.u32 4294901760, %v11212_v50  ;;  %v11225_v8 = vpack.c.bf16 %v2160_v43, %v2156_v26  ;;  %v11242_v17 = vpack.c.bf16 %v2162_v44, %v2158_v25  ;;  %v1158_v26 = vld [vmem:[%s10834_s14 + $0xb8] sm:$0xff] }
 0x16c   : > { %17888 = vst [vmem:[#allocation11_spill] sm:$0xff] %v11216_v56  ;;  %17889 = vst [vmem:[#allocation12_spill] sm:$0xff] %v11218_v62  ;;  %v2166_v2 = vand.u32 4294901760, %v11220_v63  ;;  %v1415_v57 = vpop.permute.xlu0 %1414  ;;  %v2164_v4 = vand.u32 4294901760, %v1536_v5 }
 0x16d   : > { %17890 = vst [vmem:[#allocation13_spill] sm:$0xff] %v11225_v8  ;;  %v11234_v11 = vsub.f32 %v11214_v54, %v16920_v6  ;;  %v11239_v12 = vsub.f32 %v11212_v50, %v16919_v3  ;;  %1873 = vxpose.xlu0.b32.cont [3/16] %v1731_v0, 128  ;;  %9180 = vmatprep.subr.bf16.mxu1 %v11225_v8  ;;  %v1275_v16 = vpop.permute.xlu1 %1274  ;;  %17893 = vst [vmem:[#allocation16_spill] sm:$0xff] %v11242_v17  ;;  %v1210_v6 = vld [vmem:[%s10834_s14 + $0x258] sm:$0xff]  ;;  %v17918_v8 = vand.u32 4294901760, %v11214_v54 }
 0x16e   : > { %v11247_v21 = vsub.f32 %v11220_v63, %v2166_v2  ;;  %v1537_v27 = vmul.f32 %v1275_v16, %v1145_v9  ;;  %v1538_v28 = vmul.f32 %v1275_v16, %v1146_v10  ;;  %v11251_v36 = vsub.f32 %v1536_v5, %v2164_v4  ;;  %9182 = vmatpush1.bf16.msra.mxu1 %v11242_v17  ;;  %v1791_v63 = vld [vmem:[%s10839_s17 + $0x300] sm:$0xff] }
 0x16f   : > { %17891 = vst [vmem:[#allocation14_spill] sm:$0xff] %v11234_v11  ;;  %17892 = vst [vmem:[#allocation15_spill] sm:$0xff] %v11239_v12  ;;  %v11254_v40 = vmul.f32 %v1415_v57, %v1201_v52  ;;  %v11258_v55 = vmul.f32 %v1415_v57, %v1202_v34  ;;  %v1205_v52 = vld [vmem:[%s10834_s14 + $0x230] sm:$0xff]  ;;  %v1206_v57 = vld [vmem:[%s10834_s14 + $0x238] sm:$0xff]  ;;  %v17922_v54 = vand.u32 4294901760, %v11212_v50 }
 0x170   : > { %17894 = vst [vmem:[#allocation17_spill] sm:$0xff] %v11247_v21  ;;  %17895 = vst [vmem:[#allocation18_spill] sm:$0xff] %v11251_v36  ;;  %v2168_v46 = vand.u32 4294901760, %v1538_v28  ;;  %v2170_v51 = vand.u32 4294901760, %v1537_v27  ;;  %v1305_v61 = vpop.permute.xlu0 %1304  ;;  %v1222_v36 = vld [vmem:[%s10834_s14 + $0x2b8] sm:$0xff] }
 0x171   : > { %v16916_v1 = vand.u32 4294901760, %v11254_v40  ;;  %1874 = vxpose.xlu0.b32.cont [4/16] %v1733_v35, 128  ;;  %v1280_v7 = vpop.permute.xlu1 %1279  ;;  %v16917_v22 = vand.u32 4294901760, %v11258_v55  ;;  %v11282_v33 = vmul.f32 %v1305_v61, %v1157_v49  ;;  %v11290_v43 = vmul.f32 %v1305_v61, %v1158_v26 }
 0x172   : > { %v11261_v13 = vsub.f32 %v1538_v28, %v2168_v46  ;;  %v11263_v14 = vsub.f32 %v1537_v27, %v2170_v51  ;;  %v11265_v18 = vmul.f32 %v1280_v7, %v1147_v41  ;;  %v1540_v25 = vmul.f32 %v1280_v7, %v1148_v59  ;;  %v1151_v27 = vld [vmem:[%s10834_s14 + $0x80] sm:$0xff] }
 0x173   : > { %v11273_v23 = vsub.f32 %v11254_v40, %v16916_v1  ;;  %v11280_v31 = vsub.f32 %v11258_v55, %v16917_v22  ;;  %v11292_v44 = vpack.c.bf16 %v2168_v46, %v2164_v4  ;;  %v16913_v5 = vand.u32 4294901760, %v11282_v33  ;;  %v1739_v59 = vld [vmem:[%s10839_s17 + $0x160] sm:$0xff] }
 0x174   : > { %17896 = vst [vmem:[#allocation19_spill] sm:$0xff] %v11261_v13  ;;  %17897 = vst [vmem:[#allocation20_spill] sm:$0xff] %v11263_v14  ;;  %v2174_v29 = vand.u32 4294901760, %v11265_v18  ;;  %v2172_v32 = vand.u32 4294901760, %v1540_v25  ;;  %v16914_v9 = vand.u32 4294901760, %v11290_v43  ;;  %v11316_v41 = vpack.c.bf16 %v2170_v51, %v2166_v2  ;;  %v1221_v13 = vld [vmem:[%s10834_s14 + $0x2b0] sm:$0xff] }
 0x175   : > { %17898 = vst [vmem:[#allocation21_spill] sm:$0xff] %v11273_v23  ;;  %17899 = vst [vmem:[#allocation22_spill] sm:$0xff] %v11280_v31  ;;  %1875 = vxpose.xlu0.b32.cont [5/16] %v1735_v19, 128  ;;  %v1285_v38 = vpop.permute.xlu1 %1284  ;;  %9184 = vmatprep.subr.bf16.mxu1 %v11292_v44  ;;  %v11306_v4 = vsub.f32 %v11282_v33, %v16913_v5  ;;  %v1152_v19 = vld [vmem:[%s10834_s14 + $0x88] sm:$0xff] }
 0x176   : > { %v11288_v42 = vsub.f32 %v11265_v18, %v2174_v29  ;;  %17901 = vst [vmem:[#allocation24_spill] sm:$0xff] %v11292_v44  ;;  %v1425_v47 = vpop.permute.xlu0 %1424  ;;  %v11296_v0 = vsub.f32 %v1540_v25, %v2172_v32  ;;  %v1541_v10 = vmul.f32 %v1285_v38, %v1149_v37  ;;  %v1542_v16 = vmul.f32 %v1285_v38, %v1150_v45  ;;  %v1161_v25 = vld [vmem:[%s10834_s14 + $0xd0] sm:$0xff]  ;;  %v1162_v45 = vld [vmem:[%s10834_s14 + $0xd8] sm:$0xff] }
 0x177   : > { %17903 = vst [vmem:[#allocation26_spill] sm:$0xff] %v11306_v4  ;;  %v11312_v34 = vsub.f32 %v11290_v43, %v16914_v9  ;;  %17905 = vst [vmem:[#allocation28_spill] sm:$0xff] %v11316_v41  ;;  %v11319_v7 = vmul.f32 %v1425_v47, %v1205_v52  ;;  %v11321_v49 = vmul.f32 %v1425_v47, %v1206_v57  ;;  %9186 = vmatpush1.bf16.msra.mxu1 %v11316_v41  ;;  %v1200_v9 = vld [vmem:[%s10834_s14 + $0x208] sm:$0xff] }
 0x178   : > { %17900 = vst [vmem:[#allocation23_spill] sm:$0xff] %v11288_v42  ;;  %17902 = vst [vmem:[#allocation25_spill] sm:$0xff] %v11296_v0  ;;  %v2178_v35 = vand.u32 4294901760, %v1541_v10  ;;  %v2176_v61 = vand.u32 4294901760, %v1542_v16 }
 0x179   : > { %1876 = vxpose.xlu0.b32.cont [6/16] %v1737_v48, 128  ;;  %v1290_v28 = vpop.permute.xlu1 %1289  ;;  %17904 = vst [vmem:[#allocation27_spill] sm:$0xff] %v11312_v34  ;;  %v16915_v2 = vand.u32 4294901760, %v11321_v49  ;;  %v16918_v51 = vand.u32 4294901760, %v11319_v7 }
 0x17a   : > { %v1315_v46 = vpop.permute.xlu0 %1314  ;;  %v11325_v26 = vsub.f32 %v1541_v10, %v2178_v35  ;;  %v11328_v37 = vmul.f32 %v1290_v28, %v1151_v27  ;;  %v11331_v38 = vsub.f32 %v1542_v16, %v2176_v61  ;;  %v1544_v48 = vmul.f32 %v1290_v28, %v1152_v19  ;;  %v1741_v27 = vld [vmem:[%s10839_s17 + $0x170] sm:$0xff] }
 0x17b   : > { %v11337_v52 = vmul.f32 %v1315_v46, %v1161_v25  ;;  %v11343_v16 = vsub.f32 %v11321_v49, %v16915_v2  ;;  %v11348_v5 = vsub.f32 %v11319_v7, %v16918_v51  ;;  %v11353_v19 = vmul.f32 %v1315_v46, %v1162_v45  ;;  %v1199_v25 = vld [vmem:[%s10834_s14 + $0x200] sm:$0xff]  ;;  %v1793_v51 = vld [vmem:[%s10839_s17 + $0x310] sm:$0xff] }
 0x17c   : > { %17906 = vst [vmem:[#allocation29_spill] sm:$0xff] %v11325_v26  ;;  %17907 = vst [vmem:[#allocation30_spill] sm:$0xff] %v11331_v38  ;;  %v2182_v10 = vand.u32 4294901760, %v11328_v37  ;;  %v2180_v28 = vand.u32 4294901760, %v1544_v48  ;;  %v11358_v1 = vpack.c.bf16 %v2176_v61, %v2172_v32  ;;  %v1743_v46 = vld [vmem:[%s10839_s17 + $0x180] sm:$0xff]  ;;  %v11382_v41 = vpack.c.bf16 %v2178_v35, %v2174_v29  ;;  %v1226_v38 = vld [vmem:[%s10834_s14 + $0x2d8] sm:$0xff] }
 0x17d   : > { %1877 = vxpose.xlu0.b32.cont [7/16] %v1739_v59, 128  ;;  %v1410_v47 = vpop.permute.xlu1 %1409  ;;  %17908 = vst [vmem:[#allocation31_spill] sm:$0xff] %v11343_v16  ;;  %17909 = vst [vmem:[#allocation32_spill] sm:$0xff] %v11348_v5  ;;  %v16923_v2 = vand.u32 4294901760, %v11337_v52 }
 0x17e   : > { %v1435_v57 = vpop.permute.xlu0 %1434  ;;  %v11351_v59 = vsub.f32 %v11328_v37, %v2182_v10  ;;  %17911 = vst [vmem:[#allocation34_spill] sm:$0xff] %v11358_v1  ;;  %v11361_v3 = vsub.f32 %v1544_v48, %v2180_v28  ;;  %9188 = vmatprep.subr.bf16.mxu1 %v11358_v1  ;;  %v11371_v32 = vmul.f32 %v1410_v47, %v1199_v25  ;;  %17915 = vst [vmem:[#allocation38_spill] sm:$0xff] %v11382_v41 }
 0x17f   : > { %1999 = vxpose.xlu1.b32.start [1/8] (short) %v1791_v63, 128  ;;  %v16930_v63 = vand.u32 4294901760, %v11353_v19  ;;  %v11368_v45 = vsub.f32 %v11337_v52, %v16923_v2  ;;  %v1592_v61 = vmul.f32 %v1410_v47, %v1200_v9  ;;  %v1155_v2 = vld [vmem:[%s10834_s14 + $0xa0] sm:$0xff]  ;;  %v1156_v47 = vld [vmem:[%s10834_s14 + $0xa8] sm:$0xff]  ;;  %9190 = vmatpush1.bf16.msra.mxu1 %v11382_v41  ;;  %v11393_v29 = vmul.f32 %v1435_v57, %v1210_v6 }
 0x180   : > { %17910 = vst [vmem:[#allocation33_spill] sm:$0xff] %v11351_v59  ;;  %17912 = vst [vmem:[#allocation35_spill] sm:$0xff] %v11361_v3  ;;  %v16939_v9 = vand.u32 4294901760, %v11371_v32  ;;  %v11408_v41 = vpack.c.bf16 %v17918_v8, %v2180_v28  ;;  %v11424_v8 = vpack.c.bf16 %v17922_v54, %v2182_v10  ;;  %v17924_v28 = vand.u32 4294901760, %v11184_v53  ;;  %v1767_v3 = vld [vmem:[%s10839_s17 + $0x240] sm:$0xff] }
 0x181   : > { %1878 = vxpose.xlu0.b32.cont [8/16] %v1741_v27, 128  ;;  %v1300_v22 = vpop.permute.xlu1 %1299  ;;  %17913 = vst [vmem:[#allocation36_spill] sm:$0xff] %v11368_v45  ;;  %v1209_v27 = vld [vmem:[%s10834_s14 + $0x250] sm:$0xff]  ;;  %v11378_v48 = vsub.f32 %v11353_v19, %v16930_v63  ;;  %v5106_v44 = vand.u32 4294901760, %v1592_v61  ;;  %v1795_v63 = vld [vmem:[%s10839_s17 + $0x320] sm:$0xff]  ;;  %v16942_v6 = vand.u32 4294901760, %v11393_v29 }
 0x182   : > { %v1325_v37 = vpop.permute.xlu0 %1324  ;;  %v11391_v18 = vmul.f32 %v1435_v57, %v1209_v27  ;;  %17919 = vst [vmem:[#allocation41_spill] sm:$0xff] %v11408_v41  ;;  %v11412_v27 = vmul.f32 %v1300_v22, %v1155_v2  ;;  %v1548_v1 = vmul.f32 %v1300_v22, %v1156_v47  ;;  %9192 = vmatprep.subr.bf16.mxu1 %v11408_v41  ;;  %17923 = vst [vmem:[#allocation43_spill] sm:$0xff] %v11424_v8  ;;  %v1797_v22 = vld [vmem:[%s10839_s17 + $0x330] sm:$0xff]  ;;  %v1747_v41 = vld [vmem:[%s10839_s17 + $0x1a0] sm:$0xff] }
 0x183   : > { %17914 = vst [vmem:[#allocation37_spill] sm:$0xff] %v11378_v48  ;;  %2000 = vxpose.xlu1.b32.cont [2/8] (short) %v1793_v51, 128  ;;  %v1745_v51 = vld [vmem:[%s10839_s17 + $0x190] sm:$0xff]  ;;  %v11399_v25 = vsub.f32 %v1592_v61, %v5106_v44  ;;  %v1166_v61 = vld [vmem:[%s10834_s14 + $0xf8] sm:$0xff]  ;;  %9194 = vmatpush1.bf16.msra.mxu1 %v11424_v8  ;;  %v1159_v8 = vld [vmem:[%s10834_s14 + $0xc0] sm:$0xff] }
 0x184   : > { %v16947_v57 = vand.u32 4294901760, %v11391_v18  ;;  %v2188_v10 = vand.u32 4294901760, %v1548_v1  ;;  %v2190_v47 = vand.u32 4294901760, %v11412_v27 }
 0x185   : > { %1879 = vxpose.xlu0.b32.cont [9/16] %v1743_v46, 128  ;;  %v1420_v17 = vpop.permute.xlu1 %1419  ;;  %17916 = vst [vmem:[#allocation39_spill] sm:$0xff] %v11399_v25  ;;  %v11404_v46 = vsub.f32 %v11371_v32, %v16939_v9  ;;  %v11419_v9 = vsub.f32 %v11186_v58, %v17920_v20  ;;  %v11437_v20 = vsub.f32 %v11393_v29, %v16942_v6  ;;  %v17928_v58 = vand.u32 4294901760, %v11258_v55 }
 0x186   : > { %v11395_v35 = vpop.permute.xlu0 %1444  ;;  %v11442_v50 = vsub.f32 %v11391_v18, %v16947_v57  ;;  %v11452_v6 = vmul.f32 %v1325_v37, %v1166_v61  ;;  %v1204_v57 = vld [vmem:[%s10834_s14 + $0x228] sm:$0xff]  ;;  %v17930_v25 = vand.u32 4294901760, %v11192_v60  ;;  %v11465_v48 = vsub.f32 %v1548_v1, %v2188_v10  ;;  %v1799_v1 = vld [vmem:[%s10839_s17 + $0x340] sm:$0xff] }
 0x187   : > { %17917 = vst [vmem:[#allocation40_spill] sm:$0xff] %v11404_v46  ;;  %2001 = vxpose.xlu1.b32.cont [3/8] (short) %v1795_v63, 128  ;;  %17921 = vst [vmem:[#allocation42_spill] sm:$0xff] %v11419_v9  ;;  %v11432_v63 = vsub.f32 %v11184_v53, %v17924_v28  ;;  %v11450_v28 = vmul.f32 %v1325_v37, %v1165_v24  ;;  %v11456_v53 = vpack.c.bf16 %v17928_v58, %v5106_v44  ;;  %v1213_v37 = vld [vmem:[%s10834_s14 + $0x270] sm:$0xff] }
 0x188   : > { %17926 = vst [vmem:[#allocation45_spill] sm:$0xff] %v11437_v20  ;;  %17927 = vst [vmem:[#allocation46_spill] sm:$0xff] %v11442_v50  ;;  %v11463_v50 = vsub.f32 %v11192_v60, %v17930_v25  ;;  %v11468_v24 = vsub.f32 %v11412_v27, %v2190_v47  ;;  %v1214_v20 = vld [vmem:[%s10834_s14 + $0x278] sm:$0xff]  ;;  %v1749_v58 = vld [vmem:[%s10839_s17 + $0x1b0] sm:$0xff] }
 0x189   : > { %1880 = vxpose.xlu0.b32.cont [10/16] %v1745_v51, 128  ;;  %v11426_v2 = vpop.permute.xlu1 %1309  ;;  %17925 = vst [vmem:[#allocation44_spill] sm:$0xff] %v11432_v63  ;;  %v1203_v51 = vld [vmem:[%s10834_s14 + $0x220] sm:$0xff]  ;;  %17929 = vst [vmem:[#allocation47_spill] sm:$0xff] %v11456_v53  ;;  %9560 = vmatprep.subr.bf16.mxu0 %v11456_v53  ;;  %v1160_v63 = vld [vmem:[%s10834_s14 + $0xc8] sm:$0xff] }
 0x18a   : > { %v11446_v54 = vpop.permute.xlu0 %1334  ;;  %17931 = vst [vmem:[#allocation48_spill] sm:$0xff] %v11463_v50  ;;  %17932 = vst [vmem:[#allocation49_spill] sm:$0xff] %v11465_v48  ;;  %v11473_v44 = vmul.f32 %v1420_v17, %v1203_v51  ;;  %v17934_v51 = vand.u32 4294901760, %v11452_v6  ;;  %v1169_v9 = vld [vmem:[%s10834_s14 + $0x110] sm:$0xff] }
 0x18b   : > { %17933 = vst [vmem:[#allocation50_spill] sm:$0xff] %v11468_v24  ;;  %2002 = vxpose.xlu1.b32.cont [4/8] (short) %v1797_v22, 128  ;;  %v1596_v22 = vmul.f32 %v1420_v17, %v1204_v57  ;;  %v17938_v17 = vand.u32 4294901760, %v11371_v32  ;;  %v17939_v57 = vand.u32 4294901760, %v11254_v40 }
 0x18c   : > { %v11489_v53 = vsub.f32 %v11452_v6, %v17934_v51  ;;  %v16964_v61 = vand.u32 4294901760, %v11473_v44 }
 0x18d   : > { %1881 = vxpose.xlu0.b32.cont [11/16] %v1747_v41, 128  ;;  %v11476_v25 = vpop.permute.xlu1 %1429  ;;  %v17936_v41 = vand.u32 4294901760, %v11450_v28  ;;  %v11501_v27 = vpack.c.bf16 %v17939_v57, %v17938_v17  ;;  %v5114_v51 = vand.u32 4294901760, %v1596_v22 }
 0x18e   : > { %v11482_v55 = vpop.permute.xlu0 %1454  ;;  %17935 = vst [vmem:[#allocation51_spill] sm:$0xff] %v11489_v53  ;;  %v11506_v53 = vmul.f32 %v11395_v35, %v1213_v37  ;;  %v11518_v17 = vsub.f32 %v11473_v44, %v16964_v61  ;;  %v11522_v37 = vmul.f32 %v11395_v35, %v1214_v20  ;;  %v1170_v35 = vld [vmem:[%s10834_s14 + $0x118] sm:$0xff]  ;;  %v1751_v20 = vld [vmem:[%s10839_s17 + $0x1c0] sm:$0xff] }
 0x18f   : > { %v11494_v60 = vsub.f32 %v11450_v28, %v17936_v41  ;;  %17940 = vst [vmem:[#allocation53_spill] sm:$0xff] %v11501_v27  ;;  %2003 = vxpose.xlu1.b32.cont [5/8] (short) %v1799_v1, 128  ;;  %v17941_v41 = vand.u32 4294901760, %v11190_v15  ;;  %9562 = vmatpush1.bf16.msra.mxu0 %v11501_v27  ;;  %v17944_v1 = vand.u32 4294901760, %v11290_v43  ;;  %v11533_v50 = vsub.f32 %v1596_v22, %v5114_v51 }
 0x190   : > { %17943 = vst [vmem:[#allocation55_spill] sm:$0xff] %v11518_v17  ;;  %v11537_v27 = vmul.f32 %v11426_v2, %v1159_v8  ;;  %v17947_v43 = vand.u32 4294901760, %v11202_v30  ;;  %v1552_v22 = vmul.f32 %v11426_v2, %v1160_v63  ;;  %v17951_v39 = vand.u32 4294901760, %v11506_v53 }
 0x191   : > { %17937 = vst [vmem:[#allocation52_spill] sm:$0xff] %v11494_v60  ;;  %v11512_v32 = vsub.f32 %v11190_v15, %v17941_v41  ;;  %v11526_v57 = vpack.c.bf16 %v17944_v1, %v2188_v10  ;;  %1882 = vxpose.xlu0.b32.cont [12/16] %v1749_v58, 128  ;;  %v11529_v41 = vpop.permute.xlu1 %1319  ;;  %v1801_v15 = vld [vmem:[%s10839_s17 + $0x350] sm:$0xff]  ;;  %17946 = vst [vmem:[#allocation57_spill] sm:$0xff] %v11533_v50  ;;  %v17949_v1 = vand.u32 4294901760, %v11282_v33  ;;  %v17953_v33 = vand.u32 4294901760, %v11218_v62 }
 0x192   : > { %v11544_v10 = vsub.f32 %v11202_v30, %v17947_v43  ;;  %v11553_v8 = vpop.permute.xlu0 %1344  ;;  %v11559_v43 = vsub.f32 %v11506_v53, %v17951_v39  ;;  %v16979_v58 = vand.u32 4294901760, %v11537_v27  ;;  %v17955_v63 = vand.u32 4294901760, %v11522_v37  ;;  %v1218_v30 = vld [vmem:[%s10834_s14 + $0x298] sm:$0xff] }
 0x193   : > { %17942 = vst [vmem:[#allocation54_spill] sm:$0xff] %v11512_v32  ;;  %17945 = vst [vmem:[#allocation56_spill] sm:$0xff] %v11526_v57  ;;  %9196 = vmatprep.subr.bf16.mxu1 %v11526_v57  ;;  %v11551_v40 = vpack.c.bf16 %v17949_v1, %v2190_v47  ;;  %v11563_v57 = vmul.f32 %v11446_v54, %v1169_v9  ;;  %2004 = vxpose.xlu1.b32.cont [6/8] (short) %v1801_v15, 128  ;;  %v2196_v39 = vand.u32 4294901760, %v1552_v22  ;;  %v1207_v9 = vld [vmem:[%s10834_s14 + $0x240] sm:$0xff] }
 0x194   : > { %17948 = vst [vmem:[#allocation58_spill] sm:$0xff] %v11544_v10  ;;  %17952 = vst [vmem:[#allocation60_spill] sm:$0xff] %v11559_v43  ;;  %v11568_v2 = vsub.f32 %v11218_v62, %v17953_v33  ;;  %v11573_v47 = vsub.f32 %v11522_v37, %v17955_v63  ;;  %v11577_v1 = vmul.f32 %v11446_v54, %v1170_v35  ;;  %v1803_v15 = vld [vmem:[%s10839_s17 + $0x360] sm:$0xff]  ;;  %v1208_v35 = vld [vmem:[%s10834_s14 + $0x248] sm:$0xff]  ;;  %v17966_v50 = vand.u32 4294901760, %v11473_v44 }
 0x195   : > { %17950 = vst [vmem:[#allocation59_spill] sm:$0xff] %v11551_v40  ;;  %9198 = vmatpush1.bf16.msra.mxu1 %v11551_v40  ;;  %1883 = vxpose.xlu0.b32.cont [13/16] %v1751_v20, 128  ;;  %v11580_v61 = vpop.permute.xlu1 %1439  ;;  %v11587_v63 = vsub.f32 %v11537_v27, %v16979_v58  ;;  %v17958_v40 = vand.u32 4294901760, %v11321_v49  ;;  %v1753_v20 = vld [vmem:[%s10839_s17 + $0x1d0] sm:$0xff]  ;;  %v17963_v49 = vand.u32 4294901760, %v11563_v57  ;;  %v11652_v11 = vmul.f32 %v11482_v55, %v1218_v30 }
 0x196   : > { %17954 = vst [vmem:[#allocation61_spill] sm:$0xff] %v11568_v2  ;;  %17956 = vst [vmem:[#allocation62_spill] sm:$0xff] %v11573_v47  ;;  %v11597_v47 = vsub.f32 %v1552_v22, %v2196_v39  ;;  %v16987_v33 = vand.u32 4294901760, %v11577_v1  ;;  %v1217_v22 = vld [vmem:[%s10834_s14 + $0x290] sm:$0xff] }
 0x197   : > { %17957 = vst [vmem:[#allocation63_spill] sm:$0xff] %v11587_v63  ;;  %v11592_v54 = vpack.c.bf16 %v17958_v40, %v5114_v51  ;;  %v17961_v63 = vand.u32 4294901760, %v11239_v12  ;;  %v11610_v51 = vsub.f32 %v11563_v57, %v17963_v49  ;;  %v11614_v40 = vmul.f32 %v11476_v25, %v1207_v9  ;;  %2005 = vxpose.xlu1.b32.cont [7/8] (short) %v1803_v15, 128  ;;  %v1805_v58 = vld [vmem:[%s10839_s17 + $0x370] sm:$0xff] }
 0x198   : > { %17960 = vst [vmem:[#allocation65_spill] sm:$0xff] %v11597_v47  ;;  %v1600_v49 = vmul.f32 %v11476_v25, %v1208_v35  ;;  %v1755_v25 = vld [vmem:[%s10839_s17 + $0x1e0] sm:$0xff]  ;;  %v1173_v44 = vld [vmem:[%s10834_s14 + $0x130] sm:$0xff] }
 0x199   : > { %17959 = vst [vmem:[#allocation64_spill] sm:$0xff] %v11592_v54  ;;  %v11605_v62 = vsub.f32 %v11239_v12, %v17961_v63  ;;  %17964 = vst [vmem:[#allocation67_spill] sm:$0xff] %v11610_v51  ;;  %9564 = vmatprep.subr.bf16.mxu0 %v11592_v54  ;;  %v11622_v63 = vsub.f32 %v11577_v1, %v16987_v33  ;;  %v17967_v54 = vand.u32 4294901760, %v11319_v7  ;;  %v11631_v12 = vpop.permute.xlu0 %1464  ;;  %1884 = vxpose.xlu0.b32.cont [14/16] %v1753_v20, 128  ;;  %v11633_v15 = vpop.permute.xlu1 %1329  ;;  %v1757_v30 = vld [vmem:[%s10839_s17 + $0x1f0] sm:$0xff] }
 0x19a   : > { %v17969_v33 = vand.u32 4294901760, %v11247_v21  ;;  %v5124_v7 = vand.u32 4294901760, %v11614_v40  ;;  %v5122_v35 = vand.u32 4294901760, %v1600_v49  ;;  %v11649_v20 = vmul.f32 %v11482_v55, %v1217_v22  ;;  %v1189_v47 = vld [vmem:[%s10834_s14 + $0x1b0] sm:$0xff] }
 0x19b   : > { %17962 = vst [vmem:[#allocation66_spill] sm:$0xff] %v11605_v62  ;;  %17965 = vst [vmem:[#allocation68_spill] sm:$0xff] %v11622_v63  ;;  %v11629_v9 = vpack.c.bf16 %v17967_v54, %v17966_v50  ;;  %v1163_v50 = vld [vmem:[%s10834_s14 + $0xe0] sm:$0xff]  ;;  %v17972_v54 = vand.u32 4294901760, %v11353_v19  ;;  %2006 = vxpose.xlu1.b32.end [8/8] (short) %v1805_v58, 128  ;;  %v17980_v19 = vand.u32 4294901760, %v11273_v23 }
 0x19c   : > { %v11640_v10 = vsub.f32 %v11247_v21, %v17969_v33  ;;  %v1164_v33 = vld [vmem:[%s10834_s14 + $0xe8] sm:$0xff]  ;;  %v11658_v2 = vsub.f32 %v11614_v40, %v5124_v7  ;;  %v11669_v55 = vmul.f32 %v11529_v41, %v1163_v50  ;;  %v1174_v21 = vld [vmem:[%s10834_s14 + $0x138] sm:$0xff]  ;;  %v17977_v50 = vand.u32 4294901760, %v11537_v27 }
 0x19d   : > { %17968 = vst [vmem:[#allocation69_spill] sm:$0xff] %v11629_v9  ;;  %9566 = vmatpush1.bf16.msra.mxu0 %v11629_v9  ;;  %v11662_v56 = vpack.c.bf16 %v17972_v54, %v2196_v39  ;;  %v11664_v9 = vsub.f32 %v1600_v49, %v5122_v35  ;;  %1885 = vxpose.xlu0.b32.cont [15/16] %v1755_v25, 128  ;;  %v11673_v40 = vpop.permute.xlu1 %1449  ;;  %v17975_v39 = vand.u32 4294901760, %v11263_v14  ;;  %v17978_v54 = vand.u32 4294901760, %v11337_v52 }
 0x19e   : > { %17970 = vst [vmem:[#allocation70_spill] sm:$0xff] %v11640_v10  ;;  %17971 = vst [vmem:[#allocation71_spill] sm:$0xff] %v11658_v2  ;;  %v1556_v49 = vmul.f32 %v11529_v41, %v1164_v33  ;;  %v11693_v22 = vsub.f32 %v11273_v23, %v17980_v19  ;;  %v17984_v41 = vand.u32 4294901760, %v11649_v20  ;;  %v2206_v52 = vand.u32 4294901760, %v11669_v55  ;;  %v11706_v33 = vpop.permute.xlu0 %1354 }
 0x19f   : > { %17973 = vst [vmem:[#allocation72_spill] sm:$0xff] %v11662_v56  ;;  %17974 = vst [vmem:[#allocation73_spill] sm:$0xff] %v11664_v9  ;;  %v11679_v58 = vsub.f32 %v11263_v14, %v17975_v39  ;;  %9200 = vmatprep.subr.bf16.mxu1 %v11662_v56  ;;  %v11687_v25 = vpack.c.bf16 %v17978_v54, %v17977_v50  ;;  %v17982_v39 = vand.u32 4294901760, %v11652_v11  ;;  %v1211_v56 = vld [vmem:[%s10834_s14 + $0x260] sm:$0xff]  ;;  %v17987_v50 = vand.u32 4294901760, %v11393_v29 }
 0x1a0   : > { %17981 = vst [vmem:[#allocation76_spill] sm:$0xff] %v11693_v22  ;;  %v11703_v27 = vsub.f32 %v11649_v20, %v17984_v41  ;;  %v2204_v54 = vand.u32 4294901760, %v1556_v49  ;;  %v11711_v19 = vmul.f32 %v11553_v8, %v1173_v44  ;;  %v1212_v41 = vld [vmem:[%s10834_s14 + $0x268] sm:$0xff]  ;;  %v11721_v10 = vsub.f32 %v11669_v55, %v2206_v52  ;;  %v1759_v55 = vld [vmem:[%s10839_s17 + $0x200] sm:$0xff]  ;;  %v1761_v22 = vld [vmem:[%s10839_s17 + $0x210] sm:$0xff] }
 0x1a1   : > { %17976 = vst [vmem:[#allocation74_spill] sm:$0xff] %v11679_v58  ;;  %17979 = vst [vmem:[#allocation75_spill] sm:$0xff] %v11687_v25  ;;  %v11698_v14 = vsub.f32 %v11652_v11, %v17982_v39  ;;  %9202 = vmatpush1.bf16.msra.mxu1 %v11687_v25  ;;  %v11714_v39 = vmul.f32 %v11553_v8, %v1174_v21  ;;  %v11725_v25 = vpack.c.bf16 %v17987_v50, %v5122_v35  ;;  %v11728_v44 = vpop.permute.xlu1 %1339  ;;  %v1779_v9 = vld [vmem:[%s10839_s17 + $0x2a0] sm:$0xff] }
 0x1a2   : > { %17985 = vst [vmem:[#allocation78_spill] sm:$0xff] %v11703_v27  ;;  %17986 = vst [vmem:[#allocation79_spill] sm:$0xff] %v11721_v10  ;;  %1886 = vxpose.xlu0.b32.end [16/16] %v1757_v30, 128  ;;  %v11731_v8 = vsub.f32 %v1556_v49, %v2204_v54  ;;  %v17014_v62 = vand.u32 4294901760, %v11711_v19  ;;  %v11741_v30 = vmul.f32 %v11580_v61, %v1211_v56  ;;  %v17992_v29 = vand.u32 4294901760, %v11391_v18  ;;  %v1168_v18 = vld [vmem:[%s10834_s14 + $0x108] sm:$0xff] }
 0x1a3   : > { %17983 = vst [vmem:[#allocation77_spill] sm:$0xff] %v11698_v14  ;;  %17988 = vst [vmem:[#allocation80_spill] sm:$0xff] %v11725_v25  ;;  %v17012_v23 = vand.u32 4294901760, %v11714_v39  ;;  %9568 = vmatprep.subr.bf16.mxu0 %v11725_v25  ;;  %v1604_v50 = vmul.f32 %v11580_v61, %v1212_v41  ;;  %v11759_v56 = vmul.f32 %v11631_v12, %v1221_v13  ;;  %v1167_v25 = vld [vmem:[%s10834_s14 + $0x100] sm:$0xff]  ;;  %v17994_v61 = vand.u32 4294901760, %v11288_v42 }
 0x1a4   : > { %17989 = vst [vmem:[#allocation81_spill] sm:$0xff] %v11731_v8  ;;  %v11752_v21 = vsub.f32 %v11711_v19, %v17014_v62  ;;  %v11756_v35 = vpack.c.bf16 %v17992_v29, %v5124_v7  ;;  %v5132_v8 = vand.u32 4294901760, %v11741_v30  ;;  %v11769_v62 = vmul.f32 %v11631_v12, %v1222_v36  ;;  %v11772_v7 = vpop.permute.xlu0 %1474 }
 0x1a5   : > { %v11747_v49 = vsub.f32 %v11714_v39, %v17012_v23  ;;  %v11765_v41 = vsub.f32 %v11288_v42, %v17994_v61  ;;  %v5130_v23 = vand.u32 4294901760, %v1604_v50  ;;  %v11774_v29 = vpop.permute.xlu1 %1459  ;;  %v17996_v13 = vand.u32 4294901760, %v11306_v4  ;;  %v1177_v61 = vld [vmem:[%s10834_s14 + $0x150] sm:$0xff] }
 0x1a6   : > { %17991 = vst [vmem:[#allocation83_spill] sm:$0xff] %v11752_v21  ;;  %17993 = vst [vmem:[#allocation84_spill] sm:$0xff] %v11756_v35  ;;  %1935 = vxpose.xlu0.b32.start [1/16] %v1759_v55, 128  ;;  %9570 = vmatpush1.bf16.msra.mxu0 %v11756_v35  ;;  %v17025_v42 = vand.u32 4294901760, %v11759_v56  ;;  %v17998_v12 = vand.u32 4294901760, %v11452_v6  ;;  %v11792_v31 = vsub.f32 %v11741_v30, %v5132_v8  ;;  %v18003_v30 = vand.u32 4294901760, %v11450_v28 }
 0x1a7   : > { %17990 = vst [vmem:[#allocation82_spill] sm:$0xff] %v11747_v49  ;;  %17995 = vst [vmem:[#allocation85_spill] sm:$0xff] %v11765_v41  ;;  %v11779_v58 = vsub.f32 %v11306_v4, %v17996_v13  ;;  %v11789_v55 = vsub.f32 %v1604_v50, %v5130_v23  ;;  %v17028_v13 = vand.u32 4294901760, %v11769_v62  ;;  %v11796_v4 = vmul.f32 %v11633_v15, %v1167_v25  ;;  %v1178_v25 = vld [vmem:[%s10834_s14 + $0x158] sm:$0xff] }
 0x1a8   : > { %v11786_v36 = vpack.c.bf16 %v17998_v12, %v2204_v54  ;;  %18001 = vst [vmem:[#allocation89_spill] sm:$0xff] %v11792_v31  ;;  %v11803_v6 = vsub.f32 %v11759_v56, %v17025_v42  ;;  %v1560_v54 = vmul.f32 %v11633_v15, %v1168_v18  ;;  %v11809_v50 = vpack.c.bf16 %v18003_v30, %v2206_v52  ;;  %v1215_v30 = vld [vmem:[%s10834_s14 + $0x280] sm:$0xff] }
 0x1a9   : > { %17997 = vst [vmem:[#allocation86_spill] sm:$0xff] %v11779_v58  ;;  %18000 = vst [vmem:[#allocation88_spill] sm:$0xff] %v11789_v55  ;;  %v11817_v42 = vsub.f32 %v11769_v62, %v17028_v13  ;;  %v2214_v0 = vand.u32 4294901760, %v11796_v4  ;;  %v11824_v18 = vmul.f32 %v11706_v33, %v1177_v61  ;;  %v1763_v12 = vld [vmem:[%s10839_s17 + $0x220] sm:$0xff]  ;;  %v18006_v13 = vand.u32 4294901760, %v11325_v26  ;;  %v11841_v61 = vpop.permute.xlu0 %1364 }
 0x1aa   : > { %17999 = vst [vmem:[#allocation87_spill] sm:$0xff] %v11786_v36  ;;  %18002 = vst [vmem:[#allocation90_spill] sm:$0xff] %v11803_v6  ;;  %9204 = vmatprep.subr.bf16.mxu1 %v11786_v36  ;;  %1936 = vxpose.xlu0.b32.cont [2/16] %v1761_v22, 128  ;;  %v2212_v52 = vand.u32 4294901760, %v1560_v54  ;;  %v11838_v28 = vmul.f32 %v11706_v33, %v1178_v25  ;;  %v11843_v36 = vpop.permute.xlu1 %1349  ;;  %v11861_v34 = vmul.f32 %v11673_v40, %v1215_v30  ;;  %v1765_v25 = vld [vmem:[%s10839_s17 + $0x230] sm:$0xff] }
 0x1ab   : > { %18004 = vst [vmem:[#allocation91_spill] sm:$0xff] %v11809_v50  ;;  %18005 = vst [vmem:[#allocation92_spill] sm:$0xff] %v11817_v42  ;;  %9206 = vmatpush1.bf16.msra.mxu1 %v11809_v50  ;;  %v11832_v22 = vsub.f32 %v11325_v26, %v18006_v13  ;;  %v11835_v15 = vsub.f32 %v11796_v4, %v2214_v0  ;;  %v1216_v50 = vld [vmem:[%s10834_s14 + $0x288] sm:$0xff]  ;;  %v17045_v58 = vand.u32 4294901760, %v11824_v18  ;;  %v18010_v13 = vand.u32 4294901760, %v11522_v37 }
 0x1ac   : > { %v11846_v35 = vsub.f32 %v1560_v54, %v2212_v52  ;;  %v18012_v4 = vand.u32 4294901760, %v11348_v5  ;;  %v17050_v41 = vand.u32 4294901760, %v11838_v28  ;;  %v1225_v54 = vld [vmem:[%s10834_s14 + $0x2d0] sm:$0xff]  ;;  %v18014_v37 = vand.u32 4294901760, %v11351_v59 }
 0x1ad   : > { %18007 = vst [vmem:[#allocation93_spill] sm:$0xff] %v11832_v22  ;;  %18008 = vst [vmem:[#allocation94_spill] sm:$0xff] %v11835_v15  ;;  %v11851_v26 = vpack.c.bf16 %v18010_v13, %v5130_v23  ;;  %v1608_v30 = vmul.f32 %v11673_v40, %v1216_v50  ;;  %v11895_v40 = vmul.f32 %v11772_v7, %v1226_v38  ;;  %v1171_v50 = vld [vmem:[%s10834_s14 + $0x120] sm:$0xff]  ;;  %v18020_v22 = vand.u32 4294901760, %v11368_v45 }
 0x1ae   : > { %18009 = vst [vmem:[#allocation95_spill] sm:$0xff] %v11846_v35  ;;  %v11856_v33 = vsub.f32 %v11348_v5, %v18012_v4  ;;  %1937 = vxpose.xlu0.b32.cont [3/16] %v1763_v12, 128  ;;  %v11869_v13 = vsub.f32 %v11351_v59, %v18014_v37  ;;  %v11874_v4 = vsub.f32 %v11824_v18, %v17045_v58  ;;  %v5140_v37 = vand.u32 4294901760, %v11861_v34  ;;  %v1172_v12 = vld [vmem:[%s10834_s14 + $0x128] sm:$0xff]  ;;  %v1182_v58 = vld [vmem:[%s10834_s14 + $0x178] sm:$0xff] }
 0x1af   : > { %18011 = vst [vmem:[#allocation96_spill] sm:$0xff] %v11851_v26  ;;  %9572 = vmatprep.subr.bf16.mxu0 %v11851_v26  ;;  %v11883_v23 = vsub.f32 %v11838_v28, %v17050_v41  ;;  %v18018_v5 = vand.u32 4294901760, %v11506_v53  ;;  %v5138_v16 = vand.u32 4294901760, %v1608_v30  ;;  %v11892_v26 = vmul.f32 %v11772_v7, %v1225_v54  ;;  %v1485_v7 = vpop.permute.xlu0 %1484  ;;  %v11913_v54 = vpop.permute.xlu1 %1469 }
 0x1b0   : > { %18013 = vst [vmem:[#allocation97_spill] sm:$0xff] %v11856_v33  ;;  %18015 = vst [vmem:[#allocation98_spill] sm:$0xff] %v11869_v13  ;;  %v11903_v53 = vsub.f32 %v11368_v45, %v18020_v22  ;;  %v1181_v45 = vld [vmem:[%s10834_s14 + $0x170] sm:$0xff] }
 0x1b1   : > { %18016 = vst [vmem:[#allocation99_spill] sm:$0xff] %v11874_v4  ;;  %18017 = vst [vmem:[#allocation100_spill] sm:$0xff] %v11883_v23  ;;  %v11888_v59 = vpack.c.bf16 %v18018_v5, %v5132_v8  ;;  %v11906_v5 = vsub.f32 %v11861_v34, %v5140_v37  ;;  %v18023_v8 = vand.u32 4294901760, %v11577_v1  ;;  %v11916_v41 = vsub.f32 %v1608_v30, %v5138_v16  ;;  %v1220_v34 = vld [vmem:[%s10834_s14 + $0x2a8] sm:$0xff] }
 0x1b2   : > { %18021 = vst [vmem:[#allocation102_spill] sm:$0xff] %v11903_v53  ;;  %1938 = vxpose.xlu0.b32.cont [4/16] %v1765_v25, 128  ;;  %v1564_v25 = vmul.f32 %v11728_v44, %v1172_v12  ;;  %v18026_v30 = vand.u32 4294901760, %v11563_v57  ;;  %v18030_v1 = vand.u32 4294901760, %v11895_v40  ;;  %v11949_v12 = vmul.f32 %v11841_v61, %v1181_v45 }
 0x1b3   : > { %18019 = vst [vmem:[#allocation101_spill] sm:$0xff] %v11888_v59  ;;  %18022 = vst [vmem:[#allocation103_spill] sm:$0xff] %v11906_v5  ;;  %9574 = vmatpush1.bf16.msra.mxu0 %v11888_v59  ;;  %v11911_v38 = vpack.c.bf16 %v18023_v8, %v2212_v52  ;;  %v11925_v52 = vmul.f32 %v11728_v44, %v1171_v50  ;;  %v18029_v59 = vld [vmem:[#allocation46_spill] sm:$0xff]  ;;  %v18032_v50 = vand.u32 4294901760, %v11892_v26  ;;  %v18035_v57 = vand.u32 4294901760, %v11652_v11 }
 0x1b4   : > { %18025 = vst [vmem:[#allocation105_spill] sm:$0xff] %v11916_v41  ;;  %v11930_v8 = vpack.c.bf16 %v18026_v30, %v2214_v0  ;;  %v11938_v33 = vsub.f32 %v11895_v40, %v18030_v1  ;;  %v2220_v0 = vand.u32 4294901760, %v1564_v25  ;;  %v1219_v30 = vld [vmem:[%s10834_s14 + $0x2a0] sm:$0xff]  ;;  %v18037_v45 = vand.u32 4294901760, %v11404_v46  ;;  %v11976_v1 = vpop.permute.xlu1 %1359 }
 0x1b5   : > { %18024 = vst [vmem:[#allocation104_spill] sm:$0xff] %v11911_v38  ;;  %9208 = vmatprep.subr.bf16.mxu1 %v11911_v38  ;;  %v11943_v38 = vsub.f32 %v11892_v26, %v18032_v50  ;;  %v11956_v50 = vmul.f32 %v11841_v61, %v1182_v58  ;;  %v11960_v44 = vpack.c.bf16 %v18035_v57, %v5138_v16  ;;  %v18040_v13 = vand.u32 4294901760, %v11925_v52  ;;  %v1375_v61 = vpop.permute.xlu0 %1374  ;;  %v1230_v58 = vld [vmem:[%s10834_s14 + $0x2f8] sm:$0xff] }
 0x1b6   : > { %18027 = vst [vmem:[#allocation106_spill] sm:$0xff] %v11930_v8  ;;  %18031 = vst [vmem:[#allocation107_spill] sm:$0xff] %v11938_v33  ;;  %9210 = vmatpush1.bf16.msra.mxu1 %v11930_v8  ;;  %1939 = vxpose.xlu0.b32.cont [5/16] %v1767_v3, 128  ;;  %v1769_v8 = vld [vmem:[%s10839_s17 + $0x250] sm:$0xff]  ;;  %v11966_v53 = vsub.f32 %v11404_v46, %v18037_v45  ;;  %v11968_v3 = vsub.f32 %v1564_v25, %v2220_v0  ;;  %v18042_v11 = vand.u32 4294901760, %v18029_v59 }
 0x1b7   : > { %18033 = vst [vmem:[#allocation108_spill] sm:$0xff] %v11943_v38  ;;  %18036 = vst [vmem:[#allocation109_spill] sm:$0xff] %v11960_v44  ;;  %v11973_v22 = vsub.f32 %v11925_v52, %v18040_v13  ;;  %9576 = vmatprep.subr.bf16.mxu0 %v11960_v44  ;;  %v11986_v25 = vmul.f32 %v11774_v29, %v1219_v30  ;;  %v1612_v13 = vmul.f32 %v11774_v29, %v1220_v34  ;;  %v1229_v45 = vld [vmem:[%s10834_s14 + $0x2f0] sm:$0xff] }
 0x1b8   : > { %18038 = vst [vmem:[#allocation110_spill] sm:$0xff] %v11966_v53  ;;  %18039 = vst [vmem:[#allocation111_spill] sm:$0xff] %v11968_v3  ;;  %v11981_v16 = vsub.f32 %v18029_v59, %v18042_v11  ;;  %v18045_v11 = vand.u32 4294901760, %v11949_v12  ;;  %v18047_v44 = vand.u32 4294901760, %v11649_v20  ;;  %v18049_v29 = vand.u32 4294901760, %v11468_v24  ;;  %v12045_v48 = vpop.permute.xlu1 %1479  ;;  %v1223_v53 = vld [vmem:[%s10834_s14 + $0x2c0] sm:$0xff] }
 0x1b9   : > { %18041 = vst [vmem:[#allocation112_spill] sm:$0xff] %v11973_v22  ;;  %v18051_v30 = vand.u32 4294901760, %v11956_v50  ;;  %v5146_v3 = vand.u32 4294901760, %v1612_v13  ;;  %v17079_v46 = vand.u32 4294901760, %v11986_v25  ;;  %v18055_v20 = vand.u32 4294901760, %v11714_v39 }
 0x1ba   : > { %18043 = vst [vmem:[#allocation113_spill] sm:$0xff] %v11981_v16  ;;  %v11996_v57 = vsub.f32 %v11949_v12, %v18045_v11  ;;  %v12000_v59 = vpack.c.bf16 %v18047_v44, %v5140_v37  ;;  %1940 = vxpose.xlu0.b32.cont [6/16] %v1769_v8, 128  ;;  %v12005_v34 = vsub.f32 %v11468_v24, %v18049_v29  ;;  %v1695_v11 = vld [vmem:[%s10839_s17] sm:$0xff]  ;;  %v1176_v24 = vld [vmem:[%s10834_s14 + $0x148] sm:$0xff]  ;;  %v18155_v33 = vand.u32 4294901760, %v11943_v38 }
 0x1bb   : > { %v12010_v32 = vsub.f32 %v11956_v50, %v18051_v30  ;;  %v12018_v8 = vmul.f32 %v1485_v7, %v1229_v45  ;;  %v12020_v44 = vmul.f32 %v1485_v7, %v1230_v58  ;;  %v1175_v29 = vld [vmem:[%s10834_s14 + $0x140] sm:$0xff]  ;;  %v12030_v22 = vsub.f32 %v11986_v25, %v17079_v46  ;;  %v1495_v46 = vpop.permute.xlu0 %1494  ;;  %v1186_v7 = vld [vmem:[%s10834_s14 + $0x198] sm:$0xff]  ;;  %v1697_v30 = vld [vmem:[%s10839_s17 + $0x10] sm:$0xff] }
 0x1bc   : > { %18046 = vst [vmem:[#allocation114_spill] sm:$0xff] %v11996_v57  ;;  %18048 = vst [vmem:[#allocation115_spill] sm:$0xff] %v12000_v59  ;;  %v1771_v57 = vld [vmem:[%s10839_s17 + $0x260] sm:$0xff]  ;;  %9578 = vmatpush1.bf16.msra.mxu0 %v12000_v59  ;;  %v12034_v37 = vpack.c.bf16 %v18055_v20, %v2220_v0  ;;  %v18057_v58 = vand.u32 4294901760, %v11518_v17  ;;  %v1185_v59 = vld [vmem:[%s10834_s14 + $0x190] sm:$0xff]  ;;  %1807 = vxpose.xlu1.b32.start [1/16] %v1695_v11, 128  ;;  %v12051_v20 = vmul.f32 %v11843_v36, %v1175_v29 }
 0x1bd   : > { %18050 = vst [vmem:[#allocation116_spill] sm:$0xff] %v12005_v34  ;;  %18052 = vst [vmem:[#allocation117_spill] sm:$0xff] %v12010_v32  ;;  %v12025_v32 = vsub.f32 %v1612_v13, %v5146_v3  ;;  %v18060_v11 = vand.u32 4294901760, %v12020_v44  ;;  %v18062_v39 = vand.u32 4294901760, %v12018_v8  ;;  %v18065_v29 = vand.u32 4294901760, %v11711_v19  ;;  %v1224_v13 = vld [vmem:[%s10834_s14 + $0x2c8] sm:$0xff] }
 0x1be   : > { %18054 = vst [vmem:[#allocation119_spill] sm:$0xff] %v12030_v22  ;;  %18056 = vst [vmem:[#allocation120_spill] sm:$0xff] %v12034_v37  ;;  %v12040_v45 = vsub.f32 %v11518_v17, %v18057_v58  ;;  %1941 = vxpose.xlu0.b32.cont [7/16] %v1771_v57, 128  ;;  %9212 = vmatprep.subr.bf16.mxu1 %v12034_v37  ;;  %v1568_v58 = vmul.f32 %v11843_v36, %v1176_v24  ;;  %v18064_v37 = vand.u32 4294901760, %v11925_v52  ;;  %v1773_v24 = vld [vmem:[%s10839_s17 + $0x270] sm:$0xff]  ;;  %v18067_v36 = vld [vmem:[#allocation63_spill] sm:$0xff] }
 0x1bf   : > { %18053 = vst [vmem:[#allocation118_spill] sm:$0xff] %v12025_v32  ;;  %v12060_v57 = vsub.f32 %v12020_v44, %v18060_v11  ;;  %v12065_v0 = vsub.f32 %v12018_v8, %v18062_v39  ;;  %v17094_v16 = vand.u32 4294901760, %v12051_v20  ;;  %v12076_v11 = vmul.f32 %v1375_v61, %v1185_v59  ;;  %v1234_v34 = vld [vmem:[%s10834_s14 + $0x318] sm:$0xff] }
 0x1c0   : > { %18058 = vst [vmem:[#allocation121_spill] sm:$0xff] %v12040_v45  ;;  %v12071_v60 = vpack.c.bf16 %v18065_v29, %v18064_v37  ;;  %v2228_v17 = vand.u32 4294901760, %v1568_v58  ;;  %v12083_v19 = vmul.f32 %v1375_v61, %v1186_v7  ;;  %v18068_v52 = vand.u32 4294901760, %v11769_v62  ;;  %1808 = vxpose.xlu1.b32.cont [2/16] %v1697_v30, 128  ;;  %v1699_v62 = vld [vmem:[%s10839_s17 + $0x20] sm:$0xff] }
 0x1c1   : > { %18061 = vst [vmem:[#allocation122_spill] sm:$0xff] %v12060_v57  ;;  %18063 = vst [vmem:[#allocation123_spill] sm:$0xff] %v12065_v0  ;;  %v18070_v59 = vand.u32 4294901760, %v11559_v43  ;;  %v12099_v57 = vsub.f32 %v12051_v20, %v17094_v16  ;;  %v12112_v16 = vpop.permute.xlu1 %1369  ;;  %v1775_v61 = vld [vmem:[%s10839_s17 + $0x280] sm:$0xff] }
 0x1c2   : > { %18066 = vst [vmem:[#allocation124_spill] sm:$0xff] %v12071_v60  ;;  %9214 = vmatpush1.bf16.msra.mxu1 %v12071_v60  ;;  %v12087_v37 = vpack.c.bf16 %v18068_v52, %v5146_v3  ;;  %v12094_v39 = vsub.f32 %v1568_v58, %v2228_v17  ;;  %1942 = vxpose.xlu0.b32.cont [8/16] %v1773_v24, 128  ;;  %v1385_v60 = vpop.permute.xlu0 %1384  ;;  %v18075_v24 = vand.u32 4294901760, %v18067_v36  ;;  %v18082_v3 = vand.u32 4294901760, %v11610_v51 }
 0x1c3   : > { %v12092_v29 = vsub.f32 %v11559_v43, %v18070_v59  ;;  %18073 = vst [vmem:[#allocation128_spill] sm:$0xff] %v12099_v57  ;;  %v12107_v52 = vmul.f32 %v11913_v54, %v1223_v53  ;;  %v1616_v58 = vmul.f32 %v11913_v54, %v1224_v13  ;;  %v1233_v59 = vld [vmem:[%s10834_s14 + $0x310] sm:$0xff]  ;;  %v18077_v53 = vand.u32 4294901760, %v12076_v11 }
 0x1c4   : > { %18069 = vst [vmem:[#allocation125_spill] sm:$0xff] %v12087_v37  ;;  %18072 = vst [vmem:[#allocation127_spill] sm:$0xff] %v12094_v39  ;;  %9580 = vmatprep.subr.bf16.mxu0 %v12087_v37  ;;  %v12118_v7 = vsub.f32 %v18067_v36, %v18075_v24  ;;  %v18079_v13 = vand.u32 4294901760, %v11986_v25  ;;  %v18080_v37 = vand.u32 4294901760, %v11759_v56  ;;  %v12135_v45 = vsub.f32 %v11610_v51, %v18082_v3  ;;  %v1180_v51 = vld [vmem:[%s10834_s14 + $0x168] sm:$0xff]  ;;  %v1798_v39 = vld [vmem:[%s10839_s17 + $0x338] sm:$0xff] }
 0x1c5   : > { %18071 = vst [vmem:[#allocation126_spill] sm:$0xff] %v12092_v29  ;;  %v12124_v54 = vsub.f32 %v12076_v11, %v18077_v53  ;;  %v18084_v24 = vand.u32 4294901760, %v12083_v19  ;;  %v5154_v36 = vand.u32 4294901760, %v1616_v58  ;;  %1809 = vxpose.xlu1.b32.cont [3/16] %v1699_v62, 128  ;;  %v12148_v3 = vmul.f32 %v1495_v46, %v1234_v34  ;;  %v1228_v29 = vld [vmem:[%s10834_s14 + $0x2e8] sm:$0xff] }
 0x1c6   : > { %18076 = vst [vmem:[#allocation129_spill] sm:$0xff] %v12118_v7  ;;  %v12130_v43 = vpack.c.bf16 %v18080_v37, %v18079_v13  ;;  %18083 = vst [vmem:[#allocation132_spill] sm:$0xff] %v12135_v45  ;;  %v12146_v37 = vmul.f32 %v1495_v46, %v1233_v59  ;;  %v1179_v13 = vld [vmem:[%s10834_s14 + $0x160] sm:$0xff]  ;;  %1943 = vxpose.xlu0.b32.cont [9/16] %v1775_v61, 128  ;;  %v18087_v62 = vand.u32 4294901760, %v12107_v52  ;;  %v18089_v25 = vand.u32 4294901760, %v11838_v28  ;;  %v1777_v46 = vld [vmem:[%s10839_s17 + $0x290] sm:$0xff]  ;;  %v1505_v34 = vpop.permute.xlu0 %1504 }
 0x1c7   : > { %18078 = vst [vmem:[#allocation130_spill] sm:$0xff] %v12124_v54  ;;  %v12140_v30 = vsub.f32 %v12083_v19, %v18084_v24  ;;  %v1701_v24 = vld [vmem:[%s10839_s17 + $0x30] sm:$0xff]  ;;  %v12154_v53 = vsub.f32 %v1616_v58, %v5154_v36  ;;  %v18091_v61 = vand.u32 4294901760, %v11658_v2  ;;  %v12183_v58 = vpop.permute.xlu1 %1489  ;;  %v12209_v7 = vmul.f32 %v1385_v60, %v1189_v47 }
 0x1c8   : > { %18081 = vst [vmem:[#allocation131_spill] sm:$0xff] %v12130_v43  ;;  %9582 = vmatpush1.bf16.msra.mxu0 %v12130_v43  ;;  %v12159_v56 = vsub.f32 %v12107_v52, %v18087_v62  ;;  %v12163_v59 = vpack.c.bf16 %v18089_v25, %v2228_v17  ;;  %v12179_v17 = vmul.f32 %v11976_v1, %v1179_v13  ;;  %v18093_v62 = vand.u32 4294901760, %v12148_v3 }
 0x1c9   : > { %18085 = vst [vmem:[#allocation133_spill] sm:$0xff] %v12140_v30  ;;  %18086 = vst [vmem:[#allocation134_spill] sm:$0xff] %v12154_v53  ;;  %v12170_v43 = vsub.f32 %v11658_v2, %v18091_v61  ;;  %v1572_v25 = vmul.f32 %v11976_v1, %v1180_v51  ;;  %v1190_v61 = vld [vmem:[%s10834_s14 + $0x1b8] sm:$0xff]  ;;  %1810 = vxpose.xlu1.b32.cont [4/16] %v1701_v24, 128  ;;  %v18095_v13 = vand.u32 4294901760, %v12146_v37  ;;  %v18097_v51 = vand.u32 4294901760, %v12051_v20  ;;  %v1703_v24 = vld [vmem:[%s10839_s17 + $0x40] sm:$0xff] }
 0x1ca   : > { %18088 = vst [vmem:[#allocation135_spill] sm:$0xff] %v12159_v56  ;;  %18090 = vst [vmem:[#allocation136_spill] sm:$0xff] %v12163_v59  ;;  %9216 = vmatprep.subr.bf16.mxu1 %v12163_v59  ;;  %v12189_v28 = vsub.f32 %v12148_v3, %v18093_v62  ;;  %v18098_v1 = vand.u32 4294901760, %v11824_v18  ;;  %1944 = vxpose.xlu0.b32.cont [10/16] %v1777_v46, 128  ;;  %v18100_v30 = vand.u32 4294901760, %v11703_v27  ;;  %v2238_v63 = vand.u32 4294901760, %v12179_v17 }
 0x1cb   : > { %18092 = vst [vmem:[#allocation137_spill] sm:$0xff] %v12170_v43  ;;  %v12194_v59 = vsub.f32 %v12146_v37, %v18095_v13  ;;  %v2236_v62 = vand.u32 4294901760, %v1572_v25  ;;  %v1227_v13 = vld [vmem:[%s10834_s14 + $0x2e0] sm:$0xff]  ;;  %v12217_v46 = vmul.f32 %v1385_v60, %v1190_v61  ;;  %v17125_v18 = vand.u32 4294901760, %v12209_v7  ;;  %v1705_v61 = vld [vmem:[%s10839_s17 + $0x50] sm:$0xff] }
 0x1cc   : > { %18094 = vst [vmem:[#allocation138_spill] sm:$0xff] %v12189_v28  ;;  %v12200_v2 = vpack.c.bf16 %v18098_v1, %v18097_v51  ;;  %v12206_v45 = vsub.f32 %v11703_v27, %v18100_v30  ;;  %v18102_v30 = vand.u32 4294901760, %v11895_v40  ;;  %v12227_v27 = vsub.f32 %v12179_v17, %v2238_v63  ;;  %v1238_v17 = vld [vmem:[%s10834_s14 + $0x338] sm:$0xff]  ;;  %v1709_v43 = vld [vmem:[%s10839_s17 + $0x70] sm:$0xff] }
 0x1cd   : > { %18096 = vst [vmem:[#allocation139_spill] sm:$0xff] %v12194_v59  ;;  %v12224_v1 = vsub.f32 %v1572_v25, %v2236_v62  ;;  %1811 = vxpose.xlu1.b32.cont [5/16] %v1703_v24, 128  ;;  %v12234_v40 = vmul.f32 %v12045_v48, %v1227_v13  ;;  %v1237_v25 = vld [vmem:[%s10834_s14 + $0x330] sm:$0xff]  ;;  %v12245_v20 = vsub.f32 %v12209_v7, %v17125_v18  ;;  %v18107_v47 = vand.u32 4294901760, %v12107_v52 }
 0x1ce   : > { %18099 = vst [vmem:[#allocation140_spill] sm:$0xff] %v12200_v2  ;;  %18101 = vst [vmem:[#allocation141_spill] sm:$0xff] %v12206_v45  ;;  %9218 = vmatpush1.bf16.msra.mxu1 %v12200_v2  ;;  %v12221_v51 = vpack.c.bf16 %v18102_v30, %v5154_v36  ;;  %v1620_v36 = vmul.f32 %v12045_v48, %v1228_v29  ;;  %1945 = vxpose.xlu0.b32.cont [11/16] %v1779_v9, 128  ;;  %v18108_v13 = vand.u32 4294901760, %v11892_v26  ;;  %v1183_v48 = vld [vmem:[%s10834_s14 + $0x180] sm:$0xff]  ;;  %v1395_v29 = vpop.permute.xlu0 %1394  ;;  %v1781_v9 = vld [vmem:[%s10839_s17 + $0x2b0] sm:$0xff] }
 0x1cf   : > { %18104 = vst [vmem:[#allocation143_spill] sm:$0xff] %v12224_v1  ;;  %18105 = vst [vmem:[#allocation144_spill] sm:$0xff] %v12227_v27  ;;  %v18110_v24 = vand.u32 4294901760, %v12217_v46  ;;  %v5164_v52 = vand.u32 4294901760, %v12234_v40  ;;  %v1184_v26 = vld [vmem:[%s10834_s14 + $0x188] sm:$0xff]  ;;  %v12272_v30 = vmul.f32 %v1505_v34, %v1237_v25  ;;  %v12274_v10 = vmul.f32 %v1505_v34, %v1238_v17  ;;  %v1707_v25 = vld [vmem:[%s10839_s17 + $0x60] sm:$0xff] }
 0x1d0   : > { %18103 = vst [vmem:[#allocation142_spill] sm:$0xff] %v12221_v51  ;;  %9584 = vmatprep.subr.bf16.mxu0 %v12221_v51  ;;  %18106 = vst [vmem:[#allocation145_spill] sm:$0xff] %v12245_v20  ;;  %v12251_v60 = vpack.c.bf16 %v18108_v13, %v18107_v47  ;;  %v12254_v51 = vpop.permute.xlu1 %1379  ;;  %v5162_v18 = vand.u32 4294901760, %v1620_v36  ;;  %v18112_v47 = vand.u32 4294901760, %v11752_v21  ;;  %v18116_v45 = vand.u32 4294901760, %v11956_v50  ;;  %v1194_v50 = vld [vmem:[%s10834_s14 + $0x1d8] sm:$0xff] }
 0x1d1   : > { %v12261_v2 = vsub.f32 %v12217_v46, %v18110_v24  ;;  %1812 = vxpose.xlu1.b32.cont [6/16] %v1705_v61, 128  ;;  %v12286_v49 = vmul.f32 %v12112_v16, %v1183_v48  ;;  %v17141_v17 = vand.u32 4294901760, %v12272_v30  ;;  %v18145_v23 = vand.u32 4294901760, %v12083_v19 }
 0x1d2   : > { %18109 = vst [vmem:[#allocation146_spill] sm:$0xff] %v12251_v60  ;;  %v12268_v13 = vsub.f32 %v11752_v21, %v18112_v47  ;;  %9586 = vmatpush1.bf16.msra.mxu0 %v12251_v60  ;;  %v12276_v24 = vsub.f32 %v1620_v36, %v5162_v18  ;;  %v12283_v47 = vpack.c.bf16 %v18116_v45, %v2236_v62  ;;  %v1193_v21 = vld [vmem:[%s10834_s14 + $0x1d0] sm:$0xff]  ;;  %v17138_v36 = vand.u32 4294901760, %v12274_v10  ;;  %v1515_v60 = vpop.permute.xlu0 %1514 }
 0x1d3   : > { %18111 = vst [vmem:[#allocation147_spill] sm:$0xff] %v12261_v2  ;;  %v12279_v2 = vsub.f32 %v12234_v40, %v5164_v52  ;;  %1946 = vxpose.xlu0.b32.cont [12/16] %v1781_v9, 128  ;;  %v12294_v40 = vmul.f32 %v12112_v16, %v1184_v26  ;;  %v18118_v45 = vand.u32 4294901760, %v11792_v31  ;;  %v18120_v9 = vand.u32 4294901760, %v11949_v12  ;;  %v1783_v16 = vld [vmem:[%s10839_s17 + $0x2c0] sm:$0xff] }
 0x1d4   : > { %18113 = vst [vmem:[#allocation148_spill] sm:$0xff] %v12268_v13  ;;  %18114 = vst [vmem:[#allocation149_spill] sm:$0xff] %v12276_v24  ;;  %9220 = vmatprep.subr.bf16.mxu1 %v12283_v47  ;;  %v12313_v26 = vsub.f32 %v12274_v10, %v17138_v36  ;;  %v12321_v48 = vmul.f32 %v1395_v29, %v1193_v21  ;;  %v1231_v12 = vld [vmem:[%s10834_s14 + $0x300] sm:$0xff]  ;;  %v18126_v36 = vand.u32 4294901760, %v12286_v49 }
 0x1d5   : > { %18115 = vst [vmem:[#allocation150_spill] sm:$0xff] %v12279_v2  ;;  %18117 = vst [vmem:[#allocation151_spill] sm:$0xff] %v12283_v47  ;;  %v12300_v62 = vsub.f32 %v11792_v31, %v18118_v45  ;;  %v12307_v34 = vpack.c.bf16 %v18120_v9, %v2238_v63  ;;  %v12318_v45 = vsub.f32 %v12272_v30, %v17141_v17  ;;  %v2244_v61 = vand.u32 4294901760, %v12294_v40  ;;  %v12324_v63 = vpop.permute.xlu1 %1499  ;;  %v1787_v13 = vld [vmem:[%s10839_s17 + $0x2e0] sm:$0xff] }
 0x1d6   : > { %18122 = vst [vmem:[#allocation154_spill] sm:$0xff] %v12313_v26  ;;  %1813 = vxpose.xlu1.b32.cont [7/16] %v1707_v25, 128  ;;  %v18124_v9 = vand.u32 4294901760, %v11803_v6  ;;  %v12334_v31 = vsub.f32 %v12286_v49, %v18126_v36  ;;  %v12337_v21 = vmul.f32 %v1395_v29, %v1194_v50  ;;  %v18128_v17 = vand.u32 4294901760, %v12020_v44  ;;  %v1232_v25 = vld [vmem:[%s10834_s14 + $0x308] sm:$0xff]  ;;  %v1405_v42 = vpop.permute.xlu0 %1404 }
 0x1d7   : > { %18119 = vst [vmem:[#allocation152_spill] sm:$0xff] %v12300_v62  ;;  %18121 = vst [vmem:[#allocation153_spill] sm:$0xff] %v12307_v34  ;;  %9222 = vmatpush1.bf16.msra.mxu1 %v12307_v34  ;;  %v12348_v36 = vsub.f32 %v12294_v40, %v2244_v61  ;;  %v17155_v55 = vand.u32 4294901760, %v12321_v48  ;;  %1947 = vxpose.xlu0.b32.cont [13/16] %v1783_v16, 128  ;;  %v18131_v50 = vand.u32 4294901760, %v11835_v15  ;;  %v1241_v40 = vld [vmem:[%s10834_s14 + $0x350] sm:$0xff]  ;;  %v18136_v29 = vand.u32 4294901760, %v12018_v8 }
 0x1d8   : > { %18123 = vst [vmem:[#allocation155_spill] sm:$0xff] %v12318_v45  ;;  %v12329_v47 = vsub.f32 %v11803_v6, %v18124_v9  ;;  %18127 = vst [vmem:[#allocation157_spill] sm:$0xff] %v12334_v31  ;;  %v12341_v14 = vpack.c.bf16 %v18128_v17, %v5162_v18  ;;  %v12360_v17 = vmul.f32 %v12183_v58, %v1231_v12  ;;  %v1785_v9 = vld [vmem:[%s10839_s17 + $0x2d0] sm:$0xff]  ;;  %v1242_v18 = vld [vmem:[%s10834_s14 + $0x358] sm:$0xff] }
 0x1d9   : > { %18130 = vst [vmem:[#allocation159_spill] sm:$0xff] %v12348_v36  ;;  %v12355_v44 = vsub.f32 %v11835_v15, %v18131_v50  ;;  %v12369_v50 = vsub.f32 %v12321_v48, %v17155_v55  ;;  %v1624_v6 = vmul.f32 %v12183_v58, %v1232_v25  ;;  %v12382_v15 = vpack.c.bf16 %v18136_v29, %v5164_v52  ;;  %v1711_v55 = vld [vmem:[%s10839_s17 + $0x80] sm:$0xff]  ;;  %v12395_v16 = vpop.permute.xlu1 %1389 }
 0x1da   : > { %18125 = vst [vmem:[#allocation156_spill] sm:$0xff] %v12329_v47  ;;  %18129 = vst [vmem:[#allocation158_spill] sm:$0xff] %v12341_v14  ;;  %9588 = vmatprep.subr.bf16.mxu0 %v12341_v14  ;;  %1814 = vxpose.xlu1.b32.cont [8/16] %v1709_v43, 128  ;;  %v18134_v14 = vand.u32 4294901760, %v12337_v21  ;;  %v18138_v58 = vand.u32 4294901760, %v11874_v4  ;;  %v12391_v12 = vmul.f32 %v1515_v60, %v1241_v40  ;;  %v1188_v47 = vld [vmem:[%s10834_s14 + $0x1a8] sm:$0xff]  ;;  %v18140_v29 = vand.u32 4294901760, %v12360_v17 }
 0x1db   : > { %18132 = vst [vmem:[#allocation160_spill] sm:$0xff] %v12355_v44  ;;  %18133 = vst [vmem:[#allocation161_spill] sm:$0xff] %v12369_v50  ;;  %v5170_v25 = vand.u32 4294901760, %v1624_v6  ;;  %1948 = vxpose.xlu0.b32.cont [14/16] %v1785_v9, 128  ;;  %9590 = vmatpush1.bf16.msra.mxu0 %v12382_v15  ;;  %v12405_v40 = vmul.f32 %v1515_v60, %v1242_v18  ;;  %v12418_v44 = vpack.c.bf16 %v18145_v23, %v2244_v61  ;;  %v18260_v50 = vld [vmem:[#allocation57_spill] sm:$0xff] }
 0x1dc   : > { %v12377_v34 = vsub.f32 %v12337_v21, %v18134_v14  ;;  %18137 = vst [vmem:[#allocation163_spill] sm:$0xff] %v12382_v15  ;;  %v12389_v43 = vsub.f32 %v11874_v4, %v18138_v58  ;;  %v1187_v14 = vld [vmem:[%s10834_s14 + $0x1a0] sm:$0xff]  ;;  %v12402_v58 = vsub.f32 %v12360_v17, %v18140_v29  ;;  %v18142_v4 = vand.u32 4294901760, %v11906_v5  ;;  %v1198_v15 = vld [vmem:[%s10834_s14 + $0x1f8] sm:$0xff] }
 0x1dd   : > { %v12413_v8 = vsub.f32 %v1624_v6, %v5170_v25  ;;  %18146 = vst [vmem:[#allocation168_spill] sm:$0xff] %v12418_v44  ;;  %v17171_v60 = vand.u32 4294901760, %v12405_v40  ;;  %v12423_v18 = vmul.f32 %v12254_v51, %v1187_v14  ;;  %v1197_v6 = vld [vmem:[%s10834_s14 + $0x1f0] sm:$0xff]  ;;  %9224 = vmatprep.subr.bf16.mxu1 %v12418_v44  ;;  %v18149_v61 = vand.u32 4294901760, %v12286_v49  ;;  %v1235_v29 = vld [vmem:[%s10834_s14 + $0x320] sm:$0xff]  ;;  %v1236_v14 = vld [vmem:[%s10834_s14 + $0x328] sm:$0xff]  ;;  %v12464_v35 = vpop.permute.xlu1 %1509 }
 0x1de   : > { %18135 = vst [vmem:[#allocation162_spill] sm:$0xff] %v12377_v34  ;;  %18139 = vst [vmem:[#allocation164_spill] sm:$0xff] %v12389_v43  ;;  %v12411_v9 = vsub.f32 %v11906_v5, %v18142_v4  ;;  %1815 = vxpose.xlu1.b32.cont [9/16] %v1711_v55, 128  ;;  %v1580_v4 = vmul.f32 %v12254_v51, %v1188_v47  ;;  %v1713_v5 = vld [vmem:[%s10839_s17 + $0x90] sm:$0xff]  ;;  %v18147_v55 = vand.u32 4294901760, %v12391_v12  ;;  %v18150_v51 = vand.u32 4294901760, %v12076_v11  ;;  %v1525_v43 = vpop.permute.xlu0 %1524 }
 0x1df   : > { %18141 = vst [vmem:[#allocation165_spill] sm:$0xff] %v12402_v58  ;;  %18144 = vst [vmem:[#allocation167_spill] sm:$0xff] %v12413_v8  ;;  %1949 = vxpose.xlu0.b32.cont [15/16] %v1787_v13, 128  ;;  %v12447_v52 = vsub.f32 %v12405_v40, %v17171_v60  ;;  %v1789_v44 = vld [vmem:[%s10839_s17 + $0x2f0] sm:$0xff]  ;;  %v12454_v11 = vmul.f32 %v1405_v42, %v1197_v6  ;;  %v12456_v13 = vmul.f32 %v1405_v42, %v1198_v15  ;;  %v18157_v6 = vld [vmem:[#allocation112_spill] sm:$0xff] }
 0x1e0   : > { %18143 = vst [vmem:[#allocation166_spill] sm:$0xff] %v12411_v9  ;;  %v12434_v19 = vsub.f32 %v12391_v12, %v18147_v55  ;;  %v12441_v47 = vpack.c.bf16 %v18150_v51, %v18149_v61  ;;  %v2252_v23 = vand.u32 4294901760, %v1580_v4  ;;  %v2254_v55 = vand.u32 4294901760, %v12423_v18  ;;  %v1245_v60 = vld [vmem:[%s10834_s14 + $0x370] sm:$0xff]  ;;  %v1246_v42 = vld [vmem:[%s10834_s14 + $0x378] sm:$0xff] }
 0x1e1   : > { %18152 = vst [vmem:[#allocation171_spill] sm:$0xff] %v12447_v52  ;;  %v18153_v61 = vand.u32 4294901760, %v12148_v3  ;;  %v12469_v49 = vsub.f32 %v11943_v38, %v18155_v33  ;;  %v12483_v33 = vmul.f32 %v12324_v63, %v1235_v29  ;;  %v12494_v9 = vmul.f32 %v1525_v43, %v1245_v60 }
 0x1e2   : > { %18148 = vst [vmem:[#allocation169_spill] sm:$0xff] %v12434_v19  ;;  %18151 = vst [vmem:[#allocation170_spill] sm:$0xff] %v12441_v47  ;;  %9226 = vmatpush1.bf16.msra.mxu1 %v12441_v47  ;;  %1816 = vxpose.xlu1.b32.cont [10/16] %v1713_v5, 128  ;;  %v12472_v15 = vsub.f32 %v1580_v4, %v2252_v23  ;;  %v12475_v3 = vsub.f32 %v12423_v18, %v2254_v55  ;;  %v18163_v47 = vand.u32 4294901760, %v12146_v37  ;;  %v1191_v5 = vld [vmem:[%s10834_s14 + $0x1c0] sm:$0xff] }
 0x1e3   : > { %v12460_v51 = vpack.c.bf16 %v18153_v61, %v5170_v25  ;;  %18156 = vst [vmem:[#allocation173_spill] sm:$0xff] %v12469_v49  ;;  %v1715_v25 = vld [vmem:[%s10839_s17 + $0xa0] sm:$0xff]  ;;  %v18160_v61 = vld [vmem:[#allocation114_spill] sm:$0xff]  ;;  %1950 = vxpose.xlu0.b32.end [16/16] %v1789_v44, 128  ;;  %v1628_v18 = vmul.f32 %v12324_v63, %v1236_v14  ;;  %v18165_v41 = vand.u32 4294901760, %v12456_v13  ;;  %v18167_v63 = vand.u32 4294901760, %v12454_v11 }
 0x1e4   : > { %18158 = vst [vmem:[#allocation174_spill] sm:$0xff] %v12472_v15  ;;  %18159 = vst [vmem:[#allocation175_spill] sm:$0xff] %v12475_v3  ;;  %v18162_v15 = vand.u32 4294901760, %v12360_v17  ;;  %v5180_v37 = vand.u32 4294901760, %v12483_v33  ;;  %v18169_v38 = vand.u32 4294901760, %v12217_v46  ;;  %v1400_v46 = vpop.permute.xlu1 %1399 }
 0x1e5   : > { %18154 = vst [vmem:[#allocation172_spill] sm:$0xff] %v12460_v51  ;;  %9592 = vmatprep.subr.bf16.mxu0 %v12460_v51  ;;  %v1792_v51 = vld [vmem:[%s10839_s17 + $0x308] sm:$0xff]  ;;  %v12502_v44 = vsub.f32 %v12456_v13, %v18165_v41  ;;  %v12507_v17 = vsub.f32 %v12454_v11, %v18167_v63  ;;  %v5178_v14 = vand.u32 4294901760, %v1628_v18  ;;  %v17193_v41 = vand.u32 4294901760, %v12494_v9  ;;  %v1717_v63 = vld [vmem:[%s10839_s17 + $0xb0] sm:$0xff] }
 0x1e6   : > { %v12492_v62 = vpack.c.bf16 %v18163_v47, %v18162_v15  ;;  %v1192_v47 = vld [vmem:[%s10834_s14 + $0x1c8] sm:$0xff]  ;;  %1817 = vxpose.xlu1.b32.cont [11/16] %v1715_v25, 128  ;;  %v12511_v60 = vpop.trf.xlu0  ;;  %v12514_v15 = vmul.f32 %v1525_v43, %v1246_v42  ;;  %v12519_v29 = vpack.c.bf16 %v18169_v38, %v2252_v23  ;;  %v18173_v25 = vand.u32 4294901760, %v18160_v61 }
 0x1e7   : > { %18166 = vst [vmem:[#allocation177_spill] sm:$0xff] %v12502_v44  ;;  %18168 = vst [vmem:[#allocation178_spill] sm:$0xff] %v12507_v17  ;;  %v18171_v17 = vand.u32 4294901760, %v18157_v6  ;;  %v12533_v43 = vsub.f32 %v12483_v33, %v5180_v37  ;;  %v1583_v42 = vmul.f32 %v12395_v16, %v1191_v5  ;;  %2031 = vxpose.xlu0.b32.start [1/8] (short) (narrow) %v1792_v51, 96  ;;  %v18178_v51 = vand.u32 4294901760, %v12030_v22 }
 0x1e8   : > { %18164 = vst [vmem:[#allocation176_spill] sm:$0xff] %v12492_v62  ;;  %9594 = vmatpush1.bf16.msra.mxu0 %v12492_v62  ;;  %18170 = vst [vmem:[#allocation179_spill] sm:$0xff] %v12519_v29  ;;  %v12530_v62 = vsub.f32 %v18160_v61, %v18173_v25  ;;  %v12536_v38 = vsub.f32 %v1628_v18, %v5178_v14  ;;  %9228 = vmatprep.subr.bf16.mxu1 %v12519_v29  ;;  %v1794_v25 = vld [vmem:[%s10839_s17 + $0x318] sm:$0xff]  ;;  %v18179_v61 = vand.u32 4294901760, %v12209_v7  ;;  %v1240_v7 = vld [vmem:[%s10834_s14 + $0x348] sm:$0xff]  ;;  %v1520_v29 = vpop.permute.xlu1 %1519 }
 0x1e9   : > { %v12525_v4 = vsub.f32 %v18157_v6, %v18171_v17  ;;  %18175 = vst [vmem:[#allocation182_spill] sm:$0xff] %v12533_v43  ;;  %v12542_v17 = vsub.f32 %v12494_v9, %v17193_v41  ;;  %v1584_v33 = vmul.f32 %v12395_v16, %v1192_v47  ;;  %v12551_v18 = vsub.f32 %v12030_v22, %v18178_v51  ;;  %v1239_v41 = vld [vmem:[%s10834_s14 + $0x340] sm:$0xff] }
 0x1ea   : > { %18174 = vst [vmem:[#allocation181_spill] sm:$0xff] %v12530_v62  ;;  %18176 = vst [vmem:[#allocation183_spill] sm:$0xff] %v12536_v38  ;;  %v2262_v23 = vand.u32 4294901760, %v1583_v42  ;;  %v12555_v6 = vpack.c.bf16 %v18179_v61, %v2254_v55  ;;  %1818 = vxpose.xlu1.b32.cont [12/16] %v1717_v63, 128  ;;  %v12558_v38 = vpop.trf.xlu0  ;;  %v18182_v47 = vand.u32 4294901760, %v12514_v15  ;;  %v1719_v55 = vld [vmem:[%s10839_s17 + $0xc0] sm:$0xff]  ;;  %v18185_v44 = vand.u32 4294901760, %v12274_v10 }
 0x1eb   : > { %18172 = vst [vmem:[#allocation180_spill] sm:$0xff] %v12525_v4  ;;  %18177 = vst [vmem:[#allocation184_spill] sm:$0xff] %v12542_v17  ;;  %v2260_v5 = vand.u32 4294901760, %v1584_v33  ;;  %2032 = vxpose.xlu0.b32.cont [2/8] (short) (narrow) %v1794_v25, 96  ;;  %v1631_v61 = vmul.f32 %v12464_v35, %v1239_v41  ;;  %v1195_v63 = vld [vmem:[%s10834_s14 + $0x1e0] sm:$0xff]  ;;  %v1796_v4 = vld [vmem:[%s10839_s17 + $0x328] sm:$0xff] }
 0x1ec   : > { %18180 = vst [vmem:[#allocation185_spill] sm:$0xff] %v12555_v6  ;;  %v12565_v51 = vsub.f32 %v12514_v15, %v18182_v47  ;;  %v12571_v22 = vsub.f32 %v1583_v42, %v2262_v23  ;;  %9230 = vmatpush1.bf16.msra.mxu1 %v12555_v6  ;;  %v12576_v16 = vpack.c.bf16 %v18185_v44, %v5178_v14  ;;  %v1196_v42 = vld [vmem:[%s10834_s14 + $0x1e8] sm:$0xff]  ;;  %v18189_v14 = vand.u32 4294901760, %v12272_v30 }
 0x1ed   : > { %v12580_v49 = vsub.f32 %v1584_v33, %v2260_v5  ;;  %v1632_v44 = vmul.f32 %v12464_v35, %v1240_v7  ;;  %v1243_v33 = vld [vmem:[%s10834_s14 + $0x360] sm:$0xff]  ;;  %v1244_v47 = vld [vmem:[%s10834_s14 + $0x368] sm:$0xff]  ;;  %v18191_v62 = vand.u32 4294901760, %v12065_v0  ;;  %v18192_v35 = vand.u32 4294901760, %v12337_v21 }
 0x1ee   : > { %18183 = vst [vmem:[#allocation186_spill] sm:$0xff] %v12565_v51  ;;  %18184 = vst [vmem:[#allocation187_spill] sm:$0xff] %v12571_v22  ;;  %9596 = vmatprep.subr.bf16.mxu0 %v12576_v16  ;;  %v12592_v25 = vpack.c.bf16 %v18189_v14, %v5180_v37  ;;  %1819 = vxpose.xlu1.b32.cont [13/16] %v1719_v55, 128  ;;  %v12596_v41 = vpop.trf.xlu0  ;;  %v1721_v37 = vld [vmem:[%s10839_s17 + $0xd0] sm:$0xff]  ;;  %v18194_v7 = vand.u32 4294901760, %v12099_v57  ;;  %v1587_v51 = vmul.f32 %v1400_v46, %v1195_v63 }
 0x1ef   : > { %18186 = vst [vmem:[#allocation188_spill] sm:$0xff] %v12576_v16  ;;  %18187 = vst [vmem:[#allocation189_spill] sm:$0xff] %v12580_v49  ;;  %v12601_v6 = vsub.f32 %v12065_v0, %v18191_v62  ;;  %v5188_v16 = vand.u32 4294901760, %v1631_v61  ;;  %v12606_v30 = vpack.c.bf16 %v18192_v35, %v2260_v5  ;;  %v5186_v14 = vand.u32 4294901760, %v1632_v44  ;;  %2033 = vxpose.xlu0.b32.cont [3/8] (short) (narrow) %v1796_v4, 96 }
 0x1f0   : > { %18190 = vst [vmem:[#allocation190_spill] sm:$0xff] %v12592_v25  ;;  %v12612_v55 = vsub.f32 %v12099_v57, %v18194_v7  ;;  %9598 = vmatpush1.bf16.msra.mxu0 %v12592_v25  ;;  %v1588_v62 = vmul.f32 %v1400_v46, %v1196_v42  ;;  %v18197_v21 = vand.u32 4294901760, %v12321_v48  ;;  %v1635_v35 = vmul.f32 %v1520_v29, %v1243_v33 }
 0x1f1   : > { %18193 = vst [vmem:[#allocation191_spill] sm:$0xff] %v12606_v30  ;;  %v12615_v0 = vsub.f32 %v1631_v61, %v5188_v16  ;;  %9232 = vmatprep.subr.bf16.mxu1 %v12606_v30  ;;  %v1636_v10 = vmul.f32 %v1520_v29, %v1244_v47  ;;  %v17216_v7 = vand.u32 4294901760, %v12124_v54  ;;  %v12624_v57 = vsub.f32 %v1632_v44, %v5186_v14  ;;  %v1723_v47 = vld [vmem:[%s10839_s17 + $0xe0] sm:$0xff] }
 0x1f2   : > { %18195 = vst [vmem:[#allocation192_spill] sm:$0xff] %v12612_v55  ;;  %v12620_v5 = vpack.c.bf16 %v18197_v21, %v2262_v23  ;;  %v2268_v25 = vand.u32 4294901760, %v1588_v62  ;;  %v2270_v63 = vand.u32 4294901760, %v1587_v51  ;;  %1820 = vxpose.xlu1.b32.cont [14/16] %v1721_v37, 128  ;;  %v12626_v4 = vpop.trf.xlu0  ;;  %v18200_v48 = vand.u32 4294901760, %v12405_v40  ;;  %v18288_v55 = vld [vmem:[#allocation113_spill] sm:$0xff] }
 0x1f3   : > { %18196 = vst [vmem:[#allocation193_spill] sm:$0xff] %v12615_v0  ;;  %18199 = vst [vmem:[#allocation195_spill] sm:$0xff] %v12624_v57  ;;  %v5194_v61 = vand.u32 4294901760, %v1636_v10  ;;  %v5196_v29 = vand.u32 4294901760, %v1635_v35  ;;  %v18204_v37 = vand.u32 4294901760, %v12391_v12  ;;  %2034 = vxpose.xlu0.b32.cont [4/8] (short) (narrow) %v1798_v39, 96 }
 0x1f4   : > { %18198 = vst [vmem:[#allocation194_spill] sm:$0xff] %v12620_v5  ;;  %9234 = vmatpush1.bf16.msra.mxu1 %v12620_v5  ;;  %v12632_v23 = vpack.c.bf16 %v18200_v48, %v5186_v14  ;;  %v12636_v44 = vsub.f32 %v1588_v62, %v2268_v25  ;;  %v12638_v33 = vsub.f32 %v1587_v51, %v2270_v63  ;;  %v18208_v48 = vand.u32 4294901760, %v12456_v13 }
 0x1f5   : > { %v12642_v21 = vpack.c.bf16 %v18204_v37, %v5188_v16  ;;  %v12646_v40 = vsub.f32 %v1636_v10, %v5194_v61  ;;  %v12648_v14 = vsub.f32 %v1635_v35, %v5196_v29  ;;  %v18211_v39 = vand.u32 4294901760, %v12454_v11  ;;  %v18217_v11 = vld [vmem:[#allocation54_spill] sm:$0xff]  ;;  %v1800_v16 = vld [vmem:[%s10839_s17 + $0x348] sm:$0xff] }
 0x1f6   : > { %18201 = vst [vmem:[#allocation196_spill] sm:$0xff] %v12632_v23  ;;  %18202 = vst [vmem:[#allocation197_spill] sm:$0xff] %v12636_v44  ;;  %9600 = vmatprep.subr.bf16.mxu0 %v12632_v23  ;;  %v12652_v62 = vpack.c.bf16 %v18208_v48, %v2268_v25  ;;  %1821 = vxpose.xlu1.b32.cont [15/16] %v1723_v47, 128  ;;  %v12662_v10 = vpop.trf.xlu0  ;;  %v12667_v13 = vsub.f32 %v12124_v54, %v17216_v7  ;;  %v18214_v25 = vand.u32 4294901760, %v12159_v56  ;;  %v18215_v48 = vld [vmem:[#allocation44_spill] sm:$0xff]  ;;  %v18248_v54 = vld [vmem:[#allocation186_spill] sm:$0xff] }
 0x1f7   : > { %18203 = vst [vmem:[#allocation198_spill] sm:$0xff] %v12638_v33  ;;  %18205 = vst [vmem:[#allocation199_spill] sm:$0xff] %v12642_v21  ;;  %9602 = vmatpush1.bf16.msra.mxu0 %v12642_v21  ;;  %v12660_v37 = vpack.c.bf16 %v18211_v39, %v2270_v63  ;;  %v18216_v12 = vand.u32 4294901760, %v18215_v48  ;;  %v18218_v63 = vand.u32 4294901760, %v18217_v11  ;;  %v18219_v47 = vand.u32 4294901760, %v12514_v15  ;;  %v18223_v21 = vld [vmem:[#allocation39_spill] sm:$0xff] }
 0x1f8   : > { %18206 = vst [vmem:[#allocation200_spill] sm:$0xff] %v12646_v40  ;;  %18207 = vst [vmem:[#allocation201_spill] sm:$0xff] %v12648_v14  ;;  %v12672_v35 = vsub.f32 %v12159_v56, %v18214_v25  ;;  %9236 = vmatprep.subr.bf16.mxu1 %v12652_v62  ;;  %v18221_v46 = vand.u32 4294901760, %v12494_v9  ;;  %v18224_v23 = vand.u32 4294901760, %v18223_v21  ;;  %v1725_v15 = vld [vmem:[%s10839_s17 + $0xf0] sm:$0xff]  ;;  %2035 = vxpose.xlu0.b32.cont [5/8] (short) (narrow) %v1800_v16, 96 }
 0x1f9   : > { %18209 = vst [vmem:[#allocation202_spill] sm:$0xff] %v12652_v62  ;;  %18212 = vst [vmem:[#allocation203_spill] sm:$0xff] %v12660_v37  ;;  %v9239_v39 = vpack.c.bf16 %v18218_v63, %v18216_v12  ;;  %v12681_v51 = vpack.c.bf16 %v18219_v47, %v5194_v61  ;;  %9238 = vmatpush1.bf16.msra.mxu1 %v12660_v37  ;;  %v18225_v62 = vld [vmem:[#allocation22_spill] sm:$0xff]  ;;  %v18227_v63 = vand.u32 4294901760, %v12194_v59  ;;  %v1728_v7 = vld [vmem:[%s10839_s17 + $0x108] sm:$0xff]  ;;  %v12812_v5 = vand.u32 4294901760, %v12626_v4 }
 0x1fa   : > { %18213 = vst [vmem:[#allocation204_spill] sm:$0xff] %v12667_v13  ;;  %v12688_v25 = vpack.c.bf16 %v18221_v46, %v5196_v29  ;;  %v5670_v48 = vsub.f32 %v18223_v21, %v18224_v23  ;;  %v18226_v11 = vand.u32 4294901760, %v18225_v62  ;;  %v12706_v46 = vand.u32 4294901760, %v12511_v60  ;;  %v12715_v9 = vpop.trf.xlu0  ;;  %1822 = vxpose.xlu1.b32.end [16/16] %v1725_v15, 128  ;;  %v18245_v56 = vld [vmem:[#allocation183_spill] sm:$0xff]  ;;  %v18266_v44 = vld [vmem:[#allocation73_spill] sm:$0xff] }
 0x1fb   : > { %18220 = vst [vmem:[#allocation44_spill] sm:$0xff] %v12681_v51  ;;  %v12701_v47 = vsub.f32 %v12194_v59, %v18227_v63  ;;  %9240 = vmatprep.subr.bf16.mxu1 %v9239_v39  ;;  %9604 = vmatprep.subr.bf16.mxu0 %v12681_v51  ;;  %v18229_v23 = vand.u32 4294901760, %v12227_v27  ;;  %v18238_v59 = vand.u32 4294901760, %v12533_v43  ;;  %18247 = vst [vmem:[#allocation214_spill] sm:$0xff] %v12812_v5 }
 0x1fc   : > { %18222 = vst [vmem:[#allocation54_spill] sm:$0xff] %v12688_v25  ;;  %v5682_v12 = vsub.f32 %v18225_v62, %v18226_v11  ;;  %18228 = vst [vmem:[#allocation205_spill] sm:$0xff] %v12706_v46  ;;  %9606 = vmatpush1.bf16.msra.mxu0 %v12688_v25  ;;  %v5671_v63 = vand.u32 4294901760, %v5670_v48  ;;  %v1802_v11 = vld [vmem:[%s10839_s17 + $0x358] sm:$0xff]  ;;  %v18232_v48 = vand.u32 4294901760, %v12279_v2 }
 0x1fd   : > { %v12711_v29 = vsub.f32 %v12227_v27, %v18229_v23  ;;  %v12722_v23 = vsub.f32 %v12511_v60, %v12706_v46  ;;  %v18233_v60 = vand.u32 4294901760, %v12318_v45  ;;  %2036 = vxpose.xlu0.b32.cont [6/8] (short) (narrow) %v1802_v11, 96  ;;  %v1806_v11 = vld [vmem:[%s10839_s17 + $0x378] sm:$0xff]  ;;  %v12830_v46 = vand.u32 4294901760, %v12715_v9 }
 0x1fe   : > { %v5683_v61 = vand.u32 4294901760, %v5682_v12  ;;  %v12729_v16 = vsub.f32 %v12279_v2, %v18232_v48  ;;  %v12749_v25 = vpop.trf.xlu0  ;;  %1903 = vxpose.xlu1.b32.start [1/16] (narrow) %v1728_v7, 96  ;;  %v1804_v48 = vld [vmem:[%s10839_s17 + $0x368] sm:$0xff]  ;;  %v18297_v62 = vld [vmem:[#allocation126_spill] sm:$0xff] }
 0x1ff   : > { %18230 = vst [vmem:[#allocation206_spill] sm:$0xff] %v12711_v29  ;;  %18231 = vst [vmem:[#allocation207_spill] sm:$0xff] %v12722_v23  ;;  %v12738_v15 = vsub.f32 %v12318_v45, %v18233_v60  ;;  %v17237_v37 = vand.u32 4294901760, %v12722_v23  ;;  %v18236_v60 = vand.u32 4294901760, %v12402_v58  ;;  %v1730_v45 = vld [vmem:[%s10839_s17 + $0x118] sm:$0xff]  ;;  %v18283_v29 = vld [vmem:[#allocation105_spill] sm:$0xff] }
 0x200   : > { %v9607_v39 = vpack.c.bf16 %v5683_v61, %v5671_v63  ;;  %v18234_v63 = vand.u32 4294901760, %v12334_v31  ;;  %18251 = vst [vmem:[#allocation216_spill] sm:$0xff] %v12830_v46 }
 0x201   : > { %v12754_v12 = vsub.f32 %v12402_v58, %v18236_v60  ;;  %v2279_v61 = vsub.f32 %v12722_v23, %v17237_v37  ;;  %v2015_v37 = vpop.trf.xlu1  ;;  %2037 = vxpose.xlu0.b32.cont [7/8] (short) (narrow) %v1804_v48, 96  ;;  %v1732_v58 = vld [vmem:[%s10839_s17 + $0x128] sm:$0xff] }
 0x202   : > { %v12747_v51 = vsub.f32 %v12334_v31, %v18234_v63  ;;  %9608 = vmatprep.subr.bf16.mxu0 %v9607_v39  ;;  %v18237_v39 = vand.u32 4294901760, %v12434_v19  ;;  %v2065_v60 = vsel %vm2063_vm2, %v2015_v37, 0  ;;  %1904 = vxpose.xlu1.b32.cont [2/16] (narrow) %v1730_v45, 96  ;;  %v12801_v45 = vand.u32 4294901760, %v12558_v38 }
 0x203   : > { %v2280_v23 = vand.u32 4294901760, %v2279_v61  ;;  %v12784_v61 = vsub.f32 %v12533_v43, %v18238_v59  ;;  %v12786_v63 = vand.u32 4294901760, %v2065_v60  ;;  %v12819_v31 = vand.u32 4294901760, %v12662_v10  ;;  %v1734_v59 = vld [vmem:[%s10839_s17 + $0x138] sm:$0xff] }
 0x204   : > { %18235 = vst [vmem:[#allocation208_spill] sm:$0xff] %v12747_v51  ;;  %v12766_v30 = vsub.f32 %v12434_v19, %v18237_v39  ;;  %v12777_v19 = vpop.trf.xlu0  ;;  %v18240_v39 = vand.u32 4294901760, %v12542_v17  ;;  %18242 = vst [vmem:[#allocation211_spill] sm:$0xff] %v12801_v45  ;;  %v12845_v27 = vsub.f32 %v12558_v38, %v12801_v45  ;;  %v18262_v45 = vld [vmem:[#allocation31_spill] sm:$0xff] }
 0x205   : > { %18239 = vst [vmem:[#allocation209_spill] sm:$0xff] %v12786_v63  ;;  %2281 = vmatprep.mubr.f32.mxu1 %v2280_v23  ;;  %v12804_v23 = vsub.f32 %v2065_v60, %v12786_v63  ;;  %v2016_v48 = vpop.trf.xlu1  ;;  %2038 = vxpose.xlu0.b32.end [8/8] (short) (narrow) %v1806_v11, 96  ;;  %18249 = vst [vmem:[#allocation215_spill] sm:$0xff] %v12819_v31  ;;  %v18250_v63 = vand.u32 4294901760, %v12615_v0  ;;  %v18252_v60 = vand.u32 4294901760, %v12571_v22  ;;  %v12906_v49 = vand.u32 4294901760, %v12777_v19 }
 0x206   : > { %v12794_v7 = vsub.f32 %v12542_v17, %v18240_v39  ;;  %v12809_v17 = vand.u32 4294901760, %v12596_v41  ;;  %1905 = vxpose.xlu1.b32.cont [3/16] (narrow) %v1732_v58, 96  ;;  %v18254_v58 = vand.u32 4294901760, %v12648_v14  ;;  %18256 = vst [vmem:[#allocation219_spill] sm:$0xff] %v12845_v27 }
 0x207   : > { %18243 = vst [vmem:[#allocation212_spill] sm:$0xff] %v12804_v23  ;;  %v17270_v2 = vand.u32 4294901760, %v12804_v23  ;;  %v12827_v11 = vsub.f32 %v12615_v0, %v18250_v63  ;;  %v12836_v37 = vsub.f32 %v12571_v22, %v18252_v60 }
 0x208   : > { %18241 = vst [vmem:[#allocation210_spill] sm:$0xff] %v12794_v7  ;;  %18246 = vst [vmem:[#allocation213_spill] sm:$0xff] %v12809_v17  ;;  %v12814_v43 = vpop.trf.xlu0  ;;  %v12841_v39 = vsub.f32 %v12648_v14, %v18254_v58  ;;  %v12854_v22 = vsub.f32 %v12596_v41, %v12809_v17  ;;  %v12858_v58 = vsub.f32 %v12626_v4, %v12812_v5  ;;  %v18263_v41 = vand.u32 4294901760, %v18262_v45 }
 0x209   : > { %18253 = vst [vmem:[#allocation217_spill] sm:$0xff] %v12836_v37  ;;  %v2017_v63 = vpop.trf.xlu1  ;;  %v5221_v0 = vsub.f32 %v12804_v23, %v17270_v2  ;;  %v12864_v14 = vsub.f32 %v12662_v10, %v12819_v31  ;;  %v2068_v2 = vsel %vm2063_vm2, %v2016_v48, 0  ;;  %v18261_v23 = vand.u32 4294901760, %v18260_v50  ;;  %v1736_v10 = vld [vmem:[%s10839_s17 + $0x148] sm:$0xff]  ;;  %v18269_v48 = vld [vmem:[#allocation110_spill] sm:$0xff] }
 0x20a   : > { %18255 = vst [vmem:[#allocation218_spill] sm:$0xff] %v12841_v39  ;;  %18257 = vst [vmem:[#allocation220_spill] sm:$0xff] %v12854_v22  ;;  %1906 = vxpose.xlu1.b32.cont [4/16] (narrow) %v1734_v59, 96  ;;  %v5706_v17 = vsub.f32 %v18262_v45, %v18263_v41  ;;  %v12877_v37 = vsub.f32 %v12715_v9, %v12830_v46  ;;  %v18267_v41 = vand.u32 4294901760, %v18266_v44  ;;  %v12890_v45 = vand.u32 4294901760, %v2068_v2  ;;  %v18271_v46 = vld [vmem:[#allocation76_spill] sm:$0xff] }
 0x20b   : > { %18258 = vst [vmem:[#allocation221_spill] sm:$0xff] %v12858_v58  ;;  %18259 = vst [vmem:[#allocation222_spill] sm:$0xff] %v12864_v14  ;;  %v5694_v60 = vsub.f32 %v18260_v50, %v18261_v23  ;;  %v5222_v31 = vand.u32 4294901760, %v5221_v0  ;;  %v12883_v23 = vand.u32 4294901760, %v12749_v25  ;;  %v18270_v59 = vand.u32 4294901760, %v18269_v48  ;;  %v1738_v48 = vld [vmem:[%s10839_s17 + $0x158] sm:$0xff] }
 0x20c   : > { %v12860_v38 = vpop.trf.xlu0  ;;  %18264 = vst [vmem:[#allocation223_spill] sm:$0xff] %v12877_v37  ;;  %v5718_v4 = vsub.f32 %v18266_v44, %v18267_v41  ;;  %18268 = vst [vmem:[#allocation225_spill] sm:$0xff] %v12890_v45  ;;  %v18272_v34 = vand.u32 4294901760, %v18271_v46  ;;  %v5707_v41 = vand.u32 4294901760, %v5706_v17  ;;  %v18273_v44 = vld [vmem:[#allocation45_spill] sm:$0xff]  ;;  %v18276_v46 = vld [vmem:[#allocation88_spill] sm:$0xff] }
 0x20d   : > { %18265 = vst [vmem:[#allocation224_spill] sm:$0xff] %v12883_v23  ;;  %v2018_v50 = vpop.trf.xlu1  ;;  %5223 = vmatprep.mubr.f32.mxu0 %v5222_v31  ;;  %v5695_v20 = vand.u32 4294901760, %v5694_v60  ;;  %v18274_v5 = vand.u32 4294901760, %v18273_v44  ;;  %18275 = vst [vmem:[#allocation110_spill] sm:$0xff] %v12906_v49  ;;  %v2071_v31 = vsel %vm2063_vm2, %v2017_v63, 0  ;;  %v12915_v60 = vsub.f32 %v12749_v25, %v12883_v23  ;;  %v18286_v25 = vld [vmem:[#allocation137_spill] sm:$0xff] }
 0x20e   : > { %v12898_v13 = vpack.c.bf16 %v18272_v34, %v18270_v59  ;;  %1907 = vxpose.xlu1.b32.cont [5/16] (narrow) %v1736_v10, 96  ;;  %v18277_v34 = vand.u32 4294901760, %v18276_v46  ;;  %v18279_v10 = vld [vmem:[#allocation121_spill] sm:$0xff]  ;;  %v5719_v3 = vand.u32 4294901760, %v5718_v4  ;;  %v18284_v63 = vand.u32 4294901760, %v18283_v29 }
 0x20f   : > { %v5730_v9 = vsub.f32 %v18273_v44, %v18274_v5  ;;  %18278 = vst [vmem:[#allocation76_spill] sm:$0xff] %v12915_v60  ;;  %v18280_v51 = vand.u32 4294901760, %v18279_v10  ;;  %v18281_v5 = vld [vmem:[#allocation97_spill] sm:$0xff]  ;;  %v18287_v23 = vand.u32 4294901760, %v18286_v25  ;;  %v18289_v10 = vand.u32 4294901760, %v18288_v55 }
 0x210   : > { %v12892_v0 = vpop.trf.xlu0  ;;  %v5742_v59 = vsub.f32 %v18276_v46, %v18277_v34  ;;  %v18282_v44 = vand.u32 4294901760, %v18281_v5  ;;  %v5766_v42 = vsub.f32 %v18283_v29, %v18284_v63  ;;  %v12927_v34 = vsub.f32 %v2068_v2, %v12890_v45  ;;  %v18292_v5 = vld [vmem:[#allocation77_spill] sm:$0xff]  ;;  %v18295_v45 = vld [vmem:[#allocation152_spill] sm:$0xff] }
 0x211   : > { %v2019_v17 = vpop.trf.xlu1  ;;  %v12935_v36 = vpack.c.bf16 %v18289_v10, %v18287_v23  ;;  %v18293_v1 = vand.u32 4294901760, %v18292_v5  ;;  %v12943_v63 = vand.u32 4294901760, %v2071_v31  ;;  %v12945_v2 = vpack.c.bf16 %v5707_v41, %v5695_v20  ;;  %v18311_v39 = vld [vmem:[#allocation141_spill] sm:$0xff] }
 0x212   : > { %v12921_v33 = vpack.c.bf16 %v18282_v44, %v18280_v51  ;;  %18285 = vst [vmem:[#allocation121_spill] sm:$0xff] %v12927_v34  ;;  %v18290_v44 = vld [vmem:[#allocation62_spill] sm:$0xff]  ;;  %1908 = vxpose.xlu1.b32.cont [6/16] (narrow) %v1738_v48, 96  ;;  %v5731_v29 = vand.u32 4294901760, %v5730_v9  ;;  %v18296_v25 = vand.u32 4294901760, %v18295_v45  ;;  %v18298_v55 = vand.u32 4294901760, %v18297_v62 }
 0x213   : > { %v18291_v51 = vand.u32 4294901760, %v18290_v44  ;;  %v5778_v60 = vsub.f32 %v18292_v5, %v18293_v1  ;;  %18294 = vst [vmem:[#allocation97_spill] sm:$0xff] %v12943_v63  ;;  %v12955_v10 = vsub.f32 %v12777_v19, %v12906_v49  ;;  %v2074_v1 = vsel %vm2063_vm2, %v2018_v50, 0  ;;  %v1740_v5 = vld [vmem:[%s10839_s17 + $0x168] sm:$0xff] }
 0x214   : > { %v12929_v46 = vpop.trf.xlu0  ;;  %v12951_v23 = vpack.c.bf16 %v18298_v55, %v18296_v25  ;;  %v1696_v48 = vld [vmem:[%s10839_s17 + $0x8] sm:$0xff]  ;;  %v5743_v20 = vand.u32 4294901760, %v5742_v59  ;;  %v12964_v9 = vand.u32 4294901760, %v12860_v38  ;;  %v12966_v41 = vpack.c.bf16 %v5731_v29, %v5719_v3 }
 0x215   : > { %v5754_v4 = vsub.f32 %v18290_v44, %v18291_v51  ;;  %18299 = vst [vmem:[#allocation137_spill] sm:$0xff] %v12955_v10  ;;  %v12958_v51 = vand.u32 4294901760, %v12814_v43  ;;  %v2020_v45 = vpop.trf.xlu1  ;;  %v5767_v62 = vand.u32 4294901760, %v5766_v42  ;;  %v18302_v25 = vand.u32 4294901760, %v12025_v32  ;;  %v18303_v59 = vld [vmem:[#allocation92_spill] sm:$0xff] }
 0x216   : > { %18301 = vst [vmem:[#allocation152_spill] sm:$0xff] %v12964_v9  ;;  %v5779_v49 = vand.u32 4294901760, %v5778_v60  ;;  %v18304_v21 = vand.u32 4294901760, %v18303_v59  ;;  %v12978_v3 = vsub.f32 %v2071_v31, %v12943_v63  ;;  %v12980_v29 = vand.u32 4294901760, %v2074_v1  ;;  %1909 = vxpose.xlu1.b32.cont [7/16] (narrow) %v1740_v5, 96  ;;  %1839 = vxpose.xlu0.b32.start [1/16] (narrow) %v1696_v48, 96 }
 0x217   : > { %18300 = vst [vmem:[#allocation113_spill] sm:$0xff] %v12958_v51  ;;  %v5790_v19 = vsub.f32 %v12025_v32, %v18302_v25  ;;  %v5755_v50 = vand.u32 4294901760, %v5754_v4  ;;  %v2077_v42 = vsel %vm2063_vm2, %v2019_v17, 0  ;;  %v18307_v25 = vand.u32 4294901760, %v12154_v53  ;;  %v18309_v32 = vld [vmem:[#allocation166_spill] sm:$0xff]  ;;  %v1700_v10 = vld [vmem:[%s10839_s17 + $0x28] sm:$0xff] }
 0x218   : > { %v12972_v44 = vpop.trf.xlu0  ;;  %v5802_v7 = vsub.f32 %v18303_v59, %v18304_v21  ;;  %18305 = vst [vmem:[#allocation126_spill] sm:$0xff] %v12978_v3  ;;  %18306 = vst [vmem:[#allocation226_spill] sm:$0xff] %v12980_v29  ;;  %v12989_v60 = vsub.f32 %v12814_v43, %v12958_v51  ;;  %v1742_v21 = vld [vmem:[%s10839_s17 + $0x178] sm:$0xff]  ;;  %v18310_v63 = vand.u32 4294901760, %v18309_v32  ;;  %v18312_v17 = vand.u32 4294901760, %v18311_v39 }
 0x219   : > { %v5814_v55 = vsub.f32 %v12154_v53, %v18307_v25  ;;  %v1698_v59 = vld [vmem:[%s10839_s17 + $0x18] sm:$0xff]  ;;  %v12993_v31 = vpack.c.bf16 %v5755_v50, %v5743_v20  ;;  %v13003_v48 = vsub.f32 %v12860_v38, %v12964_v9  ;;  %v2021_v25 = vpop.trf.xlu1  ;;  %v13005_v4 = vpack.c.bf16 %v5779_v49, %v5767_v62  ;;  %v18315_v53 = vld [vmem:[#allocation107_spill] sm:$0xff]  ;;  %v1744_v9 = vld [vmem:[%s10839_s17 + $0x188] sm:$0xff] }
 0x21a   : > { %18308 = vst [vmem:[#allocation227_spill] sm:$0xff] %v12989_v60  ;;  %v12999_v5 = vpack.c.bf16 %v18312_v17, %v18310_v63  ;;  %v5791_v43 = vand.u32 4294901760, %v5790_v19  ;;  %v18316_v51 = vand.u32 4294901760, %v18315_v53  ;;  %v13011_v32 = vand.u32 4294901760, %v12892_v0  ;;  %1910 = vxpose.xlu1.b32.cont [8/16] (narrow) %v1742_v21, 96  ;;  %1840 = vxpose.xlu0.b32.cont [2/16] (narrow) %v1698_v59, 96 }
 0x21b   : > { %18314 = vst [vmem:[#allocation141_spill] sm:$0xff] %v13003_v48  ;;  %v13013_v39 = vand.u32 4294901760, %v2077_v42  ;;  %v18319_v38 = vand.u32 4294901760, %v12927_v34  ;;  %v5803_v49 = vand.u32 4294901760, %v5802_v7  ;;  %v13024_v19 = vsub.f32 %v2074_v1, %v12980_v29  ;;  %v18325_v62 = vld [vmem:[#allocation173_spill] sm:$0xff]  ;;  %v18337_v59 = vld [vmem:[#allocation48_spill] sm:$0xff] }
 0x21c   : > { %18313 = vst [vmem:[#allocation166_spill] sm:$0xff] %v12999_v5  ;;  %v5826_v20 = vsub.f32 %v18315_v53, %v18316_v51  ;;  %18317 = vst [vmem:[#allocation228_spill] sm:$0xff] %v13011_v32  ;;  %v13015_v63 = vpop.trf.xlu0  ;;  %v2080_v51 = vsel %vm2063_vm2, %v2020_v45, 0  ;;  %v5815_v17 = vand.u32 4294901760, %v5814_v55  ;;  %v18321_v37 = vand.u32 4294901760, %v12551_v18  ;;  %v18322_v5 = vld [vmem:[#allocation156_spill] sm:$0xff] }
 0x21d   : > { %18318 = vst [vmem:[#allocation229_spill] sm:$0xff] %v13013_v39  ;;  %v13020_v50 = vsub.f32 %v12927_v34, %v18319_v38  ;;  %18320 = vst [vmem:[#allocation230_spill] sm:$0xff] %v13024_v19  ;;  %v18323_v38 = vand.u32 4294901760, %v18322_v5  ;;  %v18324_v7 = vand.u32 4294901760, %v12672_v35  ;;  %v18326_v1 = vand.u32 4294901760, %v18325_v62  ;;  %v2022_v21 = vpop.trf.xlu1  ;;  %v1702_v53 = vld [vmem:[%s10839_s17 + $0x38] sm:$0xff] }
 0x21e   : > { %v18327_v45 = vand.u32 4294901760, %v12276_v24  ;;  %v13046_v18 = vpack.c.bf16 %v5803_v49, %v5791_v43  ;;  %v5827_v5 = vand.u32 4294901760, %v5826_v20  ;;  %v13053_v62 = vsub.f32 %v12892_v0, %v13011_v32  ;;  %1911 = vxpose.xlu1.b32.cont [9/16] (narrow) %v1744_v9, 96  ;;  %1841 = vxpose.xlu0.b32.cont [3/16] (narrow) %v1700_v10, 96  ;;  %v18342_v9 = vld [vmem:[#allocation10_spill] sm:$0xff] }
 0x21f   : > { %v13034_v34 = vpack.c.bf16 %v18323_v38, %v18321_v37  ;;  %v13040_v29 = vpack.c.bf16 %v18326_v1, %v18324_v7  ;;  %v18328_v37 = vld [vmem:[#allocation122_spill] sm:$0xff]  ;;  %v13056_v7 = vsub.f32 %v2077_v42, %v13013_v39  ;;  %v13058_v1 = vand.u32 4294901760, %v2080_v51 }
 0x220   : > { %v5838_v55 = vsub.f32 %v12276_v24, %v18327_v45  ;;  %v18329_v38 = vand.u32 4294901760, %v18328_v37  ;;  %18330 = vst [vmem:[#allocation156_spill] sm:$0xff] %v13053_v62  ;;  %v13060_v45 = vpop.trf.xlu0  ;;  %v13065_v20 = vand.u32 4294901760, %v12929_v46  ;;  %v18334_v49 = vand.u32 4294901760, %v12978_v3  ;;  %v18335_v24 = vld [vmem:[#allocation42_spill] sm:$0xff] }
 0x221   : > { %18331 = vst [vmem:[#allocation173_spill] sm:$0xff] %v13056_v7  ;;  %18332 = vst [vmem:[#allocation231_spill] sm:$0xff] %v13058_v1  ;;  %v13072_v42 = vpack.c.bf16 %v5827_v5, %v5815_v17  ;;  %v18336_v39 = vand.u32 4294901760, %v18335_v24  ;;  %v18338_v32 = vand.u32 4294901760, %v18337_v59  ;;  %v18340_v48 = vand.u32 4294901760, %v12845_v27  ;;  %v2023_v24 = vpop.trf.xlu1 }
 0x222   : > { %v5850_v35 = vsub.f32 %v18328_v37, %v18329_v38  ;;  %18333 = vst [vmem:[#allocation232_spill] sm:$0xff] %v13065_v20  ;;  %v13070_v0 = vsub.f32 %v12978_v3, %v18334_v49  ;;  %v1746_v38 = vld [vmem:[%s10839_s17 + $0x198] sm:$0xff]  ;;  %v5839_v37 = vand.u32 4294901760, %v5838_v55  ;;  %v18343_v60 = vand.u32 4294901760, %v18342_v9  ;;  %1842 = vxpose.xlu0.b32.cont [4/16] (narrow) %v1702_v53, 96 }
 0x223   : > { %v13080_v43 = vpack.c.bf16 %v18338_v32, %v18336_v39  ;;  %v13085_v10 = vsub.f32 %v12845_v27, %v18340_v48  ;;  %v13091_v17 = vand.u32 4294901760, %v12972_v44  ;;  %v2083_v55 = vsel %vm2063_vm2, %v2021_v25, 0  ;;  %v18345_v32 = vld [vmem:[#allocation11_spill] sm:$0xff]  ;;  %1912 = vxpose.xlu1.b32.cont [10/16] (narrow) %v1746_v38, 96 }
 0x224   : > { %v2752_v49 = vsub.f32 %v18342_v9, %v18343_v60  ;;  %v5851_v59 = vand.u32 4294901760, %v5850_v35  ;;  %v18346_v39 = vand.u32 4294901760, %v18345_v32  ;;  %v13100_v27 = vsub.f32 %v2080_v51, %v13058_v1  ;;  %v13102_v60 = vpop.trf.xlu0 }
 0x225   : > { %18339 = vst [vmem:[#allocation42_spill] sm:$0xff] %v13080_v43  ;;  %18341 = vst [vmem:[#allocation48_spill] sm:$0xff] %v13085_v10  ;;  %v18348_v9 = vand.u32 4294901760, %v12413_v8  ;;  %v13109_v35 = vsub.f32 %v12929_v46, %v13065_v20  ;;  %v18350_v48 = vand.u32 4294901760, %v13024_v19  ;;  %v18351_v51 = vand.u32 4294901760, %v12189_v28  ;;  %v18361_v43 = vld [vmem:[#allocation61_spill] sm:$0xff] }
 0x226   : > { %18344 = vst [vmem:[#allocation233_spill] sm:$0xff] %v13091_v17  ;;  %v2764_v5 = vsub.f32 %v18345_v32, %v18346_v39  ;;  %18347 = vst [vmem:[#allocation234_spill] sm:$0xff] %v13100_v27  ;;  %v13120_v32 = vand.u32 4294901760, %v2083_v55  ;;  %v13124_v62 = vpack.c.bf16 %v5851_v59, %v5839_v37  ;;  %v2753_v53 = vand.u32 4294901760, %v2752_v49 }
 0x227   : > { %v5862_v25 = vsub.f32 %v12413_v8, %v18348_v9  ;;  %18349 = vst [vmem:[#allocation235_spill] sm:$0xff] %v13109_v35  ;;  %v13115_v3 = vsub.f32 %v13024_v19, %v18350_v48  ;;  %v5874_v1 = vsub.f32 %v12189_v28, %v18351_v51  ;;  %v1748_v9 = vld [vmem:[%s10839_s17 + $0x1a8] sm:$0xff]  ;;  %v13129_v38 = vsub.f32 %v12972_v44, %v13091_v17  ;;  %v2024_v51 = vpop.trf.xlu1  ;;  %v18359_v28 = vld [vmem:[#allocation58_spill] sm:$0xff] }
 0x228   : > { %18352 = vst [vmem:[#allocation236_spill] sm:$0xff] %v13120_v32  ;;  %v1704_v8 = vld [vmem:[%s10839_s17 + $0x48] sm:$0xff]  ;;  %18353 = vst [vmem:[#allocation237_spill] sm:$0xff] %v13124_v62  ;;  %v13132_v48 = vand.u32 4294901760, %v13015_v63  ;;  %v2086_v39 = vsel %vm2063_vm2, %v2022_v21, 0  ;;  %v2765_v19 = vand.u32 4294901760, %v2764_v5 }
 0x229   : > { %18354 = vst [vmem:[#allocation238_spill] sm:$0xff] %v13129_v38  ;;  %v18356_v37 = vand.u32 4294901760, %v13056_v7  ;;  %v18357_v49 = vand.u32 4294901760, %v12729_v16  ;;  %v18358_v44 = vand.u32 4294901760, %v12601_v6  ;;  %v5863_v17 = vand.u32 4294901760, %v5862_v25  ;;  %1913 = vxpose.xlu1.b32.cont [11/16] (narrow) %v1748_v9, 96 }
 0x22a   : > { %18355 = vst [vmem:[#allocation239_spill] sm:$0xff] %v13132_v48  ;;  %1843 = vxpose.xlu0.b32.cont [5/16] (narrow) %v1704_v8, 96  ;;  %v5875_v20 = vand.u32 4294901760, %v5874_v1  ;;  %v18360_v10 = vand.u32 4294901760, %v18359_v28  ;;  %v18362_v62 = vand.u32 4294901760, %v18361_v43  ;;  %v13156_v16 = vsub.f32 %v2083_v55, %v13120_v32  ;;  %v1750_v25 = vld [vmem:[%s10839_s17 + $0x1b8] sm:$0xff] }
 0x22b   : > { %v13139_v59 = vsub.f32 %v13056_v7, %v18356_v37  ;;  %v13145_v46 = vpack.c.bf16 %v18358_v44, %v18357_v49  ;;  %v13158_v6 = vand.u32 4294901760, %v2086_v39  ;;  %v1951_v49 = vpop.trf.xlu0  ;;  %v1706_v44 = vld [vmem:[%s10839_s17 + $0x58] sm:$0xff]  ;;  %v18365_v9 = vand.u32 4294901760, %v12854_v22  ;;  %v13177_v55 = vpop.trf.xlu1 }
 0x22c   : > { %v13153_v37 = vpack.c.bf16 %v18362_v62, %v18360_v10  ;;  %18363 = vst [vmem:[#allocation58_spill] sm:$0xff] %v13156_v16  ;;  %v18366_v1 = vld [vmem:[#allocation18_spill] sm:$0xff]  ;;  %v13173_v43 = vsub.f32 %v13015_v63, %v13132_v48  ;;  %v13175_v10 = vand.u32 4294901760, %v1951_v49  ;;  %v13179_v5 = vpack.c.bf16 %v2765_v19, %v2753_v53 }
 0x22d   : > { %18364 = vst [vmem:[#allocation61_spill] sm:$0xff] %v13158_v6  ;;  %v13165_v8 = vsub.f32 %v12854_v22, %v18365_v9  ;;  %v18367_v21 = vand.u32 4294901760, %v18366_v1  ;;  %v18370_v7 = vand.u32 4294901760, %v13100_v27  ;;  %v13187_v62 = vpack.c.bf16 %v5875_v20, %v5863_v17  ;;  %v18371_v22 = vld [vmem:[#allocation19_spill] sm:$0xff]  ;;  %1914 = vxpose.xlu1.b32.cont [12/16] (narrow) %v1750_v25, 96  ;;  %v1708_v9 = vld [vmem:[%s10839_s17 + $0x68] sm:$0xff] }
 0x22e   : > { %18368 = vst [vmem:[#allocation240_spill] sm:$0xff] %v13173_v43  ;;  %18369 = vst [vmem:[#allocation241_spill] sm:$0xff] %v13175_v10  ;;  %v18372_v63 = vand.u32 4294901760, %v18371_v22  ;;  %v13193_v48 = vand.u32 4294901760, %v13060_v45  ;;  %v13197_v19 = vsub.f32 %v1951_v49, %v13175_v10  ;;  %1844 = vxpose.xlu0.b32.cont [6/16] (narrow) %v1706_v44, 96  ;;  %v18375_v53 = vand.u32 4294901760, %v18245_v56 }
 0x22f   : > { %v2776_v28 = vsub.f32 %v18366_v1, %v18367_v21  ;;  %v13185_v21 = vsub.f32 %v13100_v27, %v18370_v7  ;;  %v2089_v1 = vsel %vm2063_vm2, %v2023_v24, 0  ;;  %v13205_v20 = vsub.f32 %v2086_v39, %v13158_v6  ;;  %v1952_v17 = vpop.trf.xlu0 }
 0x230   : > { %v2788_v32 = vsub.f32 %v18371_v22, %v18372_v63  ;;  %18373 = vst [vmem:[#allocation242_spill] sm:$0xff] %v13193_v48  ;;  %18374 = vst [vmem:[#allocation243_spill] sm:$0xff] %v13197_v19  ;;  %v13202_v7 = vsub.f32 %v18245_v56, %v18375_v53  ;;  %v1752_v63 = vld [vmem:[%s10839_s17 + $0x1c8] sm:$0xff]  ;;  %v13213_v44 = vand.u32 4294901760, %v1952_v17  ;;  %v13215_v53 = vpop.trf.xlu1  ;;  %v18378_v39 = vand.u32 4294901760, %v12754_v12 }
 0x231   : > { %18376 = vst [vmem:[#allocation244_spill] sm:$0xff] %v13205_v20  ;;  %v2777_v22 = vand.u32 4294901760, %v2776_v28  ;;  %v18379_v56 = vand.u32 4294901760, %v12701_v47  ;;  %v13223_v10 = vand.u32 4294901760, %v2089_v1  ;;  %v18381_v49 = vand.u32 4294901760, %v12313_v26  ;;  %1915 = vxpose.xlu1.b32.cont [13/16] (narrow) %v1752_v63, 96 }
 0x232   : > { %18377 = vst [vmem:[#allocation245_spill] sm:$0xff] %v13213_v44  ;;  %v2789_v28 = vand.u32 4294901760, %v2788_v32  ;;  %v13231_v25 = vsub.f32 %v13060_v45, %v13193_v48  ;;  %v13234_v12 = vsub.f32 %v1952_v17, %v13213_v44  ;;  %1845 = vxpose.xlu0.b32.cont [7/16] (narrow) %v1708_v9, 96  ;;  %v5887_v32 = vand.u32 4294901760, %v13202_v7  ;;  %v18386_v17 = vld [vmem:[#allocation70_spill] sm:$0xff] }
 0x233   : > { %v13221_v6 = vpack.c.bf16 %v18379_v56, %v18378_v39  ;;  %18380 = vst [vmem:[#allocation246_spill] sm:$0xff] %v13223_v10  ;;  %v5898_v27 = vsub.f32 %v12313_v26, %v18381_v49  ;;  %v18384_v56 = vand.u32 4294901760, %v13197_v19  ;;  %v2092_v49 = vsel %vm2063_vm2, %v2024_v51, 0  ;;  %v1953_v24 = vpop.trf.xlu0  ;;  %v1754_v26 = vld [vmem:[%s10839_s17 + $0x1d8] sm:$0xff] }
 0x234   : > { %18382 = vst [vmem:[#allocation247_spill] sm:$0xff] %v13231_v25  ;;  %18383 = vst [vmem:[#allocation248_spill] sm:$0xff] %v13234_v12  ;;  %v18385_v45 = vand.u32 4294901760, %v13156_v16  ;;  %v18387_v63 = vand.u32 4294901760, %v18386_v17  ;;  %v18388_v9 = vld [vmem:[#allocation74_spill] sm:$0xff]  ;;  %v13255_v7 = vand.u32 4294901760, %v1953_v24  ;;  %v13257_v39 = vpop.trf.xlu1  ;;  %v13266_v17 = vsub.f32 %v2089_v1, %v13223_v10 }
 0x235   : > { %v5227_v47 = vsub.f32 %v13197_v19, %v18384_v56  ;;  %v18389_v44 = vand.u32 4294901760, %v18388_v9  ;;  %v1710_v19 = vld [vmem:[%s10839_s17 + $0x78] sm:$0xff]  ;;  %v18391_v38 = vand.u32 4294901760, %v12858_v58  ;;  %v5899_v9 = vand.u32 4294901760, %v5898_v27  ;;  %1916 = vxpose.xlu1.b32.cont [14/16] (narrow) %v1754_v26, 96 }
 0x236   : > { %v13246_v48 = vsub.f32 %v13156_v16, %v18385_v45  ;;  %18390 = vst [vmem:[#allocation70_spill] sm:$0xff] %v13255_v7  ;;  %18392 = vst [vmem:[#allocation74_spill] sm:$0xff] %v13266_v17  ;;  %v13274_v16 = vand.u32 4294901760, %v2092_v49  ;;  %1846 = vxpose.xlu0.b32.cont [8/16] (narrow) %v1710_v19, 96  ;;  %v18397_v56 = vand.u32 4294901760, %v13205_v20  ;;  %v18400_v10 = vld [vmem:[#allocation30_spill] sm:$0xff] }
 0x237   : > { %v13252_v43 = vpack.c.bf16 %v18389_v44, %v18387_v63  ;;  %v5228_v51 = vand.u32 4294901760, %v5227_v47  ;;  %v13263_v45 = vsub.f32 %v12858_v58, %v18391_v38  ;;  %v13269_v44 = vand.u32 4294901760, %v13102_v60 }
 0x238   : > { %v13271_v63 = vpack.c.bf16 %v2789_v28, %v2777_v22  ;;  %18394 = vst [vmem:[#allocation250_spill] sm:$0xff] %v13274_v16  ;;  %v13277_v47 = vsub.f32 %v1953_v24, %v13255_v7  ;;  %v18396_v38 = vand.u32 4294901760, %v13234_v12  ;;  %v1954_v22 = vpop.trf.xlu0  ;;  %v1756_v28 = vld [vmem:[%s10839_s17 + $0x1e8] sm:$0xff]  ;;  %v13288_v58 = vsub.f32 %v13205_v20, %v18397_v56  ;;  %v18398_v24 = vld [vmem:[#allocation25_spill] sm:$0xff]  ;;  %v13304_v20 = vpop.trf.xlu1 }
 0x239   : > { %18393 = vst [vmem:[#allocation249_spill] sm:$0xff] %v13269_v44  ;;  %5229 = vmatmul.mubr.f32.vlgmr.msra.gmra.mrb[0].mxu0 %v5228_v51  ;;  %v18399_v51 = vand.u32 4294901760, %v18398_v24  ;;  %v18401_v7 = vand.u32 4294901760, %v18400_v10  ;;  %v18402_v27 = vand.u32 4294901760, %v13020_v50  ;;  %v13302_v56 = vand.u32 4294901760, %v1954_v22  ;;  %1917 = vxpose.xlu1.b32.cont [15/16] (narrow) %v1756_v28, 96 }
 0x23a   : > { %18395 = vst [vmem:[#allocation251_spill] sm:$0xff] %v13277_v47  ;;  %v5243_v1 = vsub.f32 %v13234_v12, %v18396_v38  ;;  %9610 = vmatpush1.bf16.msra.mxu0 %v12898_v13  ;;  %v2095_v13 = vsel %vm2063_vm2, %v13177_v55, 0  ;;  %v17417_v19 = vand.u32 4294901760, %v13277_v47  ;;  %v13312_v55 = vpack.c.bf16 %v5899_v9, %v5887_v32 }
 0x23b   : > { %v2800_v26 = vsub.f32 %v18398_v24, %v18399_v51  ;;  %v2812_v38 = vsub.f32 %v18400_v10, %v18401_v7  ;;  %5239 = vmatprep.mubr.f32.mxu0 %v18402_v27  ;;  %9612 = vmatprep.subr.bf16.mxu0 %v12945_v2  ;;  %18403 = vst [vmem:[#allocation252_spill] sm:$0xff] %v13302_v56  ;;  %v1712_v51 = vld [vmem:[%s10839_s17 + $0x88] sm:$0xff]  ;;  %v18405_v50 = vand.u32 4294901760, %v12624_v57  ;;  %v13329_v9 = vand.u32 4294901760, %v2095_v13  ;;  %v1714_v24 = vld [vmem:[%s10839_s17 + $0x98] sm:$0xff] }
 0x23c   : > { %v5244_v12 = vand.u32 4294901760, %v5243_v1  ;;  %v13310_v7 = vsub.f32 %v13102_v60, %v13269_v44  ;;  %v13320_v2 = vsub.f32 %v2092_v49, %v13274_v16  ;;  %v13323_v1 = vsub.f32 %v1954_v22, %v13302_v56  ;;  %1847 = vxpose.xlu0.b32.cont [9/16] (narrow) %v1712_v51, 96  ;;  %v1758_v49 = vld [vmem:[%s10839_s17 + $0x1f8] sm:$0xff]  ;;  %v13346_v51 = vpop.trf.xlu1 }
 0x23d   : > { %v13317_v27 = vsub.f32 %v12624_v57, %v18405_v50  ;;  %v5259_v60 = vsub.f32 %v13277_v47, %v17417_v19  ;;  %18408 = vst [vmem:[#allocation256_spill] sm:$0xff] %v13329_v9  ;;  %v1955_v50 = vpop.trf.xlu0  ;;  %v2801_v22 = vand.u32 4294901760, %v2800_v26  ;;  %v18410_v28 = vand.u32 4294901760, %v12738_v15  ;;  %v18417_v19 = vld [vmem:[#allocation14_spill] sm:$0xff]  ;;  %1918 = vxpose.xlu1.b32.end [16/16] (narrow) %v1758_v49, 96 }
 0x23e   : > { %18404 = vst [vmem:[#allocation253_spill] sm:$0xff] %v13310_v7  ;;  %18406 = vst [vmem:[#allocation254_spill] sm:$0xff] %v13320_v2  ;;  %5245 = vmatmul.mubr.f32.gmra.mrb[2].mxu0 %v5244_v12  ;;  %v18409_v12 = vand.u32 4294901760, %v12784_v61  ;;  %v18411_v32 = vand.u32 4294901760, %v13070_v0  ;;  %v2813_v26 = vand.u32 4294901760, %v2812_v38  ;;  %v18413_v61 = vand.u32 4294901760, %v13266_v17 }
 0x23f   : > { %18407 = vst [vmem:[#allocation255_spill] sm:$0xff] %v13323_v1  ;;  %9614 = vmatpush1.bf16.msra.mxu0 %v12921_v33  ;;  %v13344_v33 = vand.u32 4294901760, %v1955_v50  ;;  %v5260_v47 = vand.u32 4294901760, %v5259_v60  ;;  %v18418_v16 = vand.u32 4294901760, %v18417_v19  ;;  %v1760_v38 = vld [vmem:[%s10839_s17 + $0x208] sm:$0xff] }
 0x240   : > { %v13338_v57 = vpack.c.bf16 %v18410_v28, %v18409_v12  ;;  %5255 = vmatprep.mubr.f32.mxu0 %v18411_v32  ;;  %9616 = vmatprep.subr.bf16.mxu0 %v12966_v41  ;;  %v13352_v15 = vsub.f32 %v13266_v17, %v18413_v61  ;;  %v18414_v12 = vand.u32 4294901760, %v12447_v52  ;;  %v18415_v32 = vld [vmem:[#allocation35_spill] sm:$0xff]  ;;  %v18420_v61 = vand.u32 4294901760, %v13323_v1 }
 0x241   : > { %18412 = vst [vmem:[#allocation257_spill] sm:$0xff] %v13344_v33  ;;  %v18416_v28 = vand.u32 4294901760, %v18415_v32  ;;  %v2836_v60 = vsub.f32 %v18417_v19, %v18418_v16  ;;  %v13365_v44 = vsub.f32 %v1955_v50, %v13344_v33  ;;  %v2098_v16 = vsel %vm2063_vm2, %v13215_v53, 0  ;;  %1848 = vxpose.xlu0.b32.cont [10/16] (narrow) %v1714_v24, 96  ;;  %v1956_v50 = vpop.trf.xlu0  ;;  %v13395_v24 = vpop.trf.xlu1  ;;  %1967 = vxpose.xlu1.b32.start [1/16] (narrow) %v1760_v38, 96 }
 0x242   : > { %v5922_v0 = vsub.f32 %v12447_v52, %v18414_v12  ;;  %5261 = vmatmul.mubr.f32.gmra.mrb[4].mxu0 %v5260_v47  ;;  %v5275_v17 = vsub.f32 %v13323_v1, %v18420_v61  ;;  %v5911_v12 = vand.u32 4294901760, %v13317_v27  ;;  %v18422_v47 = vld [vmem:[#allocation85_spill] sm:$0xff]  ;;  %v18426_v61 = vand.u32 4294901760, %v12864_v14 }
 0x243   : > { %v2824_v41 = vsub.f32 %v18415_v32, %v18416_v28  ;;  %18419 = vst [vmem:[#allocation35_spill] sm:$0xff] %v13365_v44  ;;  %v13372_v28 = vsub.f32 %v2095_v13, %v13329_v9  ;;  %9618 = vmatpush1.bf16.msra.mxu0 %v12935_v36  ;;  %v18423_v49 = vand.u32 4294901760, %v18422_v47  ;;  %v18424_v52 = vld [vmem:[#allocation93_spill] sm:$0xff]  ;;  %v18427_v53 = vand.u32 4294901760, %v13115_v3 }
 0x244   : > { %v18425_v33 = vand.u32 4294901760, %v18424_v52  ;;  %v13387_v27 = vsub.f32 %v12864_v14, %v18426_v61  ;;  %9620 = vmatprep.subr.bf16.mxu0 %v12993_v31  ;;  %v13393_v36 = vand.u32 4294901760, %v1956_v50  ;;  %v5276_v47 = vand.u32 4294901760, %v5275_v17  ;;  %v1716_v52 = vld [vmem:[%s10839_s17 + $0xa8] sm:$0xff] }
 0x245   : > { %18421 = vst [vmem:[#allocation258_spill] sm:$0xff] %v13372_v28  ;;  %5271 = vmatprep.mubr.f32.mxu0 %v18427_v53  ;;  %v5923_v61 = vand.u32 4294901760, %v5922_v0  ;;  %v2825_v1 = vand.u32 4294901760, %v2824_v41  ;;  %v2837_v14 = vand.u32 4294901760, %v2836_v60  ;;  %v13401_v13 = vand.u32 4294901760, %v2098_v16  ;;  %1849 = vxpose.xlu0.b32.cont [11/16] (narrow) %v1716_v52, 96  ;;  %v1957_v0 = vpop.trf.xlu0 }
 0x246   : > { %v13382_v56 = vpack.c.bf16 %v18425_v33, %v18423_v49  ;;  %18428 = vst [vmem:[#allocation85_spill] sm:$0xff] %v13393_v36  ;;  %v13398_v33 = vpack.c.bf16 %v2813_v26, %v2801_v22  ;;  %v13404_v3 = vsub.f32 %v1956_v50, %v13393_v36  ;;  %5277 = vmatmul.mubr.f32.gmra.mrb[6].mxu0 %v5276_v47  ;;  %v18431_v31 = vand.u32 4294901760, %v13365_v44  ;;  %v1762_v41 = vld [vmem:[%s10839_s17 + $0x218] sm:$0xff] }
 0x247   : > { %18429 = vst [vmem:[#allocation93_spill] sm:$0xff] %v13401_v13  ;;  %v18432_v53 = vand.u32 4294901760, %v13320_v2  ;;  %9622 = vmatpush1.bf16.msra.mxu0 %v12951_v23  ;;  %v13417_v60 = vpack.c.bf16 %v5923_v61, %v5911_v12  ;;  %v18433_v38 = vand.u32 4294901760, %v12646_v40  ;;  %v18434_v47 = vand.u32 4294901760, %v18248_v54  ;;  %v1823_v61 = vpop.trf.xlu1  ;;  %v1718_v49 = vld [vmem:[%s10839_s17 + $0xb8] sm:$0xff]  ;;  %1968 = vxpose.xlu1.b32.cont [2/16] (narrow) %v1762_v41, 96 }
 0x248   : > { %18430 = vst [vmem:[#allocation259_spill] sm:$0xff] %v13404_v3  ;;  %v5291_v17 = vsub.f32 %v13365_v44, %v18431_v31  ;;  %v18435_v52 = vand.u32 4294901760, %v13139_v59  ;;  %9624 = vmatprep.subr.bf16.mxu0 %v13005_v4  ;;  %v13435_v12 = vand.u32 4294901760, %v1957_v0  ;;  %v13438_v26 = vand.u32 4294901760, %v1823_v61 }
 0x249   : > { %v13412_v22 = vsub.f32 %v13320_v2, %v18432_v53  ;;  %v13422_v50 = vsub.f32 %v12646_v40, %v18433_v38  ;;  %v13427_v31 = vsub.f32 %v18248_v54, %v18434_v47  ;;  %v2101_v53 = vsel %vm2063_vm2, %v13257_v39, 0  ;;  %1850 = vxpose.xlu0.b32.cont [12/16] (narrow) %v1718_v49, 96  ;;  %v18458_v40 = vld [vmem:[#allocation49_spill] sm:$0xff] }
 0x24a   : > { %5287 = vmatprep.mubr.f32.mxu0 %v18435_v52  ;;  %18436 = vst [vmem:[#allocation260_spill] sm:$0xff] %v13435_v12  ;;  %v5292_v38 = vand.u32 4294901760, %v5291_v17  ;;  %18437 = vst [vmem:[#allocation261_spill] sm:$0xff] %v13438_v26  ;;  %v13441_v2 = vpack.c.bf16 %v2837_v14, %v2825_v1  ;;  %v18438_v39 = vand.u32 4294901760, %v12827_v11  ;;  %v18439_v23 = vand.u32 4294901760, %v12766_v30  ;;  %v18445_v1 = vld [vmem:[#allocation166_spill] sm:$0xff] }
 0x24b   : > { %v13450_v4 = vsub.f32 %v2098_v16, %v13401_v13  ;;  %v13453_v52 = vsub.f32 %v1957_v0, %v13435_v12  ;;  %v18442_v17 = vand.u32 4294901760, %v13404_v3  ;;  %v13459_v11 = vand.u32 4294901760, %v2101_v53  ;;  %9626 = vmatpush1.bf16.msra.mxu0 %v18445_v1  ;;  %v1958_v16 = vpop.trf.xlu0  ;;  %v1764_v0 = vld [vmem:[%s10839_s17 + $0x228] sm:$0xff]  ;;  %v1824_v1 = vpop.trf.xlu1 }
 0x24c   : > { %v13447_v59 = vpack.c.bf16 %v18439_v23, %v18438_v39  ;;  %5293 = vmatmul.mubr.f32.gmra.mrb[8].mxu0 %v5292_v38  ;;  %v13462_v30 = vsub.f32 %v1823_v61, %v13438_v26  ;;  %v18446_v23 = vand.u32 4294901760, %v13372_v28  ;;  %v5935_v38 = vand.u32 4294901760, %v13422_v50  ;;  %9628 = vmatprep.subr.bf16.mxu0 %v13046_v18  ;;  %v1720_v14 = vld [vmem:[%s10839_s17 + $0xc8] sm:$0xff]  ;;  %v18450_v50 = vld [vmem:[#allocation98_spill] sm:$0xff] }
 0x24d   : > { %18440 = vst [vmem:[#allocation262_spill] sm:$0xff] %v13450_v4  ;;  %18441 = vst [vmem:[#allocation263_spill] sm:$0xff] %v13453_v52  ;;  %v5307_v47 = vsub.f32 %v13404_v3, %v18442_v17  ;;  %v18447_v17 = vand.u32 4294901760, %v13185_v21  ;;  %v13476_v61 = vand.u32 4294901760, %v1958_v16  ;;  %v5947_v3 = vand.u32 4294901760, %v13427_v31  ;;  %v18452_v39 = vld [vmem:[#allocation66_spill] sm:$0xff] }
 0x24e   : > { %18443 = vst [vmem:[#allocation264_spill] sm:$0xff] %v13459_v11  ;;  %18444 = vst [vmem:[#allocation265_spill] sm:$0xff] %v13462_v30  ;;  %v13469_v41 = vsub.f32 %v13372_v28, %v18446_v23  ;;  %v13481_v28 = vand.u32 4294901760, %v1824_v1  ;;  %v18451_v44 = vand.u32 4294901760, %v18450_v50  ;;  %v18453_v13 = vand.u32 4294901760, %v18452_v39  ;;  %1969 = vxpose.xlu1.b32.cont [3/16] (narrow) %v1764_v0, 96 }
 0x24f   : > { %5303 = vmatprep.mubr.f32.mxu0 %v18447_v17  ;;  %18448 = vst [vmem:[#allocation166_spill] sm:$0xff] %v13476_v61  ;;  %v5308_v49 = vand.u32 4294901760, %v5307_v47  ;;  %v18454_v17 = vld [vmem:[#allocation223_spill] sm:$0xff]  ;;  %v13496_v31 = vsub.f32 %v1958_v16, %v13476_v61  ;;  %v18457_v23 = vand.u32 4294901760, %v13453_v52  ;;  %v18459_v39 = vand.u32 4294901760, %v18458_v40  ;;  %9630 = vmatpush1.bf16.msra.mxu0 %v13034_v34  ;;  %v1959_v16 = vpop.trf.xlu0  ;;  %v1766_v0 = vld [vmem:[%s10839_s17 + $0x238] sm:$0xff] }
 0x250   : > { %18449 = vst [vmem:[#allocation266_spill] sm:$0xff] %v13481_v28  ;;  %v13487_v21 = vpack.c.bf16 %v18453_v13, %v18451_v44  ;;  %v18455_v18 = vand.u32 4294901760, %v18454_v17  ;;  %v13507_v13 = vsub.f32 %v2101_v53, %v13459_v11  ;;  %1851 = vxpose.xlu0.b32.cont [13/16] (narrow) %v1720_v14, 96  ;;  %9632 = vmatprep.subr.bf16.mxu0 %v13072_v42  ;;  %v13524_v34 = vand.u32 4294901760, %v1959_v16  ;;  %v1825_v14 = vpop.trf.xlu1  ;;  %v1724_v12 = vld [vmem:[%s10839_s17 + $0xe8] sm:$0xff] }
 0x251   : > { %18456 = vst [vmem:[#allocation98_spill] sm:$0xff] %v13496_v31  ;;  %5309 = vmatmul.mubr.f32.gmra.mrb[10].mxu0 %v5308_v49  ;;  %v5323_v50 = vsub.f32 %v13453_v52, %v18457_v23  ;;  %v13504_v44 = vsub.f32 %v18458_v40, %v18459_v39  ;;  %v18462_v49 = vand.u32 4294901760, %v13462_v30  ;;  %v2104_v39 = vsel %vm2063_vm2, %v13304_v20, 0 }
 0x252   : > { %v13492_v54 = vsub.f32 %v18454_v17, %v18455_v18  ;;  %18460 = vst [vmem:[#allocation66_spill] sm:$0xff] %v13507_v13  ;;  %v13510_v18 = vsub.f32 %v1824_v1, %v13481_v28  ;;  %v17456_v53 = vand.u32 4294901760, %v13496_v31  ;;  %v18463_v52 = vand.u32 4294901760, %v13246_v48  ;;  %18464 = vst [vmem:[#allocation267_spill] sm:$0xff] %v13524_v34  ;;  %v1722_v17 = vld [vmem:[%s10839_s17 + $0xd8] sm:$0xff]  ;;  %1970 = vxpose.xlu1.b32.cont [4/16] (narrow) %v1766_v0, 96 }
 0x253   : > { %v2285_v23 = vsub.f32 %v13462_v30, %v18462_v49  ;;  %v5324_v1 = vand.u32 4294901760, %v5323_v50  ;;  %v13528_v49 = vand.u32 4294901760, %v1825_v14  ;;  %v13530_v30 = vpack.c.bf16 %v5947_v3, %v5935_v38  ;;  %9634 = vmatpush1.bf16.msra.mxu0 %v13040_v29  ;;  %v1960_v38 = vpop.trf.xlu0 }
 0x254   : > { %18461 = vst [vmem:[#allocation49_spill] sm:$0xff] %v13510_v18  ;;  %5319 = vmatprep.mubr.f32.mxu0 %v18463_v52  ;;  %v13533_v20 = vsub.f32 %v1959_v16, %v13524_v34  ;;  %v5339_v42 = vsub.f32 %v13496_v31, %v17456_v53  ;;  %v18467_v48 = vand.u32 4294901760, %v13450_v4  ;;  %v13544_v11 = vand.u32 4294901760, %v2104_v39  ;;  %1852 = vxpose.xlu0.b32.cont [14/16] (narrow) %v1722_v17, 96  ;;  %v1826_v29 = vpop.trf.xlu1  ;;  %v18475_v31 = vld [vmem:[#allocation27_spill] sm:$0xff]  ;;  %v18483_v34 = vld [vmem:[#allocation48_spill] sm:$0xff] }
 0x255   : > { %18465 = vst [vmem:[#allocation268_spill] sm:$0xff] %v13528_v49  ;;  %v2286_v47 = vand.u32 4294901760, %v2285_v23  ;;  %5325 = vmatmul.mubr.f32.gmra.mrb[12].mxu0 %v5324_v1  ;;  %v13547_v3 = vsub.f32 %v1825_v14, %v13528_v49  ;;  %v18470_v16 = vand.u32 4294901760, %v13510_v18  ;;  %v18471_v53 = vand.u32 4294901760, %v13288_v58  ;;  %v18472_v14 = vld [vmem:[#allocation237_spill] sm:$0xff]  ;;  %v1768_v23 = vld [vmem:[%s10839_s17 + $0x248] sm:$0xff] }
 0x256   : > { %18466 = vst [vmem:[#allocation269_spill] sm:$0xff] %v13533_v20  ;;  %v13541_v52 = vsub.f32 %v13450_v4, %v18467_v48  ;;  %18468 = vst [vmem:[#allocation270_spill] sm:$0xff] %v13544_v11  ;;  %9636 = vmatprep.subr.bf16.mxu0 %v18472_v14  ;;  %v13559_v50 = vand.u32 4294901760, %v1960_v38  ;;  %v5340_v17 = vand.u32 4294901760, %v5339_v42  ;;  %v18476_v1 = vand.u32 4294901760, %v18475_v31  ;;  %v18477_v58 = vld [vmem:[#allocation218_spill] sm:$0xff] }
 0x257   : > { %18469 = vst [vmem:[#allocation271_spill] sm:$0xff] %v13547_v3  ;;  %v2301_v0 = vsub.f32 %v13510_v18, %v18470_v16  ;;  %5335 = vmatprep.mubr.f32.mxu0 %v18471_v53  ;;  %2287 = vmatmul.mubr.f32.vlgmr.msra.gmra.mrb[0].mxu1 %v2286_v47  ;;  %v13562_v16 = vand.u32 4294901760, %v1826_v29  ;;  %v18478_v18 = vand.u32 4294901760, %v18477_v58  ;;  %v18479_v53 = vld [vmem:[#allocation210_spill] sm:$0xff]  ;;  %v2107_v42 = vsel %vm2063_vm2, %v13346_v51, 0  ;;  %v1961_v51 = vpop.trf.xlu0 }
 0x258   : > { %18473 = vst [vmem:[#allocation237_spill] sm:$0xff] %v13559_v50  ;;  %v13568_v48 = vsub.f32 %v18475_v31, %v18476_v1  ;;  %v18480_v9 = vand.u32 4294901760, %v18479_v53  ;;  %v13579_v4 = vsub.f32 %v1960_v38, %v13559_v50  ;;  %v18482_v47 = vld [vmem:[#allocation42_spill] sm:$0xff]  ;;  %v18484_v61 = vand.u32 4294901760, %v18483_v34  ;;  %9638 = vmatpush1.bf16.msra.mxu0 %v13145_v46  ;;  %1971 = vxpose.xlu1.b32.cont [5/16] (narrow) %v1768_v23, 96  ;;  %v18490_v53 = vld [vmem:[#allocation39_spill] sm:$0xff] }
 0x259   : > { %18474 = vst [vmem:[#allocation272_spill] sm:$0xff] %v13562_v16  ;;  %9242 = vmatpush1.bf16.msra.mxu1 %v18482_v47  ;;  %v2302_v1 = vand.u32 4294901760, %v2301_v0  ;;  %v18485_v36 = vand.u32 4294901760, %v13533_v20  ;;  %5341 = vmatmul.mubr.f32.gmra.mrb[14].mxu0 %v5340_v17  ;;  %v18488_v38 = vand.u32 4294901760, %v13547_v3  ;;  %v13605_v47 = vand.u32 4294901760, %v2107_v42  ;;  %v1770_v17 = vld [vmem:[%s10839_s17 + $0x258] sm:$0xff] }
 0x25a   : > { %v13574_v14 = vpack.c.bf16 %v18480_v9, %v18478_v18  ;;  %18481 = vst [vmem:[#allocation27_spill] sm:$0xff] %v13579_v4  ;;  %2297 = vmatprep.mubr.f32.mxu1 %v18484_v61  ;;  %v13589_v9 = vsub.f32 %v2104_v39, %v13544_v11  ;;  %v13592_v18 = vsub.f32 %v1826_v29, %v13562_v16  ;;  %v17481_v0 = vand.u32 4294901760, %v13579_v4  ;;  %v1827_v39 = vpop.trf.xlu1 }
 0x25b   : > { %v5355_v58 = vsub.f32 %v13533_v20, %v18485_v36  ;;  %9244 = vmatprep.subr.bf16.mxu1 %v13179_v5  ;;  %v2317_v61 = vsub.f32 %v13547_v3, %v18488_v38  ;;  %v13601_v36 = vand.u32 4294901760, %v1961_v51  ;;  %v18491_v5 = vld [vmem:[#allocation22_spill] sm:$0xff]  ;;  %18492 = vst [vmem:[#allocation48_spill] sm:$0xff] %v13605_v47  ;;  %1853 = vxpose.xlu0.b32.cont [15/16] (narrow) %v1724_v12, 96  ;;  %v18493_v38 = vand.u32 4294901760, %v13352_v15 }
 0x25c   : > { %18486 = vst [vmem:[#allocation218_spill] sm:$0xff] %v13589_v9  ;;  %18487 = vst [vmem:[#allocation210_spill] sm:$0xff] %v13592_v18  ;;  %v13610_v34 = vand.u32 4294901760, %v1827_v39  ;;  %v18495_v46 = vand.u32 4294901760, %v13507_v13  ;;  %9640 = vmatprep.subr.bf16.mxu0 %v13187_v62  ;;  %2303 = vmatmul.mubr.f32.gmra.mrb[2].mxu1 %v2302_v1  ;;  %v5371_v12 = vsub.f32 %v13579_v4, %v17481_v0  ;;  %v2861_v15 = vand.u32 4294901760, %v13568_v48  ;;  %v18499_v3 = vld [vmem:[#allocation86_spill] sm:$0xff]  ;;  %v1962_v0 = vpop.trf.xlu0 }
 0x25d   : > { %18489 = vst [vmem:[#allocation42_spill] sm:$0xff] %v13601_v36  ;;  %v5356_v29 = vand.u32 4294901760, %v5355_v58  ;;  %5351 = vmatprep.mubr.f32.mxu0 %v18493_v38  ;;  %v13619_v58 = vsub.f32 %v1961_v51, %v13601_v36  ;;  %v18497_v38 = vld [vmem:[#allocation116_spill] sm:$0xff]  ;;  %v18500_v11 = vand.u32 4294901760, %v18499_v3  ;;  %9246 = vmatpush1.bf16.msra.mxu1 %v13153_v37  ;;  %v18502_v1 = vand.u32 4294901760, %v13165_v8  ;;  %v1726_v51 = vld [vmem:[%s10839_s17 + $0xf8] sm:$0xff] }
 0x25e   : > { %18494 = vst [vmem:[#allocation273_spill] sm:$0xff] %v13610_v34  ;;  %v13615_v23 = vsub.f32 %v13507_v13, %v18495_v46  ;;  %v18498_v20 = vand.u32 4294901760, %v18497_v38  ;;  %v13635_v62 = vsub.f32 %v1827_v39, %v13610_v34  ;;  %v2318_v13 = vand.u32 4294901760, %v2317_v61  ;;  %v18503_v48 = vld [vmem:[#allocation76_spill] sm:$0xff]  ;;  %9248 = vmatprep.subr.bf16.mxu1 %v13271_v63  ;;  %v18506_v39 = vld [vmem:[#allocation65_spill] sm:$0xff]  ;;  %9642 = vmatpush1.bf16.msra.mxu0 %v13221_v6 }
 0x25f   : > { %18496 = vst [vmem:[#allocation274_spill] sm:$0xff] %v13619_v58  ;;  %2313 = vmatprep.mubr.f32.mxu1 %v18502_v1  ;;  %v17486_v38 = vand.u32 4294901760, %v13619_v58  ;;  %5357 = vmatmul.mubr.f32.gmra.mrb[16].mxu0 %v5356_v29  ;;  %v18505_v37 = vand.u32 4294901760, %v13592_v18  ;;  %v18507_v8 = vand.u32 4294901760, %v18506_v39  ;;  %v13654_v61 = vsub.f32 %v2107_v42, %v13605_v47  ;;  %v18512_v46 = vld [vmem:[#allocation37_spill] sm:$0xff] }
 0x260   : > { %v13630_v50 = vpack.c.bf16 %v18500_v11, %v18498_v20  ;;  %18501 = vst [vmem:[#allocation116_spill] sm:$0xff] %v13635_v62  ;;  %v13643_v11 = vand.u32 4294901760, %v1962_v0  ;;  %v1828_v20 = vpop.trf.xlu1  ;;  %1972 = vxpose.xlu1.b32.cont [6/16] (narrow) %v1770_v17, 96  ;;  %v5372_v29 = vand.u32 4294901760, %v5371_v12  ;;  %1854 = vxpose.xlu0.b32.end [16/16] (narrow) %v1726_v51, 96  ;;  %v18510_v4 = vand.u32 4294901760, %v13412_v22  ;;  %v1963_v22 = vpop.trf.xlu0 }
 0x261   : > { %v2333_v3 = vsub.f32 %v13592_v18, %v18505_v37  ;;  %v13651_v1 = vsub.f32 %v18506_v39, %v18507_v8  ;;  %18508 = vst [vmem:[#allocation65_spill] sm:$0xff] %v13654_v61  ;;  %v13658_v63 = vand.u32 4294901760, %v1828_v20  ;;  %v2110_v37 = vsel %vm2063_vm2, %v13395_v24, 0  ;;  %9644 = vmatprep.subr.bf16.mxu0 %v13312_v55  ;;  %2319 = vmatmul.mubr.f32.gmra.mrb[4].mxu1 %v2318_v13  ;;  %v1772_v12 = vld [vmem:[%s10839_s17 + $0x268] sm:$0xff]  ;;  %v18530_v18 = vld [vmem:[#allocation102_spill] sm:$0xff] }
 0x262   : > { %18504 = vst [vmem:[#allocation86_spill] sm:$0xff] %v13643_v11  ;;  %5367 = vmatprep.mubr.f32.mxu0 %v18510_v4  ;;  %v13665_v8 = vsub.f32 %v1962_v0, %v13643_v11  ;;  %v5387_v42 = vsub.f32 %v13619_v58, %v17486_v38  ;;  %v18513_v6 = vand.u32 4294901760, %v18512_v46  ;;  %v18515_v4 = vand.u32 4294901760, %v13504_v44  ;;  %9250 = vmatpush1.bf16.msra.mxu1 %v13252_v43 }
 0x263   : > { %18509 = vst [vmem:[#allocation275_spill] sm:$0xff] %v13658_v63  ;;  %v13675_v24 = vsub.f32 %v1828_v20, %v13658_v63  ;;  %v18516_v38 = vand.u32 4294901760, %v18503_v48  ;;  %v18517_v55 = vand.u32 4294901760, %v13263_v45  ;;  %v13692_v13 = vand.u32 4294901760, %v1963_v22  ;;  %9252 = vmatprep.subr.bf16.mxu1 %v13398_v33  ;;  %5373 = vmatmul.mubr.f32.gmra.mrb[18].mxu0 %v5372_v29 }
 0x264   : > { %18511 = vst [vmem:[#allocation276_spill] sm:$0xff] %v13665_v8  ;;  %v2884_v17 = vsub.f32 %v18512_v46, %v18513_v6  ;;  %v13680_v0 = vpack.c.bf16 %v2861_v15, %v18515_v4  ;;  %v17494_v6 = vand.u32 4294901760, %v13665_v8  ;;  %v2334_v20 = vand.u32 4294901760, %v2333_v3  ;;  %v1829_v44 = vpop.trf.xlu1  ;;  %9646 = vmatpush1.bf16.msra.mxu0 %v13338_v57  ;;  %1973 = vxpose.xlu1.b32.cont [7/16] (narrow) %v1772_v12, 96 }
 0x265   : > { %18514 = vst [vmem:[#allocation277_spill] sm:$0xff] %v13675_v24  ;;  %v13686_v58 = vsub.f32 %v18503_v48, %v18516_v38  ;;  %2329 = vmatprep.mubr.f32.mxu1 %v18517_v55  ;;  %18518 = vst [vmem:[#allocation278_spill] sm:$0xff] %v13692_v13  ;;  %v2873_v15 = vand.u32 4294901760, %v13651_v1  ;;  %v13696_v51 = vand.u32 4294901760, %v2110_v37  ;;  %v13699_v38 = vand.u32 4294901760, %v1829_v44  ;;  %9648 = vmatprep.subr.bf16.mxu0 %v13417_v60  ;;  %v18528_v48 = vld [vmem:[#allocation129_spill] sm:$0xff] }
 0x266   : > { %v18521_v43 = vand.u32 4294901760, %v13635_v62  ;;  %v13707_v3 = vsub.f32 %v1963_v22, %v13692_v13  ;;  %v5388_v1 = vand.u32 4294901760, %v5387_v42  ;;  %v2885_v4 = vand.u32 4294901760, %v2884_v17  ;;  %v18526_v42 = vld [vmem:[#allocation81_spill] sm:$0xff]  ;;  %2335 = vmatmul.mubr.f32.gmra.mrb[6].mxu1 %v2334_v20  ;;  %v1774_v22 = vld [vmem:[%s10839_s17 + $0x278] sm:$0xff] }
 0x267   : > { %18519 = vst [vmem:[#allocation279_spill] sm:$0xff] %v13696_v51  ;;  %18520 = vst [vmem:[#allocation280_spill] sm:$0xff] %v13699_v38  ;;  %v18523_v33 = vand.u32 4294901760, %v13469_v41  ;;  %v13713_v29 = vsub.f32 %v1829_v44, %v13699_v38  ;;  %v5403_v55 = vsub.f32 %v13665_v8, %v17494_v6  ;;  %v18525_v57 = vand.u32 4294901760, %v13589_v9  ;;  %9254 = vmatpush1.bf16.msra.mxu1 %v13382_v56 }
 0x268   : > { %v2349_v45 = vsub.f32 %v13635_v62, %v18521_v43  ;;  %18522 = vst [vmem:[#allocation281_spill] sm:$0xff] %v13707_v3  ;;  %v1964_v43 = vpop.trf.xlu0  ;;  %v1830_v44 = vpop.trf.xlu1  ;;  %v18529_v62 = vand.u32 4294901760, %v18528_v48  ;;  %v18531_v6 = vand.u32 4294901760, %v18530_v18  ;;  %v18533_v41 = vand.u32 4294901760, %v13387_v27  ;;  %9256 = vmatprep.subr.bf16.mxu1 %v13441_v2  ;;  %9650 = vmatpush1.bf16.msra.mxu0 %v13447_v59 }
 0x269   : > { %5383 = vmatprep.mubr.f32.mxu0 %v18523_v33  ;;  %18524 = vst [vmem:[#allocation282_spill] sm:$0xff] %v13713_v29  ;;  %v13721_v12 = vsub.f32 %v13589_v9, %v18525_v57  ;;  %v13726_v60 = vand.u32 4294901760, %v1964_v43  ;;  %v13736_v57 = vsub.f32 %v2110_v37, %v13696_v51  ;;  %v13741_v17 = vand.u32 4294901760, %v1830_v44  ;;  %v18535_v9 = vld [vmem:[#allocation51_spill] sm:$0xff]  ;;  %1974 = vxpose.xlu1.b32.cont [8/16] (narrow) %v1774_v22, 96  ;;  %v18543_v22 = vld [vmem:[#allocation137_spill] sm:$0xff] }
 0x26a   : > { %v13733_v8 = vpack.c.bf16 %v18531_v6, %v18529_v62  ;;  %2345 = vmatprep.mubr.f32.mxu1 %v18533_v41  ;;  %v2350_v20 = vand.u32 4294901760, %v2349_v45  ;;  %v17503_v47 = vand.u32 4294901760, %v18535_v9  ;;  %5389 = vmatmul.mubr.f32.gmra.mrb[20].mxu0 %v5388_v1  ;;  %v18537_v62 = vand.u32 4294901760, %v13675_v24 }
 0x26b   : > { %18527 = vst [vmem:[#allocation81_spill] sm:$0xff] %v13726_v60  ;;  %18532 = vst [vmem:[#allocation129_spill] sm:$0xff] %v13736_v57  ;;  %v13747_v18 = vsub.f32 %v1964_v43, %v13726_v60  ;;  %v9263_v48 = vpack.c.bf16 %v2885_v4, %v2873_v15  ;;  %v13754_v27 = vsub.f32 %v1830_v44, %v13741_v17  ;;  %v5404_v37 = vand.u32 4294901760, %v5403_v55  ;;  %v18547_v15 = vld [vmem:[#allocation79_spill] sm:$0xff]  ;;  %v1782_v60 = vld [vmem:[%s10839_s17 + $0x2b8] sm:$0xff] }
 0x26c   : > { %18534 = vst [vmem:[#allocation102_spill] sm:$0xff] %v13741_v17  ;;  %v2365_v56 = vsub.f32 %v13675_v24, %v18537_v62  ;;  %v1965_v6 = vpop.trf.xlu0  ;;  %v5430_v2 = vand.u32 4294901760, %v13721_v12  ;;  %v18539_v45 = vand.u32 4294901760, %v18526_v42  ;;  %v18540_v43 = vand.u32 4294901760, %v13541_v52  ;;  %9652 = vmatprep.subr.bf16.mxu0 %v13530_v30  ;;  %v1831_v4 = vpop.trf.xlu1  ;;  %2351 = vmatmul.mubr.f32.gmra.mrb[8].mxu1 %v2350_v20  ;;  %v1776_v62 = vld [vmem:[%s10839_s17 + $0x288] sm:$0xff] }
 0x26d   : > { %18536 = vst [vmem:[#allocation51_spill] sm:$0xff] %v13747_v18  ;;  %18538 = vst [vmem:[#allocation283_spill] sm:$0xff] %v13754_v27  ;;  %v13764_v59 = vand.u32 4294901760, %v1965_v6  ;;  %v18542_v41 = vand.u32 4294901760, %v13707_v3  ;;  %v18544_v12 = vand.u32 4294901760, %v18543_v22  ;;  %v13775_v52 = vand.u32 4294901760, %v1831_v4  ;;  %9258 = vmatpush1.bf16.msra.mxu1 %v13487_v21  ;;  %9654 = vmatpush1.bf16.msra.mxu0 %v13574_v14 }
 0x26e   : > { %v2896_v1 = vsub.f32 %v18526_v42, %v18539_v45  ;;  %5399 = vmatprep.mubr.f32.mxu0 %v18540_v43  ;;  %v2908_v30 = vsub.f32 %v18535_v9, %v17503_v47  ;;  %v18546_v45 = vand.u32 4294901760, %v13654_v61  ;;  %v2366_v47 = vand.u32 4294901760, %v2365_v56  ;;  %9260 = vmatprep.subr.bf16.mxu1 %v13680_v0  ;;  %v1778_v56 = vld [vmem:[%s10839_s17 + $0x298] sm:$0xff] }
 0x26f   : > { %18541 = vst [vmem:[#allocation284_spill] sm:$0xff] %v13764_v59  ;;  %v5419_v55 = vsub.f32 %v13707_v3, %v18542_v41  ;;  %v13772_v44 = vsub.f32 %v18543_v22, %v18544_v12  ;;  %18545 = vst [vmem:[#allocation285_spill] sm:$0xff] %v13775_v52  ;;  %v18548_v41 = vand.u32 4294901760, %v18547_v15  ;;  %v18549_v12 = vand.u32 4294901760, %v13492_v54  ;;  %5405 = vmatmul.mubr.f32.gmra.mrb[22].mxu0 %v5404_v37 }
 0x270   : > { %v13783_v43 = vsub.f32 %v13654_v61, %v18546_v45  ;;  %v13793_v3 = vsub.f32 %v1965_v6, %v13764_v59  ;;  %v18551_v22 = vand.u32 4294901760, %v13713_v29  ;;  %v13801_v21 = vsub.f32 %v1831_v4, %v13775_v52  ;;  %1975 = vxpose.xlu1.b32.cont [9/16] (narrow) %v1776_v62, 96  ;;  %v1832_v61 = vpop.trf.xlu1 }
 0x271   : > { %v2902_v33 = vsub.f32 %v18547_v15, %v18548_v41  ;;  %2361 = vmatprep.mubr.f32.mxu1 %v18549_v12  ;;  %v13803_v41 = vpop.trf.xlu0  ;;  %v2897_v54 = vand.u32 4294901760, %v2896_v1  ;;  %v18553_v12 = vld [vmem:[#allocation52_spill] sm:$0xff]  ;;  %v2392_v0 = vand.u32 4294901760, %v13772_v44  ;;  %v18555_v37 = vand.u32 4294901760, %v13747_v18  ;;  %9262 = vmatpush1.bf16.msra.mxu1 %v13630_v50 }
 0x272   : > { %18550 = vst [vmem:[#allocation79_spill] sm:$0xff] %v13793_v3  ;;  %v2381_v45 = vsub.f32 %v13713_v29, %v18551_v22  ;;  %18552 = vst [vmem:[#allocation286_spill] sm:$0xff] %v13801_v21  ;;  %v18554_v20 = vand.u32 4294901760, %v18553_v12  ;;  %v5420_v22 = vand.u32 4294901760, %v5419_v55  ;;  %v18556_v1 = vand.u32 4294901760, %v13615_v23  ;;  %2367 = vmatmul.mubr.f32.gmra.mrb[10].mxu1 %v2366_v47  ;;  %9264 = vmatprep.subr.bf16.mxu1 %v9263_v48 }
 0x273   : > { %v5435_v4 = vsub.f32 %v13747_v18, %v18555_v37  ;;  %v13819_v29 = vand.u32 4294901760, %v1832_v61  ;;  %v2909_v14 = vand.u32 4294901760, %v2908_v30  ;;  %v5446_v62 = vand.u32 4294901760, %v13783_v43 }
 0x274   : > { %v2914_v6 = vsub.f32 %v18553_v12, %v18554_v20  ;;  %5415 = vmatprep.mubr.f32.mxu0 %v18556_v1  ;;  %v18557_v20 = vpack.c.bf16 %v18491_v5, %v18490_v53  ;;  %v2903_v55 = vand.u32 4294901760, %v2902_v33  ;;  %v2382_v24 = vand.u32 4294901760, %v2381_v45  ;;  %v18560_v1 = vld [vmem:[#allocation95_spill] sm:$0xff]  ;;  %v1833_v53 = vpop.trf.xlu1  ;;  %1976 = vxpose.xlu1.b32.cont [10/16] (narrow) %v1778_v56, 96 }
 0x275   : > { %18558 = vst [vmem:[#allocation52_spill] sm:$0xff] %v13819_v29  ;;  %v18559_v37 = vand.u32 4294901760, %v13754_v27  ;;  %v18561_v18 = vand.u32 4294901760, %v18560_v1  ;;  %v18562_v30 = vand.u32 4294901760, %v13686_v58  ;;  %v13834_v33 = vsub.f32 %v1832_v61, %v13819_v29  ;;  %5421 = vmatmul.mubr.f32.gmra.mrb[24].mxu0 %v5420_v22  ;;  %v18571_v22 = vld [vmem:[#allocation111_spill] sm:$0xff]  ;;  %9266 = vmatpush1.bf16.msra.mxu1 %v13733_v8 }
 0x276   : > { %9656 = vmatprep.subr.bf16.mxu0 %v18557_v20  ;;  %v9267_v47 = vpack.c.bf16 %v2909_v14, %v2897_v54  ;;  %v2915_v43 = vand.u32 4294901760, %v2914_v6  ;;  %v18564_v20 = vld [vmem:[#allocation227_spill] sm:$0xff]  ;;  %v18568_v58 = vand.u32 4294901760, %v13793_v3  ;;  %v18569_v54 = vand.u32 4294901760, %v13736_v57  ;;  %5431 = vmatprep.mubr.f32.mxu0 %v5430_v2  ;;  %v2047_v14 = vpop.trf.xlu0 }
 0x277   : > { %v2397_v23 = vsub.f32 %v13754_v27, %v18559_v37  ;;  %v2920_v5 = vsub.f32 %v18560_v1, %v18561_v18  ;;  %2377 = vmatprep.mubr.f32.mxu1 %v18562_v30  ;;  %18563 = vst [vmem:[#allocation95_spill] sm:$0xff] %v13834_v33  ;;  %v18565_v45 = vand.u32 4294901760, %v18564_v20  ;;  %v5436_v37 = vand.u32 4294901760, %v5435_v4  ;;  %v18566_v18 = vld [vmem:[#allocation68_spill] sm:$0xff] }
 0x278   : > { %v18567_v27 = vand.u32 4294901760, %v18566_v18  ;;  %v5451_v61 = vsub.f32 %v13793_v3, %v18568_v58  ;;  %v5461_v6 = vsub.f32 %v13736_v57, %v18569_v54  ;;  %v9269_v48 = vpack.c.bf16 %v2915_v43, %v2903_v55  ;;  %2383 = vmatmul.mubr.f32.gmra.mrb[12].mxu1 %v2382_v24  ;;  %v1780_v58 = vld [vmem:[%s10839_s17 + $0x2a8] sm:$0xff]  ;;  %v18576_v43 = vld [vmem:[#allocation82_spill] sm:$0xff]  ;;  %9268 = vmatprep.subr.bf16.mxu1 %v9267_v47  ;;  %v18582_v47 = vld [vmem:[#allocation127_spill] sm:$0xff] }
 0x279   : > { %v2407_v44 = vsub.f32 %v18564_v20, %v18565_v45  ;;  %v13848_v30 = vand.u32 4294901760, %v1833_v53  ;;  %v18572_v4 = vand.u32 4294901760, %v18571_v22  ;;  %v18573_v20 = vld [vmem:[#allocation174_spill] sm:$0xff]  ;;  %v2398_v3 = vand.u32 4294901760, %v2397_v23  ;;  %2393 = vmatprep.mubr.f32.mxu1 %v2392_v0  ;;  %5437 = vmatmul.mubr.f32.gmra.mrb[26].mxu0 %v5436_v37 }
 0x27a   : > { %v2932_v50 = vsub.f32 %v18566_v18, %v18567_v27  ;;  %v2921_v59 = vand.u32 4294901760, %v2920_v5  ;;  %v18574_v54 = vand.u32 4294901760, %v13801_v21  ;;  %v18578_v27 = vld [vmem:[#allocation147_spill] sm:$0xff]  ;;  %v5452_v23 = vand.u32 4294901760, %v5451_v61  ;;  %1977 = vxpose.xlu1.b32.cont [11/16] (narrow) %v1780_v58, 96  ;;  %5447 = vmatprep.mubr.f32.mxu0 %v5446_v62 }
 0x27b   : > { %18570 = vst [vmem:[#allocation287_spill] sm:$0xff] %v13848_v30  ;;  %v2944_v45 = vsub.f32 %v18571_v22, %v18572_v4  ;;  %v13861_v56 = vsub.f32 %v1833_v53, %v13848_v30  ;;  %v2408_v55 = vand.u32 4294901760, %v2407_v44  ;;  %v18577_v4 = vand.u32 4294901760, %v18576_v43  ;;  %v13871_v44 = vpop.trf.xlu0  ;;  %9270 = vmatpush1.bf16.msra.mxu1 %v9269_v48 }
 0x27c   : > { %v2413_v2 = vsub.f32 %v13801_v21, %v18574_v54  ;;  %v2933_v5 = vand.u32 4294901760, %v2932_v50  ;;  %v5462_v57 = vand.u32 4294901760, %v5461_v6  ;;  %v1834_v54 = vpop.trf.xlu1  ;;  %v18579_v21 = vld [vmem:[#allocation141_spill] sm:$0xff]  ;;  %v2113_v53 = vsel %vm2063_vm2, %v2047_v14, 0  ;;  %2399 = vmatmul.mubr.f32.gmra.mrb[14].mxu1 %v2398_v3  ;;  %v18585_v14 = vld [vmem:[#allocation160_spill] sm:$0xff] }
 0x27d   : > { %18575 = vst [vmem:[#allocation111_spill] sm:$0xff] %v13861_v56  ;;  %v2956_v24 = vsub.f32 %v18576_v43, %v18577_v4  ;;  %v18580_v8 = vand.u32 4294901760, %v18579_v21  ;;  %v13873_v4 = vand.u32 4294901760, %v1834_v54  ;;  %v2945_v51 = vand.u32 4294901760, %v2944_v45  ;;  %2409 = vmatprep.mubr.f32.mxu1 %v2408_v55  ;;  %5453 = vmatmul.mubr.f32.gmra.mrb[28].mxu0 %v5452_v23 }
 0x27e   : > { %v18583_v37 = vand.u32 4294901760, %v18582_v47  ;;  %v9271_v6 = vpack.c.bf16 %v2933_v5, %v2921_v59  ;;  %v2414_v13 = vand.u32 4294901760, %v2413_v2  ;;  %v18584_v58 = vand.u32 4294901760, %v13834_v33  ;;  %1978 = vxpose.xlu1.b32.cont [12/16] (narrow) %v1782_v60, 96  ;;  %5463 = vmatprep.mubr.f32.mxu0 %v5462_v57 }
 0x27f   : > { %v2423_v0 = vsub.f32 %v18579_v21, %v18580_v8  ;;  %18581 = vst [vmem:[#allocation82_spill] sm:$0xff] %v13873_v4  ;;  %v18586_v8 = vand.u32 4294901760, %v18585_v14  ;;  %v18587_v21 = vld [vmem:[#allocation132_spill] sm:$0xff]  ;;  %v13888_v36 = vsub.f32 %v1834_v54, %v13873_v4  ;;  %v2957_v3 = vand.u32 4294901760, %v2956_v24  ;;  %v13901_v14 = vpop.trf.xlu0 }
 0x280   : > { %v2968_v50 = vsub.f32 %v18582_v47, %v18583_v37  ;;  %v2429_v62 = vsub.f32 %v13834_v33, %v18584_v58  ;;  %v18588_v45 = vand.u32 4294901760, %v18587_v21  ;;  %v18590_v37 = vld [vmem:[#allocation100_spill] sm:$0xff]  ;;  %v13894_v2 = vand.u32 4294901760, %v13803_v41  ;;  %9272 = vmatprep.subr.bf16.mxu1 %v9271_v6  ;;  %v1835_v55 = vpop.trf.xlu1  ;;  %2415 = vmatmul.mubr.f32.gmra.mrb[16].mxu1 %v2414_v13 }
 0x281   : > { %18589 = vst [vmem:[#allocation160_spill] sm:$0xff] %v13888_v36  ;;  %v18591_v61 = vand.u32 4294901760, %v18590_v37  ;;  %v13896_v5 = vand.u32 4294901760, %v2113_v53  ;;  %v2424_v48 = vand.u32 4294901760, %v2423_v0  ;;  %v18594_v21 = vld [vmem:[#allocation156_spill] sm:$0xff]  ;;  %v9275_v24 = vpack.c.bf16 %v2957_v3, %v2945_v51  ;;  %v18602_v51 = vld [vmem:[#allocation143_spill] sm:$0xff] }
 0x282   : > { %v9273_v11 = vpack.c.bf16 %v18588_v45, %v18586_v8  ;;  %18592 = vst [vmem:[#allocation132_spill] sm:$0xff] %v13894_v2  ;;  %v18595_v58 = vand.u32 4294901760, %v18594_v21  ;;  %v18598_v45 = vld [vmem:[#allocation148_spill] sm:$0xff]  ;;  %v13907_v30 = vand.u32 4294901760, %v1835_v55  ;;  %v2969_v6 = vand.u32 4294901760, %v2968_v50 }
 0x283   : > { %v2980_v59 = vsub.f32 %v18590_v37, %v18591_v61  ;;  %18593 = vst [vmem:[#allocation288_spill] sm:$0xff] %v13896_v5  ;;  %v18596_v61 = vld [vmem:[#allocation180_spill] sm:$0xff]  ;;  %v18599_v33 = vand.u32 4294901760, %v18598_v45  ;;  %v2430_v37 = vand.u32 4294901760, %v2429_v62  ;;  %v18603_v57 = vand.u32 4294901760, %v18602_v51  ;;  %2425 = vmatprep.mubr.f32.mxu1 %v2424_v48  ;;  %v18606_v62 = vld [vmem:[#allocation117_spill] sm:$0xff] }
 0x284   : > { %v2439_v54 = vsub.f32 %v18594_v21, %v18595_v58  ;;  %v18597_v8 = vand.u32 4294901760, %v18596_v61  ;;  %18600 = vst [vmem:[#allocation180_spill] sm:$0xff] %v13907_v30  ;;  %v1784_v0 = vld [vmem:[%s10839_s17 + $0x2c8] sm:$0xff]  ;;  %v18601_v58 = vand.u32 4294901760, %v13861_v56  ;;  %9274 = vmatpush1.bf16.msra.mxu1 %v9273_v11  ;;  %v18605_v13 = vand.u32 4294901760, %v13109_v35 }
 0x285   : > { %v2992_v3 = vsub.f32 %v18602_v51, %v18603_v57  ;;  %v2981_v61 = vand.u32 4294901760, %v2980_v59  ;;  %v13931_v11 = vsub.f32 %v2113_v53, %v13896_v5  ;;  %9276 = vmatprep.subr.bf16.mxu1 %v9275_v24  ;;  %v18610_v59 = vld [vmem:[#allocation159_spill] sm:$0xff]  ;;  %1979 = vxpose.xlu1.b32.cont [13/16] (narrow) %v1784_v0, 96 }
 0x286   : > { %v9277_v4 = vpack.c.bf16 %v18599_v33, %v18597_v8  ;;  %v2445_v60 = vsub.f32 %v13861_v56, %v18601_v58  ;;  %v13918_v33 = vsub.f32 %v1835_v55, %v13907_v30  ;;  %v2455_v50 = vsub.f32 %v13109_v35, %v18605_v13  ;;  %v1836_v55 = vpop.trf.xlu1  ;;  %v13937_v56 = vpop.trf.xlu0  ;;  %2431 = vmatmul.mubr.f32.gmra.mrb[18].mxu1 %v2430_v37 }
 0x287   : > { %v18607_v8 = vand.u32 4294901760, %v18606_v62  ;;  %v13928_v58 = vsub.f32 %v13803_v41, %v13894_v2  ;;  %18609 = vst [vmem:[#allocation290_spill] sm:$0xff] %v13931_v11  ;;  %v2440_v48 = vand.u32 4294901760, %v2439_v54  ;;  %v18611_v57 = vand.u32 4294901760, %v18610_v59  ;;  %v18614_v41 = vld [vmem:[#allocation164_spill] sm:$0xff]  ;;  %v1786_v54 = vld [vmem:[%s10839_s17 + $0x2d8] sm:$0xff] }
 0x288   : > { %18604 = vst [vmem:[#allocation148_spill] sm:$0xff] %v13918_v33  ;;  %v9279_v35 = vpack.c.bf16 %v2981_v61, %v2969_v6  ;;  %v18615_v2 = vand.u32 4294901760, %v18614_v41  ;;  %v13943_v53 = vand.u32 4294901760, %v1836_v55  ;;  %v2446_v24 = vand.u32 4294901760, %v2445_v60  ;;  %9278 = vmatpush1.bf16.msra.mxu1 %v9277_v4 }
 0x289   : > { %v3004_v45 = vsub.f32 %v18606_v62, %v18607_v8  ;;  %18608 = vst [vmem:[#allocation289_spill] sm:$0xff] %v13928_v58  ;;  %v3016_v23 = vsub.f32 %v18610_v59, %v18611_v57  ;;  %v18612_v8 = vld [vmem:[#allocation192_spill] sm:$0xff]  ;;  %v2993_v5 = vand.u32 4294901760, %v2992_v3  ;;  %v18617_v62 = vand.u32 4294901760, %v13888_v36  ;;  %v18618_v57 = vld [vmem:[#allocation133_spill] sm:$0xff]  ;;  %2441 = vmatprep.mubr.f32.mxu1 %v2440_v48  ;;  %1980 = vxpose.xlu1.b32.cont [14/16] (narrow) %v1786_v54, 96 }
 0x28a   : > { %v18613_v21 = vand.u32 4294901760, %v18612_v8  ;;  %18616 = vst [vmem:[#allocation192_spill] sm:$0xff] %v13943_v53  ;;  %v18619_v13 = vand.u32 4294901760, %v18618_v57  ;;  %v13953_v61 = vsub.f32 %v1836_v55, %v13943_v53  ;;  %v18621_v8 = vld [vmem:[#allocation238_spill] sm:$0xff]  ;;  %9280 = vmatprep.subr.bf16.mxu1 %v9279_v35  ;;  %v1837_v41 = vpop.trf.xlu1  ;;  %v18623_v4 = vand.u32 4294901760, %v18573_v20  ;;  %v13963_v55 = vpop.trf.xlu0  ;;  %2447 = vmatmul.mubr.f32.gmra.mrb[20].mxu1 %v2446_v24  ;;  %v18638_v54 = vld [vmem:[#allocation189_spill] sm:$0xff] }
 0x28b   : > { %v2461_v0 = vsub.f32 %v13888_v36, %v18617_v62  ;;  %v18622_v37 = vand.u32 4294901760, %v18621_v8  ;;  %v3017_v36 = vand.u32 4294901760, %v3016_v23  ;;  %v18629_v3 = vand.u32 4294901760, %v13918_v33 }
 0x28c   : > { %v9281_v30 = vpack.c.bf16 %v18615_v2, %v18613_v21  ;;  %v3028_v6 = vsub.f32 %v18618_v57, %v18619_v13  ;;  %18620 = vst [vmem:[#allocation164_spill] sm:$0xff] %v13953_v61  ;;  %v2456_v2 = vand.u32 4294901760, %v2455_v50  ;;  %v3005_v21 = vand.u32 4294901760, %v3004_v45  ;;  %v18624_v50 = vld [vmem:[#allocation206_spill] sm:$0xff]  ;;  %v18626_v13 = vld [vmem:[#allocation181_spill] sm:$0xff] }
 0x28d   : > { %v2471_v60 = vsub.f32 %v18621_v8, %v18622_v37  ;;  %v3040_v48 = vsub.f32 %v18573_v20, %v18623_v4  ;;  %v18625_v45 = vand.u32 4294901760, %v18624_v50  ;;  %v18627_v53 = vand.u32 4294901760, %v18626_v13  ;;  %v1788_v20 = vld [vmem:[%s10839_s17 + $0x2e8] sm:$0xff] }
 0x28e   : > { %v13969_v8 = vand.u32 4294901760, %v1837_v41  ;;  %v2477_v35 = vsub.f32 %v13918_v33, %v18629_v3  ;;  %v18630_v23 = vand.u32 4294901760, %v18578_v27  ;;  %v9283_v4 = vpack.c.bf16 %v3005_v21, %v2993_v5  ;;  %9282 = vmatpush1.bf16.msra.mxu1 %v9281_v30  ;;  %2457 = vmatprep.mubr.f32.mxu1 %v2456_v2  ;;  %v18632_v13 = vld [vmem:[#allocation240_spill] sm:$0xff]  ;;  %v18634_v33 = vld [vmem:[#allocation175_spill] sm:$0xff] }
 0x28f   : > { %v9285_v37 = vpack.c.bf16 %v18627_v53, %v18625_v45  ;;  %v2462_v57 = vand.u32 4294901760, %v2461_v0  ;;  %v3029_v50 = vand.u32 4294901760, %v3028_v6  ;;  %v2472_v45 = vand.u32 4294901760, %v2471_v60  ;;  %v1838_v0 = vpop.trf.xlu1  ;;  %1981 = vxpose.xlu1.b32.cont [15/16] (narrow) %v1788_v20, 96 }
 0x290   : > { %18628 = vst [vmem:[#allocation206_spill] sm:$0xff] %v13969_v8  ;;  %v3052_v62 = vsub.f32 %v18578_v27, %v18630_v23  ;;  %v13980_v53 = vsub.f32 %v1837_v41, %v13969_v8  ;;  %v18633_v59 = vand.u32 4294901760, %v18632_v13  ;;  %v18635_v51 = vand.u32 4294901760, %v18634_v33  ;;  %9284 = vmatprep.subr.bf16.mxu1 %v9283_v4  ;;  %v13994_v41 = vpop.trf.xlu0  ;;  %v1790_v4 = vld [vmem:[%s10839_s17 + $0x2f8] sm:$0xff] }
 0x291   : > { %v9287_v5 = vpack.c.bf16 %v3029_v50, %v3017_v36  ;;  %v3041_v21 = vand.u32 4294901760, %v3040_v48  ;;  %v18636_v30 = vand.u32 4294901760, %v13928_v58  ;;  %v18637_v2 = vand.u32 4294901760, %v13931_v11  ;;  %2463 = vmatmul.mubr.f32.gmra.mrb[22].mxu1 %v2462_v57  ;;  %v18646_v48 = vld [vmem:[#allocation208_spill] sm:$0xff] }
 0x292   : > { %18631 = vst [vmem:[#allocation181_spill] sm:$0xff] %v13980_v53  ;;  %v2487_v3 = vsub.f32 %v18632_v13, %v18633_v59  ;;  %v3046_v24 = vsub.f32 %v18634_v33, %v18635_v51  ;;  %v2478_v59 = vand.u32 4294901760, %v2477_v35  ;;  %v3053_v23 = vand.u32 4294901760, %v3052_v62  ;;  %9286 = vmatpush1.bf16.msra.mxu1 %v9285_v37  ;;  %2473 = vmatprep.mubr.f32.mxu1 %v2472_v45  ;;  %v18643_v35 = vld [vmem:[#allocation145_spill] sm:$0xff]  ;;  %v18648_v33 = vld [vmem:[#allocation204_spill] sm:$0xff] }
 0x293   : > { %v5467_v6 = vsub.f32 %v13928_v58, %v18636_v30  ;;  %v5477_v60 = vsub.f32 %v13931_v11, %v18637_v2  ;;  %v18639_v13 = vand.u32 4294901760, %v18638_v54  ;;  %v13999_v36 = vand.u32 4294901760, %v1838_v0  ;;  %v18642_v11 = vld [vmem:[#allocation198_spill] sm:$0xff]  ;;  %9288 = vmatprep.subr.bf16.mxu1 %v9287_v5  ;;  %v1919_v45 = vpop.trf.xlu1  ;;  %1982 = vxpose.xlu1.b32.end [16/16] (narrow) %v1790_v4, 96  ;;  %v18657_v4 = vld [vmem:[#allocation161_spill] sm:$0xff] }
 0x294   : > { %v18641_v50 = vand.u32 4294901760, %v13953_v61  ;;  %v18650_v58 = vld [vmem:[#allocation162_spill] sm:$0xff]  ;;  %v14021_v62 = vpop.trf.xlu0 }
 0x295   : > { %v3064_v51 = vsub.f32 %v18638_v54, %v18639_v13  ;;  %18640 = vst [vmem:[#allocation291_spill] sm:$0xff] %v13999_v36  ;;  %v5468_v2 = vand.u32 4294901760, %v5467_v6  ;;  %v5478_v20 = vand.u32 4294901760, %v5477_v60  ;;  %v18644_v13 = vand.u32 4294901760, %v18643_v35  ;;  %2479 = vmatmul.mubr.f32.gmra.mrb[24].mxu1 %v2478_v59 }
 0x296   : > { %v2493_v30 = vsub.f32 %v13953_v61, %v18641_v50  ;;  %v14012_v57 = vsub.f32 %v1838_v0, %v13999_v36  ;;  %v18647_v54 = vand.u32 4294901760, %v18646_v48  ;;  %v18649_v50 = vand.u32 4294901760, %v18648_v33 }
 0x297   : > { %v3058_v8 = vsub.f32 %v18643_v35, %v18644_v13  ;;  %v2488_v60 = vand.u32 4294901760, %v2487_v3  ;;  %v9291_v61 = vpack.c.bf16 %v3053_v23, %v3041_v21  ;;  %v18651_v27 = vand.u32 4294901760, %v18650_v58  ;;  %5469 = vmatmul.mubr.f32.gmra.mrb[30].mxu0 %v5468_v2  ;;  %v18655_v3 = vld [vmem:[#allocation197_spill] sm:$0xff] }
 0x298   : > { %18645 = vst [vmem:[#allocation292_spill] sm:$0xff] %v14012_v57  ;;  %v9289_v6 = vpack.c.bf16 %v18649_v50, %v18647_v54  ;;  %v3047_v13 = vand.u32 4294901760, %v3046_v24  ;;  %v18652_v0 = vand.u32 4294901760, %v13231_v25  ;;  %v3065_v48 = vand.u32 4294901760, %v3064_v51  ;;  %5479 = vmatprep.mubr.f32.mxu0 %v5478_v20  ;;  %v18659_v51 = vld [vmem:[#allocation178_spill] sm:$0xff]  ;;  %v18661_v20 = vld [vmem:[#allocation217_spill] sm:$0xff] }
 0x299   : > { %v3076_v37 = vsub.f32 %v18650_v58, %v18651_v27  ;;  %v14026_v36 = vand.u32 4294901760, %v1919_v45  ;;  %v2494_v33 = vand.u32 4294901760, %v2493_v30  ;;  %v18654_v54 = vand.u32 4294901760, %v13980_v53  ;;  %2489 = vmatprep.mubr.f32.mxu1 %v2488_v60  ;;  %v14049_v60 = vpop.trf.xlu0 }
 0x29a   : > { %v2503_v5 = vsub.f32 %v13231_v25, %v18652_v0  ;;  %v18656_v21 = vand.u32 4294901760, %v18655_v3  ;;  %v18658_v2 = vand.u32 4294901760, %v18657_v4  ;;  %9290 = vmatpush1.bf16.msra.mxu1 %v9289_v6  ;;  %v3059_v59 = vand.u32 4294901760, %v3058_v8  ;;  %v18663_v25 = vld [vmem:[#allocation177_spill] sm:$0xff] }
 0x29b   : > { %18653 = vst [vmem:[#allocation208_spill] sm:$0xff] %v14026_v36  ;;  %v2509_v27 = vsub.f32 %v13980_v53, %v18654_v54  ;;  %v14040_v30 = vsub.f32 %v1919_v45, %v14026_v36  ;;  %v3071_v54 = vand.u32 4294901760, %v18661_v20  ;;  %v18662_v53 = vand.u32 4294901760, %v18642_v11  ;;  %9292 = vmatprep.subr.bf16.mxu1 %v9291_v61  ;;  %2495 = vmatmul.mubr.f32.gmra.mrb[26].mxu1 %v2494_v33 }
 0x29c   : > { %v3088_v23 = vsub.f32 %v18655_v3, %v18656_v21  ;;  %v3082_v50 = vsub.f32 %v18657_v4, %v18658_v2  ;;  %v3077_v24 = vand.u32 4294901760, %v3076_v37  ;;  %v18664_v3 = vand.u32 4294901760, %v18663_v25  ;;  %v1920_v4 = vpop.trf.xlu1 }
 0x29d   : > { %18660 = vst [vmem:[#allocation204_spill] sm:$0xff] %v14040_v30  ;;  %v3094_v21 = vsub.f32 %v18642_v11, %v18662_v53  ;;  %v9293_v0 = vpack.c.bf16 %v3059_v59, %v3047_v13  ;;  %v2504_v6 = vand.u32 4294901760, %v2503_v5  ;;  %v18665_v8 = vand.u32 4294901760, %v13310_v7 }
 0x29e   : > { %v3100_v2 = vsub.f32 %v18663_v25, %v18664_v3  ;;  %v17594_v20 = vand.u32 4294901760, %v14040_v30  ;;  %v9295_v36 = vpack.c.bf16 %v3077_v24, %v3065_v48  ;;  %v2510_v53 = vand.u32 4294901760, %v2509_v27 }
 0x29f   : > { %v2519_v45 = vsub.f32 %v13310_v7, %v18665_v8  ;;  %v3089_v61 = vand.u32 4294901760, %v3088_v23  ;;  %v18666_v37 = vand.u32 4294901760, %v14012_v57  ;;  %v3083_v3 = vand.u32 4294901760, %v3082_v50  ;;  %9294 = vmatpush1.bf16.msra.mxu1 %v9293_v0  ;;  %2505 = vmatprep.mubr.f32.mxu1 %v2504_v6  ;;  %v14064_v8 = vpop.trf.xlu0 }
 0x2a0   : > { %v18667_v13 = vand.u32 4294901760, %v18659_v51  ;;  %v2535_v59 = vsub.f32 %v14040_v30, %v17594_v20  ;;  %9296 = vmatprep.subr.bf16.mxu1 %v9295_v36  ;;  %v3101_v33 = vand.u32 4294901760, %v3100_v2  ;;  %v1921_v48 = vpop.trf.xlu1  ;;  %v3095_v27 = vand.u32 4294901760, %v3094_v21  ;;  %2511 = vmatmul.mubr.f32.gmra.mrb[28].mxu1 %v2510_v53  ;;  %v18668_v36 = vld [vmem:[#allocation3_spill] sm:$0xff]  ;;  %v18669_v2 = vld [vmem:[#allocation5_spill] sm:$0xff] }
 0x2a1   : > { %v2525_v11 = vsub.f32 %v14012_v57, %v18666_v37  ;;  %v9297_v23 = vpack.c.bf16 %v3083_v3, %v3071_v54  ;;  %v2520_v24 = vand.u32 4294901760, %v2519_v45  ;;  %v9303_v20 = vpack.c.bf16 %v18669_v2, %v18668_v36 }
 0x2a2   : > { %v3106_v5 = vsub.f32 %v18659_v51, %v18667_v13  ;;  %v9299_v50 = vpack.c.bf16 %v3101_v33, %v3089_v61  ;;  %v2536_v0 = vand.u32 4294901760, %v2535_v59  ;;  %v14076_v61 = vand.u32 4294901760, %v1921_v48 }
 0x2a3   : > { %v2526_v37 = vand.u32 4294901760, %v2525_v11  ;;  %9298 = vmatpush1.bf16.msra.mxu1 %v9297_v23  ;;  %2521 = vmatprep.mubr.f32.mxu1 %v2520_v24  ;;  %v14066_v7 = vpop.trf.xlu0  ;;  %v14072_v11 = vand.u32 4294901760, %v1920_v4 }
 0x2a4   : > { %v3107_v57 = vand.u32 4294901760, %v3106_v5  ;;  %9300 = vmatprep.subr.bf16.mxu1 %v9299_v50  ;;  %v1922_v6 = vpop.trf.xlu1  ;;  %18671 = vst [vmem:[#allocation293_spill] sm:$0xff] %v14076_v61  ;;  %v14082_v5 = vsub.f32 %v1921_v48, %v14076_v61 }
 0x2a5   : > { %2527 = vmatmul.mubr.f32.gmra.mrb[30].mxu1 %v2526_v37  ;;  %18670 = vst [vmem:[#allocation217_spill] sm:$0xff] %v14072_v11 }
 0x2a6   : > { %v9301_v13 = vpack.c.bf16 %v3107_v57, %v3095_v27  ;;  %2537 = vmatprep.mubr.f32.mxu1 %v2536_v0  ;;  %v14079_v57 = vsub.f32 %v1920_v4, %v14072_v11  ;;  %18673 = vst [vmem:[#allocation295_spill] sm:$0xff] %v14082_v5  ;;  %v14087_v27 = vand.u32 4294901760, %v1922_v6 }
 0x2a7   : > { %v14070_v21 = vpop.trf.xlu0 }
 0x2a8   : > { %9302 = vmatpush1.bf16.msra.mxu1 %v9301_v13  ;;  %v1923_v54 = vpop.trf.xlu1  ;;  %18672 = vst [vmem:[#allocation294_spill] sm:$0xff] %v14079_v57  ;;  %v17603_v33 = vand.u32 4294901760, %v14079_v57  ;;  %18675 = vst [vmem:[#allocation297_spill] sm:$0xff] %v14087_v27  ;;  %v14097_v48 = vsub.f32 %v1922_v6, %v14087_v27  ;;  %v18682_v27 = vand.u32 4294901760, %v14082_v5 }
 0x2a9   : > { %9304 = vmatprep.subr.bf16.mxu1 %v9303_v20  ;;  %v14099_v0 = vand.u32 4294901760, %v1923_v54 }
 0x2aa   : > { %18678 = vst [vmem:[#allocation300_spill] sm:$0xff] %v14097_v48  ;;  %v2551_v13 = vsub.f32 %v14079_v57, %v17603_v33  ;;  %v2567_v11 = vsub.f32 %v14082_v5, %v18682_v27 }
 0x2ab   : > { %v14074_v45 = vpop.trf.xlu0  ;;  %18679 = vst [vmem:[#allocation301_spill] sm:$0xff] %v14099_v0 }
 0x2ac   : > { %v1924_v53 = vpop.trf.xlu1 }
 0x2ad   : > { %v14120_v57 = vand.u32 4294901760, %v1924_v53 }
 0x2af   : > { %v1855_v3 = vpop.trf.xlu0  ;;  %18684 = vst [vmem:[#allocation305_spill] sm:$0xff] %v14120_v57 }
 0x2b0   : > { %v14084_v59 = vand.u32 4294901760, %v1855_v3  ;;  %v1925_v20 = vpop.trf.xlu1 }
 0x2b2   : > { %18674 = vst [vmem:[#allocation296_spill] sm:$0xff] %v14084_v59  ;;  %v14090_v23 = vsub.f32 %v1855_v3, %v14084_v59 }
 0x2b3   : > { %v1856_v24 = vpop.trf.xlu0 }
 0x2b4   : > { %18676 = vst [vmem:[#allocation298_spill] sm:$0xff] %v14090_v23  ;;  %v17608_v4 = vand.u32 4294901760, %v14090_v23  ;;  %v14094_v37 = vand.u32 4294901760, %v1856_v24  ;;  %v1926_v50 = vpop.trf.xlu1 }
 0x2b6   : > { %18677 = vst [vmem:[#allocation299_spill] sm:$0xff] %v14094_v37  ;;  %v14105_v30 = vsub.f32 %v1856_v24, %v14094_v37  ;;  %v2541_v3 = vsub.f32 %v14090_v23, %v17608_v4  ;;  %v14118_v24 = vsub.f32 %v1923_v54, %v14099_v0  ;;  %v2552_v37 = vand.u32 4294901760, %v2551_v13 }
 0x2b7   : > { %v1857_v2 = vpop.trf.xlu0  ;;  %v2568_v54 = vand.u32 4294901760, %v2567_v11  ;;  %v14133_v13 = vsub.f32 %v1924_v53, %v14120_v57  ;;  %v14147_v53 = vand.u32 4294901760, %v1926_v50 }
 0x2b8   : > { %18680 = vst [vmem:[#allocation302_spill] sm:$0xff] %v14105_v30  ;;  %v17617_v36 = vand.u32 4294901760, %v14105_v30  ;;  %v14111_v61 = vand.u32 4294901760, %v1857_v2  ;;  %v2542_v6 = vand.u32 4294901760, %v2541_v3  ;;  %18683 = vst [vmem:[#allocation304_spill] sm:$0xff] %v14118_v24  ;;  %v1927_v0 = vpop.trf.xlu1 }
 0x2b9   : > { %18687 = vst [vmem:[#allocation308_spill] sm:$0xff] %v14133_v13  ;;  %18691 = vst [vmem:[#allocation311_spill] sm:$0xff] %v14147_v53 }
 0x2ba   : > { %18681 = vst [vmem:[#allocation303_spill] sm:$0xff] %v14111_v61  ;;  %v14123_v4 = vsub.f32 %v1857_v2, %v14111_v61  ;;  %2543 = vmatmul.mubr.f32.gmra.mrb[32].mxu1 %v2542_v6  ;;  %v2557_v3 = vsub.f32 %v14105_v30, %v17617_v36  ;;  %v14135_v2 = vand.u32 4294901760, %v1925_v20  ;;  %v18689_v6 = vand.u32 4294901760, %v14097_v48 }
 0x2bb   : > { %2553 = vmatprep.mubr.f32.mxu1 %v2552_v37  ;;  %v1858_v23 = vpop.trf.xlu0  ;;  %v14165_v61 = vsub.f32 %v1926_v50, %v14147_v53 }
 0x2bc   : > { %18685 = vst [vmem:[#allocation306_spill] sm:$0xff] %v14123_v4  ;;  %v17626_v27 = vand.u32 4294901760, %v14123_v4  ;;  %v14129_v5 = vand.u32 4294901760, %v1858_v23  ;;  %v2558_v33 = vand.u32 4294901760, %v2557_v3  ;;  %18688 = vst [vmem:[#allocation309_spill] sm:$0xff] %v14135_v2  ;;  %v2583_v36 = vsub.f32 %v14097_v48, %v18689_v6 }
 0x2bd   : > { %v14153_v6 = vsub.f32 %v1925_v20, %v14135_v2  ;;  %18696 = vst [vmem:[#allocation315_spill] sm:$0xff] %v14165_v61 }
 0x2be   : > { %18686 = vst [vmem:[#allocation307_spill] sm:$0xff] %v14129_v5  ;;  %v14141_v37 = vsub.f32 %v1858_v23, %v14129_v5  ;;  %2559 = vmatmul.mubr.f32.gmra.mrb[34].mxu1 %v2558_v33  ;;  %v2573_v11 = vsub.f32 %v14123_v4, %v17626_v27  ;;  %v2584_v23 = vand.u32 4294901760, %v2583_v36  ;;  %v18694_v33 = vand.u32 4294901760, %v14118_v24  ;;  %v1928_v4 = vpop.trf.xlu1 }
 0x2bf   : > { %2569 = vmatprep.mubr.f32.mxu1 %v2568_v54  ;;  %v1859_v3 = vpop.trf.xlu0  ;;  %18693 = vst [vmem:[#allocation313_spill] sm:$0xff] %v14153_v6 }
 0x2c0   : > { %18690 = vst [vmem:[#allocation310_spill] sm:$0xff] %v14141_v37  ;;  %v17633_v59 = vand.u32 4294901760, %v14141_v37  ;;  %v14149_v30 = vand.u32 4294901760, %v1859_v3  ;;  %v2574_v57 = vand.u32 4294901760, %v2573_v11  ;;  %v2599_v48 = vsub.f32 %v14118_v24, %v18694_v33 }
 0x2c1   : > { %v18699_v24 = vand.u32 4294901760, %v14133_v13 }
 0x2c2   : > { %18692 = vst [vmem:[#allocation312_spill] sm:$0xff] %v14149_v30  ;;  %v14159_v54 = vsub.f32 %v1859_v3, %v14149_v30  ;;  %2575 = vmatmul.mubr.f32.gmra.mrb[36].mxu1 %v2574_v57  ;;  %v2589_v27 = vsub.f32 %v14141_v37, %v17633_v59  ;;  %v14171_v3 = vand.u32 4294901760, %v1927_v0  ;;  %v2600_v57 = vand.u32 4294901760, %v2599_v48  ;;  %v1929_v30 = vpop.trf.xlu1 }
 0x2c3   : > { %2585 = vmatprep.mubr.f32.mxu1 %v2584_v23  ;;  %v1860_v11 = vpop.trf.xlu0  ;;  %v2615_v59 = vsub.f32 %v14133_v13, %v18699_v24  ;;  %v18704_v13 = vand.u32 4294901760, %v14153_v6 }
 0x2c4   : > { %18695 = vst [vmem:[#allocation314_spill] sm:$0xff] %v14159_v54  ;;  %v17642_v36 = vand.u32 4294901760, %v14159_v54  ;;  %v14168_v20 = vand.u32 4294901760, %v1860_v11  ;;  %v2590_v2 = vand.u32 4294901760, %v2589_v27  ;;  %18698 = vst [vmem:[#allocation317_spill] sm:$0xff] %v14171_v3  ;;  %v14187_v24 = vsub.f32 %v1927_v0, %v14171_v3 }
 0x2c6   : > { %18697 = vst [vmem:[#allocation316_spill] sm:$0xff] %v14168_v20  ;;  %v14177_v23 = vsub.f32 %v1860_v11, %v14168_v20  ;;  %2591 = vmatmul.mubr.f32.gmra.mrb[38].mxu1 %v2590_v2  ;;  %v2605_v50 = vsub.f32 %v14159_v54, %v17642_v36  ;;  %18702 = vst [vmem:[#allocation320_spill] sm:$0xff] %v14187_v24  ;;  %v14189_v11 = vand.u32 4294901760, %v1928_v4  ;;  %v2616_v2 = vand.u32 4294901760, %v2615_v59 }
 0x2c7   : > { %2601 = vmatprep.mubr.f32.mxu1 %v2600_v57  ;;  %v1861_v37 = vpop.trf.xlu0  ;;  %v2631_v36 = vsub.f32 %v14153_v6, %v18704_v13  ;;  %v18707_v59 = vand.u32 4294901760, %v14165_v61 }
 0x2c8   : > { %18700 = vst [vmem:[#allocation318_spill] sm:$0xff] %v14177_v23  ;;  %v17651_v33 = vand.u32 4294901760, %v14177_v23  ;;  %v14184_v53 = vand.u32 4294901760, %v1861_v37  ;;  %v2606_v48 = vand.u32 4294901760, %v2605_v50  ;;  %18703 = vst [vmem:[#allocation321_spill] sm:$0xff] %v14189_v11 }
 0x2c9   : > { %v2647_v20 = vsub.f32 %v14165_v61, %v18707_v59  ;;  %v2632_v6 = vand.u32 4294901760, %v2631_v36  ;;  %v2116_v59 = vsel %vm2063_vm2, %v13871_v44, 0 }
 0x2ca   : > { %18701 = vst [vmem:[#allocation319_spill] sm:$0xff] %v14184_v53  ;;  %v14195_v57 = vsub.f32 %v1861_v37, %v14184_v53  ;;  %2607 = vmatmul.mubr.f32.gmra.mrb[40].mxu1 %v2606_v48  ;;  %v2621_v27 = vsub.f32 %v14177_v23, %v17651_v33  ;;  %v14208_v37 = vsub.f32 %v1928_v4, %v14189_v11  ;;  %v14210_v48 = vand.u32 4294901760, %v1929_v30  ;;  %v1930_v33 = vpop.trf.xlu1 }
 0x2cb   : > { %2617 = vmatprep.mubr.f32.mxu1 %v2616_v2  ;;  %v1862_v50 = vpop.trf.xlu0  ;;  %v2648_v36 = vand.u32 4294901760, %v2647_v20  ;;  %v14227_v11 = vand.u32 4294901760, %v1930_v33  ;;  %v14238_v20 = vand.u32 4294901760, %v2116_v59 }
 0x2cc   : > { %18705 = vst [vmem:[#allocation322_spill] sm:$0xff] %v14195_v57  ;;  %v17658_v0 = vand.u32 4294901760, %v14195_v57  ;;  %v14201_v54 = vand.u32 4294901760, %v1862_v50  ;;  %v2622_v3 = vand.u32 4294901760, %v2621_v27  ;;  %18708 = vst [vmem:[#allocation324_spill] sm:$0xff] %v14208_v37 }
 0x2cd   : > { %18709 = vst [vmem:[#allocation325_spill] sm:$0xff] %v14210_v48  ;;  %18713 = vst [vmem:[#allocation329_spill] sm:$0xff] %v14227_v11 }
 0x2ce   : > { %18706 = vst [vmem:[#allocation323_spill] sm:$0xff] %v14201_v54  ;;  %v14213_v2 = vsub.f32 %v1862_v50, %v14201_v54  ;;  %2623 = vmatmul.mubr.f32.gmra.mrb[42].mxu1 %v2622_v3  ;;  %v2637_v27 = vsub.f32 %v14195_v57, %v17658_v0  ;;  %v14225_v3 = vsub.f32 %v1929_v30, %v14210_v48  ;;  %v18714_v0 = vand.u32 4294901760, %v14187_v24 }
 0x2cf   : > { %2633 = vmatprep.mubr.f32.mxu1 %v2632_v6  ;;  %v1863_v13 = vpop.trf.xlu0  ;;  %18716 = vst [vmem:[#allocation331_spill] sm:$0xff] %v14238_v20  ;;  %v2119_v30 = vsel %vm2063_vm2, %v13901_v14, 0 }
 0x2d0   : > { %18710 = vst [vmem:[#allocation326_spill] sm:$0xff] %v14213_v2  ;;  %v17665_v4 = vand.u32 4294901760, %v14213_v2  ;;  %v14221_v61 = vand.u32 4294901760, %v1863_v13  ;;  %v2638_v23 = vand.u32 4294901760, %v2637_v27  ;;  %18712 = vst [vmem:[#allocation328_spill] sm:$0xff] %v14225_v3  ;;  %v2663_v57 = vsub.f32 %v14187_v24, %v18714_v0 }
 0x2d2   : > { %18711 = vst [vmem:[#allocation327_spill] sm:$0xff] %v14221_v61  ;;  %v14233_v44 = vsub.f32 %v1863_v13, %v14221_v61  ;;  %2639 = vmatmul.mubr.f32.gmra.mrb[44].mxu1 %v2638_v23  ;;  %v2653_v6 = vsub.f32 %v14213_v2, %v17665_v4  ;;  %v14247_v23 = vsub.f32 %v1930_v33, %v14227_v11  ;;  %v2664_v24 = vand.u32 4294901760, %v2663_v57 }
 0x2d3   : > { %2649 = vmatprep.mubr.f32.mxu1 %v2648_v36  ;;  %v1864_v27 = vpop.trf.xlu0  ;;  %v18719_v4 = vand.u32 4294901760, %v14208_v37  ;;  %v14261_v13 = vand.u32 4294901760, %v2119_v30  ;;  %v2122_v57 = vsel %vm2063_vm2, %v13937_v56, 0 }
 0x2d4   : > { %18715 = vst [vmem:[#allocation330_spill] sm:$0xff] %v14233_v44  ;;  %v17672_v50 = vand.u32 4294901760, %v14233_v44  ;;  %v14243_v48 = vand.u32 4294901760, %v1864_v27  ;;  %v2654_v0 = vand.u32 4294901760, %v2653_v6  ;;  %18718 = vst [vmem:[#allocation333_spill] sm:$0xff] %v14247_v23  ;;  %v14259_v6 = vsub.f32 %v2116_v59, %v14238_v20 }
 0x2d5   : > { %v2679_v2 = vsub.f32 %v14208_v37, %v18719_v4  ;;  %18722 = vst [vmem:[#allocation336_spill] sm:$0xff] %v14261_v13 }
 0x2d6   : > { %18717 = vst [vmem:[#allocation332_spill] sm:$0xff] %v14243_v48  ;;  %v14253_v36 = vsub.f32 %v1864_v27, %v14243_v48  ;;  %2655 = vmatmul.mubr.f32.gmra.mrb[46].mxu1 %v2654_v0  ;;  %v2669_v14 = vsub.f32 %v14233_v44, %v17672_v50  ;;  %18721 = vst [vmem:[#allocation335_spill] sm:$0xff] %v14259_v6  ;;  %v18724_v50 = vand.u32 4294901760, %v14225_v3 }
 0x2d7   : > { %2665 = vmatprep.mubr.f32.mxu1 %v2664_v24  ;;  %v1865_v33 = vpop.trf.xlu0  ;;  %v2680_v11 = vand.u32 4294901760, %v2679_v2  ;;  %v1983_v44 = vpop.trf.xlu1  ;;  %v14279_v24 = vsub.f32 %v2119_v30, %v14261_v13  ;;  %v2125_v2 = vsel %vm2063_vm2, %v13963_v55, 0 }
 0x2d8   : > { %18720 = vst [vmem:[#allocation334_spill] sm:$0xff] %v14253_v36  ;;  %v17681_v4 = vand.u32 4294901760, %v14253_v36  ;;  %v14266_v37 = vand.u32 4294901760, %v1865_v33  ;;  %v2670_v27 = vand.u32 4294901760, %v2669_v14  ;;  %v2695_v59 = vsub.f32 %v14225_v3, %v18724_v50 }
 0x2d9   : > { %18726 = vst [vmem:[#allocation339_spill] sm:$0xff] %v14279_v24  ;;  %v14281_v14 = vand.u32 4294901760, %v2122_v57  ;;  %v14285_v0 = vand.u32 4294901760, %v1983_v44  ;;  %v14297_v55 = vand.u32 4294901760, %v2125_v2 }
 0x2da   : > { %18723 = vst [vmem:[#allocation337_spill] sm:$0xff] %v14266_v37  ;;  %v14273_v20 = vsub.f32 %v1865_v33, %v14266_v37  ;;  %2671 = vmatmul.mubr.f32.gmra.mrb[48].mxu1 %v2670_v27  ;;  %v2685_v56 = vsub.f32 %v14253_v36, %v17681_v4  ;;  %v2696_v30 = vand.u32 4294901760, %v2695_v59  ;;  %v18731_v36 = vand.u32 4294901760, %v14247_v23 }
 0x2db   : > { %18727 = vst [vmem:[#allocation340_spill] sm:$0xff] %v14281_v14  ;;  %18728 = vst [vmem:[#allocation341_spill] sm:$0xff] %v14285_v0  ;;  %2681 = vmatprep.mubr.f32.mxu1 %v2680_v11  ;;  %v1866_v50 = vpop.trf.xlu0  ;;  %v14292_v4 = vsub.f32 %v1983_v44, %v14285_v0  ;;  %v1984_v48 = vpop.trf.xlu1  ;;  %v14307_v44 = vsub.f32 %v2122_v57, %v14281_v14 }
 0x2dc   : > { %18725 = vst [vmem:[#allocation338_spill] sm:$0xff] %v14273_v20  ;;  %v17692_v27 = vand.u32 4294901760, %v14273_v20  ;;  %v14289_v3 = vand.u32 4294901760, %v1866_v50  ;;  %v2686_v37 = vand.u32 4294901760, %v2685_v56  ;;  %v2711_v13 = vsub.f32 %v14247_v23, %v18731_v36  ;;  %18732 = vst [vmem:[#allocation344_spill] sm:$0xff] %v14297_v55 }
 0x2dd   : > { %18730 = vst [vmem:[#allocation343_spill] sm:$0xff] %v14292_v4  ;;  %18734 = vst [vmem:[#allocation346_spill] sm:$0xff] %v14307_v44  ;;  %v17699_v59 = vand.u32 4294901760, %v14292_v4  ;;  %v14310_v0 = vand.u32 4294901760, %v1984_v48  ;;  %v2128_v36 = vsel %vm2063_vm2, %v13994_v41, 0  ;;  %v18736_v23 = vand.u32 4294901760, %v14259_v6 }
 0x2de   : > { %18729 = vst [vmem:[#allocation342_spill] sm:$0xff] %v14289_v3  ;;  %v14300_v11 = vsub.f32 %v1866_v50, %v14289_v3  ;;  %2687 = vmatmul.mubr.f32.gmra.mrb[50].mxu1 %v2686_v37  ;;  %v2701_v33 = vsub.f32 %v14273_v20, %v17692_v27  ;;  %v2712_v20 = vand.u32 4294901760, %v2711_v13 }
 0x2df   : > { %18735 = vst [vmem:[#allocation347_spill] sm:$0xff] %v14310_v0  ;;  %2697 = vmatprep.mubr.f32.mxu1 %v2696_v30  ;;  %v5493_v27 = vsub.f32 %v14259_v6, %v18736_v23  ;;  %v14319_v56 = vsub.f32 %v1984_v48, %v14310_v0  ;;  %v5483_v57 = vsub.f32 %v14292_v4, %v17699_v59  ;;  %v1985_v14 = vpop.trf.xlu1 }
 0x2e0   : > { %18733 = vst [vmem:[#allocation345_spill] sm:$0xff] %v14300_v11  ;;  %v17704_v50 = vand.u32 4294901760, %v14300_v11  ;;  %v2702_v37 = vand.u32 4294901760, %v2701_v33  ;;  %v14325_v30 = vsub.f32 %v2125_v2, %v14297_v55  ;;  %v14330_v33 = vand.u32 4294901760, %v2128_v36 }
 0x2e1   : > { %18737 = vst [vmem:[#allocation348_spill] sm:$0xff] %v14319_v56  ;;  %v17705_v23 = vand.u32 4294901760, %v14319_v56  ;;  %v14333_v48 = vand.u32 4294901760, %v1985_v14  ;;  %v5484_v6 = vand.u32 4294901760, %v5483_v57  ;;  %v5494_v13 = vand.u32 4294901760, %v5493_v27 }
 0x2e2   : > { %18738 = vst [vmem:[#allocation349_spill] sm:$0xff] %v14325_v30  ;;  %2703 = vmatmul.mubr.f32.gmra.mrb[52].mxu1 %v2702_v37  ;;  %v2717_v41 = vsub.f32 %v14300_v11, %v17704_v50  ;;  %18739 = vst [vmem:[#allocation350_spill] sm:$0xff] %v14330_v33  ;;  %v18741_v2 = vand.u32 4294901760, %v14279_v24  ;;  %v2131_v55 = vsel %vm2063_vm2, %v14021_v62, 0  ;;  %v14349_v27 = vsub.f32 %v2128_v36, %v14330_v33 }
 0x2e3   : > { %18740 = vst [vmem:[#allocation351_spill] sm:$0xff] %v14333_v48  ;;  %2713 = vmatprep.mubr.f32.mxu1 %v2712_v20  ;;  %v14342_v50 = vsub.f32 %v1985_v14, %v14333_v48  ;;  %5485 = vmatmul.mubr.f32.gmra.mrb[32].mxu0 %v5484_v6  ;;  %v5499_v57 = vsub.f32 %v14319_v56, %v17705_v23  ;;  %v1986_v59 = vpop.trf.xlu1  ;;  %v18745_v14 = vld [vmem:[#allocation205_spill] sm:$0xff]  ;;  %v14355_v6 = vand.u32 4294901760, %v2131_v55  ;;  %v2134_v23 = vsel %vm2063_vm2, %v14049_v60, 0  ;;  %v18752_v60 = vld [vmem:[#allocation10_spill] sm:$0xff] }
 0x2e4   : > { %v2718_v4 = vand.u32 4294901760, %v2717_v41  ;;  %v5509_v37 = vsub.f32 %v14279_v24, %v18741_v2  ;;  %5495 = vmatprep.mubr.f32.mxu0 %v5494_v13  ;;  %18743 = vst [vmem:[#allocation353_spill] sm:$0xff] %v14349_v27  ;;  %v14352_v2 = vand.u32 4294901760, %v1986_v59  ;;  %v18747_v20 = vand.u32 4294901760, %v14307_v44  ;;  %v18749_v13 = vld [vmem:[#allocation4_spill] sm:$0xff]  ;;  %v18750_v41 = vld [vmem:[#allocation6_spill] sm:$0xff] }
 0x2e5   : > { %18742 = vst [vmem:[#allocation352_spill] sm:$0xff] %v14342_v50  ;;  %v5500_v62 = vand.u32 4294901760, %v5499_v57  ;;  %18746 = vst [vmem:[#allocation355_spill] sm:$0xff] %v14355_v6  ;;  %v9305_v56 = vpack.c.bf16 %v18750_v41, %v18749_v13  ;;  %v18751_v57 = vand.u32 4294901760, %v14342_v50  ;;  %v14373_v48 = vand.u32 4294901760, %v2134_v23 }
 0x2e6   : > { %2719 = vmatmul.mubr.f32.gmra.mrb[54].mxu1 %v2718_v4  ;;  %18744 = vst [vmem:[#allocation354_spill] sm:$0xff] %v14352_v2  ;;  %v5510_v24 = vand.u32 4294901760, %v5509_v37  ;;  %v5525_v4 = vsub.f32 %v14307_v44, %v18747_v20  ;;  %v14363_v36 = vsub.f32 %v1986_v59, %v14352_v2  ;;  %v18753_v37 = vld [vmem:[#allocation11_spill] sm:$0xff]  ;;  %v2137_v59 = vsel %vm2063_vm2, %v14064_v8, 0 }
 0x2e7   : > { %3110 = vmatprep.mubr.f32.mxu1 %v18745_v14  ;;  %5501 = vmatmul.mubr.f32.gmra.mrb[34].mxu0 %v5500_v62  ;;  %v5515_v14 = vsub.f32 %v14342_v50, %v18751_v57  ;;  %v1987_v11 = vpop.trf.xlu1  ;;  %v9307_v33 = vpack.c.bf16 %v18753_v37, %v18752_v60  ;;  %18754 = vst [vmem:[#allocation4_spill] sm:$0xff] %v14373_v48  ;;  %v18756_v44 = vld [vmem:[#allocation211_spill] sm:$0xff] }
 0x2e8   : > { %18748 = vst [vmem:[#allocation356_spill] sm:$0xff] %v14363_v36  ;;  %5511 = vmatprep.mubr.f32.mxu0 %v5510_v24  ;;  %v14376_v20 = vand.u32 4294901760, %v1987_v11  ;;  %v14381_v57 = vsub.f32 %v2131_v55, %v14355_v6  ;;  %v5526_v24 = vand.u32 4294901760, %v5525_v4  ;;  %v18762_v41 = vand.u32 4294901760, %v14363_v36  ;;  %v18763_v4 = vld [vmem:[#allocation18_spill] sm:$0xff] }
 0x2e9   : > { %v5516_v62 = vand.u32 4294901760, %v5515_v14  ;;  %v18761_v14 = vld [vmem:[#allocation12_spill] sm:$0xff]  ;;  %v14400_v8 = vsub.f32 %v2134_v23, %v14373_v48  ;;  %v2140_v23 = vsel %vm2063_vm2, %v14066_v7, 0  ;;  %v2143_v7 = vsel %vm2063_vm2, %v14070_v21, 0 }
 0x2ea   : > { %3112 = vmatmul.mubr.f32.vlgmr.msra.gmra.mrb[0].mxu1 %v13438_v26  ;;  %18755 = vst [vmem:[#allocation10_spill] sm:$0xff] %v14376_v20  ;;  %18757 = vst [vmem:[#allocation357_spill] sm:$0xff] %v14381_v57  ;;  %v18758_v26 = vand.u32 4294901760, %v14325_v30  ;;  %v14389_v37 = vsub.f32 %v1987_v11, %v14376_v20  ;;  %v5531_v55 = vsub.f32 %v14363_v36, %v18762_v41  ;;  %v14407_v36 = vand.u32 4294901760, %v2137_v59 }
 0x2eb   : > { %9306 = vmatpush1.bf16.msra.mxu1 %v9305_v56  ;;  %3118 = vmatprep.mubr.f32.mxu1 %v18756_v44  ;;  %v18760_v56 = vld [vmem:[#allocation9_spill] sm:$0xff]  ;;  %18765 = vst [vmem:[#allocation359_spill] sm:$0xff] %v14400_v8  ;;  %v2146_v21 = vsel %vm2063_vm2, %v14074_v45, 0 }
 0x2ec   : > { %9308 = vmatprep.subr.bf16.mxu1 %v9307_v33  ;;  %v5541_v50 = vsub.f32 %v14325_v30, %v18758_v26  ;;  %18759 = vst [vmem:[#allocation358_spill] sm:$0xff] %v14389_v37  ;;  %5517 = vmatmul.mubr.f32.gmra.mrb[36].mxu0 %v5516_v62  ;;  %v9309_v44 = vpack.c.bf16 %v18761_v14, %v18760_v56  ;;  %v1988_v33 = vpop.trf.xlu1  ;;  %v18764_v26 = vld [vmem:[#allocation19_spill] sm:$0xff]  ;;  %v5532_v14 = vand.u32 4294901760, %v5531_v55  ;;  %v18767_v56 = vld [vmem:[#allocation213_spill] sm:$0xff]  ;;  %18768 = vst [vmem:[#allocation361_spill] sm:$0xff] %v14407_v36 }
 0x2ed   : > { %5527 = vmatprep.mubr.f32.mxu0 %v5526_v24  ;;  %v9311_v30 = vpack.c.bf16 %v18764_v26, %v18763_v4  ;;  %v14403_v62 = vand.u32 4294901760, %v1988_v33  ;;  %v18772_v55 = vld [vmem:[#allocation20_spill] sm:$0xff]  ;;  %v18773_v41 = vand.u32 4294901760, %v14389_v37 }
 0x2ee   : > { %3120 = vmatmul.mubr.f32.gmra.mrb[2].mxu1 %v13481_v28  ;;  %v5542_v24 = vand.u32 4294901760, %v5541_v50  ;;  %v18769_v28 = vand.u32 4294901760, %v14349_v27  ;;  %v18774_v50 = vld [vmem:[#allocation25_spill] sm:$0xff] }
 0x2ef   : > { %18766 = vst [vmem:[#allocation360_spill] sm:$0xff] %v14403_v62  ;;  %9310 = vmatpush1.bf16.msra.mxu1 %v9309_v44  ;;  %3126 = vmatprep.mubr.f32.mxu1 %v18767_v56  ;;  %v14415_v11 = vsub.f32 %v1988_v33, %v14403_v62  ;;  %v18771_v44 = vld [vmem:[#allocation17_spill] sm:$0xff]  ;;  %v5547_v4 = vsub.f32 %v14389_v37, %v18773_v41  ;;  %v14433_v41 = vand.u32 4294901760, %v2140_v23 }
 0x2f0   : > { %9312 = vmatprep.subr.bf16.mxu1 %v9311_v30  ;;  %v5557_v26 = vsub.f32 %v14349_v27, %v18769_v28  ;;  %5533 = vmatmul.mubr.f32.gmra.mrb[38].mxu0 %v5532_v14  ;;  %v9313_v56 = vpack.c.bf16 %v18772_v55, %v18771_v44  ;;  %v1989_v30 = vpop.trf.xlu1  ;;  %v9315_v28 = vpack.c.bf16 %v18400_v10, %v18774_v50  ;;  %v18776_v55 = vld [vmem:[#allocation214_spill] sm:$0xff] }
 0x2f1   : > { %18770 = vst [vmem:[#allocation362_spill] sm:$0xff] %v14415_v11  ;;  %5543 = vmatprep.mubr.f32.mxu0 %v5542_v24  ;;  %v14427_v27 = vand.u32 4294901760, %v1989_v30  ;;  %v5548_v14 = vand.u32 4294901760, %v5547_v4  ;;  %v14431_v44 = vsub.f32 %v2137_v59, %v14407_v36  ;;  %18778 = vst [vmem:[#allocation364_spill] sm:$0xff] %v14433_v41  ;;  %v18782_v4 = vld [vmem:[#allocation29_spill] sm:$0xff]  ;;  %v18783_v59 = vand.u32 4294901760, %v14415_v11 }
 0x2f2   : > { %3128 = vmatmul.mubr.f32.gmra.mrb[4].mxu1 %v13528_v49  ;;  %v5558_v24 = vand.u32 4294901760, %v5557_v26  ;;  %v18779_v49 = vand.u32 4294901760, %v14381_v57 }
 0x2f3   : > { %18775 = vst [vmem:[#allocation25_spill] sm:$0xff] %v14427_v27  ;;  %9314 = vmatpush1.bf16.msra.mxu1 %v9313_v56  ;;  %3134 = vmatprep.mubr.f32.mxu1 %v18776_v55  ;;  %18777 = vst [vmem:[#allocation363_spill] sm:$0xff] %v14431_v44  ;;  %v14441_v33 = vsub.f32 %v1989_v30, %v14427_v27  ;;  %v18781_v56 = vld [vmem:[#allocation23_spill] sm:$0xff]  ;;  %v5563_v10 = vsub.f32 %v14415_v11, %v18783_v59 }
 0x2f4   : > { %9316 = vmatprep.subr.bf16.mxu1 %v9315_v28  ;;  %v5573_v37 = vsub.f32 %v14381_v57, %v18779_v49  ;;  %5549 = vmatmul.mubr.f32.gmra.mrb[40].mxu0 %v5548_v14  ;;  %v9317_v55 = vpack.c.bf16 %v18782_v4, %v18781_v56  ;;  %v1990_v28 = vpop.trf.xlu1  ;;  %v9319_v49 = vpack.c.bf16 %v18417_v19, %v18415_v32  ;;  %v18785_v14 = vld [vmem:[#allocation215_spill] sm:$0xff]  ;;  %v18786_v57 = vand.u32 4294901760, %v14400_v8 }
 0x2f5   : > { %18780 = vst [vmem:[#allocation365_spill] sm:$0xff] %v14441_v33  ;;  %5559 = vmatprep.mubr.f32.mxu0 %v5558_v24  ;;  %v14452_v26 = vand.u32 4294901760, %v1990_v28  ;;  %v5564_v30 = vand.u32 4294901760, %v5563_v10  ;;  %v14460_v24 = vsub.f32 %v2140_v23, %v14433_v41 }
 0x2f6   : > { %3136 = vmatmul.mubr.f32.gmra.mrb[6].mxu1 %v13562_v16  ;;  %v5589_v4 = vsub.f32 %v14400_v8, %v18786_v57  ;;  %v14462_v16 = vand.u32 4294901760, %v2143_v7  ;;  %v5574_v11 = vand.u32 4294901760, %v5573_v37  ;;  %v18792_v57 = vand.u32 4294901760, %v14441_v33 }
 0x2f7   : > { %18784 = vst [vmem:[#allocation23_spill] sm:$0xff] %v14452_v26  ;;  %9318 = vmatpush1.bf16.msra.mxu1 %v9317_v55  ;;  %3142 = vmatprep.mubr.f32.mxu1 %v18785_v14  ;;  %18787 = vst [vmem:[#allocation366_spill] sm:$0xff] %v14460_v24  ;;  %v14467_v10 = vsub.f32 %v1990_v28, %v14452_v26  ;;  %v18790_v55 = vld [vmem:[#allocation33_spill] sm:$0xff]  ;;  %v18791_v14 = vld [vmem:[#allocation15_spill] sm:$0xff]  ;;  %v9323_v37 = vpack.c.bf16 %v18475_v31, %v18458_v40 }
 0x2f8   : > { %18788 = vst [vmem:[#allocation367_spill] sm:$0xff] %v14462_v16  ;;  %9320 = vmatprep.subr.bf16.mxu1 %v9319_v49  ;;  %5565 = vmatmul.mubr.f32.gmra.mrb[42].mxu0 %v5564_v30  ;;  %v9321_v19 = vpack.c.bf16 %v18791_v14, %v18790_v55  ;;  %v5579_v59 = vsub.f32 %v14441_v33, %v18792_v57  ;;  %v1991_v23 = vpop.trf.xlu1  ;;  %v18794_v30 = vld [vmem:[#allocation216_spill] sm:$0xff]  ;;  %v5590_v8 = vand.u32 4294901760, %v5589_v4 }
 0x2f9   : > { %18789 = vst [vmem:[#allocation368_spill] sm:$0xff] %v14467_v10  ;;  %5575 = vmatprep.mubr.f32.mxu0 %v5574_v11  ;;  %v14478_v49 = vand.u32 4294901760, %v1991_v23  ;;  %v14483_v57 = vsub.f32 %v2143_v7, %v14462_v16  ;;  %v14485_v11 = vand.u32 4294901760, %v2146_v21  ;;  %v18800_v4 = vand.u32 4294901760, %v14467_v10 }
 0x2fa   : > { %3144 = vmatmul.mubr.f32.gmra.mrb[8].mxu1 %v13610_v34  ;;  %v5580_v28 = vand.u32 4294901760, %v5579_v59  ;;  %v18797_v34 = vand.u32 4294901760, %v14431_v44  ;;  %v18799_v59 = vld [vmem:[#allocation26_spill] sm:$0xff] }
 0x2fb   : > { %18793 = vst [vmem:[#allocation33_spill] sm:$0xff] %v14478_v49  ;;  %9322 = vmatpush1.bf16.msra.mxu1 %v9321_v19  ;;  %3150 = vmatprep.mubr.f32.mxu1 %v18794_v30  ;;  %18795 = vst [vmem:[#allocation369_spill] sm:$0xff] %v14483_v57  ;;  %v14491_v45 = vsub.f32 %v1991_v23, %v14478_v49  ;;  %v18798_v19 = vld [vmem:[#allocation50_spill] sm:$0xff]  ;;  %v5595_v14 = vsub.f32 %v14467_v10, %v18800_v4  ;;  %v18804_v4 = vand.u32 4294901760, %v14460_v24 }
 0x2fc   : > { %18796 = vst [vmem:[#allocation370_spill] sm:$0xff] %v14485_v11  ;;  %9324 = vmatprep.subr.bf16.mxu1 %v9323_v37  ;;  %v5605_v33 = vsub.f32 %v14431_v44, %v18797_v34  ;;  %5581 = vmatmul.mubr.f32.gmra.mrb[44].mxu0 %v5580_v28  ;;  %v9325_v30 = vpack.c.bf16 %v18799_v59, %v18798_v19  ;;  %v1992_v7 = vpop.trf.xlu1  ;;  %v18802_v28 = vld [vmem:[#allocation224_spill] sm:$0xff]  ;;  %v18806_v34 = vld [vmem:[#allocation63_spill] sm:$0xff] }
 0x2fd   : > { %5591 = vmatprep.mubr.f32.mxu0 %v5590_v8  ;;  %v9327_v37 = vpack.c.bf16 %v18512_v46, %v18506_v39  ;;  %v14502_v44 = vand.u32 4294901760, %v1992_v7  ;;  %v5596_v23 = vand.u32 4294901760, %v5595_v14  ;;  %v14507_v19 = vsub.f32 %v2146_v21, %v14485_v11 }
 0x2fe   : > { %3152 = vmatmul.mubr.f32.gmra.mrb[10].mxu1 %v13658_v63  ;;  %v5606_v8 = vand.u32 4294901760, %v5605_v33  ;;  %v5621_v63 = vsub.f32 %v14460_v24, %v18804_v4  ;;  %v9331_v33 = vpack.c.bf16 %v18535_v9, %v18526_v42  ;;  %v9333_v21 = vpack.c.bf16 %v18553_v12, %v18547_v15 }
 0x2ff   : > { %18801 = vst [vmem:[#allocation371_spill] sm:$0xff] %v14502_v44  ;;  %9326 = vmatpush1.bf16.msra.mxu1 %v9325_v30  ;;  %3158 = vmatprep.mubr.f32.mxu1 %v18802_v28  ;;  %18803 = vst [vmem:[#allocation372_spill] sm:$0xff] %v14507_v19  ;;  %v14513_v10 = vsub.f32 %v1992_v7, %v14502_v44  ;;  %v18807_v30 = vld [vmem:[#allocation36_spill] sm:$0xff]  ;;  %v18808_v28 = vand.u32 4294901760, %v14491_v45 }
 0x300   : > { %9328 = vmatprep.subr.bf16.mxu1 %v9327_v37  ;;  %5597 = vmatmul.mubr.f32.gmra.mrb[46].mxu0 %v5596_v23  ;;  %v9329_v14 = vpack.c.bf16 %v18807_v30, %v18806_v34  ;;  %v1993_v46 = vpop.trf.xlu1  ;;  %v18810_v23 = vld [vmem:[#allocation110_spill] sm:$0xff]  ;;  %v5622_v24 = vand.u32 4294901760, %v5621_v63  ;;  %v9335_v63 = vpack.c.bf16 %v18566_v18, %v18560_v1 }
 0x301   : > { %18805 = vst [vmem:[#allocation373_spill] sm:$0xff] %v14513_v10  ;;  %v5611_v59 = vsub.f32 %v14491_v45, %v18808_v28  ;;  %5607 = vmatprep.mubr.f32.mxu0 %v5606_v8  ;;  %v14524_v37 = vand.u32 4294901760, %v1993_v46  ;;  %v18811_v28 = vand.u32 4294901760, %v14483_v57 }
 0x302   : > { %3160 = vmatmul.mubr.f32.gmra.mrb[12].mxu1 %v13699_v38 }
 0x303   : > { %18809 = vst [vmem:[#allocation63_spill] sm:$0xff] %v14524_v37  ;;  %9330 = vmatpush1.bf16.msra.mxu1 %v9329_v14  ;;  %v5612_v7 = vand.u32 4294901760, %v5611_v59  ;;  %3166 = vmatprep.mubr.f32.mxu1 %v18810_v23  ;;  %v5637_v8 = vsub.f32 %v14483_v57, %v18811_v28  ;;  %v14532_v38 = vsub.f32 %v1993_v46, %v14524_v37  ;;  %v18812_v14 = vand.u32 4294901760, %v14513_v10 }
 0x304   : > { %9332 = vmatprep.subr.bf16.mxu1 %v9331_v33  ;;  %v1994_v23 = vpop.trf.xlu1  ;;  %v18815_v57 = vand.u32 4294901760, %v14507_v19 }
 0x305   : > { %5613 = vmatmul.mubr.f32.gmra.mrb[48].mxu0 %v5612_v7  ;;  %v5627_v59 = vsub.f32 %v14513_v10, %v18812_v14  ;;  %v17768_v33 = vand.u32 4294901760, %v14532_v38  ;;  %v14543_v28 = vand.u32 4294901760, %v1994_v23  ;;  %v18814_v7 = vld [vmem:[#allocation113_spill] sm:$0xff]  ;;  %v5638_v4 = vand.u32 4294901760, %v5637_v8  ;;  %v18818_v10 = vld [vmem:[#allocation67_spill] sm:$0xff] }
 0x306   : > { %5623 = vmatprep.mubr.f32.mxu0 %v5622_v24  ;;  %3168 = vmatmul.mubr.f32.gmra.mrb[14].mxu1 %v13741_v17  ;;  %v5653_v14 = vsub.f32 %v14507_v19, %v18815_v57  ;;  %v18817_v17 = vld [vmem:[#allocation94_spill] sm:$0xff]  ;;  %v9339_v8 = vpack.c.bf16 %v18576_v43, %v18571_v22 }
 0x307   : > { %18813 = vst [vmem:[#allocation36_spill] sm:$0xff] %v14543_v28  ;;  %9334 = vmatpush1.bf16.msra.mxu1 %v9333_v21  ;;  %v5628_v46 = vand.u32 4294901760, %v5627_v59  ;;  %3174 = vmatprep.mubr.f32.mxu1 %v18814_v7  ;;  %v14550_v24 = vsub.f32 %v1994_v23, %v14543_v28  ;;  %v9337_v18 = vpack.c.bf16 %v18818_v10, %v18817_v17  ;;  %v18819_v23 = vld [vmem:[#allocation152_spill] sm:$0xff]  ;;  %v18821_v7 = vld [vmem:[#allocation83_spill] sm:$0xff] }
 0x308   : > { %9336 = vmatprep.subr.bf16.mxu1 %v9335_v63  ;;  %v5643_v21 = vsub.f32 %v14532_v38, %v17768_v33  ;;  %v5654_v63 = vand.u32 4294901760, %v5653_v14  ;;  %v18822_v33 = vld [vmem:[#allocation100_spill] sm:$0xff] }
 0x309   : > { %18816 = vst [vmem:[#allocation374_spill] sm:$0xff] %v14550_v24  ;;  %5629 = vmatmul.mubr.f32.gmra.mrb[50].mxu0 %v5628_v46  ;;  %v17771_v59 = vand.u32 4294901760, %v14550_v24  ;;  %v18820_v46 = vld [vmem:[#allocation112_spill] sm:$0xff] }
 0x30a   : > { %5639 = vmatprep.mubr.f32.mxu0 %v5638_v4  ;;  %3176 = vmatmul.mubr.f32.gmra.mrb[16].mxu1 %v13775_v52  ;;  %v5644_v57 = vand.u32 4294901760, %v5643_v21  ;;  %v9341_v19 = vpack.c.bf16 %v18821_v7, %v18820_v46  ;;  %v9343_v52 = vpack.c.bf16 %v18822_v33, %v18582_v47  ;;  %v18823_v21 = vld [vmem:[#allocation228_spill] sm:$0xff]  ;;  %v18827_v7 = vld [vmem:[#allocation287_spill] sm:$0xff]  ;;  %v18845_v46 = vld [vmem:[#allocation245_spill] sm:$0xff] }
 0x30b   : > { %9338 = vmatpush1.bf16.msra.mxu1 %v9337_v18  ;;  %3182 = vmatprep.mubr.f32.mxu1 %v18819_v23  ;;  %v5659_v4 = vsub.f32 %v14550_v24, %v17771_v59  ;;  %v18824_v14 = vld [vmem:[#allocation128_spill] sm:$0xff]  ;;  %v18826_v23 = vld [vmem:[#allocation209_spill] sm:$0xff]  ;;  %v18828_v59 = vld [vmem:[#allocation143_spill] sm:$0xff] }
 0x30c   : > { %9340 = vmatprep.subr.bf16.mxu1 %v9339_v8  ;;  %v18825_v8 = vld [vmem:[#allocation99_spill] sm:$0xff]  ;;  %v18831_v33 = vld [vmem:[#allocation40_spill] sm:$0xff] }
 0x30d   : > { %5645 = vmatmul.mubr.f32.gmra.mrb[52].mxu0 %v5644_v57  ;;  %v5660_v18 = vand.u32 4294901760, %v5659_v4  ;;  %v9345_v57 = vpack.c.bf16 %v18825_v8, %v18824_v14  ;;  %v18836_v8 = vld [vmem:[#allocation225_spill] sm:$0xff] }
 0x30e   : > { %5655 = vmatprep.mubr.f32.mxu0 %v5654_v63  ;;  %3184 = vmatmul.mubr.f32.gmra.mrb[18].mxu1 %v13819_v29  ;;  %v18829_v63 = vld [vmem:[#allocation117_spill] sm:$0xff]  ;;  %v18830_v29 = vld [vmem:[#allocation232_spill] sm:$0xff] }
 0x30f   : > { %9342 = vmatpush1.bf16.msra.mxu1 %v9341_v19  ;;  %3190 = vmatprep.mubr.f32.mxu1 %v18823_v21  ;;  %v9347_v24 = vpack.c.bf16 %v18829_v63, %v18828_v59  ;;  %v18832_v19 = vld [vmem:[#allocation21_spill] sm:$0xff]  ;;  %v18839_v63 = vld [vmem:[#allocation82_spill] sm:$0xff] }
 0x310   : > { %9344 = vmatprep.subr.bf16.mxu1 %v9343_v52  ;;  %v9657_v4 = vpack.c.bf16 %v18832_v19, %v18831_v33  ;;  %v18833_v21 = vld [vmem:[#allocation241_spill] sm:$0xff]  ;;  %v18842_v19 = vld [vmem:[#allocation55_spill] sm:$0xff] }
 0x311   : > { %5661 = vmatmul.mubr.f32.gmra.mrb[54].mxu0 %v5660_v18  ;;  %v18834_v52 = vld [vmem:[#allocation57_spill] sm:$0xff]  ;;  %v18835_v18 = vld [vmem:[#allocation31_spill] sm:$0xff] }
 0x312   : > { %5972 = vmatprep.mubr.f32.mxu0 %v18826_v23  ;;  %3192 = vmatmul.mubr.f32.gmra.mrb[20].mxu1 %v18827_v7  ;;  %v9659_v47 = vpack.c.bf16 %v18835_v18, %v18834_v52  ;;  %v18837_v23 = vld [vmem:[#allocation144_spill] sm:$0xff]  ;;  %v18838_v7 = vld [vmem:[#allocation114_spill] sm:$0xff] }
 0x313   : > { %9346 = vmatpush1.bf16.msra.mxu1 %v9345_v57  ;;  %3198 = vmatprep.mubr.f32.mxu1 %v18830_v29  ;;  %v9349_v14 = vpack.c.bf16 %v18838_v7, %v18837_v23  ;;  %v18840_v57 = vld [vmem:[#allocation159_spill] sm:$0xff]  ;;  %v18841_v29 = vld [vmem:[#allocation133_spill] sm:$0xff]  ;;  %v18857_v52 = vld [vmem:[#allocation70_spill] sm:$0xff] }
 0x314   : > { %9348 = vmatprep.subr.bf16.mxu1 %v9347_v24  ;;  %v9351_v59 = vpack.c.bf16 %v18841_v29, %v18840_v57  ;;  %v18843_v24 = vld [vmem:[#allocation32_spill] sm:$0xff]  ;;  %v18848_v7 = vld [vmem:[#allocation97_spill] sm:$0xff]  ;;  %v18853_v57 = vld [vmem:[#allocation147_spill] sm:$0xff] }
 0x315   : > { %5974 = vmatmul.mubr.f32.vlgmr.msra.gmra.mrb[0].mxu0 %v18833_v21  ;;  %v9661_v33 = vpack.c.bf16 %v18843_v24, %v18842_v19  ;;  %v18844_v21 = vld [vmem:[#allocation233_spill] sm:$0xff]  ;;  %v18851_v29 = vld [vmem:[#allocation180_spill] sm:$0xff]  ;;  %v18855_v19 = vld [vmem:[#allocation46_spill] sm:$0xff] }
 0x316   : > { %9658 = vmatpush1.bf16.msra.mxu0 %v9657_v4  ;;  %5980 = vmatprep.mubr.f32.mxu0 %v18836_v8  ;;  %v18846_v4 = vld [vmem:[#allocation73_spill] sm:$0xff] }
 0x317   : > { %9660 = vmatprep.subr.bf16.mxu0 %v9659_v47  ;;  %3200 = vmatmul.mubr.f32.gmra.mrb[22].mxu1 %v18839_v63  ;;  %v18847_v8 = vld [vmem:[#allocation45_spill] sm:$0xff]  ;;  %v18850_v63 = vld [vmem:[#allocation130_spill] sm:$0xff] }
 0x318   : > { %9350 = vmatpush1.bf16.msra.mxu1 %v9349_v14  ;;  %3206 = vmatprep.mubr.f32.mxu1 %v18844_v21  ;;  %v9663_v18 = vpack.c.bf16 %v18847_v8, %v18846_v4  ;;  %v18849_v47 = vld [vmem:[#allocation157_spill] sm:$0xff]  ;;  %v18852_v14 = vld [vmem:[#allocation174_spill] sm:$0xff]  ;;  %v18854_v21 = vld [vmem:[#allocation71_spill] sm:$0xff] }
 0x319   : > { %5982 = vmatmul.mubr.f32.gmra.mrb[2].mxu0 %v18845_v46  ;;  %9352 = vmatprep.subr.bf16.mxu1 %v9351_v59  ;;  %v9353_v23 = vpack.c.bf16 %v18850_v63, %v18849_v47  ;;  %v9355_v24 = vpack.c.bf16 %v18853_v57, %v18852_v14  ;;  %v9665_v46 = vpack.c.bf16 %v18855_v19, %v18854_v21  ;;  %v18856_v59 = vld [vmem:[#allocation239_spill] sm:$0xff]  ;;  %v18860_v63 = vld [vmem:[#allocation226_spill] sm:$0xff]  ;;  %v18862_v57 = vld [vmem:[#allocation192_spill] sm:$0xff] }
 0x31a   : > { %9662 = vmatpush1.bf16.msra.mxu0 %v9661_v33  ;;  %5988 = vmatprep.mubr.f32.mxu0 %v18848_v7  ;;  %v18858_v33 = vld [vmem:[#allocation88_spill] sm:$0xff]  ;;  %v18859_v7 = vld [vmem:[#allocation62_spill] sm:$0xff]  ;;  %v19027_v47 = vld [vmem:[#allocation185_spill] sm:$0xff] }
 0x31b   : > { %9664 = vmatprep.subr.bf16.mxu0 %v9663_v18  ;;  %3208 = vmatmul.mubr.f32.gmra.mrb[24].mxu1 %v18851_v29  ;;  %v9667_v8 = vpack.c.bf16 %v18859_v7, %v18858_v33  ;;  %v18861_v18 = vld [vmem:[#allocation175_spill] sm:$0xff]  ;;  %v18865_v21 = vld [vmem:[#allocation60_spill] sm:$0xff]  ;;  %v19024_v33 = vld [vmem:[#allocation230_spill] sm:$0xff] }
 0x31c   : > { %9354 = vmatpush1.bf16.msra.mxu1 %v9353_v23  ;;  %3214 = vmatprep.mubr.f32.mxu1 %v18856_v59  ;;  %v9357_v29 = vpack.c.bf16 %v18643_v35, %v18861_v18  ;;  %v18863_v23 = vld [vmem:[#allocation189_spill] sm:$0xff]  ;;  %v18867_v14 = vld [vmem:[#allocation252_spill] sm:$0xff] }
 0x31d   : > { %5990 = vmatmul.mubr.f32.gmra.mrb[4].mxu0 %v18857_v52  ;;  %9356 = vmatprep.subr.bf16.mxu1 %v9355_v24  ;;  %v9359_v19 = vpack.c.bf16 %v18650_v58, %v18863_v23  ;;  %v18864_v59 = vld [vmem:[#allocation89_spill] sm:$0xff]  ;;  %v18866_v24 = vld [vmem:[#allocation242_spill] sm:$0xff] }
 0x31e   : > { %9666 = vmatpush1.bf16.msra.mxu0 %v9665_v46  ;;  %5996 = vmatprep.mubr.f32.mxu0 %v18860_v63  ;;  %v9669_v52 = vpack.c.bf16 %v18865_v21, %v18864_v59  ;;  %v18868_v46 = vld [vmem:[#allocation105_spill] sm:$0xff]  ;;  %v18873_v58 = vld [vmem:[#allocation206_spill] sm:$0xff] }
 0x31f   : > { %9668 = vmatprep.subr.bf16.mxu0 %v9667_v8  ;;  %3216 = vmatmul.mubr.f32.gmra.mrb[26].mxu1 %v18862_v57  ;;  %v18869_v63 = vld [vmem:[#allocation77_spill] sm:$0xff]  ;;  %v18871_v8 = vld [vmem:[#allocation187_spill] sm:$0xff]  ;;  %v18876_v59 = vld [vmem:[#allocation78_spill] sm:$0xff] }
 0x320   : > { %9358 = vmatpush1.bf16.msra.mxu1 %v9357_v29  ;;  %3222 = vmatprep.mubr.f32.mxu1 %v18866_v24  ;;  %v9671_v7 = vpack.c.bf16 %v18869_v63, %v18868_v46  ;;  %v18870_v35 = vld [vmem:[#allocation229_spill] sm:$0xff]  ;;  %v18875_v24 = vld [vmem:[#allocation103_spill] sm:$0xff]  ;;  %v19023_v46 = vld [vmem:[#allocation84_spill] sm:$0xff] }
 0x321   : > { %5998 = vmatmul.mubr.f32.gmra.mrb[6].mxu0 %v18867_v14  ;;  %9360 = vmatprep.subr.bf16.mxu1 %v9359_v19  ;;  %v18872_v57 = vld [vmem:[#allocation161_spill] sm:$0xff]  ;;  %v9673_v14 = vpack.c.bf16 %v18876_v59, %v18875_v24  ;;  %v18885_v59 = vld [vmem:[#allocation90_spill] sm:$0xff] }
 0x322   : > { %9670 = vmatpush1.bf16.msra.mxu0 %v9669_v52  ;;  %6004 = vmatprep.mubr.f32.mxu0 %v18870_v35  ;;  %v9361_v18 = vpack.c.bf16 %v18872_v57, %v18871_v8  ;;  %v18874_v29 = vld [vmem:[#allocation197_spill] sm:$0xff]  ;;  %v18879_v52 = vld [vmem:[#allocation118_spill] sm:$0xff]  ;;  %v18880_v35 = vld [vmem:[#allocation92_spill] sm:$0xff] }
 0x323   : > { %9672 = vmatprep.subr.bf16.mxu0 %v9671_v7  ;;  %3224 = vmatmul.mubr.f32.gmra.mrb[28].mxu1 %v18873_v58  ;;  %v9363_v21 = vpack.c.bf16 %v18663_v25, %v18874_v29  ;;  %v18877_v19 = vld [vmem:[#allocation249_spill] sm:$0xff]  ;;  %v9675_v63 = vpack.c.bf16 %v18880_v35, %v18879_v52  ;;  %v18881_v57 = vld [vmem:[#allocation231_spill] sm:$0xff]  ;;  %v18882_v7 = vld [vmem:[#allocation198_spill] sm:$0xff] }
 0x324   : > { %9362 = vmatpush1.bf16.msra.mxu1 %v9361_v18  ;;  %3230 = vmatprep.mubr.f32.mxu1 %v18877_v19  ;;  %v18878_v23 = vld [vmem:[#allocation257_spill] sm:$0xff]  ;;  %v9365_v58 = vpack.c.bf16 %v18659_v51, %v18882_v7  ;;  %v18883_v25 = vld [vmem:[#allocation291_spill] sm:$0xff]  ;;  %v18886_v19 = vld [vmem:[#allocation208_spill] sm:$0xff] }
 0x325   : > { %6006 = vmatmul.mubr.f32.gmra.mrb[8].mxu0 %v18878_v23  ;;  %9364 = vmatprep.subr.bf16.mxu1 %v9363_v21  ;;  %v18884_v18 = vld [vmem:[#allocation119_spill] sm:$0xff]  ;;  %v18887_v23 = vld [vmem:[#allocation85_spill] sm:$0xff]  ;;  %v18889_v35 = vld [vmem:[#allocation134_spill] sm:$0xff] }
 0x326   : > { %9674 = vmatpush1.bf16.msra.mxu0 %v9673_v14  ;;  %6012 = vmatprep.mubr.f32.mxu0 %v18881_v57  ;;  %v9677_v24 = vpack.c.bf16 %v18885_v59, %v18884_v18  ;;  %v18888_v21 = vld [vmem:[#allocation7_spill] sm:$0xff]  ;;  %v18891_v57 = vld [vmem:[#allocation236_spill] sm:$0xff]  ;;  %v18895_v7 = vld [vmem:[#allocation217_spill] sm:$0xff] }
 0x327   : > { %9676 = vmatprep.subr.bf16.mxu0 %v9675_v63  ;;  %3232 = vmatmul.mubr.f32.gmra.mrb[30].mxu1 %v18883_v25  ;;  %v18890_v14 = vld [vmem:[#allocation107_spill] sm:$0xff]  ;;  %v18892_v63 = vld [vmem:[#allocation296_spill] sm:$0xff]  ;;  %v19019_v29 = vld [vmem:[#allocation170_spill] sm:$0xff] }
 0x328   : > { %9366 = vmatpush1.bf16.msra.mxu1 %v9365_v58  ;;  %3238 = vmatprep.mubr.f32.mxu1 %v18886_v19  ;;  %v9679_v52 = vpack.c.bf16 %v18890_v14, %v18889_v35  ;;  %v18893_v25 = vld [vmem:[#allocation135_spill] sm:$0xff]  ;;  %v18894_v58 = vld [vmem:[#allocation108_spill] sm:$0xff]  ;;  %v18897_v19 = vld [vmem:[#allocation149_spill] sm:$0xff] }
 0x329   : > { %6014 = vmatmul.mubr.f32.gmra.mrb[10].mxu0 %v18887_v23  ;;  %9368 = vmatprep.subr.bf16.mxu1 %v18888_v21  ;;  %v9681_v51 = vpack.c.bf16 %v18894_v58, %v18893_v25  ;;  %v18896_v59 = vld [vmem:[#allocation260_spill] sm:$0xff]  ;;  %v18898_v23 = vld [vmem:[#allocation122_spill] sm:$0xff]  ;;  %v18899_v21 = vld [vmem:[#allocation61_spill] sm:$0xff] }
 0x32a   : > { %9678 = vmatpush1.bf16.msra.mxu0 %v9677_v24  ;;  %6020 = vmatprep.mubr.f32.mxu0 %v18891_v57  ;;  %v9683_v18 = vpack.c.bf16 %v18898_v23, %v18897_v19  ;;  %v18900_v24 = vld [vmem:[#allocation299_spill] sm:$0xff]  ;;  %v18901_v57 = vld [vmem:[#allocation150_spill] sm:$0xff] }
 0x32b   : > { %9680 = vmatprep.subr.bf16.mxu0 %v9679_v52  ;;  %3240 = vmatmul.mubr.f32.gmra.mrb[32].mxu1 %v18892_v63  ;;  %v18902_v52 = vld [vmem:[#allocation123_spill] sm:$0xff]  ;;  %v18903_v63 = vld [vmem:[#allocation293_spill] sm:$0xff]  ;;  %v18904_v35 = vld [vmem:[#allocation166_spill] sm:$0xff] }
 0x32c   : > { %3246 = vmatprep.mubr.f32.mxu1 %v18895_v7  ;;  %v9685_v14 = vpack.c.bf16 %v18902_v52, %v18901_v57  ;;  %v18905_v58 = vld [vmem:[#allocation167_spill] sm:$0xff]  ;;  %v18906_v7 = vld [vmem:[#allocation138_spill] sm:$0xff] }
 0x32d   : > { %6022 = vmatmul.mubr.f32.gmra.mrb[12].mxu0 %v18896_v59  ;;  %v9687_v25 = vpack.c.bf16 %v18906_v7, %v18905_v58  ;;  %v18907_v59 = vld [vmem:[#allocation246_spill] sm:$0xff]  ;;  %v18912_v19 = vld [vmem:[#allocation267_spill] sm:$0xff]  ;;  %v18919_v7 = vld [vmem:[#allocation237_spill] sm:$0xff] }
 0x32e   : > { %9682 = vmatpush1.bf16.msra.mxu0 %v9681_v51  ;;  %6028 = vmatprep.mubr.f32.mxu0 %v18899_v21  ;;  %v18908_v51 = vld [vmem:[#allocation303_spill] sm:$0xff]  ;;  %v18909_v21 = vld [vmem:[#allocation165_spill] sm:$0xff]  ;;  %v19016_v58 = vld [vmem:[#allocation126_spill] sm:$0xff] }
 0x32f   : > { %9684 = vmatprep.subr.bf16.mxu0 %v9683_v18  ;;  %3248 = vmatmul.mubr.f32.gmra.mrb[34].mxu1 %v18900_v24  ;;  %v18910_v18 = vld [vmem:[#allocation139_spill] sm:$0xff]  ;;  %v18911_v24 = vld [vmem:[#allocation297_spill] sm:$0xff] }
 0x330   : > { %3254 = vmatprep.mubr.f32.mxu1 %v18903_v63  ;;  %v9689_v23 = vpack.c.bf16 %v18910_v18, %v18909_v21  ;;  %v18913_v52 = vld [vmem:[#allocation183_spill] sm:$0xff]  ;;  %v18914_v63 = vld [vmem:[#allocation154_spill] sm:$0xff] }
 0x331   : > { %6030 = vmatmul.mubr.f32.gmra.mrb[14].mxu0 %v18904_v35  ;;  %v9691_v57 = vpack.c.bf16 %v18914_v63, %v18913_v52  ;;  %v18915_v35 = vld [vmem:[#allocation250_spill] sm:$0xff]  ;;  %v18920_v18 = vld [vmem:[#allocation195_spill] sm:$0xff] }
 0x332   : > { %9686 = vmatpush1.bf16.msra.mxu0 %v9685_v14  ;;  %6036 = vmatprep.mubr.f32.mxu0 %v18907_v59  ;;  %v18916_v14 = vld [vmem:[#allocation182_spill] sm:$0xff]  ;;  %v19021_v8 = vld [vmem:[#allocation251_spill] sm:$0xff] }
 0x333   : > { %9688 = vmatprep.subr.bf16.mxu0 %v9687_v25  ;;  %3256 = vmatmul.mubr.f32.gmra.mrb[36].mxu1 %v18908_v51  ;;  %v18917_v25 = vld [vmem:[#allocation155_spill] sm:$0xff]  ;;  %v18918_v51 = vld [vmem:[#allocation301_spill] sm:$0xff]  ;;  %v18927_v52 = vld [vmem:[#allocation42_spill] sm:$0xff] }
 0x334   : > { %3262 = vmatprep.mubr.f32.mxu1 %v18911_v24  ;;  %v9693_v59 = vpack.c.bf16 %v18917_v25, %v18916_v14  ;;  %v18921_v24 = vld [vmem:[#allocation171_spill] sm:$0xff]  ;;  %v18928_v25 = vld [vmem:[#allocation200_spill] sm:$0xff] }
 0x335   : > { %6038 = vmatmul.mubr.f32.gmra.mrb[16].mxu0 %v18912_v19  ;;  %v9695_v21 = vpack.c.bf16 %v18921_v24, %v18920_v18  ;;  %v18922_v19 = vld [vmem:[#allocation256_spill] sm:$0xff]  ;;  %v18935_v18 = vld [vmem:[#allocation86_spill] sm:$0xff] }
 0x336   : > { %9690 = vmatpush1.bf16.msra.mxu0 %v9689_v23  ;;  %6044 = vmatprep.mubr.f32.mxu0 %v18915_v35  ;;  %v18923_v23 = vld [vmem:[#allocation312_spill] sm:$0xff]  ;;  %v18924_v35 = vld [vmem:[#allocation193_spill] sm:$0xff] }
 0x337   : > { %9692 = vmatprep.subr.bf16.mxu0 %v9691_v57  ;;  %3264 = vmatmul.mubr.f32.gmra.mrb[38].mxu1 %v14129_v5  ;;  %v18925_v57 = vld [vmem:[#allocation169_spill] sm:$0xff] }
 0x338   : > { %3270 = vmatprep.mubr.f32.mxu1 %v18918_v51  ;;  %v9697_v63 = vpack.c.bf16 %v18925_v57, %v18924_v35  ;;  %v18926_v5 = vld [vmem:[#allocation305_spill] sm:$0xff]  ;;  %v18929_v51 = vld [vmem:[#allocation186_spill] sm:$0xff]  ;;  %v19013_v57 = vld [vmem:[#allocation248_spill] sm:$0xff] }
 0x339   : > { %6046 = vmatmul.mubr.f32.gmra.mrb[18].mxu0 %v18919_v7  ;;  %v9699_v14 = vpack.c.bf16 %v18929_v51, %v18928_v25  ;;  %v18930_v7 = vld [vmem:[#allocation93_spill] sm:$0xff]  ;;  %v19009_v51 = vld [vmem:[#allocation64_spill] sm:$0xff]  ;;  %v19012_v25 = vld [vmem:[#allocation238_spill] sm:$0xff] }
 0x33a   : > { %9694 = vmatpush1.bf16.msra.mxu0 %v9693_v59  ;;  %6052 = vmatprep.mubr.f32.mxu0 %v18922_v19  ;;  %v18931_v59 = vld [vmem:[#allocation316_spill] sm:$0xff]  ;;  %v18932_v19 = vld [vmem:[#allocation201_spill] sm:$0xff] }
 0x33b   : > { %9696 = vmatprep.subr.bf16.mxu0 %v9695_v21  ;;  %3272 = vmatmul.mubr.f32.gmra.mrb[40].mxu1 %v18923_v23  ;;  %v18933_v21 = vld [vmem:[#allocation184_spill] sm:$0xff]  ;;  %v18934_v23 = vld [vmem:[#allocation309_spill] sm:$0xff] }
 0x33c   : > { %3278 = vmatprep.mubr.f32.mxu1 %v18926_v5  ;;  %v9701_v24 = vpack.c.bf16 %v18933_v21, %v18932_v19  ;;  %v18936_v5 = vld [vmem:[#allocation264_spill] sm:$0xff]  ;;  %v19007_v19 = vld [vmem:[#allocation53_spill] sm:$0xff] }
 0x33d   : > { %6054 = vmatmul.mubr.f32.gmra.mrb[20].mxu0 %v18927_v52  ;;  %v18937_v52 = vld [vmem:[#allocation47_spill] sm:$0xff]  ;;  %v19003_v21 = vld [vmem:[#allocation140_spill] sm:$0xff]  ;;  %v19015_v35 = vld [vmem:[#allocation69_spill] sm:$0xff] }
 0x33e   : > { %9698 = vmatpush1.bf16.msra.mxu0 %v9697_v63  ;;  %6060 = vmatprep.mubr.f32.mxu0 %v18930_v7  ;;  %v18938_v63 = vld [vmem:[#allocation311_spill] sm:$0xff]  ;;  %v18939_v7 = vld [vmem:[#allocation278_spill] sm:$0xff] }
 0x33f   : > { %9700 = vmatprep.subr.bf16.mxu0 %v9699_v14  ;;  %3280 = vmatmul.mubr.f32.gmra.mrb[42].mxu1 %v18931_v59  ;;  %v18940_v14 = vld [vmem:[#allocation270_spill] sm:$0xff]  ;;  %v18941_v59 = vld [vmem:[#allocation317_spill] sm:$0xff] }
 0x340   : > { %3286 = vmatprep.mubr.f32.mxu1 %v18934_v23  ;;  %v18942_v23 = vld [vmem:[#allocation81_spill] sm:$0xff] }
 0x341   : > { %6062 = vmatmul.mubr.f32.gmra.mrb[22].mxu0 %v18935_v18  ;;  %v18943_v18 = vld [vmem:[#allocation48_spill] sm:$0xff] }
 0x342   : > { %9702 = vmatpush1.bf16.msra.mxu0 %v9701_v24  ;;  %6068 = vmatprep.mubr.f32.mxu0 %v18936_v5  ;;  %v18944_v24 = vld [vmem:[#allocation321_spill] sm:$0xff]  ;;  %v18945_v5 = vld [vmem:[#allocation284_spill] sm:$0xff] }
 0x343   : > { %9704 = vmatprep.subr.bf16.mxu0 %v18937_v52  ;;  %3288 = vmatmul.mubr.f32.gmra.mrb[44].mxu1 %v14184_v53  ;;  %v18946_v53 = vld [vmem:[#allocation279_spill] sm:$0xff]  ;;  %v18974_v52 = vld [vmem:[#allocation38_spill] sm:$0xff] }
 0x344   : > { %3294 = vmatprep.mubr.f32.mxu1 %v18938_v63  ;;  %v18947_v63 = vld [vmem:[#allocation332_spill] sm:$0xff] }
 0x345   : > { %6070 = vmatmul.mubr.f32.gmra.mrb[24].mxu0 %v18939_v7  ;;  %v18948_v7 = vld [vmem:[#allocation325_spill] sm:$0xff] }
 0x346   : > { %6076 = vmatprep.mubr.f32.mxu0 %v18940_v14  ;;  %v18949_v14 = vld [vmem:[#allocation132_spill] sm:$0xff] }
 0x347   : > { %3296 = vmatmul.mubr.f32.gmra.mrb[46].mxu1 %v14201_v54  ;;  %v18950_v54 = vld [vmem:[#allocation288_spill] sm:$0xff] }
 0x348   : > { %3302 = vmatprep.mubr.f32.mxu1 %v18941_v59  ;;  %v18951_v59 = vld [vmem:[#allocation337_spill] sm:$0xff] }
 0x349   : > { %6078 = vmatmul.mubr.f32.gmra.mrb[26].mxu0 %v18942_v23  ;;  %v18952_v23 = vld [vmem:[#allocation329_spill] sm:$0xff] }
 0x34a   : > { %6084 = vmatprep.mubr.f32.mxu0 %v18943_v18  ;;  %v18953_v18 = vld [vmem:[#allocation341_spill] sm:$0xff] }
 0x34b   : > { %3304 = vmatmul.mubr.f32.gmra.mrb[48].mxu1 %v14221_v61  ;;  %v18954_v61 = vld [vmem:[#allocation331_spill] sm:$0xff] }
 0x34c   : > { %3310 = vmatprep.mubr.f32.mxu1 %v18944_v24  ;;  %v18968_v24 = vld [vmem:[#allocation271_spill] sm:$0xff] }
 0x34d   : > { %6086 = vmatmul.mubr.f32.gmra.mrb[28].mxu0 %v18945_v5  ;;  %v18955_v5 = vld [vmem:[#allocation207_spill] sm:$0xff] }
 0x34e   : > { %6092 = vmatprep.mubr.f32.mxu0 %v18946_v53  ;;  %v18965_v53 = vld [vmem:[#allocation220_spill] sm:$0xff] }
 0x34f   : > { %3312 = vmatmul.mubr.f32.gmra.mrb[50].mxu1 %v18947_v63  ;;  %v18956_v63 = vld [vmem:[#allocation336_spill] sm:$0xff] }
 0x350   : > { %3318 = vmatprep.mubr.f32.mxu1 %v18948_v7  ;;  %v18957_v7 = vld [vmem:[#allocation265_spill] sm:$0xff] }
 0x351   : > { %6094 = vmatmul.mubr.f32.gmra.mrb[30].mxu0 %v18949_v14  ;;  %v18958_v14 = vld [vmem:[#allocation8_spill] sm:$0xff] }
 0x352   : > { %6100 = vmatprep.mubr.f32.mxu0 %v18950_v54  ;;  %v18959_v54 = vld [vmem:[#allocation219_spill] sm:$0xff] }
 0x353   : > { %3320 = vmatmul.mubr.f32.gmra.mrb[52].mxu1 %v18951_v59  ;;  %v18960_v59 = vld [vmem:[#allocation351_spill] sm:$0xff] }
 0x354   : > { %3326 = vmatprep.mubr.f32.mxu1 %v18952_v23  ;;  %v18961_v23 = vld [vmem:[#allocation13_spill] sm:$0xff] }
 0x355   : > { %6102 = vmatmul.mubr.f32.gmra.mrb[32].mxu0 %v18953_v18  ;;  %v18962_v18 = vld [vmem:[#allocation340_spill] sm:$0xff] }
 0x356   : > { %6108 = vmatprep.mubr.f32.mxu0 %v18954_v61  ;;  %v18963_v61 = vld [vmem:[#allocation49_spill] sm:$0xff] }
 0x357   : > { %3328 = vmatmul.mubr.f32.gmra.mrb[54].mxu1 %v14289_v3  ;;  %v18964_v3 = vld [vmem:[#allocation16_spill] sm:$0xff] }
 0x358   : > { %3528 = vmatprep.mubr.f32.mxu1 %v18955_v5 }
 0x359   : > { %6110 = vmatmul.mubr.f32.gmra.mrb[34].mxu0 %v14310_v0  ;;  %v18967_v0 = vld [vmem:[#allocation344_spill] sm:$0xff] }
 0x35a   : > { %6116 = vmatprep.mubr.f32.mxu0 %v18956_v63  ;;  %v18966_v63 = vld [vmem:[#allocation24_spill] sm:$0xff] }
 0x35b   : > { %3531 = vmatmul.mubr.f32.vlgmr.msra.gmra.mrb[0].mxu1 %v18957_v7 }
 0x35c   : > { %9370 = vmatpush1.bf16.msra.mxu1 %v18958_v14  ;;  %3538 = vmatprep.mubr.f32.mxu1 %v18959_v54  ;;  %v18969_v14 = vld [vmem:[#allocation28_spill] sm:$0xff] }
 0x35d   : > { %6118 = vmatmul.mubr.f32.gmra.mrb[36].mxu0 %v18960_v59  ;;  %9372 = vmatprep.subr.bf16.mxu1 %v18961_v23  ;;  %v18970_v59 = vld [vmem:[#allocation221_spill] sm:$0xff]  ;;  %v18972_v23 = vld [vmem:[#allocation350_spill] sm:$0xff] }
 0x35e   : > { %6124 = vmatprep.mubr.f32.mxu0 %v18962_v18  ;;  %v18971_v18 = vld [vmem:[#allocation34_spill] sm:$0xff] }
 0x35f   : > { %3541 = vmatmul.mubr.f32.gmra.mrb[2].mxu1 %v18963_v61 }
 0x360   : > { %9374 = vmatpush1.bf16.msra.mxu1 %v18964_v3  ;;  %3548 = vmatprep.mubr.f32.mxu1 %v18965_v53  ;;  %v18973_v3 = vld [vmem:[#allocation210_spill] sm:$0xff] }
 0x361   : > { %6126 = vmatmul.mubr.f32.gmra.mrb[38].mxu0 %v14352_v2  ;;  %9376 = vmatprep.subr.bf16.mxu1 %v18966_v63  ;;  %v18975_v2 = vld [vmem:[#allocation222_spill] sm:$0xff]  ;;  %v18978_v63 = vld [vmem:[#allocation43_spill] sm:$0xff] }
 0x362   : > { %6132 = vmatprep.mubr.f32.mxu0 %v18967_v0  ;;  %v18976_v0 = vld [vmem:[#allocation41_spill] sm:$0xff] }
 0x363   : > { %3551 = vmatmul.mubr.f32.gmra.mrb[4].mxu1 %v18968_v24 }
 0x364   : > { %9378 = vmatpush1.bf16.msra.mxu1 %v18969_v14  ;;  %3558 = vmatprep.mubr.f32.mxu1 %v18970_v59  ;;  %v18977_v14 = vld [vmem:[#allocation116_spill] sm:$0xff] }
 0x365   : > { %6134 = vmatmul.mubr.f32.gmra.mrb[40].mxu0 %v14376_v20  ;;  %9380 = vmatprep.subr.bf16.mxu1 %v18971_v18  ;;  %v18979_v20 = vld [vmem:[#allocation223_spill] sm:$0xff] }
 0x366   : > { %6140 = vmatprep.mubr.f32.mxu0 %v18972_v23  ;;  %v18980_v23 = vld [vmem:[#allocation56_spill] sm:$0xff]  ;;  %v18982_v18 = vld [vmem:[#allocation59_spill] sm:$0xff] }
 0x367   : > { %3561 = vmatmul.mubr.f32.gmra.mrb[6].mxu1 %v18973_v3 }
 0x368   : > { %9382 = vmatpush1.bf16.msra.mxu1 %v18974_v52  ;;  %3568 = vmatprep.mubr.f32.mxu1 %v18975_v2  ;;  %v18981_v52 = vld [vmem:[#allocation277_spill] sm:$0xff] }
 0x369   : > { %6142 = vmatmul.mubr.f32.gmra.mrb[42].mxu0 %v14403_v62  ;;  %9384 = vmatprep.subr.bf16.mxu1 %v18976_v0  ;;  %v18983_v62 = vld [vmem:[#allocation76_spill] sm:$0xff]  ;;  %v18986_v0 = vld [vmem:[#allocation75_spill] sm:$0xff] }
 0x36a   : > { %6148 = vmatprep.mubr.f32.mxu0 %v14355_v6  ;;  %v18984_v6 = vld [vmem:[#allocation72_spill] sm:$0xff] }
 0x36b   : > { %3571 = vmatmul.mubr.f32.gmra.mrb[8].mxu1 %v18977_v14 }
 0x36c   : > { %9386 = vmatpush1.bf16.msra.mxu1 %v18978_v63  ;;  %3578 = vmatprep.mubr.f32.mxu1 %v18979_v20  ;;  %v18985_v63 = vld [vmem:[#allocation282_spill] sm:$0xff] }
 0x36d   : > { %6150 = vmatmul.mubr.f32.gmra.mrb[44].mxu0 %v14427_v27  ;;  %9388 = vmatprep.subr.bf16.mxu1 %v18980_v23  ;;  %v18987_v27 = vld [vmem:[#allocation137_spill] sm:$0xff]  ;;  %v18990_v23 = vld [vmem:[#allocation91_spill] sm:$0xff] }
 0x36e   : > { %6156 = vmatprep.mubr.f32.mxu0 %v14373_v48  ;;  %v18988_v48 = vld [vmem:[#allocation87_spill] sm:$0xff] }
 0x36f   : > { %3581 = vmatmul.mubr.f32.gmra.mrb[10].mxu1 %v18981_v52 }
 0x370   : > { %9390 = vmatpush1.bf16.msra.mxu1 %v18982_v18  ;;  %3588 = vmatprep.mubr.f32.mxu1 %v18983_v62  ;;  %v18989_v18 = vld [vmem:[#allocation283_spill] sm:$0xff] }
 0x371   : > { %6158 = vmatmul.mubr.f32.gmra.mrb[46].mxu0 %v14452_v26  ;;  %9392 = vmatprep.subr.bf16.mxu1 %v18984_v6  ;;  %v18991_v26 = vld [vmem:[#allocation227_spill] sm:$0xff]  ;;  %v18994_v6 = vld [vmem:[#allocation106_spill] sm:$0xff] }
 0x372   : > { %6164 = vmatprep.mubr.f32.mxu0 %v14407_v36  ;;  %v18992_v36 = vld [vmem:[#allocation104_spill] sm:$0xff] }
 0x373   : > { %3591 = vmatmul.mubr.f32.gmra.mrb[12].mxu1 %v18985_v63 }
 0x374   : > { %9394 = vmatpush1.bf16.msra.mxu1 %v18986_v0  ;;  %3598 = vmatprep.mubr.f32.mxu1 %v18987_v27  ;;  %v18993_v0 = vld [vmem:[#allocation286_spill] sm:$0xff] }
 0x375   : > { %6166 = vmatmul.mubr.f32.gmra.mrb[48].mxu0 %v14478_v49  ;;  %9396 = vmatprep.subr.bf16.mxu1 %v18988_v48  ;;  %v18995_v49 = vld [vmem:[#allocation141_spill] sm:$0xff]  ;;  %v18998_v48 = vld [vmem:[#allocation124_spill] sm:$0xff] }
 0x376   : > { %6172 = vmatprep.mubr.f32.mxu0 %v14433_v41  ;;  %v18996_v41 = vld [vmem:[#allocation120_spill] sm:$0xff] }
 0x377   : > { %3601 = vmatmul.mubr.f32.gmra.mrb[14].mxu1 %v18989_v18 }
 0x378   : > { %9398 = vmatpush1.bf16.msra.mxu1 %v18990_v23  ;;  %3608 = vmatprep.mubr.f32.mxu1 %v18991_v26  ;;  %v18997_v23 = vld [vmem:[#allocation95_spill] sm:$0xff] }
 0x379   : > { %6174 = vmatmul.mubr.f32.gmra.mrb[50].mxu0 %v14502_v44  ;;  %9400 = vmatprep.subr.bf16.mxu1 %v18992_v36  ;;  %v18999_v44 = vld [vmem:[#allocation156_spill] sm:$0xff] }
 0x37a   : > { %6180 = vmatprep.mubr.f32.mxu0 %v14462_v16  ;;  %v19000_v16 = vld [vmem:[#allocation136_spill] sm:$0xff] }
 0x37b   : > { %3611 = vmatmul.mubr.f32.gmra.mrb[16].mxu1 %v18993_v0  ;;  %v19001_v36 = vld [vmem:[#allocation212_spill] sm:$0xff] }
 0x37c   : > { %9402 = vmatpush1.bf16.msra.mxu1 %v18994_v6  ;;  %3618 = vmatprep.mubr.f32.mxu1 %v18995_v49  ;;  %v19002_v6 = vld [vmem:[#allocation111_spill] sm:$0xff] }
 0x37d   : > { %6182 = vmatmul.mubr.f32.gmra.mrb[52].mxu0 %v14524_v37  ;;  %9404 = vmatprep.subr.bf16.mxu1 %v18996_v41  ;;  %v19004_v37 = vld [vmem:[#allocation235_spill] sm:$0xff] }
 0x37e   : > { %6188 = vmatprep.mubr.f32.mxu0 %v14485_v11  ;;  %v19005_v41 = vld [vmem:[#allocation243_spill] sm:$0xff] }
 0x37f   : > { %3621 = vmatmul.mubr.f32.gmra.mrb[18].mxu1 %v18997_v23  ;;  %v19006_v11 = vld [vmem:[#allocation151_spill] sm:$0xff] }
 0x380   : > { %9406 = vmatpush1.bf16.msra.mxu1 %v18998_v48  ;;  %3628 = vmatprep.mubr.f32.mxu1 %v18999_v44  ;;  %v19008_v48 = vld [vmem:[#allocation121_spill] sm:$0xff] }
 0x381   : > { %6190 = vmatmul.mubr.f32.gmra.mrb[54].mxu0 %v14543_v28  ;;  %9408 = vmatprep.subr.bf16.mxu1 %v19000_v16  ;;  %v19010_v28 = vld [vmem:[#allocation160_spill] sm:$0xff]  ;;  %v19011_v16 = vld [vmem:[#allocation153_spill] sm:$0xff] }
 0x382   : > { %6358 = vmatprep.mubr.f32.mxu0 %v19001_v36 }
 0x383   : > { %3631 = vmatmul.mubr.f32.gmra.mrb[20].mxu1 %v19002_v6 }
 0x384   : > { %9410 = vmatpush1.bf16.msra.mxu1 %v19003_v21  ;;  %3638 = vmatprep.mubr.f32.mxu1 %v19004_v37  ;;  %v19014_v21 = vld [vmem:[#allocation168_spill] sm:$0xff] }
 0x385   : > { %6361 = vmatmul.mubr.f32.vlgmr.msra.gmra.mrb[0].mxu0 %v19005_v41  ;;  %9412 = vmatprep.subr.bf16.mxu1 %v19006_v11  ;;  %v19017_v11 = vld [vmem:[#allocation80_spill] sm:$0xff] }
 0x386   : > { %9706 = vmatpush1.bf16.msra.mxu0 %v19007_v19  ;;  %6368 = vmatprep.mubr.f32.mxu0 %v19008_v48  ;;  %v19018_v19 = vld [vmem:[#allocation148_spill] sm:$0xff] }
 0x387   : > { %9708 = vmatprep.subr.bf16.mxu0 %v19009_v51  ;;  %3641 = vmatmul.mubr.f32.gmra.mrb[22].mxu1 %v19010_v28  ;;  %v19020_v51 = vld [vmem:[#allocation240_spill] sm:$0xff] }
 0x388   : > { %9414 = vmatpush1.bf16.msra.mxu1 %v19011_v16  ;;  %3648 = vmatprep.mubr.f32.mxu1 %v19012_v25  ;;  %v19022_v16 = vld [vmem:[#allocation179_spill] sm:$0xff] }
 0x389   : > { %6371 = vmatmul.mubr.f32.gmra.mrb[2].mxu0 %v19013_v57  ;;  %9416 = vmatprep.subr.bf16.mxu1 %v19014_v21  ;;  %v19025_v21 = vld [vmem:[#allocation96_spill] sm:$0xff] }
 0x38a   : > { %9710 = vmatpush1.bf16.msra.mxu0 %v19015_v35  ;;  %6378 = vmatprep.mubr.f32.mxu0 %v19016_v58  ;;  %v19026_v35 = vld [vmem:[#allocation164_spill] sm:$0xff]  ;;  %v19045_v58 = vld [vmem:[#allocation5_spill] sm:$0xff] }
 0x38b   : > { %9712 = vmatprep.subr.bf16.mxu0 %v19017_v11  ;;  %3651 = vmatmul.mubr.f32.gmra.mrb[24].mxu1 %v19018_v19  ;;  %v19028_v11 = vld [vmem:[#allocation247_spill] sm:$0xff] }
 0x38c   : > { %9418 = vmatpush1.bf16.msra.mxu1 %v19019_v29  ;;  %3658 = vmatprep.mubr.f32.mxu1 %v19020_v51  ;;  %v19029_v19 = vld [vmem:[#allocation255_spill] sm:$0xff]  ;;  %v19031_v51 = vld [vmem:[#allocation101_spill] sm:$0xff] }
 0x38d   : > { %6381 = vmatmul.mubr.f32.gmra.mrb[4].mxu0 %v19021_v8  ;;  %9420 = vmatprep.subr.bf16.mxu1 %v19022_v16  ;;  %v19030_v29 = vld [vmem:[#allocation191_spill] sm:$0xff]  ;;  %v19032_v8 = vld [vmem:[#allocation173_spill] sm:$0xff] }
 0x38e   : > { %9714 = vmatpush1.bf16.msra.mxu0 %v19023_v46  ;;  %6388 = vmatprep.mubr.f32.mxu0 %v19024_v33  ;;  %v19033_v16 = vld [vmem:[#allocation109_spill] sm:$0xff]  ;;  %v19035_v33 = vld [vmem:[#allocation194_spill] sm:$0xff] }
 0x38f   : > { %9716 = vmatprep.subr.bf16.mxu0 %v19025_v21  ;;  %3661 = vmatmul.mubr.f32.gmra.mrb[26].mxu1 %v19026_v35  ;;  %v19034_v46 = vld [vmem:[#allocation181_spill] sm:$0xff]  ;;  %v19037_v35 = vld [vmem:[#allocation35_spill] sm:$0xff] }
 0x390   : > { %9422 = vmatpush1.bf16.msra.mxu1 %v19027_v47  ;;  %3668 = vmatprep.mubr.f32.mxu1 %v19028_v11  ;;  %v19036_v21 = vld [vmem:[#allocation253_spill] sm:$0xff]  ;;  %v19038_v47 = vld [vmem:[#allocation202_spill] sm:$0xff]  ;;  %v19039_v11 = vld [vmem:[#allocation115_spill] sm:$0xff] }
 0x391   : > { %6391 = vmatmul.mubr.f32.gmra.mrb[6].mxu0 %v19029_v19  ;;  %9424 = vmatprep.subr.bf16.mxu1 %v19030_v29  ;;  %v19040_v19 = vld [vmem:[#allocation234_spill] sm:$0xff]  ;;  %v19041_v29 = vld [vmem:[#allocation125_spill] sm:$0xff] }
 0x392   : > { %9718 = vmatpush1.bf16.msra.mxu0 %v19031_v51  ;;  %6398 = vmatprep.mubr.f32.mxu0 %v19032_v8  ;;  %v19042_v51 = vld [vmem:[#allocation292_spill] sm:$0xff]  ;;  %v19043_v8 = vld [vmem:[#allocation3_spill] sm:$0xff] }
 0x393   : > { %9720 = vmatprep.subr.bf16.mxu0 %v19033_v16  ;;  %3671 = vmatmul.mubr.f32.gmra.mrb[28].mxu1 %v19034_v46  ;;  %v19044_v16 = vand.u32 4294901760, %v19043_v8  ;;  %v19046_v46 = vand.u32 4294901760, %v19045_v58  ;;  %v19055_v8 = vld [vmem:[#allocation263_spill] sm:$0xff]  ;;  %v19058_v58 = vld [vmem:[#allocation158_spill] sm:$0xff] }
 0x394   : > { %9426 = vmatpush1.bf16.msra.mxu1 %v19035_v33  ;;  %3678 = vmatprep.mubr.f32.mxu1 %v19036_v21  ;;  %v19047_v33 = vld [vmem:[#allocation203_spill] sm:$0xff]  ;;  %v19048_v21 = vld [vmem:[#allocation204_spill] sm:$0xff] }
 0x395   : > { %6401 = vmatmul.mubr.f32.gmra.mrb[8].mxu0 %v19037_v35  ;;  %9428 = vmatprep.subr.bf16.mxu1 %v19038_v47  ;;  %v9431_v4 = vpack.c.bf16 %v19046_v46, %v19044_v16  ;;  %v19049_v35 = vld [vmem:[#allocation259_spill] sm:$0xff]  ;;  %v19056_v16 = vld [vmem:[#allocation146_spill] sm:$0xff]  ;;  %v19057_v46 = vld [vmem:[#allocation244_spill] sm:$0xff] }
 0x396   : > { %9722 = vmatpush1.bf16.msra.mxu0 %v19039_v11  ;;  %6408 = vmatprep.mubr.f32.mxu0 %v19040_v19  ;;  %v19050_v47 = vld [vmem:[#allocation131_spill] sm:$0xff]  ;;  %v19051_v11 = vld [vmem:[#allocation58_spill] sm:$0xff] }
 0x397   : > { %9724 = vmatprep.subr.bf16.mxu0 %v19041_v29  ;;  %3681 = vmatmul.mubr.f32.gmra.mrb[30].mxu1 %v19042_v51  ;;  %v19052_v19 = vld [vmem:[#allocation142_spill] sm:$0xff] }
 0x398   : > { %9430 = vmatpush1.bf16.msra.mxu1 %v19047_v33  ;;  %3688 = vmatprep.mubr.f32.mxu1 %v19048_v21  ;;  %v19053_v29 = vld [vmem:[#allocation298_spill] sm:$0xff] }
 0x399   : > { %6411 = vmatmul.mubr.f32.gmra.mrb[10].mxu0 %v19049_v35  ;;  %9432 = vmatprep.subr.bf16.mxu1 %v9431_v4  ;;  %v19054_v51 = vld [vmem:[#allocation294_spill] sm:$0xff]  ;;  %v19060_v4 = vld [vmem:[#allocation295_spill] sm:$0xff] }
 0x39a   : > { %9726 = vmatpush1.bf16.msra.mxu0 %v19050_v47  ;;  %6418 = vmatprep.mubr.f32.mxu0 %v19051_v11  ;;  %v19059_v33 = vld [vmem:[#allocation302_spill] sm:$0xff]  ;;  %v19062_v11 = vld [vmem:[#allocation163_spill] sm:$0xff] }
 0x39b   : > { %9728 = vmatprep.subr.bf16.mxu0 %v19052_v19  ;;  %3691 = vmatmul.mubr.f32.gmra.mrb[32].mxu1 %v19053_v29  ;;  %v19061_v47 = vld [vmem:[#allocation98_spill] sm:$0xff]  ;;  %v19064_v29 = vld [vmem:[#allocation172_spill] sm:$0xff] }
 0x39c   : > { %3698 = vmatprep.mubr.f32.mxu1 %v19054_v51  ;;  %v19063_v19 = vld [vmem:[#allocation74_spill] sm:$0xff] }
 0x39d   : > { %6421 = vmatmul.mubr.f32.gmra.mrb[12].mxu0 %v19055_v8  ;;  %v19065_v51 = vld [vmem:[#allocation306_spill] sm:$0xff]  ;;  %v19066_v8 = vld [vmem:[#allocation300_spill] sm:$0xff] }
 0x39e   : > { %9730 = vmatpush1.bf16.msra.mxu0 %v19056_v16  ;;  %6428 = vmatprep.mubr.f32.mxu0 %v19057_v46  ;;  %v19067_v16 = vld [vmem:[#allocation269_spill] sm:$0xff]  ;;  %v19068_v46 = vld [vmem:[#allocation176_spill] sm:$0xff]  ;;  %v19088_v35 = vld [vmem:[#allocation22_spill] sm:$0xff] }
 0x39f   : > { %9732 = vmatprep.subr.bf16.mxu0 %v19058_v58  ;;  %3701 = vmatmul.mubr.f32.gmra.mrb[34].mxu1 %v19059_v33  ;;  %v19069_v58 = vld [vmem:[#allocation254_spill] sm:$0xff]  ;;  %v19070_v33 = vld [vmem:[#allocation188_spill] sm:$0xff] }
 0x3a0   : > { %3708 = vmatprep.mubr.f32.mxu1 %v19060_v4  ;;  %v19071_v4 = vld [vmem:[#allocation310_spill] sm:$0xff] }
 0x3a1   : > { %6431 = vmatmul.mubr.f32.gmra.mrb[14].mxu0 %v19061_v47  ;;  %v19072_v47 = vld [vmem:[#allocation304_spill] sm:$0xff] }
 0x3a2   : > { %9734 = vmatpush1.bf16.msra.mxu0 %v19062_v11  ;;  %6438 = vmatprep.mubr.f32.mxu0 %v19063_v19  ;;  %v19073_v11 = vld [vmem:[#allocation27_spill] sm:$0xff]  ;;  %v19074_v19 = vld [vmem:[#allocation190_spill] sm:$0xff] }
 0x3a3   : > { %9736 = vmatprep.subr.bf16.mxu0 %v19064_v29  ;;  %3711 = vmatmul.mubr.f32.gmra.mrb[36].mxu1 %v19065_v51  ;;  %v19075_v29 = vld [vmem:[#allocation258_spill] sm:$0xff]  ;;  %v19076_v51 = vld [vmem:[#allocation196_spill] sm:$0xff] }
 0x3a4   : > { %3718 = vmatprep.mubr.f32.mxu1 %v19066_v8  ;;  %v19077_v8 = vld [vmem:[#allocation314_spill] sm:$0xff] }
 0x3a5   : > { %6441 = vmatmul.mubr.f32.gmra.mrb[16].mxu0 %v19067_v16  ;;  %v19078_v16 = vld [vmem:[#allocation308_spill] sm:$0xff] }
 0x3a6   : > { %9738 = vmatpush1.bf16.msra.mxu0 %v19068_v46  ;;  %6448 = vmatprep.mubr.f32.mxu0 %v19069_v58  ;;  %v19079_v46 = vld [vmem:[#allocation274_spill] sm:$0xff]  ;;  %v19080_v58 = vld [vmem:[#allocation199_spill] sm:$0xff] }
 0x3a7   : > { %9740 = vmatprep.subr.bf16.mxu0 %v19070_v33  ;;  %3721 = vmatmul.mubr.f32.gmra.mrb[38].mxu1 %v19071_v4  ;;  %v19081_v33 = vld [vmem:[#allocation262_spill] sm:$0xff]  ;;  %v19082_v4 = vld [vmem:[#allocation44_spill] sm:$0xff] }
 0x3a8   : > { %3728 = vmatprep.mubr.f32.mxu1 %v19072_v47  ;;  %v19083_v47 = vld [vmem:[#allocation318_spill] sm:$0xff] }
 0x3a9   : > { %6451 = vmatmul.mubr.f32.gmra.mrb[18].mxu0 %v19073_v11  ;;  %v19084_v11 = vld [vmem:[#allocation313_spill] sm:$0xff] }
 0x3aa   : > { %9742 = vmatpush1.bf16.msra.mxu0 %v19074_v19  ;;  %6458 = vmatprep.mubr.f32.mxu0 %v19075_v29  ;;  %v19085_v19 = vld [vmem:[#allocation276_spill] sm:$0xff]  ;;  %v19086_v29 = vld [vmem:[#allocation39_spill] sm:$0xff] }
 0x3ab   : > { %9744 = vmatprep.subr.bf16.mxu0 %v19076_v51  ;;  %3731 = vmatmul.mubr.f32.gmra.mrb[40].mxu1 %v19077_v8  ;;  %v19087_v51 = vand.u32 4294901760, %v19086_v29  ;;  %v19089_v8 = vand.u32 4294901760, %v19088_v35  ;;  %v19098_v29 = vld [vmem:[#allocation51_spill] sm:$0xff]  ;;  %v19099_v35 = vld [vmem:[#allocation65_spill] sm:$0xff] }
 0x3ac   : > { %3738 = vmatprep.mubr.f32.mxu1 %v19078_v16  ;;  %v19090_v16 = vld [vmem:[#allocation54_spill] sm:$0xff] }
 0x3ad   : > { %6461 = vmatmul.mubr.f32.gmra.mrb[20].mxu0 %v19079_v46  ;;  %v9751_v21 = vpack.c.bf16 %v19089_v8, %v19087_v51  ;;  %v19091_v46 = vld [vmem:[#allocation66_spill] sm:$0xff]  ;;  %v19101_v8 = vld [vmem:[#allocation324_spill] sm:$0xff] }
 0x3ae   : > { %9746 = vmatpush1.bf16.msra.mxu0 %v19080_v58  ;;  %6468 = vmatprep.mubr.f32.mxu0 %v19081_v33  ;;  %v19092_v58 = vld [vmem:[#allocation322_spill] sm:$0xff]  ;;  %v19093_v33 = vld [vmem:[#allocation315_spill] sm:$0xff] }
 0x3af   : > { %9748 = vmatprep.subr.bf16.mxu0 %v19082_v4  ;;  %3741 = vmatmul.mubr.f32.gmra.mrb[42].mxu1 %v19083_v47  ;;  %v19094_v4 = vld [vmem:[#allocation281_spill] sm:$0xff]  ;;  %v19095_v47 = vld [vmem:[#allocation218_spill] sm:$0xff] }
 0x3b0   : > { %3748 = vmatprep.mubr.f32.mxu1 %v19084_v11  ;;  %v19096_v11 = vld [vmem:[#allocation326_spill] sm:$0xff] }
 0x3b1   : > { %6471 = vmatmul.mubr.f32.gmra.mrb[22].mxu0 %v19085_v19  ;;  %v19097_v19 = vld [vmem:[#allocation320_spill] sm:$0xff]  ;;  %v19100_v51 = vld [vmem:[#allocation330_spill] sm:$0xff] }
 0x3b2   : > { %9750 = vmatpush1.bf16.msra.mxu0 %v19090_v16  ;;  %6478 = vmatprep.mubr.f32.mxu0 %v19091_v46  ;;  %v19103_v16 = vld [vmem:[#allocation129_spill] sm:$0xff] }
 0x3b3   : > { %9752 = vmatprep.subr.bf16.mxu0 %v9751_v21  ;;  %3751 = vmatmul.mubr.f32.gmra.mrb[44].mxu1 %v19092_v58  ;;  %v19102_v21 = vld [vmem:[#allocation79_spill] sm:$0xff] }
 0x3b4   : > { %3758 = vmatprep.mubr.f32.mxu1 %v19093_v33  ;;  %v19104_v33 = vld [vmem:[#allocation334_spill] sm:$0xff] }
 0x3b5   : > { %6481 = vmatmul.mubr.f32.gmra.mrb[24].mxu0 %v19094_v4  ;;  %v19105_v4 = vld [vmem:[#allocation328_spill] sm:$0xff] }
 0x3b6   : > { %6488 = vmatprep.mubr.f32.mxu0 %v19095_v47  ;;  %v19106_v47 = vld [vmem:[#allocation289_spill] sm:$0xff] }
 0x3b7   : > { %3761 = vmatmul.mubr.f32.gmra.mrb[46].mxu1 %v19096_v11  ;;  %v19107_v11 = vld [vmem:[#allocation290_spill] sm:$0xff] }
 0x3b8   : > { %3768 = vmatprep.mubr.f32.mxu1 %v19097_v19  ;;  %v19108_v19 = vld [vmem:[#allocation338_spill] sm:$0xff] }
 0x3b9   : > { %6491 = vmatmul.mubr.f32.gmra.mrb[26].mxu0 %v19098_v29  ;;  %v19109_v29 = vld [vmem:[#allocation333_spill] sm:$0xff] }
 0x3ba   : > { %6498 = vmatprep.mubr.f32.mxu0 %v19099_v35  ;;  %v19110_v35 = vld [vmem:[#allocation343_spill] sm:$0xff] }
 0x3bb   : > { %3771 = vmatmul.mubr.f32.gmra.mrb[48].mxu1 %v19100_v51  ;;  %v19111_v51 = vld [vmem:[#allocation335_spill] sm:$0xff] }
 0x3bc   : > { %3778 = vmatprep.mubr.f32.mxu1 %v19101_v8  ;;  %v19112_v8 = vld [vmem:[#allocation345_spill] sm:$0xff] }
 0x3bd   : > { %6501 = vmatmul.mubr.f32.gmra.mrb[28].mxu0 %v19102_v21 }
 0x3be   : > { %6508 = vmatprep.mubr.f32.mxu0 %v19103_v16  ;;  %v19113_v16 = vand.u32 4294901760, %v18955_v5  ;;  %v19123_v5 = vand.u32 4294901760, %v18959_v54  ;;  %v19135_v54 = vand.u32 4294901760, %v18965_v53  ;;  %v19146_v53 = vand.u32 4294901760, %v18970_v59 }
 0x3bf   : > { %3781 = vmatmul.mubr.f32.gmra.mrb[50].mxu1 %v19104_v33  ;;  %v19114_v33 = vld [vmem:[#allocation348_spill] sm:$0xff]  ;;  %v19156_v59 = vand.u32 4294901760, %v18975_v2  ;;  %v19165_v2 = vand.u32 4294901760, %v18979_v20  ;;  %v19176_v20 = vand.u32 4294901760, %v18983_v62  ;;  %v19184_v62 = vand.u32 4294901760, %v18987_v27 }
 0x3c0   : > { %3788 = vmatprep.mubr.f32.mxu1 %v19105_v4  ;;  %v19115_v4 = vld [vmem:[#allocation339_spill] sm:$0xff]  ;;  %v19192_v27 = vand.u32 4294901760, %v18991_v26  ;;  %v19200_v26 = vand.u32 4294901760, %v18995_v49  ;;  %v19211_v49 = vand.u32 4294901760, %v18999_v44 }
 0x3c1   : > { %6511 = vmatmul.mubr.f32.gmra.mrb[30].mxu0 %v19106_v47  ;;  %v19116_v47 = vand.u32 4294901760, %v18749_v13  ;;  %v19126_v13 = vld [vmem:[#allocation9_spill] sm:$0xff] }
 0x3c2   : > { %6518 = vmatprep.mubr.f32.mxu0 %v19107_v11  ;;  %v19117_v11 = vld [vmem:[#allocation6_spill] sm:$0xff] }
 0x3c3   : > { %3791 = vmatmul.mubr.f32.gmra.mrb[52].mxu1 %v19108_v19  ;;  %v19118_v21 = vand.u32 4294901760, %v19117_v11  ;;  %v19127_v11 = vand.u32 4294901760, %v19126_v13  ;;  %v19138_v13 = vld [vmem:[#allocation17_spill] sm:$0xff] }
 0x3c4   : > { %3798 = vmatprep.mubr.f32.mxu1 %v19109_v29  ;;  %v19119_v29 = vand.u32 4294901760, %v18957_v7 }
 0x3c5   : > { %6521 = vmatmul.mubr.f32.gmra.mrb[32].mxu0 %v19110_v35  ;;  %v9433_v19 = vpack.c.bf16 %v19118_v21, %v19116_v47  ;;  %v19120_v35 = vand.u32 4294901760, %v18752_v60  ;;  %v19128_v47 = vld [vmem:[#allocation12_spill] sm:$0xff]  ;;  %v19131_v60 = vld [vmem:[#allocation18_spill] sm:$0xff] }
 0x3c6   : > { %6528 = vmatprep.mubr.f32.mxu0 %v19111_v51  ;;  %v19121_v51 = vld [vmem:[#allocation11_spill] sm:$0xff]  ;;  %v19129_v21 = vand.u32 4294901760, %v19128_v47  ;;  %v19139_v47 = vand.u32 4294901760, %v19138_v13  ;;  %v19150_v13 = vld [vmem:[#allocation29_spill] sm:$0xff] }
 0x3c7   : > { %3801 = vmatmul.mubr.f32.gmra.mrb[54].mxu1 %v19112_v8  ;;  %v19122_v58 = vand.u32 4294901760, %v19121_v51  ;;  %v19132_v51 = vand.u32 4294901760, %v19131_v60  ;;  %v19143_v60 = vand.u32 4294901760, %v18774_v50  ;;  %v19153_v50 = vand.u32 4294901760, %v18415_v32 }
 0x3c8   : > { %3938 = vmatprep.mubr.f32.mxu1 %v19113_v16  ;;  %v19124_v16 = vld [vmem:[#allocation352_spill] sm:$0xff]  ;;  %v9437_v7 = vpack.c.bf16 %v19129_v21, %v19127_v11  ;;  %v19163_v32 = vand.u32 4294901760, %v18458_v40  ;;  %v19173_v40 = vand.u32 4294901760, %v18506_v39  ;;  %v19182_v39 = vand.u32 4294901760, %v18526_v42 }
 0x3c9   : > { %6531 = vmatmul.mubr.f32.gmra.mrb[34].mxu0 %v19114_v33  ;;  %v9435_v8 = vpack.c.bf16 %v19122_v58, %v19120_v35  ;;  %v19133_v58 = vld [vmem:[#allocation19_spill] sm:$0xff]  ;;  %v19140_v11 = vld [vmem:[#allocation20_spill] sm:$0xff] }
 0x3ca   : > { %6538 = vmatprep.mubr.f32.mxu0 %v19115_v4  ;;  %v19125_v4 = vld [vmem:[#allocation346_spill] sm:$0xff]  ;;  %v19141_v21 = vand.u32 4294901760, %v19140_v11  ;;  %v19152_v11 = vand.u32 4294901760, %v18973_v3  ;;  %v19190_v42 = vld [vmem:[#allocation68_spill] sm:$0xff] }
 0x3cb   : > { %3942 = vmatmul.mubr.f32.vlgmr.msra.gmra.mrb[0].mxu1 %v19119_v29  ;;  %v19130_v29 = vand.u32 4294901760, %v18963_v61 }
 0x3cc   : > { %9434 = vmatpush1.bf16.msra.mxu1 %v9433_v19  ;;  %3950 = vmatprep.mubr.f32.mxu1 %v19123_v5  ;;  %v19134_v19 = vand.u32 4294901760, %v19133_v58  ;;  %v19137_v5 = vld [vmem:[#allocation349_spill] sm:$0xff]  ;;  %v9441_v61 = vpack.c.bf16 %v19141_v21, %v19139_v47  ;;  %v19151_v47 = vand.u32 4294901760, %v19150_v13  ;;  %v19154_v21 = vld [vmem:[#allocation14_spill] sm:$0xff] }
 0x3cd   : > { %6541 = vmatmul.mubr.f32.gmra.mrb[36].mxu0 %v19124_v16  ;;  %9436 = vmatprep.subr.bf16.mxu1 %v9435_v8  ;;  %v19136_v8 = vld [vmem:[#allocation356_spill] sm:$0xff] }
 0x3ce   : > { %6548 = vmatprep.mubr.f32.mxu0 %v19125_v4  ;;  %v9439_v35 = vpack.c.bf16 %v19134_v19, %v19132_v51  ;;  %v19144_v51 = vld [vmem:[#allocation30_spill] sm:$0xff] }
 0x3cf   : > { %3954 = vmatmul.mubr.f32.gmra.mrb[2].mxu1 %v19130_v29  ;;  %v19142_v29 = vand.u32 4294901760, %v18968_v24  ;;  %v19147_v19 = vld [vmem:[#allocation358_spill] sm:$0xff] }
 0x3d0   : > { %9438 = vmatpush1.bf16.msra.mxu1 %v9437_v7  ;;  %3962 = vmatprep.mubr.f32.mxu1 %v19135_v54  ;;  %v19145_v7 = vand.u32 4294901760, %v19144_v51  ;;  %v19149_v54 = vand.u32 4294901760, %v18781_v56  ;;  %v19158_v51 = vld [vmem:[#allocation357_spill] sm:$0xff]  ;;  %v19159_v56 = vand.u32 4294901760, %v18790_v55  ;;  %v19168_v55 = vld [vmem:[#allocation50_spill] sm:$0xff] }
 0x3d1   : > { %6551 = vmatmul.mubr.f32.gmra.mrb[38].mxu0 %v19136_v8  ;;  %9440 = vmatprep.subr.bf16.mxu1 %v9439_v35  ;;  %v19148_v35 = vld [vmem:[#allocation353_spill] sm:$0xff] }
 0x3d2   : > { %6558 = vmatprep.mubr.f32.mxu0 %v19137_v5  ;;  %v9443_v58 = vpack.c.bf16 %v19145_v7, %v19143_v60  ;;  %v9445_v24 = vpack.c.bf16 %v19151_v47, %v19149_v54  ;;  %v19157_v60 = vld [vmem:[#allocation362_spill] sm:$0xff]  ;;  %v19160_v7 = vld [vmem:[#allocation15_spill] sm:$0xff]  ;;  %v19164_v54 = vand.u32 4294901760, %v18475_v31  ;;  %v19166_v47 = vld [vmem:[#allocation365_spill] sm:$0xff] }
 0x3d3   : > { %3966 = vmatmul.mubr.f32.gmra.mrb[4].mxu1 %v19142_v29  ;;  %v19174_v31 = vld [vmem:[#allocation37_spill] sm:$0xff] }
 0x3d4   : > { %9442 = vmatpush1.bf16.msra.mxu1 %v9441_v61  ;;  %3974 = vmatprep.mubr.f32.mxu1 %v19146_v53  ;;  %v19155_v61 = vand.u32 4294901760, %v19154_v21  ;;  %v19162_v53 = vand.u32 4294901760, %v18977_v14  ;;  %v9451_v13 = vpack.c.bf16 %v19164_v54, %v19163_v32  ;;  %v19183_v32 = vand.u32 4294901760, %v18535_v9 }
 0x3d5   : > { %6561 = vmatmul.mubr.f32.gmra.mrb[40].mxu0 %v19147_v19  ;;  %9444 = vmatprep.subr.bf16.mxu1 %v9443_v58  ;;  %v19161_v58 = vand.u32 4294901760, %v19160_v7  ;;  %v19178_v7 = vld [vmem:[#allocation363_spill] sm:$0xff]  ;;  %v19189_v9 = vand.u32 4294901760, %v18560_v1  ;;  %v19198_v1 = vand.u32 4294901760, %v18571_v22 }
 0x3d6   : > { %6568 = vmatprep.mubr.f32.mxu0 %v19148_v35  ;;  %v9447_v29 = vpack.c.bf16 %v19155_v61, %v19153_v50  ;;  %v19170_v50 = vld [vmem:[#allocation26_spill] sm:$0xff]  ;;  %v19172_v61 = vand.u32 4294901760, %v18981_v52  ;;  %v9459_v54 = vpack.c.bf16 %v19183_v32, %v19182_v39  ;;  %v19207_v22 = vld [vmem:[#allocation127_spill] sm:$0xff]  ;;  %v19213_v39 = vand.u32 4294901760, %v19001_v36  ;;  %v19214_v32 = vld [vmem:[#allocation128_spill] sm:$0xff] }
 0x3d7   : > { %3978 = vmatmul.mubr.f32.gmra.mrb[6].mxu1 %v19152_v11  ;;  %v9449_v3 = vpack.c.bf16 %v19161_v58, %v19159_v56  ;;  %v19169_v11 = vand.u32 4294901760, %v19168_v55  ;;  %v19171_v21 = vand.u32 4294901760, %v19170_v50  ;;  %v19177_v56 = vld [vmem:[#allocation368_spill] sm:$0xff]  ;;  %v19179_v58 = vand.u32 4294901760, %v18806_v34  ;;  %v19193_v50 = vld [vmem:[#allocation373_spill] sm:$0xff] }
 0x3d8   : > { %9446 = vmatpush1.bf16.msra.mxu1 %v9445_v24  ;;  %3986 = vmatprep.mubr.f32.mxu1 %v19156_v59  ;;  %v19167_v24 = vld [vmem:[#allocation359_spill] sm:$0xff]  ;;  %v19186_v34 = vand.u32 4294901760, %v18547_v15  ;;  %v19191_v55 = vand.u32 4294901760, %v19190_v42  ;;  %v19195_v15 = vand.u32 4294901760, %v18817_v17  ;;  %v19202_v17 = vld [vmem:[#allocation112_spill] sm:$0xff] }
 0x3d9   : > { %6571 = vmatmul.mubr.f32.gmra.mrb[42].mxu0 %v19157_v60  ;;  %9448 = vmatprep.subr.bf16.mxu1 %v9447_v29  ;;  %v9453_v14 = vpack.c.bf16 %v19171_v21, %v19169_v11  ;;  %v19175_v29 = vand.u32 4294901760, %v19174_v31  ;;  %v19194_v21 = vld [vmem:[#allocation369_spill] sm:$0xff]  ;;  %v19201_v31 = vld [vmem:[#allocation372_spill] sm:$0xff] }
 0x3da   : > { %6578 = vmatprep.mubr.f32.mxu0 %v19158_v51  ;;  %v9463_v11 = vpack.c.bf16 %v19191_v55, %v19189_v9  ;;  %v19221_v9 = vld [vmem:[#allocation117_spill] sm:$0xff]  ;;  %v19223_v55 = vld [vmem:[#allocation40_spill] sm:$0xff] }
 0x3db   : > { %3990 = vmatmul.mubr.f32.gmra.mrb[8].mxu1 %v19162_v53  ;;  %v9455_v59 = vpack.c.bf16 %v19175_v29, %v19173_v40  ;;  %v19181_v53 = vand.u32 4294901760, %v18985_v63  ;;  %v19204_v29 = vld [vmem:[#allocation83_spill] sm:$0xff]  ;;  %v19222_v42 = vand.u32 4294901760, %v19221_v9  ;;  %v19255_v9 = vld [vmem:[#allocation157_spill] sm:$0xff] }
 0x3dc   : > { %9450 = vmatpush1.bf16.msra.mxu1 %v9449_v3  ;;  %3998 = vmatprep.mubr.f32.mxu1 %v19165_v2  ;;  %v19180_v3 = vand.u32 4294901760, %v18807_v30  ;;  %v19187_v30 = vand.u32 4294901760, %v18553_v12  ;;  %v19188_v2 = vand.u32 4294901760, %v18989_v18  ;;  %v19196_v12 = vand.u32 4294901760, %v18818_v10 }
 0x3dd   : > { %6581 = vmatmul.mubr.f32.gmra.mrb[44].mxu0 %v19166_v47  ;;  %9452 = vmatprep.subr.bf16.mxu1 %v9451_v13  ;;  %v19185_v13 = vld [vmem:[#allocation366_spill] sm:$0xff]  ;;  %v19203_v10 = vand.u32 4294901760, %v19202_v17  ;;  %v19234_v17 = vld [vmem:[#allocation144_spill] sm:$0xff] }
 0x3de   : > { %6588 = vmatprep.mubr.f32.mxu0 %v19167_v24  ;;  %v9457_v52 = vpack.c.bf16 %v19180_v3, %v19179_v58  ;;  %v9461_v63 = vpack.c.bf16 %v19187_v30, %v19186_v34  ;;  %v9465_v18 = vpack.c.bf16 %v19196_v12, %v19195_v15  ;;  %v19209_v58 = vld [vmem:[#allocation100_spill] sm:$0xff]  ;;  %v19218_v30 = vand.u32 4294901760, %v19002_v6  ;;  %v19229_v6 = vld [vmem:[#allocation57_spill] sm:$0xff] }
 0x3df   : > { %4002 = vmatmul.mubr.f32.gmra.mrb[10].mxu1 %v19172_v61  ;;  %v19199_v61 = vand.u32 4294901760, %v18576_v43  ;;  %v19208_v43 = vand.u32 4294901760, %v19207_v22  ;;  %v19210_v3 = vand.u32 4294901760, %v19209_v58  ;;  %v19227_v12 = vand.u32 4294901760, %v19004_v37  ;;  %v19241_v22 = vld [vmem:[#allocation133_spill] sm:$0xff] }
 0x3e0   : > { %9454 = vmatpush1.bf16.msra.mxu1 %v9453_v14  ;;  %4010 = vmatprep.mubr.f32.mxu1 %v19176_v20  ;;  %v19197_v14 = vand.u32 4294901760, %v18993_v0  ;;  %v19206_v20 = vand.u32 4294901760, %v18997_v23  ;;  %v19238_v37 = vand.u32 4294901760, %v19010_v28  ;;  %v19249_v28 = vld [vmem:[#allocation73_spill] sm:$0xff] }
 0x3e1   : > { %6591 = vmatmul.mubr.f32.gmra.mrb[46].mxu0 %v19177_v56  ;;  %9456 = vmatprep.subr.bf16.mxu1 %v9455_v59  ;;  %v9467_v40 = vpack.c.bf16 %v19199_v61, %v19198_v1  ;;  %v19205_v59 = vand.u32 4294901760, %v19204_v29  ;;  %v19231_v1 = vld [vmem:[#allocation31_spill] sm:$0xff]  ;;  %v19236_v29 = vld [vmem:[#allocation114_spill] sm:$0xff] }
 0x3e2   : > { %6598 = vmatprep.mubr.f32.mxu0 %v19178_v7  ;;  %v19232_v61 = vand.u32 4294901760, %v19231_v1  ;;  %v19267_v1 = vld [vmem:[#allocation46_spill] sm:$0xff] }
 0x3e3   : > { %4014 = vmatmul.mubr.f32.gmra.mrb[12].mxu1 %v19181_v53  ;;  %v9469_v0 = vpack.c.bf16 %v19205_v59, %v19203_v10  ;;  %v19212_v53 = vld [vmem:[#allocation374_spill] sm:$0xff]  ;;  %v19235_v10 = vand.u32 4294901760, %v19234_v17  ;;  %v19237_v59 = vand.u32 4294901760, %v19236_v29 }
 0x3e4   : > { %9458 = vmatpush1.bf16.msra.mxu1 %v9457_v52  ;;  %4022 = vmatprep.mubr.f32.mxu1 %v19184_v62  ;;  %v9471_v52 = vpack.c.bf16 %v19210_v3, %v19208_v43  ;;  %v19216_v62 = vld [vmem:[#allocation99_spill] sm:$0xff]  ;;  %v19242_v43 = vand.u32 4294901760, %v19241_v22  ;;  %v19277_v22 = vld [vmem:[#allocation230_spill] sm:$0xff] }
 0x3e5   : > { %6601 = vmatmul.mubr.f32.gmra.mrb[48].mxu0 %v14491_v45  ;;  %9460 = vmatprep.subr.bf16.mxu1 %v9459_v54  ;;  %v19215_v54 = vand.u32 4294901760, %v19214_v32  ;;  %v19217_v23 = vand.u32 4294901760, %v19216_v62  ;;  %v19243_v3 = vld [vmem:[#allocation55_spill] sm:$0xff]  ;;  %v19247_v32 = vand.u32 4294901760, %v19012_v25  ;;  %v19250_v62 = vand.u32 4294901760, %v19249_v28  ;;  %v19259_v25 = vld [vmem:[#allocation148_spill] sm:$0xff] }
 0x3e6   : > { %6608 = vmatprep.mubr.f32.mxu0 %v19185_v13 }
 0x3e7   : > { %4026 = vmatmul.mubr.f32.gmra.mrb[14].mxu1 %v19188_v2  ;;  %v9473_v34 = vpack.c.bf16 %v19217_v23, %v19215_v54  ;;  %v19248_v54 = vand.u32 4294901760, %v19013_v57  ;;  %v19251_v23 = vld [vmem:[#allocation45_spill] sm:$0xff]  ;;  %v19261_v57 = vld [vmem:[#allocation174_spill] sm:$0xff] }
 0x3e8   : > { %9462 = vmatpush1.bf16.msra.mxu1 %v9461_v63  ;;  %4034 = vmatprep.mubr.f32.mxu1 %v19192_v27  ;;  %v19219_v63 = vld [vmem:[#allocation143_spill] sm:$0xff]  ;;  %v19225_v27 = vld [vmem:[#allocation21_spill] sm:$0xff] }
 0x3e9   : > { %6611 = vmatmul.mubr.f32.gmra.mrb[50].mxu0 %v19193_v50  ;;  %9464 = vmatprep.subr.bf16.mxu1 %v9463_v11  ;;  %v19220_v2 = vand.u32 4294901760, %v19219_v63  ;;  %v19224_v11 = vand.u32 4294901760, %v19223_v55  ;;  %v19226_v15 = vand.u32 4294901760, %v19225_v27  ;;  %v19253_v63 = vld [vmem:[#allocation126_spill] sm:$0xff]  ;;  %v19260_v27 = vand.u32 4294901760, %v19259_v25 }
 0x3ea   : > { %6618 = vmatprep.mubr.f32.mxu0 %v19194_v21 }
 0x3eb   : > { %4038 = vmatmul.mubr.f32.gmra.mrb[16].mxu1 %v19197_v14  ;;  %v9475_v44 = vpack.c.bf16 %v19222_v42, %v19220_v2  ;;  %v9753_v36 = vpack.c.bf16 %v19226_v15, %v19224_v11  ;;  %v19230_v14 = vand.u32 4294901760, %v19229_v6  ;;  %v19254_v2 = vand.u32 4294901760, %v19253_v63  ;;  %v19265_v6 = vld [vmem:[#allocation71_spill] sm:$0xff] }
 0x3ec   : > { %9466 = vmatpush1.bf16.msra.mxu1 %v9465_v18  ;;  %4046 = vmatprep.mubr.f32.mxu1 %v19200_v26  ;;  %v19228_v18 = vand.u32 4294901760, %v19005_v41  ;;  %v19233_v26 = vand.u32 4294901760, %v19008_v48  ;;  %v19239_v41 = vld [vmem:[#allocation159_spill] sm:$0xff]  ;;  %v19256_v42 = vand.u32 4294901760, %v19255_v9  ;;  %v19262_v15 = vand.u32 4294901760, %v19261_v57 }
 0x3ed   : > { %6621 = vmatmul.mubr.f32.gmra.mrb[52].mxu0 %v14532_v38  ;;  %9468 = vmatprep.subr.bf16.mxu1 %v9467_v40  ;;  %v9755_v40 = vpack.c.bf16 %v19232_v61, %v19230_v14  ;;  %v19266_v14 = vand.u32 4294901760, %v19265_v6  ;;  %v19268_v61 = vand.u32 4294901760, %v19267_v1 }
 0x3ee   : > { %6628 = vmatprep.mubr.f32.mxu0 %v19201_v31 }
 0x3ef   : > { %4050 = vmatmul.mubr.f32.gmra.mrb[18].mxu1 %v19206_v20  ;;  %v19240_v20 = vand.u32 4294901760, %v19239_v41 }
 0x3f0   : > { %9470 = vmatpush1.bf16.msra.mxu1 %v9469_v0  ;;  %4058 = vmatprep.mubr.f32.mxu1 %v19211_v49  ;;  %v9477_v0 = vpack.c.bf16 %v19237_v59, %v19235_v10  ;;  %v19245_v49 = vld [vmem:[#allocation32_spill] sm:$0xff]  ;;  %v19271_v10 = vld [vmem:[#allocation251_spill] sm:$0xff] }
 0x3f1   : > { %6631 = vmatmul.mubr.f32.gmra.mrb[54].mxu0 %v19212_v53  ;;  %9472 = vmatprep.subr.bf16.mxu1 %v9471_v52  ;;  %v9479_v58 = vpack.c.bf16 %v19242_v43, %v19240_v20  ;;  %v19244_v52 = vand.u32 4294901760, %v19243_v3  ;;  %v19246_v48 = vand.u32 4294901760, %v19245_v49  ;;  %v19272_v29 = vand.u32 4294901760, %v19271_v10  ;;  %v19273_v59 = vld [vmem:[#allocation88_spill] sm:$0xff] }
 0x3f2   : > { %6752 = vmatprep.mubr.f32.mxu0 %v19213_v39  ;;  %v19278_v43 = vand.u32 4294901760, %v19277_v22 }
 0x3f3   : > { %4062 = vmatmul.mubr.f32.gmra.mrb[20].mxu1 %v19218_v30  ;;  %v9757_v39 = vpack.c.bf16 %v19246_v48, %v19244_v52  ;;  %v19281_v52 = vld [vmem:[#allocation145_spill] sm:$0xff] }
 0x3f4   : > { %9474 = vmatpush1.bf16.msra.mxu1 %v9473_v34  ;;  %4070 = vmatprep.mubr.f32.mxu1 %v19227_v12  ;;  %v19252_v34 = vand.u32 4294901760, %v19251_v23  ;;  %v19282_v49 = vand.u32 4294901760, %v19281_v52  ;;  %v19317_v52 = vld [vmem:[#allocation253_spill] sm:$0xff] }
 0x3f5   : > { %6756 = vmatmul.mubr.f32.vlgmr.msra.gmra.mrb[0].mxu0 %v19228_v18  ;;  %9476 = vmatprep.subr.bf16.mxu1 %v9475_v44  ;;  %v19257_v44 = vld [vmem:[#allocation130_spill] sm:$0xff] }
 0x3f6   : > { %9754 = vmatpush1.bf16.msra.mxu0 %v9753_v36  ;;  %6764 = vmatprep.mubr.f32.mxu0 %v19233_v26  ;;  %v9759_v30 = vpack.c.bf16 %v19252_v34, %v19250_v62  ;;  %v19258_v55 = vand.u32 4294901760, %v19257_v44  ;;  %v19263_v36 = vld [vmem:[#allocation147_spill] sm:$0xff]  ;;  %v19269_v26 = vld [vmem:[#allocation240_spill] sm:$0xff]  ;;  %v19287_v62 = vld [vmem:[#allocation162_spill] sm:$0xff] }
 0x3f7   : > { %9756 = vmatprep.subr.bf16.mxu0 %v9755_v40  ;;  %4074 = vmatmul.mubr.f32.gmra.mrb[22].mxu1 %v19238_v37  ;;  %v19264_v12 = vand.u32 4294901760, %v19263_v36  ;;  %v9761_v40 = vpack.c.bf16 %v19268_v61, %v19266_v14  ;;  %v19270_v17 = vand.u32 4294901760, %v19269_v26  ;;  %v19275_v37 = vld [vmem:[#allocation62_spill] sm:$0xff]  ;;  %v19288_v23 = vand.u32 4294901760, %v19287_v62  ;;  %v19293_v44 = vld [vmem:[#allocation247_spill] sm:$0xff]  ;;  %v19305_v61 = vld [vmem:[#allocation161_spill] sm:$0xff] }
 0x3f8   : > { %9478 = vmatpush1.bf16.msra.mxu1 %v9477_v0  ;;  %4082 = vmatprep.mubr.f32.mxu1 %v19247_v32  ;;  %v9481_v11 = vpack.c.bf16 %v19258_v55, %v19256_v42  ;;  %v19274_v0 = vand.u32 4294901760, %v19273_v59  ;;  %v19276_v41 = vand.u32 4294901760, %v19275_v37  ;;  %v19294_v55 = vand.u32 4294901760, %v19293_v44  ;;  %v19303_v14 = vld [vmem:[#allocation187_spill] sm:$0xff] }
 0x3f9   : > { %6768 = vmatmul.mubr.f32.gmra.mrb[2].mxu0 %v19248_v54  ;;  %9480 = vmatprep.subr.bf16.mxu1 %v9479_v58  ;;  %v9483_v18 = vpack.c.bf16 %v19264_v12, %v19262_v15  ;;  %v19279_v58 = vld [vmem:[#allocation175_spill] sm:$0xff]  ;;  %v19285_v54 = vld [vmem:[#allocation189_spill] sm:$0xff]  ;;  %v19304_v1 = vand.u32 4294901760, %v19303_v14 }
 0x3fa   : > { %9758 = vmatpush1.bf16.msra.mxu0 %v9757_v39  ;;  %6776 = vmatprep.mubr.f32.mxu0 %v19254_v2  ;;  %v9763_v20 = vpack.c.bf16 %v19276_v41, %v19274_v0  ;;  %v19280_v3 = vand.u32 4294901760, %v19279_v58  ;;  %v19283_v39 = vld [vmem:[#allocation164_spill] sm:$0xff]  ;;  %v19286_v28 = vand.u32 4294901760, %v19285_v54  ;;  %v19299_v15 = vld [vmem:[#allocation77_spill] sm:$0xff] }
 0x3fb   : > { %9760 = vmatprep.subr.bf16.mxu0 %v9759_v30  ;;  %4086 = vmatmul.mubr.f32.gmra.mrb[24].mxu1 %v19260_v27  ;;  %v19284_v32 = vand.u32 4294901760, %v19283_v39  ;;  %v19289_v30 = vld [vmem:[#allocation89_spill] sm:$0xff]  ;;  %v19291_v2 = vld [vmem:[#allocation60_spill] sm:$0xff]  ;;  %v19300_v36 = vand.u32 4294901760, %v19299_v15 }
 0x3fc   : > { %9482 = vmatpush1.bf16.msra.mxu1 %v9481_v11  ;;  %4094 = vmatprep.mubr.f32.mxu1 %v19270_v17  ;;  %v9485_v48 = vpack.c.bf16 %v19282_v49, %v19280_v3  ;;  %v9487_v34 = vpack.c.bf16 %v19288_v23, %v19286_v28  ;;  %v19290_v63 = vand.u32 4294901760, %v19289_v30  ;;  %v19292_v9 = vand.u32 4294901760, %v19291_v2  ;;  %v19295_v11 = vld [vmem:[#allocation255_spill] sm:$0xff]  ;;  %v19297_v27 = vld [vmem:[#allocation105_spill] sm:$0xff]  ;;  %v19323_v28 = vld [vmem:[#allocation92_spill] sm:$0xff] }
 0x3fd   : > { %6780 = vmatmul.mubr.f32.gmra.mrb[4].mxu0 %v19272_v29  ;;  %9484 = vmatprep.subr.bf16.mxu1 %v9483_v18  ;;  %v19296_v25 = vand.u32 4294901760, %v19295_v11  ;;  %v19298_v57 = vand.u32 4294901760, %v19297_v27  ;;  %v19301_v18 = vld [vmem:[#allocation173_spill] sm:$0xff]  ;;  %v19318_v49 = vand.u32 4294901760, %v19317_v52  ;;  %v19324_v62 = vand.u32 4294901760, %v19323_v28 }
 0x3fe   : > { %9762 = vmatpush1.bf16.msra.mxu0 %v9761_v40  ;;  %6788 = vmatprep.mubr.f32.mxu0 %v19278_v43  ;;  %v9765_v42 = vpack.c.bf16 %v19292_v9, %v19290_v63  ;;  %v19302_v6 = vand.u32 4294901760, %v19301_v18  ;;  %v19306_v40 = vand.u32 4294901760, %v19305_v61  ;;  %v19307_v17 = vld [vmem:[#allocation181_spill] sm:$0xff]  ;;  %v19315_v43 = vld [vmem:[#allocation78_spill] sm:$0xff] }
 0x3ff   : > { %9764 = vmatprep.subr.bf16.mxu0 %v9763_v20  ;;  %4098 = vmatmul.mubr.f32.gmra.mrb[26].mxu1 %v19284_v32  ;;  %v9767_v12 = vpack.c.bf16 %v19300_v36, %v19298_v57  ;;  %v19308_v10 = vand.u32 4294901760, %v19307_v17  ;;  %v19309_v29 = vld [vmem:[#allocation197_spill] sm:$0xff]  ;;  %v19313_v20 = vld [vmem:[#allocation103_spill] sm:$0xff]  ;;  %v19316_v58 = vand.u32 4294901760, %v19315_v43  ;;  %v19321_v32 = vld [vmem:[#allocation118_spill] sm:$0xff] }
 0x400   : > { %9486 = vmatpush1.bf16.msra.mxu1 %v9485_v48  ;;  %4106 = vmatprep.mubr.f32.mxu1 %v19294_v55  ;;  %v9489_v26 = vpack.c.bf16 %v19306_v40, %v19304_v1  ;;  %v19310_v59 = vand.u32 4294901760, %v19309_v29  ;;  %v19311_v0 = vld [vmem:[#allocation177_spill] sm:$0xff]  ;;  %v19314_v22 = vand.u32 4294901760, %v19313_v20  ;;  %v19319_v48 = vld [vmem:[#allocation35_spill] sm:$0xff]  ;;  %v19322_v54 = vand.u32 4294901760, %v19321_v32  ;;  %v19327_v63 = vld [vmem:[#allocation198_spill] sm:$0xff] }
 0x401   : > { %6792 = vmatmul.mubr.f32.gmra.mrb[6].mxu0 %v19296_v25  ;;  %9488 = vmatprep.subr.bf16.mxu1 %v9487_v34  ;;  %v19312_v37 = vand.u32 4294901760, %v19311_v0  ;;  %v19320_v39 = vand.u32 4294901760, %v19319_v48  ;;  %v19325_v34 = vld [vmem:[#allocation234_spill] sm:$0xff]  ;;  %v19328_v2 = vand.u32 4294901760, %v19327_v63  ;;  %v19331_v55 = vld [vmem:[#allocation292_spill] sm:$0xff]  ;;  %v19333_v25 = vld [vmem:[#allocation119_spill] sm:$0xff] }
 0x402   : > { %9766 = vmatpush1.bf16.msra.mxu0 %v9765_v42  ;;  %6800 = vmatprep.mubr.f32.mxu0 %v19302_v6  ;;  %v9769_v3 = vpack.c.bf16 %v19316_v58, %v19314_v22  ;;  %v9771_v23 = vpack.c.bf16 %v19324_v62, %v19322_v54  ;;  %v19326_v30 = vand.u32 4294901760, %v19325_v34  ;;  %v19329_v9 = vld [vmem:[#allocation178_spill] sm:$0xff]  ;;  %v19332_v11 = vand.u32 4294901760, %v19331_v55  ;;  %v19339_v6 = vld [vmem:[#allocation259_spill] sm:$0xff]  ;;  %v19352_v22 = vld [vmem:[#allocation108_spill] sm:$0xff] }
 0x403   : > { %9768 = vmatprep.subr.bf16.mxu0 %v9767_v12  ;;  %4110 = vmatmul.mubr.f32.gmra.mrb[28].mxu1 %v19308_v10  ;;  %v9491_v41 = vpack.c.bf16 %v19312_v37, %v19310_v59  ;;  %v19330_v42 = vand.u32 4294901760, %v19329_v9  ;;  %v19334_v27 = vand.u32 4294901760, %v19333_v25  ;;  %v19335_v57 = vld [vmem:[#allocation90_spill] sm:$0xff]  ;;  %v19337_v12 = vld [vmem:[#allocation204_spill] sm:$0xff]  ;;  %v19340_v14 = vand.u32 4294901760, %v19339_v6  ;;  %v19341_v1 = vld [vmem:[#allocation7_spill] sm:$0xff] }
 0x404   : > { %9490 = vmatpush1.bf16.msra.mxu1 %v9489_v26  ;;  %4118 = vmatprep.mubr.f32.mxu1 %v19318_v49  ;;  %v19336_v15 = vand.u32 4294901760, %v19335_v57  ;;  %v19338_v18 = vand.u32 4294901760, %v19337_v12  ;;  %v19342_v61 = vld [vmem:[#allocation134_spill] sm:$0xff]  ;;  %v19344_v26 = vld [vmem:[#allocation107_spill] sm:$0xff]  ;;  %v19353_v43 = vand.u32 4294901760, %v19352_v22 }
 0x405   : > { %6804 = vmatmul.mubr.f32.gmra.mrb[8].mxu0 %v19320_v39  ;;  %9492 = vmatprep.subr.bf16.mxu1 %v9491_v41  ;;  %v9493_v44 = vpack.c.bf16 %v19330_v42, %v19328_v2  ;;  %v19343_v40 = vand.u32 4294901760, %v19342_v61  ;;  %v19345_v17 = vand.u32 4294901760, %v19344_v26  ;;  %v19346_v29 = vld [vmem:[#allocation58_spill] sm:$0xff]  ;;  %v19350_v41 = vld [vmem:[#allocation135_spill] sm:$0xff]  ;;  %v19358_v39 = vld [vmem:[#allocation149_spill] sm:$0xff] }
 0x406   : > { %9770 = vmatpush1.bf16.msra.mxu0 %v9769_v3  ;;  %6812 = vmatprep.mubr.f32.mxu0 %v19326_v30  ;;  %v9773_v36 = vpack.c.bf16 %v19336_v15, %v19334_v27  ;;  %v19347_v59 = vand.u32 4294901760, %v19346_v29  ;;  %v19348_v0 = vld [vmem:[#allocation298_spill] sm:$0xff]  ;;  %v19351_v20 = vand.u32 4294901760, %v19350_v41  ;;  %v19356_v49 = vld [vmem:[#allocation263_spill] sm:$0xff]  ;;  %v19359_v32 = vand.u32 4294901760, %v19358_v39  ;;  %v19382_v26 = vld [vmem:[#allocation165_spill] sm:$0xff] }
 0x407   : > { %9772 = vmatprep.subr.bf16.mxu0 %v9771_v23  ;;  %4122 = vmatmul.mubr.f32.gmra.mrb[30].mxu1 %v19332_v11  ;;  %v9775_v10 = vpack.c.bf16 %v19345_v17, %v19343_v40  ;;  %v19349_v37 = vand.u32 4294901760, %v19348_v0  ;;  %v19354_v3 = vld [vmem:[#allocation294_spill] sm:$0xff]  ;;  %v19357_v48 = vand.u32 4294901760, %v19356_v49  ;;  %v19362_v23 = vld [vmem:[#allocation244_spill] sm:$0xff]  ;;  %v19368_v42 = vld [vmem:[#allocation123_spill] sm:$0xff]  ;;  %v19383_v17 = vand.u32 4294901760, %v19382_v26 }
 0x408   : > { %9494 = vmatpush1.bf16.msra.mxu1 %v9493_v44  ;;  %4130 = vmatprep.mubr.f32.mxu1 %v19338_v18  ;;  %v9777_v58 = vpack.c.bf16 %v19353_v43, %v19351_v20  ;;  %v19355_v52 = vand.u32 4294901760, %v19354_v3  ;;  %v19360_v54 = vld [vmem:[#allocation122_spill] sm:$0xff]  ;;  %v19363_v34 = vand.u32 4294901760, %v19362_v23  ;;  %v19369_v44 = vand.u32 4294901760, %v19368_v42  ;;  %v19370_v11 = vld [vmem:[#allocation295_spill] sm:$0xff]  ;;  %v19386_v0 = vld [vmem:[#allocation300_spill] sm:$0xff] }
 0x409   : > { %6816 = vmatmul.mubr.f32.gmra.mrb[10].mxu0 %v19340_v14  ;;  %9496 = vmatprep.subr.bf16.mxu1 %v19341_v1  ;;  %v19361_v28 = vand.u32 4294901760, %v19360_v54  ;;  %v19364_v30 = vld [vmem:[#allocation302_spill] sm:$0xff]  ;;  %v19371_v25 = vand.u32 4294901760, %v19370_v11  ;;  %v19374_v15 = vld [vmem:[#allocation167_spill] sm:$0xff]  ;;  %v19388_v41 = vld [vmem:[#allocation269_spill] sm:$0xff] }
 0x40a   : > { %9774 = vmatpush1.bf16.msra.mxu0 %v9773_v36  ;;  %6824 = vmatprep.mubr.f32.mxu0 %v19347_v59  ;;  %v19365_v63 = vand.u32 4294901760, %v19364_v30  ;;  %v19366_v2 = vld [vmem:[#allocation150_spill] sm:$0xff]  ;;  %v19375_v36 = vand.u32 4294901760, %v19374_v15  ;;  %v19389_v20 = vand.u32 4294901760, %v19388_v41  ;;  %v19390_v22 = vld [vmem:[#allocation183_spill] sm:$0xff]  ;;  %v19402_v30 = vld [vmem:[#allocation304_spill] sm:$0xff] }
 0x40b   : > { %9776 = vmatprep.subr.bf16.mxu0 %v9775_v10  ;;  %4134 = vmatmul.mubr.f32.gmra.mrb[32].mxu1 %v19349_v37  ;;  %v9779_v62 = vpack.c.bf16 %v19361_v28, %v19359_v32  ;;  %v19367_v9 = vand.u32 4294901760, %v19366_v2  ;;  %v19372_v27 = vld [vmem:[#allocation98_spill] sm:$0xff]  ;;  %v19384_v10 = vld [vmem:[#allocation139_spill] sm:$0xff]  ;;  %v19387_v37 = vand.u32 4294901760, %v19386_v0  ;;  %v19391_v43 = vand.u32 4294901760, %v19390_v22 }
 0x40c   : > { %4142 = vmatprep.mubr.f32.mxu1 %v19355_v52  ;;  %v19373_v57 = vand.u32 4294901760, %v19372_v27  ;;  %v19376_v12 = vld [vmem:[#allocation138_spill] sm:$0xff]  ;;  %v19385_v29 = vand.u32 4294901760, %v19384_v10  ;;  %v19404_v2 = vld [vmem:[#allocation27_spill] sm:$0xff]  ;;  %v19422_v10 = vld [vmem:[#allocation200_spill] sm:$0xff] }
 0x40d   : > { %6828 = vmatmul.mubr.f32.gmra.mrb[12].mxu0 %v19357_v48  ;;  %v9781_v55 = vpack.c.bf16 %v19369_v44, %v19367_v9  ;;  %v19377_v18 = vand.u32 4294901760, %v19376_v12  ;;  %v19378_v14 = vld [vmem:[#allocation74_spill] sm:$0xff]  ;;  %v19405_v9 = vand.u32 4294901760, %v19404_v2  ;;  %v19406_v42 = vld [vmem:[#allocation195_spill] sm:$0xff]  ;;  %v19414_v12 = vld [vmem:[#allocation193_spill] sm:$0xff] }
 0x40e   : > { %9778 = vmatpush1.bf16.msra.mxu0 %v9777_v58  ;;  %6836 = vmatprep.mubr.f32.mxu0 %v19363_v34  ;;  %v19379_v1 = vand.u32 4294901760, %v19378_v14  ;;  %v19380_v61 = vld [vmem:[#allocation306_spill] sm:$0xff]  ;;  %v9785_v59 = vpack.c.bf16 %v19385_v29, %v19383_v17  ;;  %v19407_v44 = vand.u32 4294901760, %v19406_v42  ;;  %v19423_v29 = vand.u32 4294901760, %v19422_v10 }
 0x40f   : > { %9780 = vmatprep.subr.bf16.mxu0 %v9779_v62  ;;  %4146 = vmatmul.mubr.f32.gmra.mrb[34].mxu1 %v19365_v63  ;;  %v9783_v6 = vpack.c.bf16 %v19377_v18, %v19375_v36  ;;  %v19381_v40 = vand.u32 4294901760, %v19380_v61  ;;  %v19392_v58 = vld [vmem:[#allocation154_spill] sm:$0xff]  ;;  %v19400_v62 = vld [vmem:[#allocation155_spill] sm:$0xff]  ;;  %v19403_v63 = vand.u32 4294901760, %v19402_v30  ;;  %v19415_v18 = vand.u32 4294901760, %v19414_v12  ;;  %v19418_v61 = vld [vmem:[#allocation308_spill] sm:$0xff] }
 0x410   : > { %4154 = vmatprep.mubr.f32.mxu1 %v19371_v25  ;;  %v19393_v3 = vand.u32 4294901760, %v19392_v58  ;;  %v19394_v49 = vld [vmem:[#allocation254_spill] sm:$0xff]  ;;  %v19401_v23 = vand.u32 4294901760, %v19400_v62  ;;  %v19430_v58 = vld [vmem:[#allocation201_spill] sm:$0xff]  ;;  %v19438_v62 = vand.u32 4294901760, %v19091_v46 }
 0x411   : > { %6840 = vmatmul.mubr.f32.gmra.mrb[14].mxu0 %v19373_v57  ;;  %v19395_v48 = vand.u32 4294901760, %v19394_v49  ;;  %v19396_v39 = vld [vmem:[#allocation310_spill] sm:$0xff] }
 0x412   : > { %9782 = vmatpush1.bf16.msra.mxu0 %v9781_v55  ;;  %6848 = vmatprep.mubr.f32.mxu0 %v19379_v1  ;;  %v9787_v52 = vpack.c.bf16 %v19393_v3, %v19391_v43  ;;  %v19397_v32 = vand.u32 4294901760, %v19396_v39  ;;  %v19398_v54 = vld [vmem:[#allocation182_spill] sm:$0xff]  ;;  %v19408_v55 = vld [vmem:[#allocation171_spill] sm:$0xff]  ;;  %v19431_v3 = vand.u32 4294901760, %v19430_v58  ;;  %v19434_v39 = vld [vmem:[#allocation313_spill] sm:$0xff] }
 0x413   : > { %9784 = vmatprep.subr.bf16.mxu0 %v9783_v6  ;;  %4158 = vmatmul.mubr.f32.gmra.mrb[36].mxu1 %v19381_v40  ;;  %v19399_v28 = vand.u32 4294901760, %v19398_v54  ;;  %v19409_v11 = vand.u32 4294901760, %v19408_v55  ;;  %v19410_v27 = vld [vmem:[#allocation258_spill] sm:$0xff]  ;;  %v19416_v6 = vld [vmem:[#allocation169_spill] sm:$0xff]  ;;  %v19419_v40 = vand.u32 4294901760, %v19418_v61  ;;  %v19436_v54 = vld [vmem:[#allocation276_spill] sm:$0xff] }
 0x414   : > { %4166 = vmatprep.mubr.f32.mxu1 %v19387_v37  ;;  %v19411_v57 = vand.u32 4294901760, %v19410_v27  ;;  %v19412_v15 = vld [vmem:[#allocation314_spill] sm:$0xff]  ;;  %v19417_v14 = vand.u32 4294901760, %v19416_v6  ;;  %v19450_v27 = vld [vmem:[#allocation320_spill] sm:$0xff]  ;;  %v19460_v61 = vld [vmem:[#allocation79_spill] sm:$0xff] }
 0x415   : > { %6852 = vmatmul.mubr.f32.gmra.mrb[16].mxu0 %v19389_v20  ;;  %v9789_v34 = vpack.c.bf16 %v19401_v23, %v19399_v28  ;;  %v9791_v25 = vpack.c.bf16 %v19409_v11, %v19407_v44  ;;  %v19413_v36 = vand.u32 4294901760, %v19412_v15  ;;  %v19420_v26 = vld [vmem:[#allocation274_spill] sm:$0xff]  ;;  %v19437_v28 = vand.u32 4294901760, %v19436_v54  ;;  %v19439_v23 = vld [vmem:[#allocation47_spill] sm:$0xff]  ;;  %v19480_v54 = vld [vmem:[#allocation345_spill] sm:$0xff] }
 0x416   : > { %9786 = vmatpush1.bf16.msra.mxu0 %v9785_v59  ;;  %6860 = vmatprep.mubr.f32.mxu0 %v19395_v48  ;;  %v9793_v1 = vpack.c.bf16 %v19417_v14, %v19415_v18  ;;  %v19421_v17 = vand.u32 4294901760, %v19420_v26  ;;  %v19424_v59 = vld [vmem:[#allocation186_spill] sm:$0xff]  ;;  %v19451_v46 = vand.u32 4294901760, %v19450_v27  ;;  %v19458_v14 = vld [vmem:[#allocation324_spill] sm:$0xff]  ;;  %v19462_v26 = vld [vmem:[#allocation129_spill] sm:$0xff]  ;;  %v19495_v27 = vand.u32 4294901760, %v19136_v8 }
 0x417   : > { %9788 = vmatprep.subr.bf16.mxu0 %v9787_v52  ;;  %4170 = vmatmul.mubr.f32.gmra.mrb[38].mxu1 %v19397_v32  ;;  %v19425_v0 = vand.u32 4294901760, %v19424_v59  ;;  %v19426_v41 = vld [vmem:[#allocation262_spill] sm:$0xff]  ;;  %v19432_v52 = vld [vmem:[#allocation184_spill] sm:$0xff]  ;;  %v19435_v32 = vand.u32 4294901760, %v19434_v39  ;;  %v19478_v39 = vld [vmem:[#allocation335_spill] sm:$0xff] }
 0x418   : > { %4178 = vmatprep.mubr.f32.mxu1 %v19403_v63  ;;  %v19427_v20 = vand.u32 4294901760, %v19426_v41  ;;  %v19428_v22 = vld [vmem:[#allocation318_spill] sm:$0xff]  ;;  %v19433_v49 = vand.u32 4294901760, %v19432_v52  ;;  %v19442_v63 = vld [vmem:[#allocation315_spill] sm:$0xff]  ;;  %v19466_v59 = vld [vmem:[#allocation328_spill] sm:$0xff] }
 0x419   : > { %6864 = vmatmul.mubr.f32.gmra.mrb[18].mxu0 %v19405_v9  ;;  %v9795_v37 = vpack.c.bf16 %v19425_v0, %v19423_v29  ;;  %v19429_v43 = vand.u32 4294901760, %v19428_v22  ;;  %v19443_v2 = vand.u32 4294901760, %v19442_v63  ;;  %v19444_v9 = vld [vmem:[#allocation281_spill] sm:$0xff]  ;;  %v19446_v44 = vld [vmem:[#allocation218_spill] sm:$0xff]  ;;  %v19467_v0 = vand.u32 4294901760, %v19466_v59  ;;  %v19504_v8 = vld [vmem:[#allocation272_spill] sm:$0xff] }
 0x41a   : > { %9790 = vmatpush1.bf16.msra.mxu0 %v9789_v34  ;;  %6872 = vmatprep.mubr.f32.mxu0 %v19411_v57  ;;  %v9797_v48 = vpack.c.bf16 %v19433_v49, %v19431_v3  ;;  %v19440_v34 = vld [vmem:[#allocation322_spill] sm:$0xff]  ;;  %v19445_v42 = vand.u32 4294901760, %v19444_v9  ;;  %v19447_v55 = vand.u32 4294901760, %v19446_v44  ;;  %v19452_v57 = vld [vmem:[#allocation51_spill] sm:$0xff]  ;;  %v19474_v3 = vld [vmem:[#allocation333_spill] sm:$0xff]  ;;  %v19519_v59 = vand.u32 4294901760, %v19177_v56 }
 0x41b   : > { %9792 = vmatprep.subr.bf16.mxu0 %v9791_v25  ;;  %4182 = vmatmul.mubr.f32.gmra.mrb[40].mxu1 %v19413_v36  ;;  %v19441_v30 = vand.u32 4294901760, %v19440_v34  ;;  %v19448_v11 = vld [vmem:[#allocation326_spill] sm:$0xff]  ;;  %v19453_v15 = vand.u32 4294901760, %v19452_v57  ;;  %v19454_v36 = vld [vmem:[#allocation65_spill] sm:$0xff]  ;;  %v19475_v52 = vand.u32 4294901760, %v19474_v3  ;;  %v19476_v49 = vld [vmem:[#allocation343_spill] sm:$0xff] }
 0x41c   : > { %4190 = vmatprep.mubr.f32.mxu1 %v19419_v40  ;;  %v19449_v25 = vand.u32 4294901760, %v19448_v11  ;;  %v19455_v12 = vand.u32 4294901760, %v19454_v36  ;;  %v19456_v18 = vld [vmem:[#allocation330_spill] sm:$0xff]  ;;  %v19461_v40 = vand.u32 4294901760, %v19460_v61  ;;  %v19484_v34 = vld [vmem:[#allocation339_spill] sm:$0xff]  ;;  %v19486_v63 = vld [vmem:[#allocation261_spill] sm:$0xff] }
 0x41d   : > { %6876 = vmatmul.mubr.f32.gmra.mrb[20].mxu0 %v19421_v17  ;;  %v19457_v6 = vand.u32 4294901760, %v19456_v18  ;;  %v19463_v17 = vand.u32 4294901760, %v19462_v26  ;;  %v19464_v10 = vld [vmem:[#allocation334_spill] sm:$0xff]  ;;  %v19488_v9 = vld [vmem:[#allocation211_spill] sm:$0xff]  ;;  %v19490_v44 = vld [vmem:[#allocation13_spill] sm:$0xff]  ;;  %v19497_v57 = vand.u32 4294901760, %v19137_v5 }
 0x41e   : > { %9794 = vmatpush1.bf16.msra.mxu0 %v9793_v1  ;;  %6884 = vmatprep.mubr.f32.mxu0 %v19427_v20  ;;  %v19459_v1 = vand.u32 4294901760, %v19458_v14  ;;  %v19465_v29 = vand.u32 4294901760, %v19464_v10  ;;  %v19470_v20 = vld [vmem:[#allocation290_spill] sm:$0xff]  ;;  %v19501_v36 = vand.u32 4294901760, %v19147_v19  ;;  %v19503_v18 = vand.u32 4294901760, %v19148_v35  ;;  %v19506_v5 = vld [vmem:[#allocation215_spill] sm:$0xff] }
 0x41f   : > { %9796 = vmatprep.subr.bf16.mxu0 %v9795_v37  ;;  %4194 = vmatmul.mubr.f32.gmra.mrb[42].mxu1 %v19429_v43  ;;  %v19468_v37 = vld [vmem:[#allocation289_spill] sm:$0xff]  ;;  %v19471_v22 = vand.u32 4294901760, %v19470_v20  ;;  %v19472_v43 = vld [vmem:[#allocation338_spill] sm:$0xff]  ;;  %v19507_v14 = vand.u32 4294901760, %v19157_v60  ;;  %v19509_v61 = vand.u32 4294901760, %v19158_v51  ;;  %v19512_v35 = vld [vmem:[#allocation216_spill] sm:$0xff] }
 0x420   : > { %4202 = vmatprep.mubr.f32.mxu1 %v19435_v32  ;;  %v19469_v41 = vand.u32 4294901760, %v19468_v37  ;;  %v19473_v58 = vand.u32 4294901760, %v19472_v43  ;;  %v19479_v32 = vand.u32 4294901760, %v19478_v39  ;;  %v19492_v11 = vld [vmem:[#allocation266_spill] sm:$0xff]  ;;  %v19510_v19 = vld [vmem:[#allocation273_spill] sm:$0xff]  ;;  %v19513_v26 = vand.u32 4294901760, %v19166_v47 }
 0x421   : > { %6888 = vmatmul.mubr.f32.gmra.mrb[22].mxu0 %v19437_v28  ;;  %v19481_v28 = vand.u32 4294901760, %v19480_v54  ;;  %v19515_v10 = vand.u32 4294901760, %v19167_v24  ;;  %v19516_v60 = vld [vmem:[#allocation275_spill] sm:$0xff]  ;;  %v19518_v51 = vld [vmem:[#allocation224_spill] sm:$0xff]  ;;  %v19521_v37 = vand.u32 4294901760, %v19178_v7  ;;  %v19524_v24 = vld [vmem:[#allocation110_spill] sm:$0xff] }
 0x422   : > { %9798 = vmatpush1.bf16.msra.mxu0 %v9797_v48  ;;  %6896 = vmatprep.mubr.f32.mxu0 %v19438_v62  ;;  %v19477_v48 = vand.u32 4294901760, %v19476_v49  ;;  %v19482_v62 = vld [vmem:[#allocation205_spill] sm:$0xff]  ;;  %v19522_v47 = vld [vmem:[#allocation280_spill] sm:$0xff]  ;;  %v19525_v20 = vand.u32 4294901760, %v14491_v45  ;;  %v19527_v43 = vand.u32 4294901760, %v19185_v13  ;;  %v19528_v56 = vld [vmem:[#allocation102_spill] sm:$0xff] }
 0x423   : > { %9800 = vmatprep.subr.bf16.mxu0 %v19439_v23  ;;  %4206 = vmatmul.mubr.f32.gmra.mrb[44].mxu1 %v19441_v30  ;;  %v19483_v23 = vand.u32 4294901760, %v19114_v33  ;;  %v19485_v30 = vand.u32 4294901760, %v19484_v34  ;;  %v19493_v33 = vld [vmem:[#allocation16_spill] sm:$0xff]  ;;  %v19530_v7 = vld [vmem:[#allocation113_spill] sm:$0xff]  ;;  %v19531_v3 = vand.u32 4294901760, %v19193_v50  ;;  %v19533_v49 = vand.u32 4294901760, %v19194_v21 }
 0x424   : > { %4214 = vmatprep.mubr.f32.mxu1 %v19443_v2  ;;  %v19487_v2 = vld [vmem:[#allocation8_spill] sm:$0xff]  ;;  %v19534_v45 = vld [vmem:[#allocation285_spill] sm:$0xff]  ;;  %v19537_v39 = vand.u32 4294901760, %v14532_v38  ;;  %v19539_v54 = vand.u32 4294901760, %v19201_v31  ;;  %v19546_v38 = vld [vmem:[#allocation287_spill] sm:$0xff] }
 0x425   : > { %6900 = vmatmul.mubr.f32.gmra.mrb[24].mxu0 %v19445_v42  ;;  %v19489_v42 = vand.u32 4294901760, %v19124_v16  ;;  %v19498_v16 = vld [vmem:[#allocation268_spill] sm:$0xff]  ;;  %v19549_v31 = vld [vmem:[#allocation241_spill] sm:$0xff] }
 0x426   : > { %6908 = vmatprep.mubr.f32.mxu0 %v19447_v55  ;;  %v19491_v55 = vand.u32 4294901760, %v19125_v4  ;;  %v19500_v4 = vld [vmem:[#allocation214_spill] sm:$0xff]  ;;  %v19536_v13 = vld [vmem:[#allocation152_spill] sm:$0xff] }
 0x427   : > { %4218 = vmatmul.mubr.f32.gmra.mrb[46].mxu1 %v19449_v25  ;;  %v19494_v25 = vld [vmem:[#allocation213_spill] sm:$0xff]  ;;  %v19540_v50 = vld [vmem:[#allocation52_spill] sm:$0xff] }
 0x428   : > { %4226 = vmatprep.mubr.f32.mxu1 %v19451_v46  ;;  %v19496_v46 = vld [vmem:[#allocation24_spill] sm:$0xff] }
 0x429   : > { %6912 = vmatmul.mubr.f32.gmra.mrb[26].mxu0 %v19453_v15  ;;  %v19499_v15 = vld [vmem:[#allocation28_spill] sm:$0xff] }
 0x42a   : > { %6920 = vmatprep.mubr.f32.mxu0 %v19455_v12  ;;  %v19502_v12 = vld [vmem:[#allocation34_spill] sm:$0xff]  ;;  %v19542_v21 = vld [vmem:[#allocation228_spill] sm:$0xff] }
 0x42b   : > { %4230 = vmatmul.mubr.f32.gmra.mrb[48].mxu1 %v19457_v6  ;;  %v19505_v6 = vld [vmem:[#allocation38_spill] sm:$0xff]  ;;  %v19544_v34 = vld [vmem:[#allocation136_spill] sm:$0xff] }
 0x42c   : > { %4238 = vmatprep.mubr.f32.mxu1 %v19459_v1  ;;  %v19508_v1 = vld [vmem:[#allocation41_spill] sm:$0xff] }
 0x42d   : > { %6924 = vmatmul.mubr.f32.gmra.mrb[28].mxu0 %v19461_v40  ;;  %v19511_v40 = vld [vmem:[#allocation43_spill] sm:$0xff] }
 0x42e   : > { %6932 = vmatprep.mubr.f32.mxu0 %v19463_v17  ;;  %v19514_v17 = vld [vmem:[#allocation56_spill] sm:$0xff] }
 0x42f   : > { %4242 = vmatmul.mubr.f32.gmra.mrb[50].mxu1 %v19465_v29  ;;  %v19517_v29 = vld [vmem:[#allocation59_spill] sm:$0xff] }
 0x430   : > { %4250 = vmatprep.mubr.f32.mxu1 %v19467_v0  ;;  %v19520_v0 = vld [vmem:[#allocation72_spill] sm:$0xff] }
 0x431   : > { %6936 = vmatmul.mubr.f32.gmra.mrb[30].mxu0 %v19469_v41  ;;  %v19523_v41 = vld [vmem:[#allocation75_spill] sm:$0xff] }
 0x432   : > { %6944 = vmatprep.mubr.f32.mxu0 %v19471_v22  ;;  %v19526_v22 = vld [vmem:[#allocation87_spill] sm:$0xff] }
 0x433   : > { %4254 = vmatmul.mubr.f32.gmra.mrb[52].mxu1 %v19473_v58  ;;  %v19529_v58 = vld [vmem:[#allocation91_spill] sm:$0xff] }
 0x434   : > { %4262 = vmatprep.mubr.f32.mxu1 %v19475_v52  ;;  %v19532_v52 = vld [vmem:[#allocation104_spill] sm:$0xff] }
 0x435   : > { %6948 = vmatmul.mubr.f32.gmra.mrb[32].mxu0 %v19477_v48  ;;  %v19535_v48 = vld [vmem:[#allocation106_spill] sm:$0xff] }
 0x436   : > { %6956 = vmatprep.mubr.f32.mxu0 %v19479_v32  ;;  %v19538_v32 = vld [vmem:[#allocation120_spill] sm:$0xff] }
 0x437   : > { %4266 = vmatmul.mubr.f32.gmra.mrb[54].mxu1 %v19481_v28  ;;  %v19541_v28 = vld [vmem:[#allocation124_spill] sm:$0xff] }
 0x438   : > { %4529 = vmatprep.mubr.f32.mxu1 %v19482_v62 }
 0x439   : > { %6960 = vmatmul.mubr.f32.gmra.mrb[34].mxu0 %v19483_v23  ;;  %v19543_v23 = vand.u32 4294901760, %v19212_v53  ;;  %v19553_v53 = vld [vmem:[#allocation64_spill] sm:$0xff] }
 0x43a   : > { %6968 = vmatprep.mubr.f32.mxu0 %v19485_v30  ;;  %v19545_v30 = vld [vmem:[#allocation209_spill] sm:$0xff] }
 0x43b   : > { %4531 = vmatmul.mubr.f32.vlgmr.msra.gmra.mrb[0].mxu1 %v19486_v63 }
 0x43c   : > { %9498 = vmatpush1.bf16.msra.mxu1 %v19487_v2  ;;  %4537 = vmatprep.mubr.f32.mxu1 %v19488_v9  ;;  %v19547_v2 = vld [vmem:[#allocation140_spill] sm:$0xff] }
 0x43d   : > { %6972 = vmatmul.mubr.f32.gmra.mrb[36].mxu0 %v19489_v42  ;;  %9500 = vmatprep.subr.bf16.mxu1 %v19490_v44  ;;  %v19548_v42 = vld [vmem:[#allocation232_spill] sm:$0xff]  ;;  %v19550_v44 = vld [vmem:[#allocation151_spill] sm:$0xff] }
 0x43e   : > { %6980 = vmatprep.mubr.f32.mxu0 %v19491_v55  ;;  %v19551_v55 = vld [vmem:[#allocation53_spill] sm:$0xff] }
 0x43f   : > { %4539 = vmatmul.mubr.f32.gmra.mrb[2].mxu1 %v19492_v11 }
 0x440   : > { %9502 = vmatpush1.bf16.msra.mxu1 %v19493_v33  ;;  %4545 = vmatprep.mubr.f32.mxu1 %v19494_v25  ;;  %v19552_v33 = vld [vmem:[#allocation225_spill] sm:$0xff] }
 0x441   : > { %6984 = vmatmul.mubr.f32.gmra.mrb[38].mxu0 %v19495_v27  ;;  %9504 = vmatprep.subr.bf16.mxu1 %v19496_v46  ;;  %v19554_v27 = vld [vmem:[#allocation82_spill] sm:$0xff]  ;;  %v19555_v46 = vld [vmem:[#allocation153_spill] sm:$0xff] }
 0x442   : > { %6992 = vmatprep.mubr.f32.mxu0 %v19497_v57  ;;  %v19556_v57 = vld [vmem:[#allocation233_spill] sm:$0xff] }
 0x443   : > { %4547 = vmatmul.mubr.f32.gmra.mrb[4].mxu1 %v19498_v16 }
 0x444   : > { %9506 = vmatpush1.bf16.msra.mxu1 %v19499_v15  ;;  %4553 = vmatprep.mubr.f32.mxu1 %v19500_v4  ;;  %v19557_v15 = vld [vmem:[#allocation245_spill] sm:$0xff] }
 0x445   : > { %6996 = vmatmul.mubr.f32.gmra.mrb[40].mxu0 %v19501_v36  ;;  %9508 = vmatprep.subr.bf16.mxu1 %v19502_v12  ;;  %v19558_v36 = vld [vmem:[#allocation168_spill] sm:$0xff]  ;;  %v19559_v12 = vld [vmem:[#allocation69_spill] sm:$0xff] }
 0x446   : > { %7004 = vmatprep.mubr.f32.mxu0 %v19503_v18  ;;  %v19560_v18 = vld [vmem:[#allocation97_spill] sm:$0xff] }
 0x447   : > { %4555 = vmatmul.mubr.f32.gmra.mrb[6].mxu1 %v19504_v8 }
 0x448   : > { %9510 = vmatpush1.bf16.msra.mxu1 %v19505_v6  ;;  %4561 = vmatprep.mubr.f32.mxu1 %v19506_v5  ;;  %v19561_v6 = vld [vmem:[#allocation80_spill] sm:$0xff] }
 0x449   : > { %7008 = vmatmul.mubr.f32.gmra.mrb[42].mxu0 %v19507_v14  ;;  %9512 = vmatprep.subr.bf16.mxu1 %v19508_v1  ;;  %v19562_v14 = vld [vmem:[#allocation180_spill] sm:$0xff]  ;;  %v19563_v1 = vld [vmem:[#allocation170_spill] sm:$0xff] }
 0x44a   : > { %7016 = vmatprep.mubr.f32.mxu0 %v19509_v61  ;;  %v19564_v61 = vld [vmem:[#allocation239_spill] sm:$0xff] }
 0x44b   : > { %4563 = vmatmul.mubr.f32.gmra.mrb[8].mxu1 %v19510_v19 }
 0x44c   : > { %9514 = vmatpush1.bf16.msra.mxu1 %v19511_v40  ;;  %4569 = vmatprep.mubr.f32.mxu1 %v19512_v35  ;;  %v19565_v40 = vld [vmem:[#allocation70_spill] sm:$0xff] }
 0x44d   : > { %7020 = vmatmul.mubr.f32.gmra.mrb[44].mxu0 %v19513_v26  ;;  %9516 = vmatprep.subr.bf16.mxu1 %v19514_v17  ;;  %v19566_v26 = vld [vmem:[#allocation179_spill] sm:$0xff]  ;;  %v19567_v17 = vld [vmem:[#allocation84_spill] sm:$0xff] }
 0x44e   : > { %7028 = vmatprep.mubr.f32.mxu0 %v19515_v10  ;;  %v19568_v10 = vld [vmem:[#allocation226_spill] sm:$0xff] }
 0x44f   : > { %4571 = vmatmul.mubr.f32.gmra.mrb[10].mxu1 %v19516_v60 }
 0x450   : > { %9518 = vmatpush1.bf16.msra.mxu1 %v19517_v29  ;;  %4577 = vmatprep.mubr.f32.mxu1 %v19518_v51  ;;  %v19569_v29 = vld [vmem:[#allocation96_spill] sm:$0xff] }
 0x451   : > { %7032 = vmatmul.mubr.f32.gmra.mrb[46].mxu0 %v19519_v59  ;;  %9520 = vmatprep.subr.bf16.mxu1 %v19520_v0  ;;  %v19570_v59 = vld [vmem:[#allocation192_spill] sm:$0xff]  ;;  %v19571_v0 = vld [vmem:[#allocation185_spill] sm:$0xff] }
 0x452   : > { %7040 = vmatprep.mubr.f32.mxu0 %v19521_v37  ;;  %v19572_v37 = vld [vmem:[#allocation242_spill] sm:$0xff] }
 0x453   : > { %4579 = vmatmul.mubr.f32.gmra.mrb[12].mxu1 %v19522_v47 }
 0x454   : > { %9522 = vmatpush1.bf16.msra.mxu1 %v19523_v41  ;;  %4585 = vmatprep.mubr.f32.mxu1 %v19524_v24  ;;  %v19573_v41 = vld [vmem:[#allocation252_spill] sm:$0xff] }
 0x455   : > { %7044 = vmatmul.mubr.f32.gmra.mrb[48].mxu0 %v19525_v20  ;;  %9524 = vmatprep.subr.bf16.mxu1 %v19526_v22  ;;  %v19574_v20 = vld [vmem:[#allocation191_spill] sm:$0xff]  ;;  %v19575_v22 = vld [vmem:[#allocation101_spill] sm:$0xff] }
 0x456   : > { %7052 = vmatprep.mubr.f32.mxu0 %v19527_v43  ;;  %v19576_v43 = vld [vmem:[#allocation229_spill] sm:$0xff] }
 0x457   : > { %4587 = vmatmul.mubr.f32.gmra.mrb[14].mxu1 %v19528_v56 }
 0x458   : > { %9526 = vmatpush1.bf16.msra.mxu1 %v19529_v58  ;;  %4593 = vmatprep.mubr.f32.mxu1 %v19530_v7  ;;  %v19577_v58 = vld [vmem:[#allocation109_spill] sm:$0xff] }
 0x459   : > { %7056 = vmatmul.mubr.f32.gmra.mrb[50].mxu0 %v19531_v3  ;;  %9528 = vmatprep.subr.bf16.mxu1 %v19532_v52  ;;  %v19578_v3 = vld [vmem:[#allocation206_spill] sm:$0xff] }
 0x45a   : > { %7064 = vmatprep.mubr.f32.mxu0 %v19533_v49  ;;  %v19579_v52 = vld [vmem:[#allocation194_spill] sm:$0xff]  ;;  %v19580_v49 = vld [vmem:[#allocation249_spill] sm:$0xff] }
 0x45b   : > { %4595 = vmatmul.mubr.f32.gmra.mrb[16].mxu1 %v19534_v45 }
 0x45c   : > { %9530 = vmatpush1.bf16.msra.mxu1 %v19535_v48  ;;  %4601 = vmatprep.mubr.f32.mxu1 %v19536_v13  ;;  %v19581_v48 = vld [vmem:[#allocation257_spill] sm:$0xff] }
 0x45d   : > { %7068 = vmatmul.mubr.f32.gmra.mrb[52].mxu0 %v19537_v39  ;;  %9532 = vmatprep.subr.bf16.mxu1 %v19538_v32  ;;  %v19582_v39 = vld [vmem:[#allocation202_spill] sm:$0xff]  ;;  %v19583_v32 = vld [vmem:[#allocation115_spill] sm:$0xff] }
 0x45e   : > { %7076 = vmatprep.mubr.f32.mxu0 %v19539_v54  ;;  %v19584_v54 = vld [vmem:[#allocation231_spill] sm:$0xff] }
 0x45f   : > { %4603 = vmatmul.mubr.f32.gmra.mrb[18].mxu1 %v19540_v50 }
 0x460   : > { %9534 = vmatpush1.bf16.msra.mxu1 %v19541_v28  ;;  %4609 = vmatprep.mubr.f32.mxu1 %v19542_v21  ;;  %v19585_v28 = vld [vmem:[#allocation125_spill] sm:$0xff] }
 0x461   : > { %7080 = vmatmul.mubr.f32.gmra.mrb[54].mxu0 %v19543_v23  ;;  %9536 = vmatprep.subr.bf16.mxu1 %v19544_v34  ;;  %v19586_v23 = vld [vmem:[#allocation291_spill] sm:$0xff] }
 0x462   : > { %7295 = vmatprep.mubr.f32.mxu0 %v19545_v30  ;;  %v19587_v34 = vld [vmem:[#allocation203_spill] sm:$0xff] }
 0x463   : > { %4611 = vmatmul.mubr.f32.gmra.mrb[20].mxu1 %v19546_v38 }
 0x464   : > { %9538 = vmatpush1.bf16.msra.mxu1 %v19547_v2  ;;  %4617 = vmatprep.mubr.f32.mxu1 %v19548_v42  ;;  %v19588_v2 = vld [vmem:[#allocation208_spill] sm:$0xff] }
 0x465   : > { %7297 = vmatmul.mubr.f32.vlgmr.msra.gmra.mrb[0].mxu0 %v19549_v31  ;;  %9540 = vmatprep.subr.bf16.mxu1 %v19550_v44  ;;  %v19589_v44 = vld [vmem:[#allocation85_spill] sm:$0xff] }
 0x466   : > { %9802 = vmatpush1.bf16.msra.mxu0 %v19551_v55  ;;  %7303 = vmatprep.mubr.f32.mxu0 %v19552_v33  ;;  %v19590_v55 = vld [vmem:[#allocation131_spill] sm:$0xff] }
 0x467   : > { %9804 = vmatprep.subr.bf16.mxu0 %v19553_v53  ;;  %4619 = vmatmul.mubr.f32.gmra.mrb[22].mxu1 %v19554_v27  ;;  %v19591_v53 = vld [vmem:[#allocation236_spill] sm:$0xff] }
 0x468   : > { %9542 = vmatpush1.bf16.msra.mxu1 %v19555_v46  ;;  %4625 = vmatprep.mubr.f32.mxu1 %v19556_v57  ;;  %v19592_v46 = vld [vmem:[#allocation142_spill] sm:$0xff] }
 0x469   : > { %7305 = vmatmul.mubr.f32.gmra.mrb[2].mxu0 %v19557_v15  ;;  %9544 = vmatprep.subr.bf16.mxu1 %v19558_v36  ;;  %v19593_v36 = vld [vmem:[#allocation296_spill] sm:$0xff] }
 0x46a   : > { %9806 = vmatpush1.bf16.msra.mxu0 %v19559_v12  ;;  %7311 = vmatprep.mubr.f32.mxu0 %v19560_v18  ;;  %v19594_v12 = vld [vmem:[#allocation217_spill] sm:$0xff] }
 0x46b   : > { %9808 = vmatprep.subr.bf16.mxu0 %v19561_v6  ;;  %4627 = vmatmul.mubr.f32.gmra.mrb[24].mxu1 %v19562_v14  ;;  %v19595_v6 = vld [vmem:[#allocation260_spill] sm:$0xff] }
 0x46c   : > { %9546 = vmatpush1.bf16.msra.mxu1 %v19563_v1  ;;  %4633 = vmatprep.mubr.f32.mxu1 %v19564_v61  ;;  %v19596_v1 = vld [vmem:[#allocation146_spill] sm:$0xff] }
 0x46d   : > { %7313 = vmatmul.mubr.f32.gmra.mrb[4].mxu0 %v19565_v40  ;;  %9548 = vmatprep.subr.bf16.mxu1 %v19566_v26  ;;  %v19597_v26 = vld [vmem:[#allocation61_spill] sm:$0xff] }
 0x46e   : > { %9810 = vmatpush1.bf16.msra.mxu0 %v19567_v17  ;;  %7319 = vmatprep.mubr.f32.mxu0 %v19568_v10  ;;  %v19598_v17 = vld [vmem:[#allocation158_spill] sm:$0xff] }
 0x46f   : > { %9812 = vmatprep.subr.bf16.mxu0 %v19569_v29  ;;  %4635 = vmatmul.mubr.f32.gmra.mrb[26].mxu1 %v19570_v59  ;;  %v19599_v29 = vld [vmem:[#allocation299_spill] sm:$0xff] }
 0x470   : > { %9550 = vmatpush1.bf16.msra.mxu1 %v19571_v0  ;;  %4641 = vmatprep.mubr.f32.mxu1 %v19572_v37  ;;  %v19600_v0 = vld [vmem:[#allocation293_spill] sm:$0xff] }
 0x471   : > { %7321 = vmatmul.mubr.f32.gmra.mrb[6].mxu0 %v19573_v41  ;;  %9552 = vmatprep.subr.bf16.mxu1 %v19574_v20  ;;  %v19601_v20 = vld [vmem:[#allocation166_spill] sm:$0xff] }
 0x472   : > { %9814 = vmatpush1.bf16.msra.mxu0 %v19575_v22  ;;  %7327 = vmatprep.mubr.f32.mxu0 %v19576_v43  ;;  %v19602_v22 = vld [vmem:[#allocation163_spill] sm:$0xff] }
 0x473   : > { %9816 = vmatprep.subr.bf16.mxu0 %v19577_v58  ;;  %4643 = vmatmul.mubr.f32.gmra.mrb[28].mxu1 %v19578_v3  ;;  %v19603_v58 = vld [vmem:[#allocation246_spill] sm:$0xff] }
 0x474   : > { %9554 = vmatpush1.bf16.msra.mxu1 %v19579_v52  ;;  %4649 = vmatprep.mubr.f32.mxu1 %v19580_v49  ;;  %v19604_v52 = vld [vmem:[#allocation172_spill] sm:$0xff] }
 0x475   : > { %7329 = vmatmul.mubr.f32.gmra.mrb[8].mxu0 %v19581_v48  ;;  %9556 = vmatprep.subr.bf16.mxu1 %v19582_v39  ;;  %v19605_v39 = vld [vmem:[#allocation303_spill] sm:$0xff] }
 0x476   : > { %9818 = vmatpush1.bf16.msra.mxu0 %v19583_v32  ;;  %7335 = vmatprep.mubr.f32.mxu0 %v19584_v54  ;;  %v19606_v32 = vld [vmem:[#allocation297_spill] sm:$0xff] }
 0x477   : > { %9820 = vmatprep.subr.bf16.mxu0 %v19585_v28  ;;  %4651 = vmatmul.mubr.f32.gmra.mrb[30].mxu1 %v19586_v23  ;;  %v19607_v28 = vld [vmem:[#allocation267_spill] sm:$0xff] }
 0x478   : > { %9558 = vmatpush1.bf16.msra.mxu1 %v19587_v34  ;;  %4657 = vmatprep.mubr.f32.mxu1 %v19588_v2  ;;  %v19608_v34 = vld [vmem:[#allocation176_spill] sm:$0xff] }
 0x479   : > { %7337 = vmatmul.mubr.f32.gmra.mrb[10].mxu0 %v19589_v44 }
 0x47a   : > { %9822 = vmatpush1.bf16.msra.mxu0 %v19590_v55  ;;  %7343 = vmatprep.mubr.f32.mxu0 %v19591_v53  ;;  %v19609_v55 = vld [vmem:[#allocation250_spill] sm:$0xff] }
 0x47b   : > { %9824 = vmatprep.subr.bf16.mxu0 %v19592_v46  ;;  %4659 = vmatmul.mubr.f32.gmra.mrb[32].mxu1 %v19593_v36  ;;  %v19610_v46 = vld [vmem:[#allocation188_spill] sm:$0xff] }
 0x47c   : > { %4665 = vmatprep.mubr.f32.mxu1 %v19594_v12 }
 0x47d   : > { %7345 = vmatmul.mubr.f32.gmra.mrb[12].mxu0 %v19595_v6 }
 0x47e   : > { %9826 = vmatpush1.bf16.msra.mxu0 %v19596_v1  ;;  %7351 = vmatprep.mubr.f32.mxu0 %v19597_v26  ;;  %v19611_v1 = vld [vmem:[#allocation307_spill] sm:$0xff] }
 0x47f   : > { %9828 = vmatprep.subr.bf16.mxu0 %v19598_v17  ;;  %4667 = vmatmul.mubr.f32.gmra.mrb[34].mxu1 %v19599_v29  ;;  %v19612_v17 = vld [vmem:[#allocation301_spill] sm:$0xff] }
 0x480   : > { %4673 = vmatprep.mubr.f32.mxu1 %v19600_v0 }
 0x481   : > { %7353 = vmatmul.mubr.f32.gmra.mrb[14].mxu0 %v19601_v20 }
 0x482   : > { %9830 = vmatpush1.bf16.msra.mxu0 %v19602_v22  ;;  %7359 = vmatprep.mubr.f32.mxu0 %v19603_v58  ;;  %v19613_v22 = vld [vmem:[#allocation237_spill] sm:$0xff]  ;;  %v19614_v58 = vld [vmem:[#allocation190_spill] sm:$0xff] }
 0x483   : > { %9832 = vmatprep.subr.bf16.mxu0 %v19604_v52  ;;  %4675 = vmatmul.mubr.f32.gmra.mrb[36].mxu1 %v19605_v39  ;;  %v19615_v52 = vld [vmem:[#allocation256_spill] sm:$0xff] }
 0x484   : > { %4681 = vmatprep.mubr.f32.mxu1 %v19606_v32  ;;  %v19616_v39 = vld [vmem:[#allocation196_spill] sm:$0xff] }
 0x485   : > { %7361 = vmatmul.mubr.f32.gmra.mrb[16].mxu0 %v19607_v28  ;;  %v19617_v32 = vld [vmem:[#allocation312_spill] sm:$0xff]  ;;  %v19618_v28 = vld [vmem:[#allocation305_spill] sm:$0xff] }
 0x486   : > { %9834 = vmatpush1.bf16.msra.mxu0 %v19608_v34  ;;  %7367 = vmatprep.mubr.f32.mxu0 %v19609_v55  ;;  %v19619_v34 = vld [vmem:[#allocation42_spill] sm:$0xff]  ;;  %v19620_v55 = vld [vmem:[#allocation199_spill] sm:$0xff] }
 0x487   : > { %9836 = vmatprep.subr.bf16.mxu0 %v19610_v46  ;;  %4683 = vmatmul.mubr.f32.gmra.mrb[38].mxu1 %v19611_v1  ;;  %v19621_v46 = vld [vmem:[#allocation93_spill] sm:$0xff]  ;;  %v19622_v1 = vld [vmem:[#allocation44_spill] sm:$0xff] }
 0x488   : > { %4689 = vmatprep.mubr.f32.mxu1 %v19612_v17  ;;  %v19623_v17 = vld [vmem:[#allocation316_spill] sm:$0xff] }
 0x489   : > { %7369 = vmatmul.mubr.f32.gmra.mrb[18].mxu0 %v19613_v22  ;;  %v19624_v22 = vld [vmem:[#allocation309_spill] sm:$0xff] }
 0x48a   : > { %9838 = vmatpush1.bf16.msra.mxu0 %v19614_v58  ;;  %7375 = vmatprep.mubr.f32.mxu0 %v19615_v52  ;;  %v19625_v58 = vld [vmem:[#allocation86_spill] sm:$0xff] }
 0x48b   : > { %9840 = vmatprep.subr.bf16.mxu0 %v19616_v39  ;;  %4691 = vmatmul.mubr.f32.gmra.mrb[40].mxu1 %v19617_v32  ;;  %v19626_v52 = vld [vmem:[#allocation54_spill] sm:$0xff]  ;;  %v19627_v39 = vld [vmem:[#allocation264_spill] sm:$0xff]  ;;  %v19628_v32 = vld [vmem:[#allocation319_spill] sm:$0xff] }
 0x48c   : > { %4697 = vmatprep.mubr.f32.mxu1 %v19618_v28  ;;  %v19629_v28 = vld [vmem:[#allocation311_spill] sm:$0xff] }
 0x48d   : > { %7377 = vmatmul.mubr.f32.gmra.mrb[20].mxu0 %v19619_v34  ;;  %v19630_v34 = vld [vmem:[#allocation278_spill] sm:$0xff] }
 0x48e   : > { %9842 = vmatpush1.bf16.msra.mxu0 %v19620_v55  ;;  %7383 = vmatprep.mubr.f32.mxu0 %v19621_v46  ;;  %v19631_v55 = vld [vmem:[#allocation270_spill] sm:$0xff]  ;;  %v19632_v46 = vld [vmem:[#allocation323_spill] sm:$0xff] }
 0x48f   : > { %9844 = vmatprep.subr.bf16.mxu0 %v19622_v1  ;;  %4699 = vmatmul.mubr.f32.gmra.mrb[42].mxu1 %v19623_v17  ;;  %v19633_v1 = vld [vmem:[#allocation317_spill] sm:$0xff] }
 0x490   : > { %4705 = vmatprep.mubr.f32.mxu1 %v19624_v22  ;;  %v19634_v17 = vld [vmem:[#allocation81_spill] sm:$0xff]  ;;  %v19635_v22 = vld [vmem:[#allocation48_spill] sm:$0xff] }
 0x491   : > { %7385 = vmatmul.mubr.f32.gmra.mrb[22].mxu0 %v19625_v58  ;;  %v19636_v58 = vld [vmem:[#allocation327_spill] sm:$0xff] }
 0x492   : > { %9846 = vmatpush1.bf16.msra.mxu0 %v19626_v52  ;;  %7391 = vmatprep.mubr.f32.mxu0 %v19627_v39  ;;  %v19637_v52 = vld [vmem:[#allocation321_spill] sm:$0xff]  ;;  %v19638_v39 = vld [vmem:[#allocation284_spill] sm:$0xff] }
 0x493   : > { %4707 = vmatmul.mubr.f32.gmra.mrb[44].mxu1 %v19628_v32  ;;  %v19639_v32 = vld [vmem:[#allocation279_spill] sm:$0xff] }
 0x494   : > { %4713 = vmatprep.mubr.f32.mxu1 %v19629_v28  ;;  %v19640_v28 = vld [vmem:[#allocation332_spill] sm:$0xff] }
 0x495   : > { %7393 = vmatmul.mubr.f32.gmra.mrb[24].mxu0 %v19630_v34  ;;  %v19641_v34 = vld [vmem:[#allocation325_spill] sm:$0xff] }
 0x496   : > { %7399 = vmatprep.mubr.f32.mxu0 %v19631_v55  ;;  %v19642_v55 = vld [vmem:[#allocation132_spill] sm:$0xff] }
 0x497   : > { %4715 = vmatmul.mubr.f32.gmra.mrb[46].mxu1 %v19632_v46  ;;  %v19643_v46 = vld [vmem:[#allocation288_spill] sm:$0xff] }
 0x498   : > { %4721 = vmatprep.mubr.f32.mxu1 %v19633_v1  ;;  %v19644_v1 = vld [vmem:[#allocation337_spill] sm:$0xff] }
 0x499   : > { %7401 = vmatmul.mubr.f32.gmra.mrb[26].mxu0 %v19634_v17  ;;  %v19645_v17 = vld [vmem:[#allocation329_spill] sm:$0xff] }
 0x49a   : > { %7407 = vmatprep.mubr.f32.mxu0 %v19635_v22  ;;  %v19646_v22 = vld [vmem:[#allocation341_spill] sm:$0xff] }
 0x49b   : > { %4723 = vmatmul.mubr.f32.gmra.mrb[48].mxu1 %v19636_v58  ;;  %v19647_v58 = vld [vmem:[#allocation331_spill] sm:$0xff] }
 0x49c   : > { %4729 = vmatprep.mubr.f32.mxu1 %v19637_v52  ;;  %v19648_v52 = vld [vmem:[#allocation342_spill] sm:$0xff] }
 0x49d   : > { %7409 = vmatmul.mubr.f32.gmra.mrb[28].mxu0 %v19638_v39 }
 0x49e   : > { %7415 = vmatprep.mubr.f32.mxu0 %v19639_v32  ;;  %v19649_v32 = vld [vmem:[#allocation347_spill] sm:$0xff] }
 0x49f   : > { %4731 = vmatmul.mubr.f32.gmra.mrb[50].mxu1 %v19640_v28  ;;  %v19650_v28 = vld [vmem:[#allocation336_spill] sm:$0xff] }
 0x4a0   : > { %4737 = vmatprep.mubr.f32.mxu1 %v19641_v34 }
 0x4a1   : > { %7417 = vmatmul.mubr.f32.gmra.mrb[30].mxu0 %v19642_v55 }
 0x4a2   : > { %7423 = vmatprep.mubr.f32.mxu0 %v19643_v46  ;;  %v19651_v46 = vld [vmem:[#allocation351_spill] sm:$0xff] }
 0x4a3   : > { %4739 = vmatmul.mubr.f32.gmra.mrb[52].mxu1 %v19644_v1  ;;  %v19652_v1 = vld [vmem:[#allocation340_spill] sm:$0xff] }
 0x4a4   : > { %4745 = vmatprep.mubr.f32.mxu1 %v19645_v17 }
 0x4a5   : > { %7425 = vmatmul.mubr.f32.gmra.mrb[32].mxu0 %v19646_v22 }
 0x4a6   : > { %7431 = vmatprep.mubr.f32.mxu0 %v19647_v58  ;;  %v19653_v58 = vld [vmem:[#allocation354_spill] sm:$0xff] }
 0x4a7   : > { %4747 = vmatmul.mubr.f32.gmra.mrb[54].mxu1 %v19648_v52  ;;  %v19654_v52 = vld [vmem:[#allocation344_spill] sm:$0xff] }
 0x4a8   : > { %4882 = vmatprep.mubr.f32.mxu1 %v19482_v62  ;;  %v19655_v62 = vld [vmem:[#allocation10_spill] sm:$0xff] }
 0x4a9   : > { %7433 = vmatmul.mubr.f32.gmra.mrb[34].mxu0 %v19649_v32 }
 0x4aa   : > { %7439 = vmatprep.mubr.f32.mxu0 %v19650_v28 }
 0x4ab   : > { %4884 = vmatmul.mubr.f32.vlgmr.msra.gmra.mrb[0].mxu1 %v19486_v63  ;;  %v19656_v63 = vld [vmem:[#allocation350_spill] sm:$0xff] }
 0x4ac   : > { %4890 = vmatprep.mubr.f32.mxu1 %v19488_v9  ;;  %v19657_v9 = vld [vmem:[#allocation360_spill] sm:$0xff] }
 0x4ad   : > { %7441 = vmatmul.mubr.f32.gmra.mrb[36].mxu0 %v19651_v46 }
 0x4ae   : > { %7447 = vmatprep.mubr.f32.mxu0 %v19652_v1 }
 0x4af   : > { %4892 = vmatmul.mubr.f32.gmra.mrb[2].mxu1 %v19492_v11  ;;  %v19658_v11 = vld [vmem:[#allocation355_spill] sm:$0xff] }
 0x4b0   : > { %4898 = vmatprep.mubr.f32.mxu1 %v19494_v25  ;;  %v19659_v25 = vld [vmem:[#allocation25_spill] sm:$0xff] }
 0x4b1   : > { %7449 = vmatmul.mubr.f32.gmra.mrb[38].mxu0 %v19653_v58 }
 0x4b2   : > { %7455 = vmatprep.mubr.f32.mxu0 %v19654_v52 }
 0x4b3   : > { %4900 = vmatmul.mubr.f32.gmra.mrb[4].mxu1 %v19498_v16  ;;  %v19660_v16 = vld [vmem:[#allocation4_spill] sm:$0xff] }
 0x4b4   : > { %4906 = vmatprep.mubr.f32.mxu1 %v19500_v4  ;;  %v19661_v4 = vld [vmem:[#allocation23_spill] sm:$0xff] }
 0x4b5   : > { %7457 = vmatmul.mubr.f32.gmra.mrb[40].mxu0 %v19655_v62 }
 0x4b6   : > { %7463 = vmatprep.mubr.f32.mxu0 %v19656_v63 }
 0x4b7   : > { %4908 = vmatmul.mubr.f32.gmra.mrb[6].mxu1 %v19504_v8  ;;  %v19662_v8 = vld [vmem:[#allocation361_spill] sm:$0xff] }
 0x4b8   : > { %4914 = vmatprep.mubr.f32.mxu1 %v19506_v5  ;;  %v19663_v5 = vld [vmem:[#allocation33_spill] sm:$0xff] }
 0x4b9   : > { %7465 = vmatmul.mubr.f32.gmra.mrb[42].mxu0 %v19657_v9 }
 0x4ba   : > { %7471 = vmatprep.mubr.f32.mxu0 %v19658_v11 }
 0x4bb   : > { %4916 = vmatmul.mubr.f32.gmra.mrb[8].mxu1 %v19510_v19  ;;  %v19664_v19 = vld [vmem:[#allocation364_spill] sm:$0xff] }
 0x4bc   : > { %4922 = vmatprep.mubr.f32.mxu1 %v19512_v35  ;;  %v19665_v35 = vld [vmem:[#allocation371_spill] sm:$0xff] }
 0x4bd   : > { %7473 = vmatmul.mubr.f32.gmra.mrb[44].mxu0 %v19659_v25 }
 0x4be   : > { %7479 = vmatprep.mubr.f32.mxu0 %v19660_v16 }
 0x4bf   : > { %4924 = vmatmul.mubr.f32.gmra.mrb[10].mxu1 %v19516_v60  ;;  %v19666_v60 = vld [vmem:[#allocation367_spill] sm:$0xff] }
 0x4c0   : > { %4930 = vmatprep.mubr.f32.mxu1 %v19518_v51  ;;  %v19667_v51 = vld [vmem:[#allocation63_spill] sm:$0xff] }
 0x4c1   : > { %7481 = vmatmul.mubr.f32.gmra.mrb[46].mxu0 %v19661_v4 }
 0x4c2   : > { %7487 = vmatprep.mubr.f32.mxu0 %v19662_v8 }
 0x4c3   : > { %4932 = vmatmul.mubr.f32.gmra.mrb[12].mxu1 %v19522_v47  ;;  %v19668_v47 = vld [vmem:[#allocation370_spill] sm:$0xff] }
 0x4c4   : > { %4938 = vmatprep.mubr.f32.mxu1 %v19524_v24  ;;  %v19669_v24 = vld [vmem:[#allocation36_spill] sm:$0xff] }
 0x4c5   : > { %7489 = vmatmul.mubr.f32.gmra.mrb[48].mxu0 %v19663_v5 }
 0x4c6   : > { %7495 = vmatprep.mubr.f32.mxu0 %v19664_v19 }
 0x4c7   : > { %4940 = vmatmul.mubr.f32.gmra.mrb[14].mxu1 %v19528_v56  ;;  %v19670_v56 = vld [vmem:[#allocation246_spill] sm:$0xff] }
 0x4c8   : > { %4946 = vmatprep.mubr.f32.mxu1 %v19530_v7  ;;  %v19671_v7 = vld [vmem:[#allocation303_spill] sm:$0xff] }
 0x4c9   : > { %7497 = vmatmul.mubr.f32.gmra.mrb[50].mxu0 %v19665_v35 }
 0x4ca   : > { %7503 = vmatprep.mubr.f32.mxu0 %v19666_v60 }
 0x4cb   : > { %4948 = vmatmul.mubr.f32.gmra.mrb[16].mxu1 %v19534_v45  ;;  %v19672_v45 = vld [vmem:[#allocation297_spill] sm:$0xff] }
 0x4cc   : > { %4954 = vmatprep.mubr.f32.mxu1 %v19536_v13  ;;  %v19673_v13 = vld [vmem:[#allocation267_spill] sm:$0xff] }
 0x4cd   : > { %7505 = vmatmul.mubr.f32.gmra.mrb[52].mxu0 %v19667_v51 }
 0x4ce   : > { %7511 = vmatprep.mubr.f32.mxu0 %v19668_v47 }
 0x4cf   : > { %4956 = vmatmul.mubr.f32.gmra.mrb[18].mxu1 %v19540_v50  ;;  %v19674_v50 = vld [vmem:[#allocation250_spill] sm:$0xff] }
 0x4d0   : > { %4962 = vmatprep.mubr.f32.mxu1 %v19542_v21  ;;  %v19675_v21 = vld [vmem:[#allocation307_spill] sm:$0xff] }
 0x4d1   : > { %7513 = vmatmul.mubr.f32.gmra.mrb[54].mxu0 %v19669_v24 }
 0x4d2   : > { %7632 = vmatprep.mubr.f32.mxu0 %v19545_v30  ;;  %v19676_v30 = vld [vmem:[#allocation301_spill] sm:$0xff] }
 0x4d3   : > { %4964 = vmatmul.mubr.f32.gmra.mrb[20].mxu1 %v19546_v38  ;;  %v19677_v38 = vld [vmem:[#allocation237_spill] sm:$0xff] }
 0x4d4   : > { %4970 = vmatprep.mubr.f32.mxu1 %v19548_v42  ;;  %v19678_v42 = vld [vmem:[#allocation256_spill] sm:$0xff] }
 0x4d5   : > { %7634 = vmatmul.mubr.f32.vlgmr.msra.gmra.mrb[0].mxu0 %v19549_v31  ;;  %v19679_v31 = vld [vmem:[#allocation312_spill] sm:$0xff] }
 0x4d6   : > { %7640 = vmatprep.mubr.f32.mxu0 %v19552_v33  ;;  %v19680_v33 = vld [vmem:[#allocation305_spill] sm:$0xff] }
 0x4d7   : > { %4972 = vmatmul.mubr.f32.gmra.mrb[22].mxu1 %v19554_v27  ;;  %v19681_v27 = vld [vmem:[#allocation42_spill] sm:$0xff] }
 0x4d8   : > { %4978 = vmatprep.mubr.f32.mxu1 %v19556_v57  ;;  %v19682_v57 = vld [vmem:[#allocation93_spill] sm:$0xff] }
 0x4d9   : > { %7642 = vmatmul.mubr.f32.gmra.mrb[2].mxu0 %v19557_v15  ;;  %v19683_v15 = vld [vmem:[#allocation316_spill] sm:$0xff] }
 0x4da   : > { %7648 = vmatprep.mubr.f32.mxu0 %v19560_v18  ;;  %v19684_v18 = vld [vmem:[#allocation309_spill] sm:$0xff] }
 0x4db   : > { %4980 = vmatmul.mubr.f32.gmra.mrb[24].mxu1 %v19562_v14  ;;  %v19685_v14 = vld [vmem:[#allocation86_spill] sm:$0xff] }
 0x4dc   : > { %4986 = vmatprep.mubr.f32.mxu1 %v19564_v61  ;;  %v19686_v61 = vld [vmem:[#allocation264_spill] sm:$0xff] }
 0x4dd   : > { %7650 = vmatmul.mubr.f32.gmra.mrb[4].mxu0 %v19565_v40  ;;  %v19687_v40 = vld [vmem:[#allocation319_spill] sm:$0xff] }
 0x4de   : > { %7656 = vmatprep.mubr.f32.mxu0 %v19568_v10  ;;  %v19688_v10 = vld [vmem:[#allocation311_spill] sm:$0xff] }
 0x4df   : > { %4988 = vmatmul.mubr.f32.gmra.mrb[26].mxu1 %v19570_v59  ;;  %v19689_v59 = vld [vmem:[#allocation278_spill] sm:$0xff] }
 0x4e0   : > { %4994 = vmatprep.mubr.f32.mxu1 %v19572_v37  ;;  %v19690_v37 = vld [vmem:[#allocation270_spill] sm:$0xff] }
 0x4e1   : > { %7658 = vmatmul.mubr.f32.gmra.mrb[6].mxu0 %v19573_v41  ;;  %v19691_v41 = vld [vmem:[#allocation323_spill] sm:$0xff] }
 0x4e2   : > { %7664 = vmatprep.mubr.f32.mxu0 %v19576_v43  ;;  %v19692_v43 = vld [vmem:[#allocation317_spill] sm:$0xff] }
 0x4e3   : > { %4996 = vmatmul.mubr.f32.gmra.mrb[28].mxu1 %v19578_v3  ;;  %v19693_v3 = vld [vmem:[#allocation81_spill] sm:$0xff] }
 0x4e4   : > { %5002 = vmatprep.mubr.f32.mxu1 %v19580_v49  ;;  %v19694_v49 = vld [vmem:[#allocation48_spill] sm:$0xff] }
 0x4e5   : > { %7666 = vmatmul.mubr.f32.gmra.mrb[8].mxu0 %v19581_v48  ;;  %v19695_v48 = vld [vmem:[#allocation327_spill] sm:$0xff] }
 0x4e6   : > { %7672 = vmatprep.mubr.f32.mxu0 %v19584_v54  ;;  %v19696_v54 = vld [vmem:[#allocation321_spill] sm:$0xff] }
 0x4e7   : > { %5004 = vmatmul.mubr.f32.gmra.mrb[30].mxu1 %v19586_v23  ;;  %v19697_v23 = vld [vmem:[#allocation279_spill] sm:$0xff] }
 0x4e8   : > { %5010 = vmatprep.mubr.f32.mxu1 %v19588_v2  ;;  %v19698_v2 = vld [vmem:[#allocation332_spill] sm:$0xff] }
 0x4e9   : > { %7674 = vmatmul.mubr.f32.gmra.mrb[10].mxu0 %v19589_v44  ;;  %v19699_v44 = vld [vmem:[#allocation288_spill] sm:$0xff] }
 0x4ea   : > { %7680 = vmatprep.mubr.f32.mxu0 %v19591_v53  ;;  %v19700_v53 = vld [vmem:[#allocation337_spill] sm:$0xff] }
 0x4eb   : > { %5012 = vmatmul.mubr.f32.gmra.mrb[32].mxu1 %v19593_v36  ;;  %v19701_v36 = vld [vmem:[#allocation331_spill] sm:$0xff] }
 0x4ec   : > { %5018 = vmatprep.mubr.f32.mxu1 %v19594_v12  ;;  %v19702_v12 = vld [vmem:[#allocation342_spill] sm:$0xff] }
 0x4ed   : > { %7682 = vmatmul.mubr.f32.gmra.mrb[12].mxu0 %v19595_v6 }
 0x4ee   : > { %7688 = vmatprep.mubr.f32.mxu0 %v19597_v26 }
 0x4ef   : > { %5020 = vmatmul.mubr.f32.gmra.mrb[34].mxu1 %v19599_v29 }
 0x4f0   : > { %5026 = vmatprep.mubr.f32.mxu1 %v19600_v0 }
 0x4f1   : > { %7690 = vmatmul.mubr.f32.gmra.mrb[14].mxu0 %v19601_v20 }
 0x4f2   : > { %7696 = vmatprep.mubr.f32.mxu0 %v19670_v56 }
 0x4f3   : > { %5028 = vmatmul.mubr.f32.gmra.mrb[36].mxu1 %v19671_v7  ;;  %v1641_v7 = vld [vmem:[#allocation2 + $0x10] sm:$0xff] }
 0x4f4   : > { %5034 = vmatprep.mubr.f32.mxu1 %v19672_v45 }
 0x4f5   : > { %7698 = vmatmul.mubr.f32.gmra.mrb[16].mxu0 %v19673_v13 }
 0x4f6   : > { %7704 = vmatprep.mubr.f32.mxu0 %v19674_v50  ;;  %v1642_v50 = vld [vmem:[#allocation2 + $0x18] sm:$0xff] }
 0x4f7   : > { %5036 = vmatmul.mubr.f32.gmra.mrb[38].mxu1 %v19675_v21 }
 0x4f8   : > { %5042 = vmatprep.mubr.f32.mxu1 %v19676_v30 }
 0x4f9   : > { %7706 = vmatmul.mubr.f32.gmra.mrb[18].mxu0 %v19677_v38 }
 0x4fa   : > { %7712 = vmatprep.mubr.f32.mxu0 %v19678_v42 }
 0x4fb   : > { %5044 = vmatmul.mubr.f32.gmra.mrb[40].mxu1 %v19679_v31 }
 0x4fc   : > { %5050 = vmatprep.mubr.f32.mxu1 %v19680_v33 }
 0x4fd   : > { %7714 = vmatmul.mubr.f32.gmra.mrb[20].mxu0 %v19681_v27  ;;  %v1643_v27 = vld [vmem:[#allocation2 + $0x20] sm:$0xff] }
 0x4fe   : > { %7720 = vmatprep.mubr.f32.mxu0 %v19682_v57 }
 0x4ff   : > { %5052 = vmatmul.mubr.f32.gmra.mrb[42].mxu1 %v19683_v15 }
 0x500   : > { %5058 = vmatprep.mubr.f32.mxu1 %v19684_v18  ;;  %v1644_v18 = vld [vmem:[#allocation2 + $0x28] sm:$0xff] }
 0x501   : > { %7722 = vmatmul.mubr.f32.gmra.mrb[22].mxu0 %v19685_v14 }
 0x502   : > { %7728 = vmatprep.mubr.f32.mxu0 %v19686_v61 }
 0x503   : > { %5060 = vmatmul.mubr.f32.gmra.mrb[44].mxu1 %v19687_v40 }
 0x504   : > { %5066 = vmatprep.mubr.f32.mxu1 %v19688_v10 }
 0x505   : > { %7730 = vmatmul.mubr.f32.gmra.mrb[24].mxu0 %v19689_v59 }
 0x506   : > { %7736 = vmatprep.mubr.f32.mxu0 %v19690_v37 }
 0x507   : > { %5068 = vmatmul.mubr.f32.gmra.mrb[46].mxu1 %v19691_v41  ;;  %v1645_v41 = vld [vmem:[#allocation2 + $0x30] sm:$0xff] }
 0x508   : > { %5074 = vmatprep.mubr.f32.mxu1 %v19692_v43 }
 0x509   : > { %7738 = vmatmul.mubr.f32.gmra.mrb[26].mxu0 %v19693_v3 }
 0x50a   : > { %7744 = vmatprep.mubr.f32.mxu0 %v19694_v49  ;;  %v1646_v49 = vld [vmem:[#allocation2 + $0x38] sm:$0xff] }
 0x50b   : > { %5076 = vmatmul.mubr.f32.gmra.mrb[48].mxu1 %v19695_v48 }
 0x50c   : > { %5082 = vmatprep.mubr.f32.mxu1 %v19696_v54 }
 0x50d   : > { %7746 = vmatmul.mubr.f32.gmra.mrb[28].mxu0 %v19638_v39 }
 0x50e   : > { %7752 = vmatprep.mubr.f32.mxu0 %v19697_v23 }
 0x50f   : > { %5084 = vmatmul.mubr.f32.gmra.mrb[50].mxu1 %v19698_v2 }
 0x510   : > { %5090 = vmatprep.mubr.f32.mxu1 %v19641_v34 }
 0x511   : > { %7754 = vmatmul.mubr.f32.gmra.mrb[30].mxu0 %v19642_v55 }
 0x512   : > { %7760 = vmatprep.mubr.f32.mxu0 %v19699_v44 }
 0x513   : > { %5092 = vmatmul.mubr.f32.gmra.mrb[52].mxu1 %v19700_v53 }
 0x514   : > { %5098 = vmatprep.mubr.f32.mxu1 %v19645_v17 }
 0x515   : > { %7762 = vmatmul.mubr.f32.gmra.mrb[32].mxu0 %v19646_v22 }
 0x516   : > { %7768 = vmatprep.mubr.f32.mxu0 %v19701_v36  ;;  %v1647_v36 = vld [vmem:[#allocation2 + $0x40] sm:$0xff] }
 0x517   : > { %5100 = vmatmul.mubr.f32.gmra.mrb[54].mxu1 %v19702_v12 }
 0x519   : > { %7770 = vmatmul.mubr.f32.gmra.mrb[34].mxu0 %v19649_v32 }
 0x51a   : > { %7776 = vmatprep.mubr.f32.mxu0 %v19650_v28 }
 0x51d   : > { %7778 = vmatmul.mubr.f32.gmra.mrb[36].mxu0 %v19651_v46 }
 0x51e   : > { %7784 = vmatprep.mubr.f32.mxu0 %v19652_v1 }
 0x521   : > { %7786 = vmatmul.mubr.f32.gmra.mrb[38].mxu0 %v19653_v58 }
 0x522   : > { %7792 = vmatprep.mubr.f32.mxu0 %v19654_v52 }
 0x525   : > { %7794 = vmatmul.mubr.f32.gmra.mrb[40].mxu0 %v19655_v62 }
 0x526   : > { %7800 = vmatprep.mubr.f32.mxu0 %v19656_v63 }
 0x529   : > { %7802 = vmatmul.mubr.f32.gmra.mrb[42].mxu0 %v19657_v9 }
 0x52a   : > { %7808 = vmatprep.mubr.f32.mxu0 %v19658_v11 }
 0x52d   : > { %7810 = vmatmul.mubr.f32.gmra.mrb[44].mxu0 %v19659_v25 }
 0x52e   : > { %7816 = vmatprep.mubr.f32.mxu0 %v19660_v16 }
 0x531   : > { %7818 = vmatmul.mubr.f32.gmra.mrb[46].mxu0 %v19661_v4  ;;  %v1639_v4 = vld [vmem:[#allocation2] sm:$0xff] }
 0x532   : > { %7824 = vmatprep.mubr.f32.mxu0 %v19662_v8 }
 0x535   : > { %7826 = vmatmul.mubr.f32.gmra.mrb[48].mxu0 %v19663_v5 }
 0x536   : > { %7832 = vmatprep.mubr.f32.mxu0 %v19664_v19  ;;  %v1640_v19 = vld [vmem:[#allocation2 + $0x8] sm:$0xff] }
 0x539   : > { %7834 = vmatmul.mubr.f32.gmra.mrb[50].mxu0 %v19665_v35 }
 0x53a   : > { %7840 = vmatprep.mubr.f32.mxu0 %v19666_v60 }
 0x53d   : > { %7842 = vmatmul.mubr.f32.gmra.mrb[52].mxu0 %v19667_v51 }
 0x53e   : > { %7848 = vmatprep.mubr.f32.mxu0 %v19668_v47 }
 0x541   : > { %7850 = vmatmul.mubr.f32.gmra.mrb[54].mxu0 %v19669_v24 }
 0x57e   : > { %v4885_v6 = vpop.f32.mrb[0].mxu1 }
 0x57f   : > { %v4887_v26 = vpop.f32.mrb[1].mxu1 }
 0x582   : > { %v4893_v29 = vpop.f32.mrb[2].mxu1 }
 0x583   : > { %v4895_v0 = vpop.f32.mrb[3].mxu1 }
 0x586   : > { %v4901_v20 = vpop.f32.mrb[4].mxu1 }
 0x587   : > { %v4903_v32 = vpop.f32.mrb[5].mxu1 }
 0x58a   : > { %v4909_v28 = vpop.f32.mrb[6].mxu1 }
 0x58b   : > { %v4911_v17 = vpop.f32.mrb[7].mxu1 }
 0x58e   : > { %v15626_v22 = vpop.f32.mrb[8].mxu1 }
 0x58f   : > { %v15628_v34 = vpop.f32.mrb[9].mxu1 }
 0x592   : > { %v15630_v46 = vpop.f32.mrb[10].mxu1 }
 0x593   : > { %v15632_v58 = vpop.f32.mrb[11].mxu1 }
 0x596   : > { %v15634_v39 = vpop.f32.mrb[12].mxu1 }
 0x597   : > { %v15636_v55 = vpop.f32.mrb[13].mxu1 }
 0x59a   : > { %v15638_v1 = vpop.f32.mrb[14].mxu1 }
 0x59b   : > { %v15640_v52 = vpop.f32.mrb[15].mxu1 }
 0x59e   : > { %v15642_v62 = vpop.f32.mrb[16].mxu1 }
 0x59f   : > { %v15644_v63 = vpop.f32.mrb[17].mxu1 }
 0x5a2   : > { %v15646_v9 = vpop.f32.mrb[18].mxu1 }
 0x5a3   : > { %v15648_v11 = vpop.f32.mrb[19].mxu1 }
 0x5a6   : > { %v15650_v25 = vpop.f32.mrb[20].mxu1 }
 0x5a7   : > { %v15652_v16 = vpop.f32.mrb[21].mxu1 }
 0x5a8   : > { %v7635_v8 = vpop.f32.mrb[0].mxu0 }
 0x5a9   : > { %v9847_v5 = vadd.f32 %v7635_v8, %v4885_v6  ;;  %v7637_v35 = vpop.f32.mrb[1].mxu0 }
 0x5aa   : > { %v9848_v60 = vadd.f32 %v7637_v35, %v4887_v26  ;;  %v15654_v51 = vpop.f32.mrb[22].mxu1  ;;  %v1648_v26 = vld [vmem:[#allocation2 + $0x48] sm:$0xff] }
 0x5ab   : > { %v7856_v47 = vadd.f32 %v9847_v5, %v1639_v4  ;;  %v15656_v24 = vpop.f32.mrb[23].mxu1  ;;  %v1649_v4 = vld [vmem:[#allocation2 + $0x50] sm:$0xff] }
 0x5ac   : > { %v7857_v56 = vadd.f32 %v9848_v60, %v1640_v19  ;;  %v7643_v45 = vpop.f32.mrb[2].mxu0  ;;  %v1650_v19 = vld [vmem:[#allocation2 + $0x58] sm:$0xff] }
 0x5ad   : > { %7912 = vst [vmem:[#allocation2] sm:$0xff] %v7856_v47  ;;  %v9849_v13 = vadd.f32 %v7643_v45, %v4893_v29  ;;  %v7645_v21 = vpop.f32.mrb[3].mxu0 }
 0x5ae   : > { %7914 = vst.msk [vmem:[#allocation2 + $0x8] sm:$0xff] %vm7913_vm3, %v7857_v56  ;;  %v9850_v30 = vadd.f32 %v7645_v21, %v4895_v0  ;;  %v15659_v38 = vpop.f32.mrb[24].mxu1 }
 0x5af   : > { %v7858_v42 = vadd.f32 %v9849_v13, %v1641_v7  ;;  %v15661_v31 = vpop.f32.mrb[25].mxu1  ;;  %v1651_v7 = vld [vmem:[#allocation2 + $0x60] sm:$0xff] }
 0x5b0   : > { %v7859_v33 = vadd.f32 %v9850_v30, %v1642_v50  ;;  %v7651_v57 = vpop.f32.mrb[4].mxu0  ;;  %v1652_v50 = vld [vmem:[#allocation2 + $0x68] sm:$0xff] }
 0x5b1   : > { %7915 = vst [vmem:[#allocation2 + $0x10] sm:$0xff] %v7858_v42  ;;  %v9851_v15 = vadd.f32 %v7651_v57, %v4901_v20  ;;  %v7653_v14 = vpop.f32.mrb[5].mxu0 }
 0x5b2   : > { %7916 = vst.msk [vmem:[#allocation2 + $0x18] sm:$0xff] %vm7913_vm3, %v7859_v33  ;;  %v9852_v61 = vadd.f32 %v7653_v14, %v4903_v32  ;;  %v15664_v40 = vpop.f32.mrb[26].mxu1 }
 0x5b3   : > { %v7860_v10 = vadd.f32 %v9851_v15, %v1643_v27  ;;  %v15666_v59 = vpop.f32.mrb[27].mxu1  ;;  %v1653_v27 = vld [vmem:[#allocation2 + $0x70] sm:$0xff] }
 0x5b4   : > { %v7861_v37 = vadd.f32 %v9852_v61, %v1644_v18  ;;  %v7659_v43 = vpop.f32.mrb[6].mxu0  ;;  %v1654_v18 = vld [vmem:[#allocation2 + $0x78] sm:$0xff] }
 0x5b5   : > { %7917 = vst [vmem:[#allocation2 + $0x20] sm:$0xff] %v7860_v10  ;;  %v9853_v3 = vadd.f32 %v7659_v43, %v4909_v28  ;;  %v7661_v48 = vpop.f32.mrb[7].mxu0 }
 0x5b6   : > { %7918 = vst.msk [vmem:[#allocation2 + $0x28] sm:$0xff] %vm7913_vm3, %v7861_v37  ;;  %v9854_v54 = vadd.f32 %v7661_v48, %v4911_v17  ;;  %v15669_v23 = vpop.f32.mrb[28].mxu1 }
 0x5b7   : > { %v7862_v2 = vadd.f32 %v9853_v3, %v1645_v41  ;;  %v15671_v44 = vpop.f32.mrb[29].mxu1  ;;  %v1655_v41 = vld [vmem:[#allocation2 + $0x80] sm:$0xff] }
 0x5b8   : > { %v7863_v53 = vadd.f32 %v9854_v54, %v1646_v49  ;;  %v7667_v12 = vpop.f32.mrb[8].mxu0  ;;  %v1656_v49 = vld [vmem:[#allocation2 + $0x88] sm:$0xff] }
 0x5b9   : > { %7919 = vst [vmem:[#allocation2 + $0x30] sm:$0xff] %v7862_v2  ;;  %v9855_v6 = vadd.f32 %v7667_v12, %v15626_v22  ;;  %v7669_v29 = vpop.f32.mrb[9].mxu0 }
 0x5ba   : > { %7920 = vst.msk [vmem:[#allocation2 + $0x38] sm:$0xff] %vm7913_vm3, %v7863_v53  ;;  %v9856_v0 = vadd.f32 %v7669_v29, %v15628_v34  ;;  %v15676_v20 = vpop.f32.mrb[30].mxu1 }
 0x5bb   : > { %v7864_v32 = vadd.f32 %v9855_v6, %v1647_v36  ;;  %v15678_v28 = vpop.f32.mrb[31].mxu1  ;;  %v1657_v36 = vld [vmem:[#allocation2 + $0x90] sm:$0xff] }
 0x5bc   : > { %v7865_v17 = vadd.f32 %v9856_v0, %v1648_v26  ;;  %v7675_v8 = vpop.f32.mrb[10].mxu0  ;;  %v1658_v26 = vld [vmem:[#allocation2 + $0x98] sm:$0xff] }
 0x5bd   : > { %7921 = vst [vmem:[#allocation2 + $0x40] sm:$0xff] %v7864_v32  ;;  %v9857_v5 = vadd.f32 %v7675_v8, %v15630_v46  ;;  %v7677_v35 = vpop.f32.mrb[11].mxu0 }
 0x5be   : > { %7922 = vst.msk [vmem:[#allocation2 + $0x48] sm:$0xff] %vm7913_vm3, %v7865_v17  ;;  %v9858_v22 = vadd.f32 %v7677_v35, %v15632_v58  ;;  %v15683_v60 = vpop.f32.mrb[32].mxu1 }
 0x5bf   : > { %v7866_v34 = vadd.f32 %v9857_v5, %v1649_v4  ;;  %v15685_v47 = vpop.f32.mrb[33].mxu1  ;;  %v1659_v4 = vld [vmem:[#allocation2 + $0xa0] sm:$0xff] }
 0x5c0   : > { %v7867_v56 = vadd.f32 %v9858_v22, %v1650_v19  ;;  %v7683_v45 = vpop.f32.mrb[12].mxu0  ;;  %v1660_v19 = vld [vmem:[#allocation2 + $0xa8] sm:$0xff] }
 0x5c1   : > { %7923 = vst [vmem:[#allocation2 + $0x50] sm:$0xff] %v7866_v34  ;;  %v9859_v13 = vadd.f32 %v7683_v45, %v15634_v39  ;;  %v7685_v21 = vpop.f32.mrb[13].mxu0 }
 0x5c2   : > { %7924 = vst.msk [vmem:[#allocation2 + $0x58] sm:$0xff] %vm7913_vm3, %v7867_v56  ;;  %v9860_v46 = vadd.f32 %v7685_v21, %v15636_v55  ;;  %v15690_v30 = vpop.f32.mrb[34].mxu1 }
 0x5c3   : > { %v7868_v58 = vadd.f32 %v9859_v13, %v1651_v7  ;;  %v15692_v42 = vpop.f32.mrb[35].mxu1  ;;  %v1661_v7 = vld [vmem:[#allocation2 + $0xb0] sm:$0xff] }
 0x5c4   : > { %v7869_v33 = vadd.f32 %v9860_v46, %v1652_v50  ;;  %v7691_v57 = vpop.f32.mrb[14].mxu0  ;;  %v1662_v50 = vld [vmem:[#allocation2 + $0xb8] sm:$0xff] }
 0x5c5   : > { %7925 = vst [vmem:[#allocation2 + $0x60] sm:$0xff] %v7868_v58  ;;  %v9861_v15 = vadd.f32 %v7691_v57, %v15638_v1  ;;  %v7693_v14 = vpop.f32.mrb[15].mxu0 }
 0x5c6   : > { %7926 = vst.msk [vmem:[#allocation2 + $0x68] sm:$0xff] %vm7913_vm3, %v7869_v33  ;;  %v9862_v39 = vadd.f32 %v7693_v14, %v15640_v52  ;;  %v15697_v61 = vpop.f32.mrb[36].mxu1 }
 0x5c7   : > { %v7870_v55 = vadd.f32 %v9861_v15, %v1653_v27  ;;  %v15699_v10 = vpop.f32.mrb[37].mxu1  ;;  %v1663_v27 = vld [vmem:[#allocation2 + $0xc0] sm:$0xff] }
 0x5c8   : > { %v7871_v37 = vadd.f32 %v9862_v39, %v1654_v18  ;;  %v7699_v43 = vpop.f32.mrb[16].mxu0  ;;  %v1664_v18 = vld [vmem:[#allocation2 + $0xc8] sm:$0xff] }
 0x5c9   : > { %7927 = vst [vmem:[#allocation2 + $0x70] sm:$0xff] %v7870_v55  ;;  %v9863_v3 = vadd.f32 %v7699_v43, %v15642_v62  ;;  %v7701_v48 = vpop.f32.mrb[17].mxu0 }
 0x5ca   : > { %7928 = vst.msk [vmem:[#allocation2 + $0x78] sm:$0xff] %vm7913_vm3, %v7871_v37  ;;  %v9864_v1 = vadd.f32 %v7701_v48, %v15644_v63  ;;  %v15704_v54 = vpop.f32.mrb[38].mxu1 }
 0x5cb   : > { %v7872_v52 = vadd.f32 %v9863_v3, %v1655_v41  ;;  %v15706_v2 = vpop.f32.mrb[39].mxu1  ;;  %v1665_v41 = vld [vmem:[#allocation2 + $0xd0] sm:$0xff] }
 0x5cc   : > { %v7873_v53 = vadd.f32 %v9864_v1, %v1656_v49  ;;  %v7707_v12 = vpop.f32.mrb[18].mxu0  ;;  %v1666_v49 = vld [vmem:[#allocation2 + $0xd8] sm:$0xff] }
 0x5cd   : > { %7929 = vst [vmem:[#allocation2 + $0x80] sm:$0xff] %v7872_v52  ;;  %v9865_v6 = vadd.f32 %v7707_v12, %v15646_v9  ;;  %v7709_v29 = vpop.f32.mrb[19].mxu0 }
 0x5ce   : > { %7930 = vst.msk [vmem:[#allocation2 + $0x88] sm:$0xff] %vm7913_vm3, %v7873_v53  ;;  %v9866_v62 = vadd.f32 %v7709_v29, %v15648_v11  ;;  %v15711_v0 = vpop.f32.mrb[40].mxu1 }
 0x5cf   : > { %v7874_v63 = vadd.f32 %v9865_v6, %v1657_v36  ;;  %v15713_v32 = vpop.f32.mrb[41].mxu1  ;;  %v1667_v36 = vld [vmem:[#allocation2 + $0xe0] sm:$0xff] }
 0x5d0   : > { %v7875_v17 = vadd.f32 %v9866_v62, %v1658_v26  ;;  %v7715_v8 = vpop.f32.mrb[20].mxu0  ;;  %v1668_v26 = vld [vmem:[#allocation2 + $0xe8] sm:$0xff] }
 0x5d1   : > { %7931 = vst [vmem:[#allocation2 + $0x90] sm:$0xff] %v7874_v63  ;;  %v9867_v5 = vadd.f32 %v7715_v8, %v15650_v25  ;;  %v7717_v35 = vpop.f32.mrb[21].mxu0 }
 0x5d2   : > { %7932 = vst.msk [vmem:[#allocation2 + $0x98] sm:$0xff] %vm7913_vm3, %v7875_v17  ;;  %v9868_v9 = vadd.f32 %v7717_v35, %v15652_v16  ;;  %v15718_v22 = vpop.f32.mrb[42].mxu1 }
 0x5d3   : > { %v7876_v11 = vadd.f32 %v9867_v5, %v1659_v4  ;;  %v15720_v34 = vpop.f32.mrb[43].mxu1  ;;  %v1669_v4 = vld [vmem:[#allocation2 + $0xf0] sm:$0xff] }
 0x5d4   : > { %v7877_v56 = vadd.f32 %v9868_v9, %v1660_v19  ;;  %v7723_v45 = vpop.f32.mrb[22].mxu0  ;;  %v1670_v19 = vld [vmem:[#allocation2 + $0xf8] sm:$0xff] }
 0x5d5   : > { %7933 = vst [vmem:[#allocation2 + $0xa0] sm:$0xff] %v7876_v11  ;;  %v9869_v13 = vadd.f32 %v7723_v45, %v15654_v51  ;;  %v7725_v21 = vpop.f32.mrb[23].mxu0 }
 0x5d6   : > { %7934 = vst.msk [vmem:[#allocation2 + $0xa8] sm:$0xff] %vm7913_vm3, %v7877_v56  ;;  %v9870_v25 = vadd.f32 %v7725_v21, %v15656_v24  ;;  %v15725_v46 = vpop.f32.mrb[44].mxu1 }
 0x5d7   : > { %v7878_v16 = vadd.f32 %v9869_v13, %v1661_v7  ;;  %v15727_v58 = vpop.f32.mrb[45].mxu1  ;;  %v1671_v7 = vld [vmem:[#allocation2 + $0x100] sm:$0xff] }
 0x5d8   : > { %v7879_v33 = vadd.f32 %v9870_v25, %v1662_v50  ;;  %v7731_v57 = vpop.f32.mrb[24].mxu0  ;;  %v1672_v50 = vld [vmem:[#allocation2 + $0x108] sm:$0xff] }
 0x5d9   : > { %7935 = vst [vmem:[#allocation2 + $0xb0] sm:$0xff] %v7878_v16  ;;  %v9871_v15 = vadd.f32 %v7731_v57, %v15659_v38  ;;  %v7733_v14 = vpop.f32.mrb[25].mxu0 }
 0x5da   : > { %7936 = vst.msk [vmem:[#allocation2 + $0xb8] sm:$0xff] %vm7913_vm3, %v7879_v33  ;;  %v9872_v51 = vadd.f32 %v7733_v14, %v15661_v31  ;;  %v15732_v39 = vpop.f32.mrb[46].mxu1 }
 0x5db   : > { %v7880_v24 = vadd.f32 %v9871_v15, %v1663_v27  ;;  %v15734_v55 = vpop.f32.mrb[47].mxu1  ;;  %v1673_v27 = vld [vmem:[#allocation2 + $0x110] sm:$0xff] }
 0x5dc   : > { %v7881_v37 = vadd.f32 %v9872_v51, %v1664_v18  ;;  %v7739_v43 = vpop.f32.mrb[26].mxu0  ;;  %v1674_v18 = vld [vmem:[#allocation2 + $0x118] sm:$0xff] }
 0x5dd   : > { %7937 = vst [vmem:[#allocation2 + $0xc0] sm:$0xff] %v7880_v24  ;;  %v9873_v3 = vadd.f32 %v7739_v43, %v15664_v40  ;;  %v7741_v48 = vpop.f32.mrb[27].mxu0  ;;  %v1676_v43 = vld [vmem:[#allocation2 + $0x128] sm:$0xff] }
 0x5de   : > { %7938 = vst.msk [vmem:[#allocation2 + $0xc8] sm:$0xff] %vm7913_vm3, %v7881_v37  ;;  %v9874_v38 = vadd.f32 %v7741_v48, %v15666_v59  ;;  %v15739_v1 = vpop.f32.mrb[48].mxu1 }
 0x5df   : > { %v7882_v31 = vadd.f32 %v9873_v3, %v1665_v41  ;;  %v15741_v52 = vpop.f32.mrb[49].mxu1 }
 0x5e0   : > { %v7883_v53 = vadd.f32 %v9874_v38, %v1666_v49  ;;  %v7747_v12 = vpop.f32.mrb[28].mxu0  ;;  %v1677_v38 = vld [vmem:[#allocation2 + $0x130] sm:$0xff] }
 0x5e1   : > { %7939 = vst [vmem:[#allocation2 + $0xd0] sm:$0xff] %v7882_v31  ;;  %v9875_v6 = vadd.f32 %v7747_v12, %v15669_v23  ;;  %v7749_v29 = vpop.f32.mrb[29].mxu0 }
 0x5e2   : > { %7940 = vst.msk [vmem:[#allocation2 + $0xd8] sm:$0xff] %vm7913_vm3, %v7883_v53  ;;  %v9876_v40 = vadd.f32 %v7749_v29, %v15671_v44  ;;  %v15746_v62 = vpop.f32.mrb[50].mxu1  ;;  %v1678_v53 = vld [vmem:[#allocation2 + $0x138] sm:$0xff] }
 0x5e3   : > { %v7884_v59 = vadd.f32 %v9875_v6, %v1667_v36  ;;  %v15748_v63 = vpop.f32.mrb[51].mxu1 }
 0x5e4   : > { %v7885_v17 = vadd.f32 %v9876_v40, %v1668_v26  ;;  %v7755_v8 = vpop.f32.mrb[30].mxu0  ;;  %v1679_v26 = vld [vmem:[#allocation2 + $0x140] sm:$0xff]  ;;  %v1680_v40 = vld [vmem:[#allocation2 + $0x148] sm:$0xff] }
 0x5e5   : > { %7941 = vst [vmem:[#allocation2 + $0xe0] sm:$0xff] %v7884_v59  ;;  %v9877_v5 = vadd.f32 %v7755_v8, %v15676_v20  ;;  %v7757_v35 = vpop.f32.mrb[31].mxu0  ;;  %v1681_v8 = vld [vmem:[#allocation2 + $0x150] sm:$0xff] }
 0x5e6   : > { %7942 = vst.msk [vmem:[#allocation2 + $0xe8] sm:$0xff] %vm7913_vm3, %v7885_v17  ;;  %v9878_v23 = vadd.f32 %v7757_v35, %v15678_v28  ;;  %v15753_v9 = vpop.f32.mrb[52].mxu1 }
 0x5e7   : > { %v7886_v44 = vadd.f32 %v9877_v5, %v1669_v4  ;;  %v15755_v11 = vpop.f32.mrb[53].mxu1 }
 0x5e8   : > { %v7887_v56 = vadd.f32 %v9878_v23, %v1670_v19  ;;  %v7763_v45 = vpop.f32.mrb[32].mxu0  ;;  %v1682_v19 = vld [vmem:[#allocation2 + $0x158] sm:$0xff] }
 0x5e9   : > { %7943 = vst [vmem:[#allocation2 + $0xf0] sm:$0xff] %v7886_v44  ;;  %v9879_v13 = vadd.f32 %v7763_v45, %v15683_v60  ;;  %v7765_v21 = vpop.f32.mrb[33].mxu0  ;;  %v1684_v45 = vld [vmem:[#allocation2 + $0x168] sm:$0xff] }
 0x5ea   : > { %7944 = vst.msk [vmem:[#allocation2 + $0xf8] sm:$0xff] %vm7913_vm3, %v7887_v56  ;;  %v9880_v20 = vadd.f32 %v7765_v21, %v15685_v47  ;;  %v15760_v25 = vpop.f32.mrb[54].mxu1  ;;  %v1675_v47 = vld [vmem:[#allocation2 + $0x120] sm:$0xff] }
 0x5eb   : > { %v7888_v28 = vadd.f32 %v9879_v13, %v1671_v7  ;;  %v15762_v16 = vpop.f32.mrb[55].mxu1  ;;  %v1683_v56 = vld [vmem:[#allocation2 + $0x160] sm:$0xff] }
 0x5ec   : > { %v7889_v33 = vadd.f32 %v9880_v20, %v1672_v50  ;;  %v7771_v57 = vpop.f32.mrb[34].mxu0  ;;  %v1685_v20 = vld [vmem:[#allocation2 + $0x170] sm:$0xff] }
 0x5ed   : > { %7945 = vst [vmem:[#allocation2 + $0x100] sm:$0xff] %v7888_v28  ;;  %v9881_v15 = vadd.f32 %v7771_v57, %v15690_v30  ;;  %v7773_v14 = vpop.f32.mrb[35].mxu0 }
 0x5ee   : > { %7946 = vst.msk [vmem:[#allocation2 + $0x108] sm:$0xff] %vm7913_vm3, %v7889_v33  ;;  %v9882_v60 = vadd.f32 %v7773_v14, %v15692_v42  ;;  %v1686_v33 = vld [vmem:[#allocation2 + $0x178] sm:$0xff] }
 0x5ef   : > { %v7890_v51 = vadd.f32 %v9881_v15, %v1673_v27 }
 0x5f0   : > { %v7891_v24 = vadd.f32 %v9882_v60, %v1674_v18  ;;  %v7779_v37 = vpop.f32.mrb[36].mxu0  ;;  %v1687_v18 = vld [vmem:[#allocation2 + $0x180] sm:$0xff]  ;;  %v1688_v60 = vld [vmem:[#allocation2 + $0x188] sm:$0xff] }
 0x5f1   : > { %7947 = vst [vmem:[#allocation2 + $0x110] sm:$0xff] %v7890_v51  ;;  %v9883_v41 = vadd.f32 %v7779_v37, %v15697_v61  ;;  %v7781_v3 = vpop.f32.mrb[37].mxu0  ;;  %v1689_v37 = vld [vmem:[#allocation2 + $0x190] sm:$0xff] }
 0x5f2   : > { %7948 = vst.msk [vmem:[#allocation2 + $0x118] sm:$0xff] %vm7913_vm3, %v7891_v24  ;;  %v9884_v49 = vadd.f32 %v7781_v3, %v15699_v10 }
 0x5f3   : > { %v7892_v30 = vadd.f32 %v9883_v41, %v1675_v47 }
 0x5f4   : > { %v7893_v48 = vadd.f32 %v9884_v49, %v1676_v43  ;;  %v7787_v31 = vpop.f32.mrb[38].mxu0  ;;  %v1690_v43 = vld [vmem:[#allocation2 + $0x198] sm:$0xff] }
 0x5f5   : > { %7949 = vst [vmem:[#allocation2 + $0x120] sm:$0xff] %v7892_v30  ;;  %v9885_v42 = vadd.f32 %v7787_v31, %v15704_v54  ;;  %v7789_v36 = vpop.f32.mrb[39].mxu0  ;;  %v1692_v31 = vld [vmem:[#allocation2 + $0x1a8] sm:$0xff] }
 0x5f6   : > { %7950 = vst.msk [vmem:[#allocation2 + $0x128] sm:$0xff] %vm7913_vm3, %v7893_v48  ;;  %v9886_v12 = vadd.f32 %v7789_v36, %v15706_v2  ;;  %v1691_v48 = vld [vmem:[#allocation2 + $0x1a0] sm:$0xff] }
 0x5f7   : > { %v7894_v61 = vadd.f32 %v9885_v42, %v1677_v38 }
 0x5f8   : > { %v7895_v6 = vadd.f32 %v9886_v12, %v1678_v53  ;;  %v7795_v29 = vpop.f32.mrb[40].mxu0  ;;  %v1693_v12 = vld [vmem:[#allocation2 + $0x1b0] sm:$0xff] }
 0x5f9   : > { %7951 = vst [vmem:[#allocation2 + $0x130] sm:$0xff] %v7894_v61  ;;  %v9887_v10 = vadd.f32 %v7795_v29, %v15711_v0  ;;  %v7797_v59 = vpop.f32.mrb[41].mxu0 }
 0x5fa   : > { %7952 = vst.msk [vmem:[#allocation2 + $0x138] sm:$0xff] %vm7913_vm3, %v7895_v6  ;;  %v9888_v17 = vadd.f32 %v7797_v59, %v15713_v32  ;;  %v1694_v6 = vld [vmem:[#allocation2 + $0x1b8] sm:$0xff] }
 0x5fb   : > { %v7896_v54 = vadd.f32 %v9887_v10, %v1679_v26 }
 0x5fc   : > { %v7897_v4 = vadd.f32 %v9888_v17, %v1680_v40  ;;  %v7803_v5 = vpop.f32.mrb[42].mxu0 }
 0x5fd   : > { %7953 = vst [vmem:[#allocation2 + $0x140] sm:$0xff] %v7896_v54  ;;  %v9889_v2 = vadd.f32 %v7803_v5, %v15718_v22  ;;  %v7805_v35 = vpop.f32.mrb[43].mxu0 }
 0x5fe   : > { %7954 = vst.msk [vmem:[#allocation2 + $0x148] sm:$0xff] %vm7913_vm3, %v7897_v4  ;;  %v9890_v23 = vadd.f32 %v7805_v35, %v15720_v34 }
 0x5ff   : > { %v7898_v0 = vadd.f32 %v9889_v2, %v1681_v8 }
 0x600   : > { %v7899_v44 = vadd.f32 %v9890_v23, %v1682_v19  ;;  %v7811_v7 = vpop.f32.mrb[44].mxu0 }
 0x601   : > { %7955 = vst [vmem:[#allocation2 + $0x150] sm:$0xff] %v7898_v0  ;;  %v9891_v32 = vadd.f32 %v7811_v7, %v15725_v46  ;;  %v7813_v13 = vpop.f32.mrb[45].mxu0 }
 0x602   : > { %7956 = vst.msk [vmem:[#allocation2 + $0x158] sm:$0xff] %vm7913_vm3, %v7899_v44  ;;  %v9892_v50 = vadd.f32 %v7813_v13, %v15727_v58 }
 0x603   : > { %v7900_v22 = vadd.f32 %v9891_v32, %v1683_v56 }
 0x604   : > { %v7901_v21 = vadd.f32 %v9892_v50, %v1684_v45  ;;  %v7819_v28 = vpop.f32.mrb[46].mxu0 }
 0x605   : > { %7957 = vst [vmem:[#allocation2 + $0x160] sm:$0xff] %v7900_v22  ;;  %v9893_v34 = vadd.f32 %v7819_v28, %v15732_v39  ;;  %v7821_v27 = vpop.f32.mrb[47].mxu0 }
 0x606   : > { %7958 = vst.msk [vmem:[#allocation2 + $0x168] sm:$0xff] %vm7913_vm3, %v7901_v21  ;;  %v9894_v57 = vadd.f32 %v7821_v27, %v15734_v55 }
 0x607   : > { %v7902_v46 = vadd.f32 %v9893_v34, %v1685_v20 }
 0x608   : > { %v7903_v15 = vadd.f32 %v9894_v57, %v1686_v33  ;;  %v7827_v14 = vpop.f32.mrb[48].mxu0 }
 0x609   : > { %7959 = vst [vmem:[#allocation2 + $0x170] sm:$0xff] %v7902_v46  ;;  %v9895_v58 = vadd.f32 %v7827_v14, %v15739_v1  ;;  %v7829_v51 = vpop.f32.mrb[49].mxu0 }
 0x60a   : > { %7960 = vst.msk [vmem:[#allocation2 + $0x178] sm:$0xff] %vm7913_vm3, %v7903_v15  ;;  %v9896_v24 = vadd.f32 %v7829_v51, %v15741_v52 }
 0x60b   : > { %v7904_v39 = vadd.f32 %v9895_v58, %v1687_v18 }
 0x60c   : > { %v7905_v47 = vadd.f32 %v9896_v24, %v1688_v60  ;;  %v7835_v41 = vpop.f32.mrb[50].mxu0 }
 0x60d   : > { %7961 = vst [vmem:[#allocation2 + $0x180] sm:$0xff] %v7904_v39  ;;  %v9897_v55 = vadd.f32 %v7835_v41, %v15746_v62  ;;  %v7837_v3 = vpop.f32.mrb[51].mxu0 }
 0x60e   : > { %7962 = vst.msk [vmem:[#allocation2 + $0x188] sm:$0xff] %vm7913_vm3, %v7905_v47  ;;  %v9898_v49 = vadd.f32 %v7837_v3, %v15748_v63 }
 0x60f   : > { %v7906_v1 = vadd.f32 %v9897_v55, %v1689_v37 }
 0x610   : > { %v7907_v30 = vadd.f32 %v9898_v49, %v1690_v43  ;;  %v7843_v38 = vpop.f32.mrb[52].mxu0 }
 0x611   : > { %7963 = vst [vmem:[#allocation2 + $0x190] sm:$0xff] %v7906_v1  ;;  %v9899_v52 = vadd.f32 %v7843_v38, %v15753_v9  ;;  %v7845_v42 = vpop.f32.mrb[53].mxu0 }
 0x612   : > { %7964 = vst.msk [vmem:[#allocation2 + $0x198] sm:$0xff] %vm7913_vm3, %v7907_v30  ;;  %v9900_v53 = vadd.f32 %v7845_v42, %v15755_v11 }
 0x613   : > { %v7908_v62 = vadd.f32 %v9899_v52, %v1691_v48 }
 0x614   : > { %v7909_v36 = vadd.f32 %v9900_v53, %v1692_v31  ;;  %v7851_v61 = vpop.f32.mrb[54].mxu0  ;;  %7972 = sbr.rel (%p9170_p5) target bundleno = 2016 (0x7e0), region = 56 }
 0x615   : > { %7965 = vst [vmem:[#allocation2 + $0x1a0] sm:$0xff] %v7908_v62  ;;  %v9901_v63 = vadd.f32 %v7851_v61, %v15760_v25  ;;  %v7853_v26 = vpop.f32.mrb[55].mxu0 }
 0x616   : > { %7966 = vst.msk [vmem:[#allocation2 + $0x1a8] sm:$0xff] %vm7913_vm3, %v7909_v36  ;;  %v9902_v29 = vadd.f32 %v7853_v26, %v15762_v16 }
 0x617   : > { %v7910_v9 = vadd.f32 %v9901_v63, %v1693_v12 }
 0x618   : > { %v7911_v10 = vadd.f32 %v9902_v29, %v1694_v6 }
 0x619   : > { %7967 = vst [vmem:[#allocation2 + $0x1b0] sm:$0xff] %v7910_v9 }
 0x61a   : > { %7968 = vst.msk [vmem:[#allocation2 + $0x1b8] sm:$0xff] %vm7913_vm3, %v7911_v10 }
 0x61b   : > { %v15799_v11 = vld [vmem:[#allocation2 + $0x20] sm:$0xff]  ;;  %v15801_v40 = vld [vmem:[#allocation2 + $0x28] sm:$0xff]  ;;  %v15809_v16 = vld [vmem:[#allocation2 + $0x30] sm:$0xff]  ;;  %v10769_v4 = vmov 0  }
 0x61c   : > { %v15803_v59 = vld [vmem:[#allocation2] sm:$0xff]  ;;  %v8037_v25 = vsel %vm7913_vm3, %v15801_v40, 0.0  ;;  %v15807_v17 = vld [vmem:[#allocation2 + $0x8] sm:$0xff]  ;;  %v15811_v54 = vld [vmem:[#allocation2 + $0x38] sm:$0xff]  ;;  %10702 = vset.pattern.permute.xlu1 %v10769_v4  ;;  %10701 = vset.pattern.permute.xlu0 %v10769_v4 }
 0x61d   : > { %v8038_v8 = vadd.f32 %v8037_v25, %v15799_v11  ;;  %v8029_v5 = vsel %vm7913_vm3, %v15807_v17, 0.0  ;;  %v8041_v2 = vsel %vm7913_vm3, %v15811_v54, 0.0  ;;  %v15818_v19 = vld [vmem:[#allocation2 + $0x10] sm:$0xff]  ;;  %v15820_v35 = vld [vmem:[#allocation2 + $0x18] sm:$0xff]  ;;  %v15827_v56 = vld [vmem:[#allocation2 + $0x48] sm:$0xff] }
 0x61e   : > { %v8030_v23 = vadd.f32 %v8029_v5, %v15803_v59  ;;  %v8033_v0 = vsel %vm7913_vm3, %v15820_v35, 0.0  ;;  %v15825_v44 = vld [vmem:[#allocation2 + $0x58] sm:$0xff]  ;;  %v8042_v7 = vadd.f32 %v8041_v2, %v15809_v16  ;;  %v15831_v45 = vld [vmem:[#allocation2 + $0x50] sm:$0xff]  ;;  %v15835_v50 = vld [vmem:[#allocation2 + $0x40] sm:$0xff]  ;;  %v8045_v22 = vsel %vm7913_vm3, %v15827_v56, 0.0 }
 0x61f   : > { %8039 = vadd.xlane.f32.xlu1 %v8038_v8  ;;  %v8034_v32 = vadd.f32 %v8033_v0, %v15818_v19  ;;  %v8049_v13 = vsel %vm7913_vm3, %v15825_v44, 0.0  ;;  %v15839_v21 = vld [vmem:[#allocation2 + $0x78] sm:$0xff]  ;;  %v15841_v20 = vld [vmem:[#allocation2 + $0x68] sm:$0xff]  ;;  %v8046_v34 = vadd.f32 %v8045_v22, %v15835_v50  ;;  %v15845_v33 = vld [vmem:[#allocation2 + $0x70] sm:$0xff] }
 0x620   : > { %8031 = vadd.xlane.f32.xlu0 %v8030_v23  ;;  %v8050_v28 = vadd.f32 %v8049_v13, %v15831_v45  ;;  %v8057_v27 = vsel %vm7913_vm3, %v15839_v21, 0.0  ;;  %v15849_v57 = vld [vmem:[#allocation2 + $0x60] sm:$0xff]  ;;  %v8053_v46 = vsel %vm7913_vm3, %v15841_v20, 0.0  ;;  %v15853_v15 = vld [vmem:[#allocation2 + $0x98] sm:$0xff]  ;;  %v15855_v18 = vld [vmem:[#allocation2 + $0x88] sm:$0xff] }
 0x621   : > { %v8058_v14 = vadd.f32 %v8057_v27, %v15845_v33  ;;  %v8054_v58 = vadd.f32 %v8053_v46, %v15849_v57  ;;  %v15859_v60 = vld [vmem:[#allocation2 + $0x90] sm:$0xff]  ;;  %v8065_v51 = vsel %vm7913_vm3, %v15853_v15, 0.0  ;;  %v15863_v24 = vld [vmem:[#allocation2 + $0x80] sm:$0xff]  ;;  %v8061_v39 = vsel %vm7913_vm3, %v15855_v18, 0.0  ;;  %v15867_v47 = vld [vmem:[#allocation2 + $0xb8] sm:$0xff] }
 0x622   : > { %v15869_v37 = vld [vmem:[#allocation2 + $0xa8] sm:$0xff]  ;;  %v8066_v41 = vadd.f32 %v8065_v51, %v15859_v60  ;;  %v8062_v55 = vadd.f32 %v8061_v39, %v15863_v24  ;;  %v15873_v43 = vld [vmem:[#allocation2 + $0xb0] sm:$0xff]  ;;  %v8073_v3 = vsel %vm7913_vm3, %v15867_v47, 0.0  ;;  %v15877_v49 = vld [vmem:[#allocation2 + $0xa0] sm:$0xff] }
 0x623   : > { %8043 = vadd.xlane.f32.xlu1 %v8042_v7  ;;  %v8069_v1 = vsel %vm7913_vm3, %v15869_v37, 0.0  ;;  %v15881_v30 = vld [vmem:[#allocation2 + $0xd8] sm:$0xff]  ;;  %v15883_v48 = vld [vmem:[#allocation2 + $0xc8] sm:$0xff]  ;;  %v8074_v38 = vadd.f32 %v8073_v3, %v15873_v43  ;;  %v15887_v31 = vld [vmem:[#allocation2 + $0xd0] sm:$0xff] }
 0x624   : > { %8035 = vadd.xlane.f32.xlu0 %v8034_v32  ;;  %v8070_v52 = vadd.f32 %v8069_v1, %v15877_v49  ;;  %v8081_v42 = vsel %vm7913_vm3, %v15881_v30, 0.0  ;;  %v15891_v53 = vld [vmem:[#allocation2 + $0xc0] sm:$0xff]  ;;  %v8077_v62 = vsel %vm7913_vm3, %v15883_v48, 0.0  ;;  %v15895_v36 = vld [vmem:[#allocation2 + $0xf8] sm:$0xff]  ;;  %v15897_v12 = vld [vmem:[#allocation2 + $0xe8] sm:$0xff] }
 0x625   : > { %v8082_v61 = vadd.f32 %v8081_v42, %v15887_v31  ;;  %v8078_v63 = vadd.f32 %v8077_v62, %v15891_v53  ;;  %v15901_v6 = vld [vmem:[#allocation2 + $0xf0] sm:$0xff]  ;;  %v8089_v26 = vsel %vm7913_vm3, %v15895_v36, 0.0  ;;  %v15905_v29 = vld [vmem:[#allocation2 + $0xe0] sm:$0xff]  ;;  %v8085_v9 = vsel %vm7913_vm3, %v15897_v12, 0.0  ;;  %v15909_v10 = vld [vmem:[#allocation2 + $0x118] sm:$0xff] }
 0x626   : > { %v15911_v25 = vld [vmem:[#allocation2 + $0x108] sm:$0xff]  ;;  %v8090_v4 = vadd.f32 %v8089_v26, %v15901_v6  ;;  %v8086_v8 = vadd.f32 %v8085_v9, %v15905_v29  ;;  %v15915_v5 = vld [vmem:[#allocation2 + $0x110] sm:$0xff]  ;;  %v8097_v2 = vsel %vm7913_vm3, %v15909_v10, 0.0  ;;  %v15919_v23 = vld [vmem:[#allocation2 + $0x100] sm:$0xff] }
 0x627   : > { %8051 = vadd.xlane.f32.xlu1 %v8050_v28  ;;  %v8093_v0 = vsel %vm7913_vm3, %v15911_v25, 0.0  ;;  %v15923_v7 = vld [vmem:[#allocation2 + $0x138] sm:$0xff]  ;;  %v15925_v32 = vld [vmem:[#allocation2 + $0x128] sm:$0xff]  ;;  %v8098_v13 = vadd.f32 %v8097_v2, %v15915_v5  ;;  %v15929_v28 = vld [vmem:[#allocation2 + $0x130] sm:$0xff] }
 0x628   : > { %8047 = vadd.xlane.f32.xlu0 %v8046_v34  ;;  %v8094_v22 = vadd.f32 %v8093_v0, %v15919_v23  ;;  %v8105_v34 = vsel %vm7913_vm3, %v15923_v7, 0.0  ;;  %v15933_v27 = vld [vmem:[#allocation2 + $0x120] sm:$0xff]  ;;  %v8101_v46 = vsel %vm7913_vm3, %v15925_v32, 0.0 }
 0x629   : > { %v8106_v51 = vadd.f32 %v8105_v34, %v15929_v28  ;;  %v8102_v39 = vadd.f32 %v8101_v46, %v15933_v27  ;;  %v15947_v3 = vld [vmem:[#allocation2 + $0x140] sm:$0xff] }
 0x62a   : > { %v15961_v26 = vld [vmem:[#allocation2 + $0x160] sm:$0xff] }
 0x62b   : > { %8059 = vadd.xlane.f32.xlu1 %v8058_v14  ;;  %v15937_v14 = vld [vmem:[#allocation2 + $0x158] sm:$0xff]  ;;  %v15975_v34 = vld [vmem:[#allocation2 + $0x180] sm:$0xff] }
 0x62c   : > { %8055 = vadd.xlane.f32.xlu0 %v8054_v58  ;;  %v15939_v58 = vld [vmem:[#allocation2 + $0x148] sm:$0xff] }
 0x62d   : > { %v8109_v1 = vsel %vm7913_vm3, %v15939_v58, 0.0 }
 0x62e   : > { %v8110_v62 = vadd.f32 %v8109_v1, %v15947_v3 }
 0x62f   : > { %8067 = vadd.xlane.f32.xlu1 %v8066_v41  ;;  %v15943_v41 = vld [vmem:[#allocation2 + $0x150] sm:$0xff] }
 0x630   : > { %8063 = vadd.xlane.f32.xlu0 %v8062_v55  ;;  %v8113_v55 = vsel %vm7913_vm3, %v15937_v14, 0.0 }
 0x631   : > { %v8114_v42 = vadd.f32 %v8113_v55, %v15943_v41 }
 0x633   : > { %8075 = vadd.xlane.f32.xlu1 %v8074_v38  ;;  %v15951_v38 = vld [vmem:[#allocation2 + $0x178] sm:$0xff] }
 0x634   : > { %8071 = vadd.xlane.f32.xlu0 %v8070_v52  ;;  %v15953_v52 = vld [vmem:[#allocation2 + $0x168] sm:$0xff] }
 0x635   : > { %v8117_v9 = vsel %vm7913_vm3, %v15953_v52, 0.0 }
 0x636   : > { %v8118_v0 = vadd.f32 %v8117_v9, %v15961_v26 }
 0x637   : > { %8083 = vadd.xlane.f32.xlu1 %v8082_v61  ;;  %v15957_v61 = vld [vmem:[#allocation2 + $0x170] sm:$0xff] }
 0x638   : > { %8079 = vadd.xlane.f32.xlu0 %v8078_v63  ;;  %v8121_v63 = vsel %vm7913_vm3, %v15951_v38, 0.0 }
 0x639   : > { %v8122_v2 = vadd.f32 %v8121_v63, %v15957_v61  ;;  %v15989_v63 = vld [vmem:[#allocation2 + $0x1a0] sm:$0xff] }
 0x63a   : > { %19706 = vst [vmem:[#allocation378_spill] sm:$0xff] %v15989_v63 }
 0x63b   : > { %8091 = vadd.xlane.f32.xlu1 %v8090_v4  ;;  %v15965_v4 = vld [vmem:[#allocation2 + $0x198] sm:$0xff] }
 0x63c   : > { %8087 = vadd.xlane.f32.xlu0 %v8086_v8  ;;  %v15967_v8 = vld [vmem:[#allocation2 + $0x188] sm:$0xff] }
 0x63d   : > { %19703 = vst [vmem:[#allocation375_spill] sm:$0xff] %v15967_v8  ;;  %v8125_v46 = vsel %vm7913_vm3, %v15967_v8, 0.0 }
 0x63e   : > { %v8126_v1 = vadd.f32 %v8125_v46, %v15975_v34  ;;  %v8534_v46 = vld [vmem:[%s16910_s5] sm:$0xff] }
 0x63f   : > { %8099 = vadd.xlane.f32.xlu1 %v8098_v13  ;;  %v15971_v13 = vld [vmem:[#allocation2 + $0x190] sm:$0xff] }
 0x640   : > { %8095 = vadd.xlane.f32.xlu0 %v8094_v22  ;;  %v8129_v22 = vsel %vm7913_vm3, %v15965_v4, 0.0 }
 0x641   : > { %v8130_v55 = vadd.f32 %v8129_v22, %v15971_v13  ;;  %v8536_v22 = vld [vmem:[%s16910_s5 + $0x10] sm:$0xff] }
 0x643   : > { %8107 = vadd.xlane.f32.xlu1 %v8106_v51  ;;  %v15979_v51 = vld [vmem:[#allocation2 + $0x1b8] sm:$0xff] }
 0x644   : > { %8103 = vadd.xlane.f32.xlu0 %v8102_v39  ;;  %19704 = vst [vmem:[#allocation376_spill] sm:$0xff] %v15979_v51  ;;  %v15981_v39 = vld [vmem:[#allocation2 + $0x1a8] sm:$0xff] }
 0x645   : > { %19705 = vst [vmem:[#allocation377_spill] sm:$0xff] %v15981_v39  ;;  %v8133_v9 = vsel %vm7913_vm3, %v15981_v39, 0.0 }
 0x647   : > { %8115 = vadd.xlane.f32.xlu1 %v8114_v42  ;;  %v15985_v42 = vld [vmem:[#allocation2 + $0x1b0] sm:$0xff] }
 0x648   : > { %8111 = vadd.xlane.f32.xlu0 %v8110_v62  ;;  %v8137_v62 = vsel %vm7913_vm3, %v15979_v51, 0.0 }
 0x649   : > { %v8138_v8 = vadd.f32 %v8137_v62, %v15985_v42  ;;  %v8540_v62 = vld [vmem:[%s16910_s5 + $0x30] sm:$0xff] }
 0x64b   : > { %8123 = vadd.xlane.f32.xlu1 %v8122_v2  ;;  %v8134_v2 = vadd.f32 %v8133_v9, %v15989_v63  ;;  %v8541_v9 = vld [vmem:[%s16910_s5 + $0x38] sm:$0xff] }
 0x64c   : > { %8119 = vadd.xlane.f32.xlu0 %v8118_v0  ;;  %v8535_v0 = vld [vmem:[%s16910_s5 + $0x8] sm:$0xff] }
 0x64f   : > { %8131 = vadd.xlane.f32.xlu1 %v8130_v55  ;;  %v8537_v55 = vld [vmem:[%s16910_s5 + $0x18] sm:$0xff] }
 0x650   : > { %8127 = vadd.xlane.f32.xlu0 %v8126_v1  ;;  %v8539_v1 = vld [vmem:[%s16910_s5 + $0x28] sm:$0xff] }
 0x653   : > { %8139 = vadd.xlane.f32.xlu1 %v8138_v8  ;;  %v8538_v8 = vld [vmem:[%s16910_s5 + $0x20] sm:$0xff] }
 0x654   : > { %8135 = vadd.xlane.f32.xlu0 %v8134_v2  ;;  %v8542_v2 = vld [vmem:[%s16910_s5 + $0x40] sm:$0xff] }
 0x664   : > { %8569 = vperm.xlu1 %10702, %v8535_v0  }
 0x668   : > { %8574 = vperm.xlu1 %10702, %v8536_v22  }
 0x66a   : > { %8564 = vperm.xlu0 %10701, %v8534_v46  }
 0x66c   : > { %8579 = vperm.xlu1 %10702, %v8537_v55  }
 0x670   : > { %8584 = vperm.xlu1 %10702, %v8538_v8  }
 0x674   : > { %8589 = vperm.xlu1 %10702, %v8539_v1  }
 0x678   : > { %8594 = vperm.xlu1 %10702, %v8540_v62  }
 0x67c   : > { %8599 = vperm.xlu1 %10702, %v8541_v9  }
 0x680   : > { %8604 = vperm.xlu1 %10702, %v8542_v2  }
 0x6ac   : > { %v8040_v0 = vpop.xlane.xlu1 %8039 }
 0x6ad   : > { %v8144_v22 = vmul.f32 0.0051020407, %v8040_v0  ;;  %v8032_v46 = vpop.xlane.xlu0 %8031 }
 0x6ae   : > { %v8142_v55 = vmul.f32 0.0051020407, %v8032_v46 }
 0x6af   : > { %v16023_v8 = vsub.f32 %v15799_v11, %v8144_v22  ;;  %v16026_v1 = vsub.f32 %v15801_v40, %v8144_v22 }
 0x6b0   : > { %v16029_v62 = vsub.f32 %v15803_v59, %v8142_v55  ;;  %v16032_v9 = vsub.f32 %v15807_v17, %v8142_v55  ;;  %v8044_v39 = vpop.xlane.xlu1 %8043 }
 0x6b1   : > { %19707 = vst [vmem:[#allocation379_spill] sm:$0xff] %v16023_v8  ;;  %19708 = vst [vmem:[#allocation380_spill] sm:$0xff] %v16026_v1  ;;  %v8145_v63 = vmul.f32 0.0051020407, %v8044_v39  ;;  %v8036_v51 = vpop.xlane.xlu0 %8035  ;;  %v8231_v2 = vmul.f32 %v16026_v1, %v16026_v1  ;;  %v8230_v17 = vmul.f32 %v16023_v8, %v16023_v8 }
 0x6b2   : > { %19709 = vst [vmem:[#allocation381_spill] sm:$0xff] %v16029_v62  ;;  %19710 = vst [vmem:[#allocation382_spill] sm:$0xff] %v16032_v9  ;;  %v8143_v0 = vmul.f32 0.0051020407, %v8036_v51  ;;  %v8226_v11 = vmul.f32 %v16029_v62, %v16029_v62  ;;  %v8227_v40 = vmul.f32 %v16032_v9, %v16032_v9 }
 0x6b3   : > { %v16041_v22 = vsub.f32 %v15809_v16, %v8145_v63  ;;  %v16044_v59 = vsub.f32 %v15811_v54, %v8145_v63  ;;  %v8290_v1 = vsel %vm7913_vm3, %v8231_v2, 0.0 }
 0x6b4   : > { %v16049_v39 = vsub.f32 %v15818_v19, %v8143_v0  ;;  %v16052_v51 = vsub.f32 %v15820_v35, %v8143_v0  ;;  %v8052_v46 = vpop.xlane.xlu1 %8051  ;;  %v8282_v55 = vsel %vm7913_vm3, %v8227_v40, 0.0 }
 0x6b5   : > { %19711 = vst [vmem:[#allocation383_spill] sm:$0xff] %v16041_v22  ;;  %19712 = vst [vmem:[#allocation384_spill] sm:$0xff] %v16044_v59  ;;  %v8147_v9 = vmul.f32 0.0051020407, %v8052_v46  ;;  %v8048_v16 = vpop.xlane.xlu0 %8047  ;;  %v8283_v62 = vadd.f32 %v8282_v55, %v8226_v11  ;;  %v8233_v54 = vmul.f32 %v16044_v59, %v16044_v59  ;;  %v8232_v35 = vmul.f32 %v16041_v22, %v16041_v22 }
 0x6b6   : > { %19713 = vst [vmem:[#allocation385_spill] sm:$0xff] %v16052_v51  ;;  %v8146_v63 = vmul.f32 0.0051020407, %v8048_v16  ;;  %v8228_v8 = vmul.f32 %v16049_v39, %v16049_v39  ;;  %v8229_v19 = vmul.f32 %v16052_v51, %v16052_v51  ;;  %v8291_v11 = vadd.f32 %v8290_v1, %v8230_v17 }
 0x6b7   : > { %v16065_v0 = vsub.f32 %v15831_v45, %v8147_v9  ;;  %v16068_v2 = vsub.f32 %v15825_v44, %v8147_v9  ;;  %8284 = vadd.xlane.f32.xlu0 %v8283_v62  ;;  %v8294_v40 = vsel %vm7913_vm3, %v8233_v54, 0.0 }
 0x6b8   : > { %v16072_v46 = vsub.f32 %v15835_v50, %v8146_v63  ;;  %v16075_v55 = vsub.f32 %v15827_v56, %v8146_v63  ;;  %v8060_v16 = vpop.xlane.xlu1 %8059  ;;  %v8286_v59 = vsel %vm7913_vm3, %v8229_v19, 0.0  ;;  %v8295_v62 = vadd.f32 %v8294_v40, %v8232_v35 }
 0x6b9   : > { %v8149_v22 = vmul.f32 0.0051020407, %v8060_v16  ;;  %v8056_v51 = vpop.xlane.xlu0 %8055  ;;  %v8287_v45 = vadd.f32 %v8286_v59, %v8228_v8  ;;  %v8237_v44 = vmul.f32 %v16068_v2, %v16068_v2  ;;  %v8236_v8 = vmul.f32 %v16065_v0, %v16065_v0 }
 0x6ba   : > { %v8148_v9 = vmul.f32 0.0051020407, %v8056_v51  ;;  %v8234_v1 = vmul.f32 %v16072_v46, %v16072_v46  ;;  %v8235_v50 = vmul.f32 %v16075_v55, %v16075_v55 }
 0x6bb   : > { %v16085_v56 = vsub.f32 %v15845_v33, %v8149_v22  ;;  %v16088_v17 = vsub.f32 %v15839_v21, %v8149_v22  ;;  %8292 = vadd.xlane.f32.xlu0 %v8291_v11  ;;  %8288 = vadd.xlane.f32.xlu1 %v8287_v45  ;;  %v8302_v33 = vsel %vm7913_vm3, %v8237_v44, 0.0 }
 0x6bc   : > { %v16093_v59 = vsub.f32 %v15849_v57, %v8148_v9  ;;  %v16096_v51 = vsub.f32 %v15841_v20, %v8148_v9  ;;  %v8068_v54 = vpop.xlane.xlu1 %8067  ;;  %v8298_v63 = vsel %vm7913_vm3, %v8235_v50, 0.0  ;;  %v8303_v44 = vadd.f32 %v8302_v33, %v8236_v8 }
 0x6bd   : > { %19714 = vst [vmem:[#allocation386_spill] sm:$0xff] %v16088_v17  ;;  %v8151_v19 = vmul.f32 0.0051020407, %v8068_v54  ;;  %v8064_v35 = vpop.xlane.xlu0 %8063  ;;  %v8299_v21 = vadd.f32 %v8298_v63, %v8234_v1  ;;  %v8241_v22 = vmul.f32 %v16088_v17, %v16088_v17  ;;  %v8240_v20 = vmul.f32 %v16085_v56, %v16085_v56 }
 0x6be   : > { %v8150_v11 = vmul.f32 0.0051020407, %v8064_v35  ;;  %v8238_v40 = vmul.f32 %v16093_v59, %v16093_v59  ;;  %v8239_v57 = vmul.f32 %v16096_v51, %v16096_v51 }
 0x6bf   : > { %v16109_v16 = vsub.f32 %v15859_v60, %v8151_v19  ;;  %v16112_v45 = vsub.f32 %v15853_v15, %v8151_v19  ;;  %8296 = vadd.xlane.f32.xlu1 %v8295_v62  ;;  %8300 = vadd.xlane.f32.xlu0 %v8299_v21  ;;  %v8310_v9 = vsel %vm7913_vm3, %v8241_v22, 0.0 }
 0x6c0   : > { %v16116_v1 = vsub.f32 %v15863_v24, %v8150_v11  ;;  %v16119_v50 = vsub.f32 %v15855_v18, %v8150_v11  ;;  %v8076_v54 = vpop.xlane.xlu1 %8075  ;;  %v8306_v63 = vsel %vm7913_vm3, %v8239_v57, 0.0  ;;  %v8311_v19 = vadd.f32 %v8310_v9, %v8240_v20 }
 0x6c1   : > { %v8153_v35 = vmul.f32 0.0051020407, %v8076_v54  ;;  %v8072_v60 = vpop.xlane.xlu0 %8071  ;;  %v8307_v17 = vadd.f32 %v8306_v63, %v8238_v40  ;;  %v8245_v15 = vmul.f32 %v16112_v45, %v16112_v45  ;;  %v8244_v21 = vmul.f32 %v16109_v16, %v16109_v16 }
 0x6c2   : > { %v8152_v62 = vmul.f32 0.0051020407, %v8072_v60  ;;  %v8242_v8 = vmul.f32 %v16116_v1, %v16116_v1  ;;  %v8243_v24 = vmul.f32 %v16119_v50, %v16119_v50 }
 0x6c3   : > { %v16129_v18 = vsub.f32 %v15873_v43, %v8153_v35  ;;  %v16132_v33 = vsub.f32 %v15867_v47, %v8153_v35  ;;  %8304 = vadd.xlane.f32.xlu1 %v8303_v44  ;;  %8308 = vadd.xlane.f32.xlu0 %v8307_v17  ;;  %v8318_v43 = vsel %vm7913_vm3, %v8245_v15, 0.0 }
 0x6c4   : > { %v16137_v22 = vsub.f32 %v15877_v49, %v8152_v62  ;;  %v16140_v11 = vsub.f32 %v15869_v37, %v8152_v62  ;;  %v8084_v40 = vpop.xlane.xlu1 %8083  ;;  %v8314_v57 = vsel %vm7913_vm3, %v8243_v24, 0.0  ;;  %v8319_v60 = vadd.f32 %v8318_v43, %v8244_v21 }
 0x6c5   : > { %v8155_v20 = vmul.f32 0.0051020407, %v8084_v40  ;;  %v8080_v9 = vpop.xlane.xlu0 %8079  ;;  %v8315_v47 = vadd.f32 %v8314_v57, %v8242_v8  ;;  %v8249_v17 = vmul.f32 %v16132_v33, %v16132_v33  ;;  %v8248_v37 = vmul.f32 %v16129_v18, %v16129_v18 }
 0x6c6   : > { %v8154_v44 = vmul.f32 0.0051020407, %v8080_v9  ;;  %v8246_v54 = vmul.f32 %v16137_v22, %v16137_v22  ;;  %v8247_v49 = vmul.f32 %v16140_v11, %v16140_v11 }
 0x6c7   : > { %v16153_v63 = vsub.f32 %v15887_v31, %v8155_v20  ;;  %v16156_v35 = vsub.f32 %v15881_v30, %v8155_v20  ;;  %8312 = vadd.xlane.f32.xlu1 %v8311_v19  ;;  %8316 = vadd.xlane.f32.xlu0 %v8315_v47  ;;  %v8326_v15 = vsel %vm7913_vm3, %v8249_v17, 0.0 }
 0x6c8   : > { %v16160_v62 = vsub.f32 %v15891_v53, %v8154_v44  ;;  %v16163_v8 = vsub.f32 %v15883_v48, %v8154_v44  ;;  %v8092_v24 = vpop.xlane.xlu1 %8091  ;;  %v8322_v40 = vsel %vm7913_vm3, %v8247_v49, 0.0  ;;  %v8327_v20 = vadd.f32 %v8326_v15, %v8248_v37 }
 0x6c9   : > { %v8157_v57 = vmul.f32 0.0051020407, %v8092_v24  ;;  %v8088_v31 = vpop.xlane.xlu0 %8087  ;;  %v8323_v9 = vadd.f32 %v8322_v40, %v8246_v54  ;;  %v8253_v30 = vmul.f32 %v16156_v35, %v16156_v35  ;;  %v8252_v47 = vmul.f32 %v16153_v63, %v16153_v63 }
 0x6ca   : > { %v8156_v19 = vmul.f32 0.0051020407, %v8088_v31  ;;  %v8250_v21 = vmul.f32 %v16160_v62, %v16160_v62  ;;  %v8251_v53 = vmul.f32 %v16163_v8, %v16163_v8 }
 0x6cb   : > { %v16173_v48 = vsub.f32 %v15901_v6, %v8157_v57  ;;  %v16176_v43 = vsub.f32 %v15895_v36, %v8157_v57  ;;  %8320 = vadd.xlane.f32.xlu1 %v8319_v60  ;;  %8324 = vadd.xlane.f32.xlu0 %v8323_v9  ;;  %v8334_v6 = vsel %vm7913_vm3, %v8253_v30, 0.0 }
 0x6cc   : > { %v16181_v17 = vsub.f32 %v15905_v29, %v8156_v19  ;;  %v16184_v44 = vsub.f32 %v15897_v12, %v8156_v19  ;;  %v8100_v54 = vpop.xlane.xlu1 %8099  ;;  %v8330_v49 = vsel %vm7913_vm3, %v8251_v53, 0.0  ;;  %v8335_v9 = vadd.f32 %v8334_v6, %v8252_v47 }
 0x6cd   : > { %19715 = vst [vmem:[#allocation387_spill] sm:$0xff] %v16173_v48  ;;  %19716 = vst [vmem:[#allocation388_spill] sm:$0xff] %v16176_v43  ;;  %v8159_v37 = vmul.f32 0.0051020407, %v8100_v54  ;;  %v8096_v15 = vpop.xlane.xlu0 %8095  ;;  %v8331_v36 = vadd.f32 %v8330_v49, %v8250_v21  ;;  %v8257_v60 = vmul.f32 %v16176_v43, %v16176_v43  ;;  %v8256_v12 = vmul.f32 %v16173_v48, %v16173_v48 }
 0x6ce   : > { %19717 = vst [vmem:[#allocation389_spill] sm:$0xff] %v16181_v17  ;;  %19718 = vst [vmem:[#allocation390_spill] sm:$0xff] %v16184_v44  ;;  %v8158_v24 = vmul.f32 0.0051020407, %v8096_v15  ;;  %v8254_v40 = vmul.f32 %v16181_v17, %v16181_v17  ;;  %v8255_v29 = vmul.f32 %v16184_v44, %v16184_v44 }
 0x6cf   : > { %v16197_v57 = vsub.f32 %v15915_v5, %v8159_v37  ;;  %v16200_v31 = vsub.f32 %v15909_v10, %v8159_v37  ;;  %8328 = vadd.xlane.f32.xlu1 %v8327_v20  ;;  %8332 = vadd.xlane.f32.xlu0 %v8331_v36  ;;  %v8342_v30 = vsel %vm7913_vm3, %v8257_v60, 0.0 }
 0x6d0   : > { %v16204_v19 = vsub.f32 %v15919_v23, %v8158_v24  ;;  %v16207_v21 = vsub.f32 %v15911_v25, %v8158_v24  ;;  %v8108_v53 = vpop.xlane.xlu1 %8107  ;;  %v8338_v54 = vsel %vm7913_vm3, %v8255_v29, 0.0  ;;  %v8343_v37 = vadd.f32 %v8342_v30, %v8256_v12 }
 0x6d1   : > { %19719 = vst [vmem:[#allocation391_spill] sm:$0xff] %v16197_v57  ;;  %19720 = vst [vmem:[#allocation392_spill] sm:$0xff] %v16200_v31  ;;  %v8161_v49 = vmul.f32 0.0051020407, %v8108_v53  ;;  %v8104_v5 = vpop.xlane.xlu0 %8103  ;;  %v8339_v15 = vadd.f32 %v8338_v54, %v8254_v40  ;;  %v8261_v10 = vmul.f32 %v16200_v31, %v16200_v31  ;;  %v8260_v36 = vmul.f32 %v16197_v57, %v16197_v57 }
 0x6d2   : > { %19721 = vst [vmem:[#allocation393_spill] sm:$0xff] %v16204_v19  ;;  %19722 = vst [vmem:[#allocation394_spill] sm:$0xff] %v16207_v21  ;;  %v8160_v20 = vmul.f32 0.0051020407, %v8104_v5  ;;  %v8258_v47 = vmul.f32 %v16204_v19, %v16204_v19  ;;  %v8259_v23 = vmul.f32 %v16207_v21, %v16207_v21 }
 0x6d3   : > { %v16217_v25 = vsub.f32 %v15929_v28, %v8161_v49  ;;  %v16220_v6 = vsub.f32 %v15923_v7, %v8161_v49  ;;  %8336 = vadd.xlane.f32.xlu1 %v8335_v9  ;;  %8340 = vadd.xlane.f32.xlu0 %v8339_v15  ;;  %v8350_v28 = vsel %vm7913_vm3, %v8261_v10, 0.0 }
 0x6d4   : > { %v16225_v60 = vsub.f32 %v15933_v27, %v8160_v20  ;;  %v16228_v24 = vsub.f32 %v15925_v32, %v8160_v20  ;;  %v8116_v40 = vpop.xlane.xlu1 %8115  ;;  %v8346_v29 = vsel %vm7913_vm3, %v8259_v23, 0.0  ;;  %v8351_v15 = vadd.f32 %v8350_v28, %v8260_v36 }
 0x6d5   : > { %19723 = vst [vmem:[#allocation395_spill] sm:$0xff] %v16217_v25  ;;  %19724 = vst [vmem:[#allocation396_spill] sm:$0xff] %v16220_v6  ;;  %v8163_v12 = vmul.f32 0.0051020407, %v8116_v40  ;;  %v8112_v30 = vpop.xlane.xlu0 %8111  ;;  %v8347_v7 = vadd.f32 %v8346_v29, %v8258_v47  ;;  %v8265_v9 = vmul.f32 %v16220_v6, %v16220_v6  ;;  %v8264_v32 = vmul.f32 %v16217_v25, %v16217_v25 }
 0x6d6   : > { %19725 = vst [vmem:[#allocation397_spill] sm:$0xff] %v16225_v60  ;;  %19726 = vst [vmem:[#allocation398_spill] sm:$0xff] %v16228_v24  ;;  %v8162_v53 = vmul.f32 0.0051020407, %v8112_v30  ;;  %v8262_v54 = vmul.f32 %v16225_v60, %v16225_v60  ;;  %v8263_v27 = vmul.f32 %v16228_v24, %v16228_v24 }
 0x6d7   : > { %v16241_v49 = vsub.f32 %v15943_v41, %v8163_v12  ;;  %v16244_v5 = vsub.f32 %v15937_v14, %v8163_v12  ;;  %8344 = vadd.xlane.f32.xlu1 %v8343_v37  ;;  %8348 = vadd.xlane.f32.xlu0 %v8347_v7  ;;  %v8358_v10 = vsel %vm7913_vm3, %v8265_v9, 0.0 }
 0x6d8   : > { %v16248_v20 = vsub.f32 %v15947_v3, %v8162_v53  ;;  %v16251_v47 = vsub.f32 %v15939_v58, %v8162_v53  ;;  %v8124_v23 = vpop.xlane.xlu1 %8123  ;;  %v8354_v40 = vsel %vm7913_vm3, %v8263_v27, 0.0  ;;  %v8359_v12 = vadd.f32 %v8358_v10, %v8264_v32 }
 0x6d9   : > { %19727 = vst [vmem:[#allocation399_spill] sm:$0xff] %v16241_v49  ;;  %19728 = vst [vmem:[#allocation400_spill] sm:$0xff] %v16244_v5  ;;  %v8165_v29 = vmul.f32 0.0051020407, %v8124_v23  ;;  %v8120_v41 = vpop.xlane.xlu0 %8119  ;;  %v8355_v30 = vadd.f32 %v8354_v40, %v8262_v54  ;;  %v8269_v14 = vmul.f32 %v16244_v5, %v16244_v5  ;;  %v8268_v7 = vmul.f32 %v16241_v49, %v16241_v49  ;;  %v8783_v5 = vld [vmem:[%s16911_s6 + $0xc8] sm:$0xff] }
 0x6da   : > { %19729 = vst [vmem:[#allocation401_spill] sm:$0xff] %v16248_v20  ;;  %19730 = vst [vmem:[#allocation402_spill] sm:$0xff] %v16251_v47  ;;  %v8164_v37 = vmul.f32 0.0051020407, %v8120_v41  ;;  %v8266_v36 = vmul.f32 %v16248_v20, %v16248_v20  ;;  %v8267_v3 = vmul.f32 %v16251_v47, %v16251_v47 }
 0x6db   : > { %v16261_v58 = vsub.f32 %v15957_v61, %v8165_v29  ;;  %v16264_v28 = vsub.f32 %v15951_v38, %v8165_v29  ;;  %8352 = vadd.xlane.f32.xlu1 %v8351_v15  ;;  %8356 = vadd.xlane.f32.xlu0 %v8355_v30  ;;  %v8366_v61 = vsel %vm7913_vm3, %v8269_v14, 0.0 }
 0x6dc   : > { %v16269_v9 = vsub.f32 %v15961_v26, %v8164_v37  ;;  %v16272_v53 = vsub.f32 %v15953_v52, %v8164_v37  ;;  %v8132_v54 = vpop.xlane.xlu1 %8131  ;;  %v8362_v27 = vsel %vm7913_vm3, %v8267_v3, 0.0  ;;  %v8367_v30 = vadd.f32 %v8366_v61, %v8268_v7 }
 0x6dd   : > { %19731 = vst [vmem:[#allocation403_spill] sm:$0xff] %v16261_v58  ;;  %19732 = vst [vmem:[#allocation404_spill] sm:$0xff] %v16264_v28  ;;  %v8167_v32 = vmul.f32 0.0051020407, %v8132_v54  ;;  %v8128_v10 = vpop.xlane.xlu0 %8127  ;;  %v8363_v38 = vadd.f32 %v8362_v27, %v8266_v36  ;;  %v8273_v15 = vmul.f32 %v16264_v28, %v16264_v28  ;;  %v8272_v52 = vmul.f32 %v16261_v58, %v16261_v58  ;;  %v19738_v36 = vld [vmem:[#allocation375_spill] sm:$0xff]  ;;  %v19748_v58 = vld [vmem:[#allocation382_spill] sm:$0xff] }
 0x6de   : > { %19733 = vst [vmem:[#allocation405_spill] sm:$0xff] %v16269_v9  ;;  %19734 = vst [vmem:[#allocation406_spill] sm:$0xff] %v16272_v53  ;;  %v8166_v23 = vmul.f32 0.0051020407, %v8128_v10  ;;  %v8270_v40 = vmul.f32 %v16269_v9, %v16269_v9  ;;  %v8271_v26 = vmul.f32 %v16272_v53, %v16272_v53 }
 0x6df   : > { %v16285_v29 = vsub.f32 %v15971_v13, %v8167_v32  ;;  %v16288_v41 = vsub.f32 %v15965_v4, %v8167_v32  ;;  %8360 = vadd.xlane.f32.xlu1 %v8359_v12  ;;  %8364 = vadd.xlane.f32.xlu0 %v8363_v38  ;;  %v8374_v14 = vsel %vm7913_vm3, %v8273_v15, 0.0  ;;  %v19741_v38 = vld [vmem:[#allocation376_spill] sm:$0xff] }
 0x6e0   : > { %v16292_v37 = vsub.f32 %v15975_v34, %v8166_v23  ;;  %v16295_v3 = vsub.f32 %v19738_v36, %v8166_v23  ;;  %v8140_v54 = vpop.xlane.xlu1 %8139  ;;  %v8370_v27 = vsel %vm7913_vm3, %v8271_v26, 0.0  ;;  %v8375_v32 = vadd.f32 %v8374_v14, %v8272_v52  ;;  %v19745_v52 = vld [vmem:[#allocation377_spill] sm:$0xff] }
 0x6e1   : > { %19735 = vst [vmem:[#allocation407_spill] sm:$0xff] %v16285_v29  ;;  %19736 = vst [vmem:[#allocation408_spill] sm:$0xff] %v16288_v41  ;;  %v8169_v10 = vmul.f32 0.0051020407, %v8140_v54  ;;  %v8136_v13 = vpop.xlane.xlu0 %8135  ;;  %v8371_v28 = vadd.f32 %v8370_v27, %v8270_v40  ;;  %v8277_v4 = vmul.f32 %v16288_v41, %v16288_v41  ;;  %v8276_v23 = vmul.f32 %v16285_v29, %v16285_v29  ;;  %v19743_v40 = vld [vmem:[#allocation378_spill] sm:$0xff] }
 0x6e2   : > { %19737 = vst [vmem:[#allocation409_spill] sm:$0xff] %v16292_v37  ;;  %19739 = vst [vmem:[#allocation375_spill] sm:$0xff] %v16295_v3  ;;  %v8168_v12 = vmul.f32 0.0051020407, %v8136_v13  ;;  %v8274_v7 = vmul.f32 %v16292_v37, %v16292_v37  ;;  %v8275_v34 = vmul.f32 %v16295_v3, %v16295_v3 }
 0x6e3   : > { %v16305_v61 = vsub.f32 %v15985_v42, %v8169_v10  ;;  %v16308_v15 = vsub.f32 %v19741_v38, %v8169_v10  ;;  %8368 = vadd.xlane.f32.xlu1 %v8367_v30  ;;  %8372 = vadd.xlane.f32.xlu0 %v8371_v28  ;;  %v8382_v54 = vsel %vm7913_vm3, %v8277_v4, 0.0  ;;  %v8544_v38 = vld [vmem:[%s16910_s5 + $0x50] sm:$0xff] }
 0x6e4   : > { %v16313_v26 = vsub.f32 %v19743_v40, %v8168_v12  ;;  %v16316_v14 = vsub.f32 %v19745_v52, %v8168_v12  ;;  %v8378_v36 = vsel %vm7913_vm3, %v8275_v34, 0.0  ;;  %v8383_v10 = vadd.f32 %v8382_v54, %v8276_v23  ;;  %v8546_v23 = vld [vmem:[%s16910_s5 + $0x60] sm:$0xff]  ;;  %v8545_v40 = vld [vmem:[%s16910_s5 + $0x58] sm:$0xff]  ;;  %v8548_v52 = vld [vmem:[%s16910_s5 + $0x70] sm:$0xff] }
 0x6e5   : > { %19740 = vst [vmem:[#allocation410_spill] sm:$0xff] %v16305_v61  ;;  %19742 = vst [vmem:[#allocation376_spill] sm:$0xff] %v16308_v15  ;;  %v8379_v42 = vadd.f32 %v8378_v36, %v8274_v7  ;;  %v8281_v27 = vmul.f32 %v16308_v15, %v16308_v15  ;;  %v8280_v13 = vmul.f32 %v16305_v61, %v16305_v61  ;;  %v8547_v36 = vld [vmem:[%s16910_s5 + $0x68] sm:$0xff]  ;;  %v8550_v54 = vld [vmem:[%s16910_s5 + $0x80] sm:$0xff] }
 0x6e6   : > { %19744 = vst [vmem:[#allocation378_spill] sm:$0xff] %v16313_v26  ;;  %19746 = vst [vmem:[#allocation377_spill] sm:$0xff] %v16316_v14  ;;  %v8278_v28 = vmul.f32 %v16313_v26, %v16313_v26  ;;  %v8279_v30 = vmul.f32 %v16316_v14, %v16316_v14  ;;  %v19747_v26 = vld [vmem:[#allocation381_spill] sm:$0xff] }
 0x6e7   : > { %8376 = vadd.xlane.f32.xlu1 %v8375_v32  ;;  %8380 = vadd.xlane.f32.xlu0 %v8379_v42  ;;  %v8390_v4 = vsel %vm7913_vm3, %v8281_v27, 0.0  ;;  %v8543_v32 = vld [vmem:[%s16910_s5 + $0x48] sm:$0xff]  ;;  %v8549_v42 = vld [vmem:[%s16910_s5 + $0x78] sm:$0xff]  ;;  %v8552_v27 = vld [vmem:[%s16910_s5 + $0x90] sm:$0xff] }
 0x6e8   : > { %v8386_v12 = vsel %vm7913_vm3, %v8279_v30, 0.0  ;;  %v8391_v34 = vadd.f32 %v8390_v4, %v8280_v13  ;;  %v8554_v30 = vld [vmem:[%s16910_s5 + $0xa0] sm:$0xff]  ;;  %v8556_v13 = vld [vmem:[%s16910_s5 + $0xb0] sm:$0xff] }
 0x6e9   : > { %v8387_v7 = vadd.f32 %v8386_v12, %v8278_v28  ;;  %v8551_v28 = vld [vmem:[%s16910_s5 + $0x88] sm:$0xff]  ;;  %v8558_v4 = vld [vmem:[%s16910_s5 + $0xc0] sm:$0xff] }
 0x6ea   : > { %v8555_v12 = vld [vmem:[%s16910_s5 + $0xa8] sm:$0xff] }
 0x6eb   : > { %8384 = vadd.xlane.f32.xlu1 %v8383_v10  ;;  %8388 = vadd.xlane.f32.xlu0 %v8387_v7  ;;  %v8553_v10 = vld [vmem:[%s16910_s5 + $0x98] sm:$0xff]  ;;  %v16375_v7 = vpop.permute.xlu1 %8569 }
 0x6ef   : > { %8392 = vadd.xlane.f32.xlu1 %v8391_v34  ;;  %v8557_v34 = vld [vmem:[%s16910_s5 + $0xb8] sm:$0xff] }
 0x700   : > { %8614 = vperm.xlu1 %10702, %v8544_v38   ;;  %v8560_v38 = vld [vmem:[%s16910_s5 + $0xd0] sm:$0xff] }
 0x701   : > { %8609 = vperm.xlu0 %10701, %v8543_v32   ;;  %v8559_v32 = vld [vmem:[%s16910_s5 + $0xc8] sm:$0xff] }
 0x704   : > { %8624 = vperm.xlu1 %10702, %v8546_v23   ;;  %v16386_v23 = vpop.permute.xlu1 %8574 }
 0x705   : > { %8619 = vperm.xlu0 %10701, %v8545_v40   ;;  %v8758_v40 = vld [vmem:[%s16911_s6] sm:$0xff] }
 0x708   : > { %8634 = vperm.xlu1 %10702, %v8548_v52   ;;  %v8561_v52 = vld [vmem:[%s16910_s5 + $0xd8] sm:$0xff] }
 0x709   : > { %8629 = vperm.xlu0 %10701, %v8547_v36   ;;  %v8760_v36 = vld [vmem:[%s16911_s6 + $0x10] sm:$0xff] }
 0x70c   : > { %8644 = vperm.xlu1 %10702, %v8550_v54   ;;  %v16397_v54 = vpop.permute.xlu1 %8579 }
 0x70d   : > { %8639 = vperm.xlu0 %10701, %v8549_v42   ;;  %v8759_v42 = vld [vmem:[%s16911_s6 + $0x8] sm:$0xff] }
 0x710   : > { %8654 = vperm.xlu1 %10702, %v8552_v27   ;;  %v8762_v27 = vld [vmem:[%s16911_s6 + $0x20] sm:$0xff] }
 0x711   : > { %8649 = vperm.xlu0 %10701, %v8551_v28   ;;  %v8761_v28 = vld [vmem:[%s16911_s6 + $0x18] sm:$0xff] }
 0x714   : > { %8664 = vperm.xlu1 %10702, %v8554_v30   ;;  %v16408_v30 = vpop.permute.xlu1 %8584 }
 0x715   : > { %8659 = vperm.xlu0 %10701, %v8553_v10   ;;  %v8764_v10 = vld [vmem:[%s16911_s6 + $0x30] sm:$0xff] }
 0x718   : > { %8674 = vperm.xlu1 %10702, %v8556_v13   ;;  %v8763_v13 = vld [vmem:[%s16911_s6 + $0x28] sm:$0xff] }
 0x719   : > { %8669 = vperm.xlu0 %10701, %v8555_v12   ;;  %v8766_v12 = vld [vmem:[%s16911_s6 + $0x40] sm:$0xff] }
 0x71c   : > { %8684 = vperm.xlu1 %10702, %v8558_v4   ;;  %v16419_v4 = vpop.permute.xlu1 %8589 }
 0x71d   : > { %8679 = vperm.xlu0 %10701, %v8557_v34   ;;  %v8765_v34 = vld [vmem:[%s16911_s6 + $0x38] sm:$0xff] }
 0x720   : > { %8694 = vperm.xlu1 %10702, %v8560_v38   ;;  %v8768_v38 = vld [vmem:[%s16911_s6 + $0x50] sm:$0xff] }
 0x721   : > { %8689 = vperm.xlu0 %10701, %v8559_v32   ;;  %v8767_v32 = vld [vmem:[%s16911_s6 + $0x48] sm:$0xff] }
 0x724   : > { %8788 = vperm.xlu1 %10702, %v8758_v40   ;;  %v16430_v40 = vpop.permute.xlu1 %8594 }
 0x725   : > { %8699 = vperm.xlu0 %10701, %v8561_v52   ;;  %v8770_v52 = vld [vmem:[%s16911_s6 + $0x60] sm:$0xff] }
 0x728   : > { %8798 = vperm.xlu1 %10702, %v8760_v36   ;;  %v8769_v36 = vld [vmem:[%s16911_s6 + $0x58] sm:$0xff] }
 0x729   : > { %8793 = vperm.xlu0 %10701, %v8759_v42   ;;  %v8772_v42 = vld [vmem:[%s16911_s6 + $0x70] sm:$0xff] }
 0x72c   : > { %8808 = vperm.xlu1 %10702, %v8762_v27   ;;  %v16441_v27 = vpop.permute.xlu1 %8599 }
 0x72d   : > { %8803 = vperm.xlu0 %10701, %v8761_v28   ;;  %v8771_v28 = vld [vmem:[%s16911_s6 + $0x68] sm:$0xff] }
 0x730   : > { %8818 = vperm.xlu1 %10702, %v8764_v10   ;;  %v8565_v10 = vpop.permute.xlu0 %8564 }
 0x731   : > { %8813 = vperm.xlu0 %10701, %v8763_v13   ;;  %v8774_v13 = vld [vmem:[%s16911_s6 + $0x80] sm:$0xff] }
 0x734   : > { %8828 = vperm.xlu1 %10702, %v8766_v12   ;;  %v8773_v12 = vld [vmem:[%s16911_s6 + $0x78] sm:$0xff] }
 0x735   : > { %8823 = vperm.xlu0 %10701, %v8765_v34   ;;  %v8605_v34 = vpop.permute.xlu1 %8604 }
 0x738   : > { %8838 = vperm.xlu1 %10702, %v8768_v38  }
 0x739   : > { %8833 = vperm.xlu0 %10701, %v8767_v32  }
 0x73c   : > { %8848 = vperm.xlu1 %10702, %v8770_v52   ;;  %v8776_v52 = vld [vmem:[%s16911_s6 + $0x90] sm:$0xff] }
 0x73d   : > { %8843 = vperm.xlu0 %10701, %v8769_v36   ;;  %v8775_v36 = vld [vmem:[%s16911_s6 + $0x88] sm:$0xff] }
 0x740   : > { %8858 = vperm.xlu1 %10702, %v8772_v42  }
 0x741   : > { %8853 = vperm.xlu0 %10701, %v8771_v28  }
 0x744   : > { %8868 = vperm.xlu1 %10702, %v8774_v13   ;;  %v8285_v38 = vpop.xlane.xlu0 %8284  ;;  %v8778_v13 = vld [vmem:[%s16911_s6 + $0xa0] sm:$0xff] }
 0x745   : > { %v8394_v32 = vmul.f32 0.0051020407, %v8285_v38  ;;  %8863 = vperm.xlu0 %10701, %v8773_v12   ;;  %v8777_v12 = vld [vmem:[%s16911_s6 + $0x98] sm:$0xff] }
 0x747   : > { %v8422_v42 = vadd.f32 0.001, %v8394_v32  ;;  %v8780_v32 = vld [vmem:[%s16911_s6 + $0xb0] sm:$0xff] }
 0x748   : > { %8878 = vperm.xlu1 %10702, %v8776_v52   ;;  %v16458_v28 = vpop.xlane.xlu1 %8288  ;;  %v16460_v15 = vpop.xlane.xlu0 %8292  ;;  %v8779_v52 = vld [vmem:[%s16911_s6 + $0xa8] sm:$0xff] }
 0x749   : > { %10703 = vrsqrt.f32 %v8422_v42  ;;  %8873 = vperm.xlu0 %10701, %v8775_v36   ;;  %v8395_v48 = vmul.f32 0.0051020407, %v16458_v28 }
 0x74b   : > { %v8423_v17 = vadd.f32 0.001, %v8395_v48 }
 0x74c   : > { %8888 = vperm.xlu1 %10702, %v8778_v13   ;;  %v8297_v38 = vpop.xlane.xlu1 %8296  ;;  %v8301_v61 = vpop.xlane.xlu0 %8300  ;;  %v8782_v13 = vld [vmem:[%s16911_s6 + $0xc0] sm:$0xff] }
 0x74d   : > { %8883 = vperm.xlu0 %10701, %v8777_v12   ;;  %v8781_v12 = vld [vmem:[%s16911_s6 + $0xb8] sm:$0xff] }
 0x750   : > { %8898 = vperm.xlu1 %10702, %v8780_v32   ;;  %v16474_v36 = vpop.xlane.xlu1 %8304  ;;  %v16476_v42 = vpop.xlane.xlu0 %8308 }
 0x751   : > { %8893 = vperm.xlu0 %10701, %v8779_v52   ;;  %v8784_v52 = vld [vmem:[%s16911_s6 + $0xd0] sm:$0xff] }
 0x753   : > { %v10704_v41 = vpop.eup %10703 }
 0x754   : > { %8908 = vperm.xlu1 %10702, %v8782_v13   ;;  %v16484_v29 = vpop.xlane.xlu1 %8312  ;;  %v8317_v14 = vpop.xlane.xlu0 %8316  ;;  %v8478_v32 = vmul.f32 %v10704_v41, %v19747_v26  ;;  %v8479_v3 = vmul.f32 %v10704_v41, %v19748_v58  ;;  %v8785_v58 = vld [vmem:[%s16911_s6 + $0xd8] sm:$0xff] }
 0x755   : > { %v8402_v37 = vmul.f32 0.0051020407, %v8317_v14  ;;  %8903 = vperm.xlu0 %10701, %v8781_v12   ;;  %v8401_v48 = vmul.f32 0.0051020407, %v16484_v29 }
 0x756   : > { %v16494_v49 = vmul.f32 %v8565_v10, %v8478_v32  ;;  %v16496_v13 = vmul.f32 %v8565_v10, %v8479_v3 }
 0x757   : > { %v8430_v53 = vadd.f32 0.001, %v8402_v37 }
 0x758   : > { %8918 = vperm.xlu1 %10702, %v8784_v52   ;;  %v8321_v9 = vpop.xlane.xlu1 %8320  ;;  %v8325_v26 = vpop.xlane.xlu0 %8324 }
 0x759   : > { %8913 = vperm.xlu0 %10701, %v8783_v5   ;;  %10705 = vrsqrt.f32 %v8430_v53 }
 0x75a   : > { %10707 = vrsqrt.f32 %v8423_v17  ;;  %v8429_v17 = vadd.f32 0.001, %v8401_v48 }
 0x75c   : > { %v8329_v41 = vpop.xlane.xlu1 %8328  ;;  %v16501_v14 = vpop.xlane.xlu0 %8332 }
 0x75d   : > { %8923 = vperm.xlu0 %10701, %v8785_v58  }
 0x760   : > { %v16503_v12 = vpop.xlane.xlu1 %8336  ;;  %v16505_v32 = vpop.xlane.xlu0 %8340 }
 0x761   : > { %v8407_v48 = vmul.f32 0.0051020407, %v16503_v12 }
 0x763   : > { %v10706_v3 = vpop.eup %10705 }
 0x764   : > { %v16507_v10 = vpop.xlane.xlu1 %8344  ;;  %v16509_v37 = vpop.xlane.xlu0 %8348  ;;  %v8494_v5 = vmul.f32 %v10706_v3, %v16116_v1  ;;  %v8495_v53 = vmul.f32 %v10706_v3, %v16119_v50 }
 0x766   : > { %v16513_v52 = vmul.f32 %v8605_v34, %v8494_v5  ;;  %v16519_v58 = vmul.f32 %v8605_v34, %v8495_v53 }
 0x768   : > { %v16515_v6 = vpop.xlane.xlu1 %8352  ;;  %v16517_v25 = vpop.xlane.xlu0 %8356 }
 0x76c   : > { %v16521_v47 = vpop.xlane.xlu1 %8360  ;;  %v16523_v20 = vpop.xlane.xlu0 %8364 }
 0x770   : > { %v16525_v31 = vpop.xlane.xlu1 %8368  ;;  %v16527_v24 = vpop.xlane.xlu0 %8372 }
 0x774   : > { %v16529_v60 = vpop.xlane.xlu1 %8376  ;;  %v16531_v1 = vpop.xlane.xlu0 %8380 }
 0x775   : > { %19749 = vst [vmem:[#allocation381_spill] sm:$0xff] %v16529_v60  ;;  %19750 = vst [vmem:[#allocation382_spill] sm:$0xff] %v16531_v1  ;;  %v8398_v1 = vmul.f32 0.0051020407, %v8301_v61 }
 0x778   : > { %v16533_v50 = vpop.xlane.xlu1 %8384  ;;  %v16535_v3 = vpop.xlane.xlu0 %8388 }
 0x779   : > { %19751 = vst [vmem:[#allocation411_spill] sm:$0xff] %v16533_v50  ;;  %19752 = vst [vmem:[#allocation412_spill] sm:$0xff] %v16535_v3  ;;  %v8396_v50 = vmul.f32 0.0051020407, %v16460_v15  ;;  %v8400_v15 = vmul.f32 0.0051020407, %v16476_v42 }
 0x77b   : > { %v8424_v60 = vadd.f32 0.001, %v8396_v50 }
 0x77c   : > { %v16537_v5 = vpop.xlane.xlu1 %8392 }
 0x77d   : > { %19753 = vst [vmem:[#allocation413_spill] sm:$0xff] %v16537_v5  ;;  %v8397_v5 = vmul.f32 0.0051020407, %v8297_v38  ;;  %10709 = vrsqrt.f32 %v8424_v60  ;;  %v8428_v38 = vadd.f32 0.001, %v8400_v15 }
 0x77e   : > { %v8404_v60 = vmul.f32 0.0051020407, %v8325_v26 }
 0x780   : > { %v16539_v34 = vpop.permute.xlu1 %8614  ;;  %v16541_v53 = vpop.permute.xlu0 %8609 }
 0x781   : > { %19754 = vst [vmem:[#allocation414_spill] sm:$0xff] %v16541_v53 }
 0x784   : > { %v16543_v57 = vpop.permute.xlu1 %8624  ;;  %v16545_v21 = vpop.permute.xlu0 %8619 }
 0x785   : > { %19755 = vst [vmem:[#allocation415_spill] sm:$0xff] %v16543_v57  ;;  %19756 = vst [vmem:[#allocation416_spill] sm:$0xff] %v16545_v21  ;;  %v8425_v21 = vadd.f32 0.001, %v8397_v5 }
 0x787   : > { %10711 = vrsqrt.f32 %v8425_v21  ;;  %v8405_v21 = vmul.f32 0.0051020407, %v8329_v41  ;;  %v19772_v41 = vld [vmem:[#allocation379_spill] sm:$0xff] }
 0x788   : > { %v16547_v19 = vpop.permute.xlu1 %8634  ;;  %v16549_v43 = vpop.permute.xlu0 %8629 }
 0x789   : > { %19757 = vst [vmem:[#allocation417_spill] sm:$0xff] %v16547_v19  ;;  %19758 = vst [vmem:[#allocation418_spill] sm:$0xff] %v16549_v43  ;;  %v8426_v19 = vadd.f32 0.001, %v8398_v1  ;;  %v8399_v43 = vmul.f32 0.0051020407, %v16474_v36 }
 0x78a   : > { %v8403_v36 = vmul.f32 0.0051020407, %v8321_v9 }
 0x78b   : > { %10713 = vrsqrt.f32 %v8426_v19  ;;  %v8427_v61 = vadd.f32 0.001, %v8399_v43  ;;  %v8406_v43 = vmul.f32 0.0051020407, %v16501_v14 }
 0x78c   : > { %v16553_v44 = vpop.permute.xlu1 %8644  ;;  %v16555_v3 = vpop.permute.xlu0 %8639  ;;  %v8431_v15 = vadd.f32 0.001, %v8403_v36 }
 0x78d   : > { %19759 = vst [vmem:[#allocation419_spill] sm:$0xff] %v16553_v44  ;;  %19760 = vst [vmem:[#allocation420_spill] sm:$0xff] %v16555_v3  ;;  %10715 = vrsqrt.f32 %v8427_v61 }
 0x78e   : > { %10717 = vrsqrt.f32 %v8428_v38  ;;  %v8433_v38 = vadd.f32 0.001, %v8405_v21 }
 0x78f   : > { %10719 = vrsqrt.f32 %v8429_v17  ;;  %v8434_v17 = vadd.f32 0.001, %v8406_v43 }
 0x790   : > { %v16557_v53 = vpop.permute.xlu1 %8654  ;;  %v16559_v57 = vpop.permute.xlu0 %8649  ;;  %10721 = vrsqrt.f32 %v8431_v15 }
 0x791   : > { %19761 = vst [vmem:[#allocation421_spill] sm:$0xff] %v16557_v53  ;;  %19762 = vst [vmem:[#allocation422_spill] sm:$0xff] %v16559_v57  ;;  %v19773_v57 = vld [vmem:[#allocation380_spill] sm:$0xff]  ;;  %v19774_v53 = vld [vmem:[#allocation383_spill] sm:$0xff] }
 0x794   : > { %v16563_v28 = vpop.permute.xlu1 %8664  ;;  %v16565_v44 = vpop.permute.xlu0 %8659 }
 0x795   : > { %19763 = vst [vmem:[#allocation423_spill] sm:$0xff] %v16563_v28  ;;  %19764 = vst [vmem:[#allocation424_spill] sm:$0xff] %v16565_v44  ;;  %v10708_v44 = vpop.eup %10707  ;;  %v8432_v28 = vadd.f32 0.001, %v8404_v60  ;;  %v8408_v60 = vmul.f32 0.0051020407, %v16505_v32 }
 0x796   : > { %v10710_v29 = vpop.eup %10709  ;;  %v8480_v26 = vmul.f32 %v10708_v44, %v16049_v39 }
 0x797   : > { %v10712_v19 = vpop.eup %10711  ;;  %v8483_v14 = vmul.f32 %v10710_v29, %v19773_v57  ;;  %10723 = vrsqrt.f32 %v8432_v28 }
 0x798   : > { %v16568_v50 = vpop.permute.xlu1 %8674  ;;  %v16570_v5 = vpop.permute.xlu0 %8669  ;;  %v8484_v36 = vmul.f32 %v10712_v19, %v19774_v53  ;;  %10725 = vrsqrt.f32 %v8433_v38 }
 0x799   : > { %19765 = vst [vmem:[#allocation425_spill] sm:$0xff] %v16568_v50  ;;  %19766 = vst [vmem:[#allocation426_spill] sm:$0xff] %v16570_v5  ;;  %v10714_v50 = vpop.eup %10713  ;;  %v8482_v5 = vmul.f32 %v10710_v29, %v19772_v41  ;;  %10727 = vrsqrt.f32 %v8434_v17  ;;  %v8707_v29 = vmul.f32 %v16386_v23, %v8483_v14  ;;  %v8410_v17 = vmul.f32 0.0051020407, %v16509_v37 }
 0x79a   : > { %v8486_v12 = vmul.f32 %v10714_v50, %v16072_v46  ;;  %v10716_v43 = vpop.eup %10715 }
 0x79b   : > { %v10718_v46 = vpop.eup %10717  ;;  %v8706_v28 = vmul.f32 %v16386_v23, %v8482_v5  ;;  %v8489_v5 = vmul.f32 %v10716_v43, %v16068_v2 }
 0x79c   : > { %v16572_v42 = vpop.permute.xlu1 %8684  ;;  %v16574_v1 = vpop.permute.xlu0 %8679  ;;  %v8490_v41 = vmul.f32 %v10718_v46, %v16093_v59  ;;  %v8491_v14 = vmul.f32 %v10718_v46, %v16096_v51 }
 0x79d   : > { %19767 = vst [vmem:[#allocation427_spill] sm:$0xff] %v16572_v42  ;;  %19768 = vst [vmem:[#allocation428_spill] sm:$0xff] %v16574_v1  ;;  %v19771_v1 = vld [vmem:[#allocation385_spill] sm:$0xff]  ;;  %v10720_v15 = vpop.eup %10719 }
 0x79e   : > { %v8481_v42 = vmul.f32 %v10708_v44, %v19771_v1  ;;  %v8704_v44 = vmul.f32 %v16375_v7, %v8480_v26  ;;  %v8487_v1 = vmul.f32 %v10714_v50, %v16075_v55  ;;  %v8409_v55 = vmul.f32 0.0051020407, %v16507_v10  ;;  %v10722_v37 = vpop.eup %10721 }
 0x79f   : > { %v8488_v10 = vmul.f32 %v10716_v43, %v16065_v0  ;;  %v19776_v0 = vld [vmem:[#allocation386_spill] sm:$0xff]  ;;  %v8715_v43 = vmul.f32 %v16430_v40, %v8491_v14 }
 0x7a0   : > { %v16578_v61 = vpop.permute.xlu1 %8694  ;;  %v16580_v9 = vpop.permute.xlu0 %8689  ;;  %v8705_v32 = vmul.f32 %v16375_v7, %v8481_v42  ;;  %v8711_v50 = vmul.f32 %v16408_v30, %v8487_v1  ;;  %v8493_v2 = vmul.f32 %v10720_v15, %v19776_v0  ;;  %v8714_v1 = vmul.f32 %v16430_v40, %v8490_v41 }
 0x7a1   : > { %19769 = vst [vmem:[#allocation429_spill] sm:$0xff] %v16578_v61  ;;  %19770 = vst [vmem:[#allocation430_spill] sm:$0xff] %v16580_v9  ;;  %v19775_v61 = vld [vmem:[#allocation384_spill] sm:$0xff]  ;;  %v8435_v9 = vadd.f32 0.001, %v8407_v48 }
 0x7a2   : > { %v8485_v3 = vmul.f32 %v10712_v19, %v19775_v61  ;;  %v8708_v19 = vmul.f32 %v16397_v54, %v8484_v36  ;;  %v8436_v48 = vadd.f32 0.001, %v8408_v60  ;;  %v8717_v40 = vmul.f32 %v16441_v27, %v8493_v2 }
 0x7a3   : > { %10729 = vrsqrt.f32 %v8435_v9 }
 0x7a4   : > { %v8789_v39 = vpop.permute.xlu1 %8788  ;;  %v16590_v21 = vpop.permute.xlu0 %8699  ;;  %v8709_v7 = vmul.f32 %v16397_v54, %v8485_v3  ;;  %v8492_v54 = vmul.f32 %v10720_v15, %v16085_v56  ;;  %10731 = vrsqrt.f32 %v8436_v48  ;;  %v8437_v3 = vadd.f32 0.001, %v8409_v55 }
 0x7a5   : > { %v8926_v57 = vadd.f32 %v8789_v39, %v16494_v49  ;;  %v8927_v53 = vadd.f32 %v8789_v39, %v16496_v13  ;;  %v8710_v49 = vmul.f32 %v16408_v30, %v8486_v12  ;;  %v8411_v30 = vmul.f32 0.0051020407, %v16515_v6  ;;  %v10724_v39 = vpop.eup %10723 }
 0x7a6   : > { %v8412_v56 = vmul.f32 0.0051020407, %v16517_v25  ;;  %v8712_v6 = vmul.f32 %v16419_v4, %v8488_v10  ;;  %10733 = vrsqrt.f32 %v8437_v3  ;;  %v8499_v10 = vmul.f32 %v10724_v39, %v16140_v11 }
 0x7a7   : > { %8982 = vst [vmem:[%s16912_s7] sm:$0xff] %v8926_v57  ;;  %8983 = vst.msk [vmem:[%s16912_s7 + $0x8] sm:$0xff] %vm7913_vm3, %v8927_v53  ;;  %v8713_v57 = vmul.f32 %v16419_v4, %v8489_v5  ;;  %v10726_v53 = vpop.eup %10725  ;;  %v8439_v25 = vadd.f32 0.001, %v8411_v30  ;;  %v8716_v4 = vmul.f32 %v16441_v27, %v8492_v54  ;;  %v8498_v27 = vmul.f32 %v10724_v39, %v16137_v22  ;;  %v19777_v54 = vld [vmem:[#allocation414_spill] sm:$0xff]  ;;  %v19782_v39 = vld [vmem:[#allocation415_spill] sm:$0xff] }
 0x7a8   : > { %v8799_v23 = vpop.permute.xlu1 %8798  ;;  %v8794_v13 = vpop.permute.xlu0 %8793  ;;  %v8440_v46 = vadd.f32 0.001, %v8412_v56 }
 0x7a9   : > { %v8930_v42 = vadd.f32 %v8799_v23, %v8706_v28  ;;  %v8931_v61 = vadd.f32 %v8799_v23, %v8707_v29  ;;  %v8928_v26 = vadd.f32 %v8794_v13, %v8704_v44  ;;  %v8929_v38 = vadd.f32 %v8794_v13, %v8705_v32  ;;  %v10728_v32 = vpop.eup %10727 }
 0x7aa   : > { %v8438_v44 = vadd.f32 0.001, %v8410_v17  ;;  %v8413_v28 = vmul.f32 0.0051020407, %v16521_v47  ;;  %v8496_v29 = vmul.f32 %v10722_v37, %v16109_v16  ;;  %v8502_v47 = vmul.f32 %v10728_v32, %v16160_v62 }
 0x7ab   : > { %8986 = vst [vmem:[%s16912_s7 + $0x20] sm:$0xff] %v8930_v42  ;;  %8987 = vst.msk [vmem:[%s16912_s7 + $0x28] sm:$0xff] %vm7913_vm3, %v8931_v61  ;;  %v8500_v16 = vmul.f32 %v10726_v53, %v16129_v18  ;;  %v8503_v22 = vmul.f32 %v10728_v32, %v16163_v8  ;;  %v8416_v17 = vmul.f32 0.0051020407, %v16527_v24  ;;  %v8723_v8 = vmul.f32 %v16539_v34, %v8499_v10  ;;  %v19787_v10 = vld [vmem:[#allocation388_spill] sm:$0xff] }
 0x7ac   : > { %8984 = vst [vmem:[%s16912_s7 + $0x10] sm:$0xff] %v8928_v26  ;;  %8985 = vst.msk [vmem:[%s16912_s7 + $0x18] sm:$0xff] %vm7913_vm3, %v8929_v38  ;;  %v8809_v59 = vpop.permute.xlu1 %8808  ;;  %v8804_v51 = vpop.permute.xlu0 %8803  ;;  %10735 = vrsqrt.f32 %v8438_v44  ;;  %v8441_v18 = vadd.f32 0.001, %v8413_v28  ;;  %v8720_v3 = vmul.f32 %v19777_v54, %v8496_v29  ;;  %v8726_v44 = vmul.f32 %v19782_v39, %v8502_v47 }
 0x7ad   : > { %v8934_v9 = vadd.f32 %v8809_v59, %v8710_v49  ;;  %v8935_v36 = vadd.f32 %v8809_v59, %v8711_v50  ;;  %v8932_v60 = vadd.f32 %v8804_v51, %v8708_v19  ;;  %v8933_v12 = vadd.f32 %v8804_v51, %v8709_v7  ;;  %v10730_v13 = vpop.eup %10729 }
 0x7ae   : > { %v8497_v19 = vmul.f32 %v10722_v37, %v16112_v45  ;;  %v8414_v50 = vmul.f32 0.0051020407, %v16523_v20  ;;  %10737 = vrsqrt.f32 %v8439_v25  ;;  %v8501_v45 = vmul.f32 %v10726_v53, %v16132_v33  ;;  %v10732_v20 = vpop.eup %10731 }
 0x7af   : > { %8990 = vst [vmem:[%s16912_s7 + $0x40] sm:$0xff] %v8934_v9  ;;  %8991 = vst.msk [vmem:[%s16912_s7 + $0x48] sm:$0xff] %vm7913_vm3, %v8935_v36  ;;  %10739 = vrsqrt.f32 %v8440_v46  ;;  %v8415_v33 = vmul.f32 0.0051020407, %v16525_v31  ;;  %v8504_v41 = vmul.f32 %v10730_v13, %v16153_v63  ;;  %v8505_v14 = vmul.f32 %v10730_v13, %v16156_v35  ;;  %v19778_v35 = vld [vmem:[#allocation381_spill] sm:$0xff]  ;;  %v19780_v9 = vld [vmem:[#allocation382_spill] sm:$0xff] }
 0x7b0   : > { %8988 = vst [vmem:[%s16912_s7 + $0x30] sm:$0xff] %v8932_v60  ;;  %8989 = vst.msk [vmem:[%s16912_s7 + $0x38] sm:$0xff] %vm7913_vm3, %v8933_v12  ;;  %v8819_v15 = vpop.permute.xlu1 %8818  ;;  %v8814_v48 = vpop.permute.xlu0 %8813  ;;  %v8442_v38 = vadd.f32 0.001, %v8414_v50  ;;  %v8722_v31 = vmul.f32 %v16539_v34, %v8498_v27  ;;  %v8721_v30 = vmul.f32 %v19777_v54, %v8497_v19  ;;  %10741 = vrsqrt.f32 %v8441_v18  ;;  %v19781_v60 = vld [vmem:[#allocation390_spill] sm:$0xff]  ;;  %v19785_v46 = vld [vmem:[#allocation387_spill] sm:$0xff] }
 0x7b1   : > { %v8938_v55 = vadd.f32 %v8819_v15, %v8714_v1  ;;  %v8939_v49 = vadd.f32 %v8819_v15, %v8715_v43  ;;  %v8936_v7 = vadd.f32 %v8814_v48, %v8712_v6  ;;  %v8937_v23 = vadd.f32 %v8814_v48, %v8713_v57  ;;  %v10734_v2 = vpop.eup %10733  ;;  %v19783_v43 = vld [vmem:[#allocation416_spill] sm:$0xff] }
 0x7b2   : > { %v8443_v63 = vadd.f32 0.001, %v8415_v33  ;;  %v8417_v24 = vmul.f32 0.0051020407, %v19778_v35  ;;  %10743 = vrsqrt.f32 %v8442_v38  ;;  %v8444_v37 = vadd.f32 0.001, %v8416_v17 }
 0x7b3   : > { %8994 = vst [vmem:[%s16912_s7 + $0x60] sm:$0xff] %v8938_v55  ;;  %8995 = vst.msk [vmem:[%s16912_s7 + $0x68] sm:$0xff] %vm7913_vm3, %v8939_v49  ;;  %v8418_v36 = vmul.f32 0.0051020407, %v19780_v9  ;;  %v8507_v12 = vmul.f32 %v10732_v20, %v19781_v60  ;;  %v8727_v1 = vmul.f32 %v19782_v39, %v8503_v22  ;;  %v8724_v57 = vmul.f32 %v19783_v43, %v8500_v16  ;;  %v19786_v50 = vld [vmem:[#allocation412_spill] sm:$0xff]  ;;  %v19788_v16 = vld [vmem:[#allocation417_spill] sm:$0xff] }
 0x7b4   : > { %8992 = vst [vmem:[%s16912_s7 + $0x50] sm:$0xff] %v8936_v7  ;;  %8993 = vst.msk [vmem:[%s16912_s7 + $0x58] sm:$0xff] %vm7913_vm3, %v8937_v23  ;;  %v8829_v11 = vpop.permute.xlu1 %8828  ;;  %v8824_v62 = vpop.permute.xlu0 %8823  ;;  %v8725_v53 = vmul.f32 %v19783_v43, %v8501_v45  ;;  %10745 = vrsqrt.f32 %v8443_v63  ;;  %v8508_v28 = vmul.f32 %v10734_v2, %v19785_v46  ;;  %v8420_v27 = vmul.f32 0.0051020407, %v19786_v50  ;;  %v19789_v33 = vld [vmem:[#allocation418_spill] sm:$0xff]  ;;  %v19793_v63 = vld [vmem:[#allocation391_spill] sm:$0xff] }
 0x7b5   : > { %v8942_v5 = vadd.f32 %v8829_v11, %v16513_v52  ;;  %v8943_v42 = vadd.f32 %v8829_v11, %v16519_v58  ;;  %v8940_v61 = vadd.f32 %v8824_v62, %v8716_v4  ;;  %v8941_v26 = vadd.f32 %v8824_v62, %v8717_v40  ;;  %v19779_v52 = vld [vmem:[#allocation389_spill] sm:$0xff]  ;;  %v19784_v40 = vld [vmem:[#allocation411_spill] sm:$0xff]  ;;  %v19798_v9 = vld [vmem:[#allocation392_spill] sm:$0xff] }
 0x7b6   : > { %v8506_v58 = vmul.f32 %v10732_v20, %v19779_v52  ;;  %v10736_v25 = vpop.eup %10735  ;;  %v8445_v4 = vadd.f32 0.001, %v8417_v24  ;;  %v8419_v32 = vmul.f32 0.0051020407, %v19784_v40  ;;  %10747 = vrsqrt.f32 %v8444_v37  ;;  %v19790_v20 = vld [vmem:[#allocation393_spill] sm:$0xff]  ;;  %v19794_v24 = vld [vmem:[#allocation419_spill] sm:$0xff] }
 0x7b7   : > { %8998 = vst [vmem:[%s16912_s7 + $0x80] sm:$0xff] %v8942_v5  ;;  %8999 = vst.msk [vmem:[%s16912_s7 + $0x88] sm:$0xff] %vm7913_vm3, %v8943_v42  ;;  %v8446_v13 = vadd.f32 0.001, %v8418_v36  ;;  %v8509_v47 = vmul.f32 %v10734_v2, %v19787_v10  ;;  %v8731_v18 = vmul.f32 %v19788_v16, %v8507_v12  ;;  %v8728_v22 = vmul.f32 %v19789_v33, %v8504_v41  ;;  %v19791_v42 = vld [vmem:[#allocation394_spill] sm:$0xff] }
 0x7b8   : > { %8996 = vst [vmem:[%s16912_s7 + $0x70] sm:$0xff] %v8940_v61  ;;  %8997 = vst.msk [vmem:[%s16912_s7 + $0x78] sm:$0xff] %vm7913_vm3, %v8941_v26  ;;  %v8839_v34 = vpop.permute.xlu1 %8838  ;;  %v8834_v0 = vpop.permute.xlu0 %8833  ;;  %v8730_v45 = vmul.f32 %v19788_v16, %v8506_v58  ;;  %v8729_v11 = vmul.f32 %v19789_v33, %v8505_v14  ;;  %10749 = vrsqrt.f32 %v8445_v4  ;;  %v8447_v62 = vadd.f32 0.001, %v8419_v32  ;;  %v19800_v32 = vld [vmem:[#allocation422_spill] sm:$0xff]  ;;  %v19805_v33 = vld [vmem:[#allocation423_spill] sm:$0xff] }
 0x7b9   : > { %v8946_v56 = vadd.f32 %v8839_v34, %v8722_v31  ;;  %v8947_v59 = vadd.f32 %v8839_v34, %v8723_v8  ;;  %v8944_v51 = vadd.f32 %v8834_v0, %v8720_v3  ;;  %v8945_v6 = vadd.f32 %v8834_v0, %v8721_v30  ;;  %v10738_v15 = vpop.eup %10737  ;;  %v19792_v3 = vld [vmem:[#allocation413_spill] sm:$0xff]  ;;  %v19795_v34 = vld [vmem:[#allocation420_spill] sm:$0xff] }
 0x7ba   : > { %v10740_v23 = vpop.eup %10739  ;;  %v8510_v5 = vmul.f32 %v10736_v25, %v19790_v20  ;;  %v8511_v61 = vmul.f32 %v10736_v25, %v19791_v42  ;;  %10751 = vrsqrt.f32 %v8446_v13  ;;  %v8448_v54 = vadd.f32 0.001, %v8420_v27  ;;  %v19799_v25 = vld [vmem:[#allocation421_spill] sm:$0xff] }
 0x7bb   : > { %9002 = vst [vmem:[%s16912_s7 + $0xa0] sm:$0xff] %v8946_v56  ;;  %9003 = vst.msk [vmem:[%s16912_s7 + $0xa8] sm:$0xff] %vm7913_vm3, %v8947_v59  ;;  %v10742_v8 = vpop.eup %10741  ;;  %v8421_v30 = vmul.f32 0.0051020407, %v19792_v3  ;;  %v8512_v35 = vmul.f32 %v10738_v15, %v19793_v63  ;;  %v8732_v0 = vmul.f32 %v19795_v34, %v8508_v28  ;;  %v8733_v2 = vmul.f32 %v19795_v34, %v8509_v47  ;;  %v19796_v59 = vld [vmem:[#allocation397_spill] sm:$0xff] }
 0x7bc   : > { %9000 = vst [vmem:[%s16912_s7 + $0x90] sm:$0xff] %v8944_v51  ;;  %9001 = vst.msk [vmem:[%s16912_s7 + $0x98] sm:$0xff] %vm7913_vm3, %v8945_v6  ;;  %v8849_v29 = vpop.permute.xlu1 %8848  ;;  %v8844_v19 = vpop.permute.xlu0 %8843  ;;  %v8734_v52 = vmul.f32 %v19794_v24, %v8510_v5  ;;  %v8735_v58 = vmul.f32 %v19794_v24, %v8511_v61  ;;  %10753 = vrsqrt.f32 %v8447_v62  ;;  %v8514_v51 = vmul.f32 %v10740_v23, %v19796_v59  ;;  %v19797_v6 = vld [vmem:[#allocation398_spill] sm:$0xff]  ;;  %v19806_v62 = vld [vmem:[#allocation424_spill] sm:$0xff] }
 0x7bd   : > { %v8950_v48 = vadd.f32 %v8849_v29, %v8726_v44  ;;  %v8951_v55 = vadd.f32 %v8849_v29, %v8727_v1  ;;  %v8948_v49 = vadd.f32 %v8844_v19, %v8724_v57  ;;  %v8949_v7 = vadd.f32 %v8844_v19, %v8725_v53  ;;  %v10744_v56 = vpop.eup %10743  ;;  %v19801_v19 = vld [vmem:[#allocation401_spill] sm:$0xff] }
 0x7be   : > { %v8515_v37 = vmul.f32 %v10740_v23, %v19797_v6  ;;  %v8513_v36 = vmul.f32 %v10738_v15, %v19798_v9  ;;  %v10746_v57 = vpop.eup %10745  ;;  %10755 = vrsqrt.f32 %v8448_v54  ;;  %v8449_v53 = vadd.f32 0.001, %v8421_v30  ;;  %v19804_v23 = vld [vmem:[#allocation396_spill] sm:$0xff]  ;;  %v19807_v61 = vld [vmem:[#allocation405_spill] sm:$0xff]  ;;  %v19814_v9 = vld [vmem:[#allocation375_spill] sm:$0xff] }
 0x7bf   : > { %9006 = vst [vmem:[%s16912_s7 + $0xc0] sm:$0xff] %v8950_v48  ;;  %9007 = vst.msk [vmem:[%s16912_s7 + $0xc8] sm:$0xff] %vm7913_vm3, %v8951_v55  ;;  %v8738_v4 = vmul.f32 %v19799_v25, %v8514_v51  ;;  %v8736_v46 = vmul.f32 %v19800_v32, %v8512_v35  ;;  %v8518_v15 = vmul.f32 %v10744_v56, %v19801_v19  ;;  %v19802_v48 = vld [vmem:[#allocation402_spill] sm:$0xff]  ;;  %v19813_v6 = vld [vmem:[#allocation409_spill] sm:$0xff] }
 0x7c0   : > { %9004 = vst [vmem:[%s16912_s7 + $0xb0] sm:$0xff] %v8948_v49  ;;  %9005 = vst.msk [vmem:[%s16912_s7 + $0xb8] sm:$0xff] %vm7913_vm3, %v8949_v7  ;;  %v8859_v26 = vpop.permute.xlu1 %8858  ;;  %v8854_v38 = vpop.permute.xlu0 %8853  ;;  %v8739_v40 = vmul.f32 %v19799_v25, %v8515_v37  ;;  %v8737_v28 = vmul.f32 %v19800_v32, %v8513_v36  ;;  %v8519_v55 = vmul.f32 %v10744_v56, %v19802_v48  ;;  %v19803_v49 = vld [vmem:[#allocation395_spill] sm:$0xff]  ;;  %10757 = vrsqrt.f32 %v8449_v53  ;;  %v19819_v48 = vld [vmem:[#allocation378_spill] sm:$0xff] }
 0x7c1   : > { %v8954_v17 = vadd.f32 %v8859_v26, %v8730_v45  ;;  %v8955_v41 = vadd.f32 %v8859_v26, %v8731_v18  ;;  %v8952_v14 = vadd.f32 %v8854_v38, %v8728_v22  ;;  %v8953_v31 = vadd.f32 %v8854_v38, %v8729_v11  ;;  %v10748_v29 = vpop.eup %10747  ;;  %v19808_v38 = vld [vmem:[#allocation406_spill] sm:$0xff] }
 0x7c2   : > { %v8516_v7 = vmul.f32 %v10742_v8, %v19803_v49  ;;  %v8517_v13 = vmul.f32 %v10742_v8, %v19804_v23  ;;  %v10750_v18 = vpop.eup %10749  ;;  %v8742_v22 = vmul.f32 %v19805_v33, %v8518_v15  ;;  %v8743_v11 = vmul.f32 %v19805_v33, %v8519_v55  ;;  %v19820_v49 = vld [vmem:[#allocation377_spill] sm:$0xff]  ;;  %v19821_v23 = vld [vmem:[#allocation407_spill] sm:$0xff] }
 0x7c3   : > { %9010 = vst [vmem:[%s16912_s7 + $0xe0] sm:$0xff] %v8954_v17  ;;  %9011 = vst.msk [vmem:[%s16912_s7 + $0xe8] sm:$0xff] %vm7913_vm3, %v8955_v41  ;;  %v8522_v26 = vmul.f32 %v10748_v29, %v19807_v61  ;;  %v8523_v17 = vmul.f32 %v10748_v29, %v19808_v38  ;;  %v19809_v41 = vld [vmem:[#allocation399_spill] sm:$0xff]  ;;  %v19825_v61 = vld [vmem:[#allocation410_spill] sm:$0xff] }
 0x7c4   : > { %9008 = vst [vmem:[%s16912_s7 + $0xd0] sm:$0xff] %v8952_v14  ;;  %9009 = vst.msk [vmem:[%s16912_s7 + $0xd8] sm:$0xff] %vm7913_vm3, %v8953_v31  ;;  %v8869_v60 = vpop.permute.xlu1 %8868  ;;  %v8864_v12 = vpop.permute.xlu0 %8863  ;;  %v8740_v20 = vmul.f32 %v19806_v62, %v8516_v7  ;;  %v8741_v5 = vmul.f32 %v19806_v62, %v8517_v13  ;;  %v8520_v14 = vmul.f32 %v10746_v57, %v19809_v41  ;;  %v19810_v31 = vld [vmem:[#allocation400_spill] sm:$0xff] }
 0x7c5   : > { %v8958_v39 = vadd.f32 %v8869_v60, %v8734_v52  ;;  %v8959_v44 = vadd.f32 %v8869_v60, %v8735_v58  ;;  %v8956_v1 = vadd.f32 %v8864_v12, %v8732_v0  ;;  %v8957_v43 = vadd.f32 %v8864_v12, %v8733_v2  ;;  %v10752_v42 = vpop.eup %10751  ;;  %v19811_v58 = vld [vmem:[#allocation425_spill] sm:$0xff]  ;;  %v19812_v2 = vld [vmem:[#allocation426_spill] sm:$0xff]  ;;  %v19815_v60 = vld [vmem:[#allocation403_spill] sm:$0xff] }
 0x7c6   : > { %v8521_v8 = vmul.f32 %v10746_v57, %v19810_v31  ;;  %v10754_v52 = vpop.eup %10753  ;;  %v8746_v34 = vmul.f32 %v19811_v58, %v8522_v26  ;;  %v8747_v0 = vmul.f32 %v19811_v58, %v8523_v17  ;;  %v8744_v56 = vmul.f32 %v19812_v2, %v8520_v14  ;;  %v19826_v38 = vld [vmem:[#allocation376_spill] sm:$0xff] }
 0x7c7   : > { %9014 = vst [vmem:[%s16912_s7 + $0x100] sm:$0xff] %v8958_v39  ;;  %9015 = vst.msk [vmem:[%s16912_s7 + $0x108] sm:$0xff] %vm7913_vm3, %v8959_v44  ;;  %v8526_v37 = vmul.f32 %v10752_v42, %v19813_v6  ;;  %v8527_v36 = vmul.f32 %v10752_v42, %v19814_v9  ;;  %v8524_v12 = vmul.f32 %v10750_v18, %v19815_v60  ;;  %v19816_v39 = vld [vmem:[#allocation404_spill] sm:$0xff] }
 0x7c8   : > { %9012 = vst [vmem:[%s16912_s7 + $0xf0] sm:$0xff] %v8956_v1  ;;  %9013 = vst.msk [vmem:[%s16912_s7 + $0xf8] sm:$0xff] %vm7913_vm3, %v8957_v43  ;;  %v8879_v50 = vpop.permute.xlu1 %8878  ;;  %v8874_v27 = vpop.permute.xlu0 %8873  ;;  %v8745_v59 = vmul.f32 %v19812_v2, %v8521_v8  ;;  %v8525_v44 = vmul.f32 %v10750_v18, %v19816_v39  ;;  %v8528_v13 = vmul.f32 %v10754_v52, %v19821_v23 }
 0x7c9   : > { %v8962_v10 = vadd.f32 %v8879_v50, %v8738_v4  ;;  %v8963_v47 = vadd.f32 %v8879_v50, %v8739_v40  ;;  %v8960_v16 = vadd.f32 %v8874_v27, %v8736_v46  ;;  %v8961_v45 = vadd.f32 %v8874_v27, %v8737_v28  ;;  %v10756_v51 = vpop.eup %10755  ;;  %v19817_v40 = vld [vmem:[#allocation427_spill] sm:$0xff]  ;;  %v19818_v28 = vld [vmem:[#allocation428_spill] sm:$0xff] }
 0x7ca   : > { %v8750_v32 = vmul.f32 %v19817_v40, %v8526_v37  ;;  %v8751_v46 = vmul.f32 %v19817_v40, %v8527_v36  ;;  %v8748_v29 = vmul.f32 %v19818_v28, %v8524_v12  ;;  %v8749_v19 = vmul.f32 %v19818_v28, %v8525_v44  ;;  %v10758_v15 = vpop.eup %10757  ;;  %v19822_v50 = vld [vmem:[#allocation408_spill] sm:$0xff] }
 0x7cb   : > { %9018 = vst [vmem:[%s16912_s7 + $0x120] sm:$0xff] %v8962_v10  ;;  %9019 = vst.msk [vmem:[%s16912_s7 + $0x128] sm:$0xff] %vm7913_vm3, %v8963_v47  ;;  %v8530_v55 = vmul.f32 %v10756_v51, %v19819_v48  ;;  %v8531_v7 = vmul.f32 %v10756_v51, %v19820_v49  ;;  %v8529_v27 = vmul.f32 %v10754_v52, %v19822_v50 }
 0x7cc   : > { %9016 = vst [vmem:[%s16912_s7 + $0x110] sm:$0xff] %v8960_v16  ;;  %9017 = vst.msk [vmem:[%s16912_s7 + $0x118] sm:$0xff] %vm7913_vm3, %v8961_v45  ;;  %v8889_v54 = vpop.permute.xlu1 %8888  ;;  %v8884_v3 = vpop.permute.xlu0 %8883  ;;  %v8532_v26 = vmul.f32 %v10758_v15, %v19825_v61  ;;  %v8533_v17 = vmul.f32 %v10758_v15, %v19826_v38 }
 0x7cd   : > { %v8966_v30 = vadd.f32 %v8889_v54, %v8742_v22  ;;  %v8967_v63 = vadd.f32 %v8889_v54, %v8743_v11  ;;  %v8964_v35 = vadd.f32 %v8884_v3, %v8740_v20  ;;  %v8965_v24 = vadd.f32 %v8884_v3, %v8741_v5  ;;  %v19823_v22 = vld [vmem:[#allocation429_spill] sm:$0xff]  ;;  %v19824_v20 = vld [vmem:[#allocation430_spill] sm:$0xff] }
 0x7ce   : > { %v8754_v11 = vmul.f32 %v19823_v22, %v8530_v55  ;;  %v8755_v62 = vmul.f32 %v19823_v22, %v8531_v7  ;;  %v8752_v5 = vmul.f32 %v19824_v20, %v8528_v13  ;;  %v8753_v42 = vmul.f32 %v19824_v20, %v8529_v27 }
 0x7cf   : > { %9022 = vst [vmem:[%s16912_s7 + $0x140] sm:$0xff] %v8966_v30  ;;  %9023 = vst.msk [vmem:[%s16912_s7 + $0x148] sm:$0xff] %vm7913_vm3, %v8967_v63  ;;  %v8756_v30 = vmul.f32 %v16590_v21, %v8532_v26  ;;  %v8757_v63 = vmul.f32 %v16590_v21, %v8533_v17 }
 0x7d0   : > { %9020 = vst [vmem:[%s16912_s7 + $0x130] sm:$0xff] %v8964_v35  ;;  %9021 = vst.msk [vmem:[%s16912_s7 + $0x138] sm:$0xff] %vm7913_vm3, %v8965_v24  ;;  %v8899_v1 = vpop.permute.xlu1 %8898  ;;  %v8894_v43 = vpop.permute.xlu0 %8893 }
 0x7d1   : > { %v8970_v57 = vadd.f32 %v8899_v1, %v8746_v34  ;;  %v8971_v53 = vadd.f32 %v8899_v1, %v8747_v0  ;;  %v8968_v25 = vadd.f32 %v8894_v43, %v8744_v56  ;;  %v8969_v4 = vadd.f32 %v8894_v43, %v8745_v59 }
 0x7d3   : > { %9026 = vst [vmem:[%s16912_s7 + $0x160] sm:$0xff] %v8970_v57  ;;  %9027 = vst.msk [vmem:[%s16912_s7 + $0x168] sm:$0xff] %vm7913_vm3, %v8971_v53 }
 0x7d4   : > { %9024 = vst [vmem:[%s16912_s7 + $0x150] sm:$0xff] %v8968_v25  ;;  %9025 = vst.msk [vmem:[%s16912_s7 + $0x158] sm:$0xff] %vm7913_vm3, %v8969_v4  ;;  %v8909_v10 = vpop.permute.xlu1 %8908  ;;  %v8904_v47 = vpop.permute.xlu0 %8903 }
 0x7d5   : > { %v8974_v16 = vadd.f32 %v8909_v10, %v8750_v32  ;;  %v8975_v45 = vadd.f32 %v8909_v10, %v8751_v46  ;;  %v8972_v18 = vadd.f32 %v8904_v47, %v8748_v29  ;;  %v8973_v33 = vadd.f32 %v8904_v47, %v8749_v19 }
 0x7d7   : > { %9030 = vst [vmem:[%s16912_s7 + $0x180] sm:$0xff] %v8974_v16  ;;  %9031 = vst.msk [vmem:[%s16912_s7 + $0x188] sm:$0xff] %vm7913_vm3, %v8975_v45 }
 0x7d8   : > { %9028 = vst [vmem:[%s16912_s7 + $0x170] sm:$0xff] %v8972_v18  ;;  %9029 = vst.msk [vmem:[%s16912_s7 + $0x178] sm:$0xff] %vm7913_vm3, %v8973_v33  ;;  %v8919_v41 = vpop.permute.xlu1 %8918  ;;  %v8914_v14 = vpop.permute.xlu0 %8913 }
 0x7d9   : > { %v8978_v31 = vadd.f32 %v8919_v41, %v8754_v11  ;;  %v8979_v8 = vadd.f32 %v8919_v41, %v8755_v62  ;;  %v8976_v54 = vadd.f32 %v8914_v14, %v8752_v5  ;;  %v8977_v3 = vadd.f32 %v8914_v14, %v8753_v42 }
 0x7db   : > { %9034 = vst [vmem:[%s16912_s7 + $0x1a0] sm:$0xff] %v8978_v31  ;;  %9035 = vst.msk [vmem:[%s16912_s7 + $0x1a8] sm:$0xff] %vm7913_vm3, %v8979_v8 }
 0x7dc   : > { %9032 = vst [vmem:[%s16912_s7 + $0x190] sm:$0xff] %v8976_v54  ;;  %9033 = vst.msk [vmem:[%s16912_s7 + $0x198] sm:$0xff] %vm7913_vm3, %v8977_v3  ;;  %v8924_v35 = vpop.permute.xlu0 %8923 }
 0x7dd   : > { %v8980_v21 = vadd.f32 %v8924_v35, %v8756_v30  ;;  %v8981_v24 = vadd.f32 %v8924_v35, %v8757_v63 }
 0x7df   : > { %9036 = vst [vmem:[%s16912_s7 + $0x1b0] sm:$0xff] %v8980_v21  ;;  %9037 = vst.msk [vmem:[%s16912_s7 + $0x1b8] sm:$0xff] %vm7913_vm3, %v8981_v24 }
 0x7e0 PF: > { %s17_s24 = sadd.s32 1, %s10765_s24  }
 0x7e1   : > { %p14_p6 = scmp.ge.s32.totalorder %s17_s24, 5  }
 0x7e3   :  { %16 = sbr.rel (!%p14_p6) target bundleno = 1 (0x1), region = 91 }

</bundles_post_ra>
